<compile_context>
chip_gen: v5e
topology: v5e:2x2
jax: 0.10.0
libtpu: 0.0.40
codegen_flags: <defaults>
</compile_context>

<pallas_src>
import math
from itertools import combinations_with_replacement

import numpy as np
import jax
import jax.numpy as jnp
from jax.experimental import pallas as pl
from jax.experimental.pallas import tpu as pltpu

# ----------------------------- hyperparameters ---------------------------------
SPECIES = [1, 8]            # species list -> S = 2
S = len(SPECIES)
N_MAX = 4                   # small instance of n_max (module default 8)
L_MAX = 4                   # module default
CUTOFF = 5.0

PAIR_IDS = list(combinations_with_replacement(range(S), 2))   # [(0,0),(0,1),(1,1)]
P = len(PAIR_IDS)
L1 = L_MAX + 1
M_TOT = sum(2 * l + 1 for l in range(L1))                     # 25
M_OFF = [sum(2 * k + 1 for k in range(l)) for l in range(L1)]
IU_ROW, IU_COL = np.triu_indices(N_MAX)                       # upper-tri (n1 <= n2) pairs
N_UP = len(IU_ROW)                                            # 10
DESC_DIM = P * N_UP * L1                                      # 150
SQRT2 = math.sqrt(2.0)

# ------------------------------ kernel tiling -----------------------------------
TD = 8            # destination atoms (sublanes) per grid step -- kept small (review)
CHUNK = 256       # source atoms (lanes) per inner grid step (sweepable 256-512)


def _ceil_to(x, m):
    return ((x + m - 1) // m) * m


ACC_W = _ceil_to(S * N_MAX * M_TOT, 128)    # 200 -> 256 density-coefficient lanes
PROD_W = _ceil_to(P * N_UP * M_TOT, 128)    # 750 -> 768 product lanes
OUT_W = _ceil_to(DESC_DIM, 128)             # 150 -> 256 output lanes (lane-dense store)

# -------------- deterministic constants (mirror SoapLayer.__init__) -------------
def _orthonormalization_matrix(n_max):
    Smat = np.zeros((n_max, n_max), dtype=np.float64)
    for a in range(1, n_max + 1):
        for b in range(1, n_max + 1):
            Smat[a - 1, b - 1] = np.sqrt((5 + 2 * a) * (5 + 2 * b)) / (5 + a + b)
    evals, evecs = np.linalg.eigh(Smat)
    return (evecs @ np.diag(evals ** -0.5) @ evecs.T).astype(np.float32)


W_NP = _orthonormalization_matrix(N_MAX)                                   # (n_max, n_max)
_ALPHA = np.arange(1, N_MAX + 1, dtype=np.float64)
NORM_FACTOR = np.sqrt(CUTOFF ** (2 * _ALPHA + 5) / (2 * _ALPHA + 5)).astype(np.float32)
PS_NORM = np.array([math.pi * math.sqrt(8.0 / (2 * l + 1)) for l in range(L1)], np.float32)
FAC_N = np.where(np.triu(np.ones((N_MAX, N_MAX)), k=1) > 0, SQRT2, 1.0).astype(np.float32)

# ------- constant gather / selection matrices for the MXU power-spectrum stage ---
# c lane layout:  col_c(s, n, m) = (s*N_MAX + n)*M_TOT + m           (width ACC_W)
# product layout: q = (pair_idx*N_UP + iu_idx),  lane = q*M_TOT + m  (width PROD_W)
# output layout (module order): oc = (pair_idx*L1 + l)*N_UP + iu_idx (width OUT_W)
COMBOS = []
for _p_idx, (_s1, _s2) in enumerate(PAIR_IDS):
    for _iu_idx, (_n1, _n2) in enumerate(zip(IU_ROW, IU_COL)):
        COMBOS.append((_p_idx, _iu_idx, _s1, _s2, int(_n1), int(_n2)))

G1_NP = np.zeros((ACC_W, PROD_W), np.float32)
G2_NP = np.zeros((ACC_W, PROD_W), np.float32)
SEL_NP = np.zeros((PROD_W, OUT_W), np.float32)
for _q, (_p_idx, _iu_idx, _s1, _s2, _n1, _n2) in enumerate(COMBOS):
    _f = (SQRT2 if _s1 != _s2 else 1.0) * (SQRT2 if _n1 != _n2 else 1.0)
    for _m in range(M_TOT):
        G1_NP[(_s1 * N_MAX + _n1) * M_TOT + _m, _q * M_TOT + _m] = 1.0
        G2_NP[(_s2 * N_MAX + _n2) * M_TOT + _m, _q * M_TOT + _m] = 1.0
    for _l in range(L1):
        _oc = (_p_idx * L1 + _l) * N_UP + _iu_idx
        for _m in range(M_OFF[_l], M_OFF[_l] + 2 * _l + 1):
            SEL_NP[_q * M_TOT + _m, _oc] = float(PS_NORM[_l]) * _f


# ----------------------- spherical harmonics (lazy thunks) -----------------------
def _sh_thunks(x, y, z):
    """Real orthonormal spherical harmonics * 4*pi as lazily evaluated thunks.

    Thunks keep only one harmonic materialized at a time inside the kernel's
    m-outer loop (small live vreg set); shared monomials are computed once.
    The SOAP power spectrum is invariant to the orthogonal m-basis choice within
    each l, so e3nn's exact m ordering/signs need not be reproduced.
    """
    pi = math.pi
    x2, y2, z2 = x * x, y * y, z * z
    xy, yz, xz = x * y, y * z, x * z
    thunks = [lambda: 2.0 * math.sqrt(pi)]                                  # l = 0 (scalar)
    if L_MAX >= 1:
        c1 = 2.0 * math.sqrt(3.0 * pi)
        thunks += [lambda: c1 * y, lambda: c1 * z, lambda: c1 * x]          # l = 1
    if L_MAX >= 2:
        c2a = 2.0 * math.sqrt(15.0 * pi)
        c2b = math.sqrt(5.0 * pi)
        c2c = math.sqrt(15.0 * pi)
        thunks += [lambda: c2a * xy,
                   lambda: c2a * yz,
                   lambda: c2b * (2.0 * z2 - x2 - y2),
                   lambda: c2a * xz,
                   lambda: c2c * (x2 - y2)]                                 # l = 2
    if L_MAX >= 3:
        c3a = math.sqrt(35.0 * pi / 2.0)
        c3b = 2.0 * math.sqrt(105.0 * pi)
        c3c = math.sqrt(21.0 * pi / 2.0)
        c3d = math.sqrt(7.0 * pi)
        c3e = math.sqrt(105.0 * pi)
        thunks += [lambda: c3a * y * (3.0 * x2 - y2),
                   lambda: c3b * xy * z,
                   lambda: c3c * y * (4.0 * z2 - x2 - y2),
                   lambda: c3d * z * (2.0 * z2 - 3.0 * x2 - 3.0 * y2),
                   lambda: c3c * x * (4.0 * z2 - x2 - y2),
                   lambda: c3e * z * (x2 - y2),
                   lambda: c3a * x * (x2 - 3.0 * y2)]                       # l = 3
    if L_MAX >= 4:
        c4a = 3.0 * math.sqrt(35.0 * pi)
        c4b = 3.0 * math.sqrt(35.0 * pi / 2.0)
        c4c = 3.0 * math.sqrt(5.0 * pi)
        c4d = 3.0 * math.sqrt(5.0 * pi / 2.0)
        c4e = 0.75 * math.sqrt(pi)
        c4f = 1.5 * math.sqrt(5.0 * pi)
        c4g = 0.75 * math.sqrt(35.0 * pi)
        thunks += [lambda: c4a * xy * (x2 - y2),
                   lambda: c4b * yz * (3.0 * x2 - y2),
                   lambda: c4c * xy * (6.0 * z2 - x2 - y2),
                   lambda: c4d * yz * (4.0 * z2 - 3.0 * x2 - 3.0 * y2),
                   lambda: c4e * (3.0 * (x2 + y2) * (x2 + y2)
                                  + 8.0 * z2 * z2 - 24.0 * z2 * (x2 + y2)),
                   lambda: c4d * xz * (4.0 * z2 - 3.0 * x2 - 3.0 * y2),
                   lambda: c4f * (x2 - y2) * (6.0 * z2 - x2 - y2),
                   lambda: c4b * xz * (x2 - 3.0 * y2),
                   lambda: c4g * (x2 * x2 - 6.0 * x2 * y2 + y2 * y2)]       # l = 4
    return thunks


# --------------------------------- kernel ---------------------------------------
def _edge_weights(dst_ref, src_ref):
    """Geometry + radial basis for one (dst tile, source chunk).

    Returns only the S*N_MAX edge-weight arrays h[s*N_MAX+n] = within*onehot_s*g_n
    and the unit-direction components; d/drc/terms/g/within are all dead before
    the hot m-loop starts (review item: end their live ranges early).
    """
    px = dst_ref[:, 0:1]; py = dst_ref[:, 1:2]; pz = dst_ref[:, 2:3]
    pb = dst_ref[:, 3:4]; pm = dst_ref[:, 4:5]
    qx = src_ref[0:1, :]; qy = src_ref[1:2, :]; qz = src_ref[2:3, :]
    qb = src_ref[3:4, :]

    dx = px - qx; dy = py - qy; dz = pz - qz                 # dvec = pos[dst] - pos[src]
    d2 = dx * dx + dy * dy + dz * dz                         # (TD, CHUNK)
    inv_d = jax.lax.rsqrt(d2 + 1e-18)                        # EUP; finite on self edges
    d = d2 * inv_d                                           # == sqrt(d2); exactly 0 at d2 = 0
    ux = dx * inv_d; uy = dy * inv_d; uz = dz * inv_d

    # edge mask == radius_graph(loop=True): same molecule, inside cutoff, active dst.
    # TODO(synk): verify e3nn's handling of zero-length (self) edges matches the
    # safe-normalized-direction convention used here (l >= 1 harmonics vanish at d = 0).
    within = jnp.where((d < CUTOFF) & (pb == qb), 1.0, 0.0) * pm

    # radial basis g_n(d), orthonormalized with W (scalar-unrolled, no array consts).
    drc = jnp.maximum(CUTOFF - d, 0.0)
    t = drc * drc * drc                                      # (cutoff-d)^(alpha+2), alpha = 1
    terms = []
    for n in range(N_MAX):
        terms.append(t * float(1.0 / NORM_FACTOR[n]))
        t = t * drc
    g = []
    for p in range(N_MAX):
        gp = terms[0] * float(W_NP[p, 0])
        for n in range(1, N_MAX):
            gp = gp + terms[n] * float(W_NP[p, n])
        g.append(gp)

    h = []
    for s in range(S):
        e_s = within * src_ref[4 + s:5 + s, :]               # species-s edge weight
        for n in range(N_MAX):
            h.append(e_s * g[n])                             # (TD, CHUNK) each
    return h, ux, uy, uz


def _soap_kernel(dst_ref, src_ref, g1_ref, g2_ref, sel_ref, out_ref, c_ref):
    # dst_ref : (TD, 8)            [x, y, z, batch_id, active, 0, 0, 0]
    # src_ref : (8, CHUNK)         [x, y, z, batch_id, oh_s0, oh_s1, 0, 0] (one src chunk)
    # g1/g2   : (ACC_W, PROD_W)    constant 0/1 gather matrices
    # sel     : (PROD_W, OUT_W)    constant m->l / sqrt2 / ps_norm selection matrix
    # out_ref : (TD, OUT_W)        lane-dense padded descriptor tile
    # c_ref   : (TD, ACC_W)        VMEM scratch: density coefficients, accumulated over k
    k = pl.program_id(1)

    @pl.when(k == 0)
    def _init():
        c_ref[...] = jnp.zeros_like(c_ref)

    h, ux, uy, uz = _edge_weights(dst_ref, src_ref)

    # Density coefficients: m-outermost loop, one spherical harmonic live at a
    # time.  One-hot lane-mask select-accumulate keeps the per-chunk result
    # lane-dense on the VPU (no narrow concatenates / cross-lane relayouts).
    lane = jax.lax.broadcasted_iota(jnp.int32, (TD, ACC_W), 1)
    acc = jnp.zeros((TD, ACC_W), jnp.float32)
    for m, thunk in enumerate(_sh_thunks(ux, uy, uz)):
        ym = thunk()                                         # scalar (l=0) or (TD, CHUNK)
        upd = None
        for sn in range(S * N_MAX):
            r = jnp.sum(h[sn] * ym, axis=1, keepdims=True)   # XLU lane reduction
            w = jnp.where(lane == sn * M_TOT + m, r, 0.0)
            upd = w if upd is None else upd + w
        acc = acc + upd
    c_ref[...] += acc

    # Power spectrum once all source chunks have been accumulated: gather the
    # (s1,n1)/(s2,n2) coefficient pairs, multiply, and apply the m->l segmented
    # sums plus ps_norm / sqrt2 factors on the otherwise-idle MXU.  The store is
    # a single lane-dense (TD, OUT_W) write.
    @pl.when(k == pl.num_programs(1) - 1)
    def _finalize():
        c = c_ref[...]
        a = jnp.dot(c, g1_ref[...], preferred_element_type=jnp.float32)
        b = jnp.dot(c, g2_ref[...], preferred_element_type=jnp.float32)
        out_ref[...] = jnp.dot(a * b, sel_ref[...], preferred_element_type=jnp.float32)


# --------------------------------- wrapper --------------------------------------
@jax.jit
def soap_forward(pos, Z):
    B, N, _ = pos.shape
    BN = B * N

    # destination (row) padding: multiple of TD and an even number of grid steps
    # so the "parallel" axis splits evenly across v7x's two TensorCores.
    bn_dst = max(_ceil_to(BN, TD), 2 * TD)
    if (bn_dst // TD) % 2:
        bn_dst += TD
    # source (lane) padding: multiple of the per-step source chunk.
    bn_src = _ceil_to(BN, CHUNK)

    posf = pos.reshape(BN, 3).astype(jnp.float32)
    Zf = Z.reshape(BN)
    maskf = (Zf != 0).astype(jnp.float32)                    # atom_mask = Z != 0
    bidf = jnp.repeat(jnp.arange(B, dtype=jnp.float32), N)   # molecule / batch id
    species_arr = jnp.asarray(SPECIES, dtype=Zf.dtype)
    ohf = ((Zf[:, None] == species_arr[None, :]) & (Zf != 0)[:, None]).astype(jnp.float32)

    # destination attributes (rows); padded rows get mask 0 -> zero descriptors.
    dst_attr = jnp.concatenate(
        [posf, bidf[:, None], maskf[:, None], jnp.zeros((BN, 3), jnp.float32)], axis=1)
    pad_d = bn_dst - BN
    if pad_d:
        dst_attr = jnp.pad(dst_attr, ((0, pad_d), (0, 0)))

    # source attributes (columns); padded columns get batch -1 and zero one-hots.
    pad_s = bn_src - BN
    pos_s = jnp.pad(posf, ((0, pad_s), (0, 0)))
    bid_s = jnp.pad(bidf, (0, pad_s), constant_values=-1.0)
    oh_s = jnp.pad(ohf, ((0, pad_s), (0, 0)))
    src_attr = jnp.concatenate(
        [pos_s.T, bid_s[None, :], oh_s.T, jnp.zeros((2, bn_src), jnp.float32)], axis=0)

    grid = (bn_dst // TD, bn_src // CHUNK)
    out = pl.pallas_call(
        _soap_kernel,
        out_shape=jax.ShapeDtypeStruct((bn_dst, OUT_W), jnp.float32),
        grid=grid,
        in_specs=[
            pl.BlockSpec((TD, 8), lambda i, k: (i, 0)),           # dst tile
            pl.BlockSpec((8, CHUNK), lambda i, k: (0, k)),        # source chunk (pipelined)
            pl.BlockSpec((ACC_W, PROD_W), lambda i, k: (0, 0)),   # constant gather (left)
            pl.BlockSpec((ACC_W, PROD_W), lambda i, k: (0, 0)),   # constant gather (right)
            pl.BlockSpec((PROD_W, OUT_W), lambda i, k: (0, 0)),   # constant m->l selection
        ],
        out_specs=pl.BlockSpec((TD, OUT_W), lambda i, k: (i, 0)),
        scratch_shapes=[pltpu.VMEM((TD, ACC_W), jnp.float32)],    # c accumulator
        compiler_params=pltpu.CompilerParams(
            dimension_semantics=("parallel", "arbitrary"),
            # v7x-safe ceiling (64 MiB physical per TC); actual use here is ~5 MiB.
            vmem_limit_bytes=48 * 1024 * 1024),
    )(dst_attr, src_attr,
      jnp.asarray(G1_NP), jnp.asarray(G2_NP), jnp.asarray(SEL_NP))

    return out[:BN, :DESC_DIM].reshape(B, N, DESC_DIM)


# --------------------------- pure-JAX reference ----------------------------------
def _sph_harm_times_4pi(x, y, z):
    vals = []
    for t in _sh_thunks(x, y, z):
        v = t()
        if isinstance(v, float):
            v = jnp.full_like(x, v)
        vals.append(v)
    return vals


def _soap_ref_single(pos_b, mask_b, oh_b):
    diff = pos_b[:, None, :] - pos_b[None, :, :]             # pos[dst] - pos[src]
    d = jnp.sqrt(jnp.sum(diff * diff, axis=-1))
    within = (d < CUTOFF).astype(jnp.float32) * mask_b[:, None]
    inv_d = 1.0 / jnp.maximum(d, 1e-12)
    ux, uy, uz = diff[..., 0] * inv_d, diff[..., 1] * inv_d, diff[..., 2] * inv_d
    y = jnp.stack(_sph_harm_times_4pi(ux, uy, uz), axis=-1)  # (N, N, M_TOT)
    drc = jnp.maximum(CUTOFF - d, 0.0)
    powers = np.arange(1, N_MAX + 1, dtype=np.float32) + 2.0
    basis = (drc[..., None] ** powers) / NORM_FACTOR
    g = basis @ W_NP.T
    c = jnp.einsum('ij,sj,ijn,ijm->isnm', within, oh_b, g, y, precision='highest')
    blocks = []
    for s1, s2 in PAIR_IDS:
        for l in range(L1):
            mo, nm = M_OFF[l], 2 * l + 1
            blk = float(PS_NORM[l]) * jnp.einsum(
                'inm,ipm->inp', c[:, s1, :, mo:mo + nm], c[:, s2, :, mo:mo + nm],
                precision='highest')
            if s1 != s2:
                blk = blk * SQRT2
            blk = blk * FAC_N
            blocks.append(blk[:, IU_ROW, IU_COL])
    return jnp.concatenate(blocks, axis=-1)


def soap_reference(pos, Z):
    mask = Z != 0
    species_arr = jnp.asarray(SPECIES, dtype=Z.dtype)
    ohT = ((Z[:, None, :] == species_arr[None, :, None]) & mask[:, None, :]).astype(jnp.float32)
    return jax.vmap(_soap_ref_single)(pos.astype(jnp.float32), mask.astype(jnp.float32), ohT)


if __name__ == "__main__":
    key = jax.random.PRNGKey(0)
    B, N = 2, 8
    pos = jax.random.uniform(key, (B, N, 3), minval=0.0, maxval=4.0, dtype=jnp.float32)
    Z = jnp.array([[1, 8, 1, 8, 1, 0, 8, 0],
                   [8, 1, 8, 0, 1, 1, 8, 8]], dtype=jnp.int32)   # 0 = masked (padding) atom

    out = jax.block_until_ready(soap_forward(pos, Z))
    assert out.shape == (B, N, DESC_DIM), out.shape
    assert bool(jnp.all(jnp.isfinite(out)))

    ref = jax.block_until_ready(soap_reference(pos, Z))
    err = float(jnp.max(jnp.abs(out - ref)))
    scale = float(jnp.max(jnp.abs(ref)))
    # Tightened 2.5x vs the previous rev; kept with headroom for the MXU's f32
    # multi-pass matmul rounding in the power-spectrum assembly stage.
    assert err <= 2e-2 * scale + 1e-5, (err, scale)

    print("KERNEL_OK")
</pallas_src>

<mosaic_0001>
module attributes {stable_mosaic.version = 11 : i64} {
  func.func @_soap_kernel(%arg0: i32, %arg1: i32, %arg2: memref<8x8xf32, #tpu.memory_space<vmem>>, %arg3: memref<8x256xf32, #tpu.memory_space<vmem>>, %arg4: memref<256x768xf32, #tpu.memory_space<vmem>>, %arg5: memref<256x768xf32, #tpu.memory_space<vmem>>, %arg6: memref<768x256xf32, #tpu.memory_space<vmem>>, %arg7: memref<8x256xf32, #tpu.memory_space<vmem>>, %arg8: memref<8x256xf32, #tpu.memory_space<vmem>>) attributes {dimension_semantics = [#tpu.dimension_semantics<parallel>, #tpu.dimension_semantics<arbitrary>], iteration_bounds = array<i64: 2, 1>, scalar_prefetch = 0 : i64, scratch_operands = 1 : i64, tpu.core_type = #tpu.core_type<tc>, window_params = [{transform_indices = @transform_0, window_bounds = array<i64: 8, 8>}, {transform_indices = @transform_1, window_bounds = array<i64: 8, 256>}, {pipeline_mode = #tpu.pipeline_mode<synchronous>, transform_indices = @transform_2, window_bounds = array<i64: 256, 768>}, {pipeline_mode = #tpu.pipeline_mode<synchronous>, transform_indices = @transform_3, window_bounds = array<i64: 256, 768>}, {pipeline_mode = #tpu.pipeline_mode<synchronous>, transform_indices = @transform_4, window_bounds = array<i64: 768, 256>}, {transform_indices = @transform_5, window_bounds = array<i64: 8, 256>}]} {
    %c0_i32 = arith.constant 0 : i32
    %0 = arith.cmpi eq, %arg1, %c0_i32 : i32
    %1 = arith.extui %0 : i1 to i32
    %c0_i32_0 = arith.constant 0 : i32
    %2 = arith.cmpi ne, %1, %c0_i32_0 : i32
    scf.if %2 {
      %cst_504 = arith.constant 0.000000e+00 : f32
      %2284 = vector.broadcast %cst_504 : f32 to vector<8x256xf32>
      %c0_505 = arith.constant 0 : index
      %c0_506 = arith.constant 0 : index
      %2285 = vector.load %arg8[%c0_505, %c0_506] : memref<8x256xf32, #tpu.memory_space<vmem>>, vector<8x256xf32>
      tpu.vector_store %arg8[%c0_505, %c0_506], %2284 {strides = array<i32>} : memref<8x256xf32, #tpu.memory_space<vmem>>, vector<8x256xf32>,
    } else {
    }
    %c0 = arith.constant 0 : index
    %c0_1 = arith.constant 0 : index
    %3 = vector.load %arg2[%c0, %c0_1] : memref<8x8xf32, #tpu.memory_space<vmem>>, vector<8x1xf32>
    %c0_2 = arith.constant 0 : index
    %c1 = arith.constant 1 : index
    %4 = vector.load %arg2[%c0_2, %c1] : memref<8x8xf32, #tpu.memory_space<vmem>>, vector<8x1xf32>
    %c0_3 = arith.constant 0 : index
    %c2 = arith.constant 2 : index
    %5 = vector.load %arg2[%c0_3, %c2] : memref<8x8xf32, #tpu.memory_space<vmem>>, vector<8x1xf32>
    %c0_4 = arith.constant 0 : index
    %c3 = arith.constant 3 : index
    %6 = vector.load %arg2[%c0_4, %c3] : memref<8x8xf32, #tpu.memory_space<vmem>>, vector<8x1xf32>
    %c0_5 = arith.constant 0 : index
    %c4 = arith.constant 4 : index
    %7 = vector.load %arg2[%c0_5, %c4] : memref<8x8xf32, #tpu.memory_space<vmem>>, vector<8x1xf32>
    %c0_6 = arith.constant 0 : index
    %c0_7 = arith.constant 0 : index
    %8 = vector.load %arg3[%c0_6, %c0_7] : memref<8x256xf32, #tpu.memory_space<vmem>>, vector<1x256xf32>
    %c1_8 = arith.constant 1 : index
    %c0_9 = arith.constant 0 : index
    %9 = vector.load %arg3[%c1_8, %c0_9] : memref<8x256xf32, #tpu.memory_space<vmem>>, vector<1x256xf32>
    %c2_10 = arith.constant 2 : index
    %c0_11 = arith.constant 0 : index
    %10 = vector.load %arg3[%c2_10, %c0_11] : memref<8x256xf32, #tpu.memory_space<vmem>>, vector<1x256xf32>
    %c3_12 = arith.constant 3 : index
    %c0_13 = arith.constant 0 : index
    %11 = vector.load %arg3[%c3_12, %c0_13] : memref<8x256xf32, #tpu.memory_space<vmem>>, vector<1x256xf32>
    %12 = vector.broadcast %3 : vector<8x1xf32> to vector<8x256xf32>
    %13 = vector.broadcast %8 : vector<1x256xf32> to vector<8x256xf32>
    %14 = arith.subf %12, %13 : vector<8x256xf32>
    %15 = vector.broadcast %4 : vector<8x1xf32> to vector<8x256xf32>
    %16 = vector.broadcast %9 : vector<1x256xf32> to vector<8x256xf32>
    %17 = arith.subf %15, %16 : vector<8x256xf32>
    %18 = vector.broadcast %5 : vector<8x1xf32> to vector<8x256xf32>
    %19 = vector.broadcast %10 : vector<1x256xf32> to vector<8x256xf32>
    %20 = arith.subf %18, %19 : vector<8x256xf32>
    %21 = arith.mulf %14, %14 : vector<8x256xf32>
    %22 = arith.mulf %17, %17 : vector<8x256xf32>
    %23 = arith.addf %21, %22 : vector<8x256xf32>
    %24 = arith.mulf %20, %20 : vector<8x256xf32>
    %25 = arith.addf %23, %24 : vector<8x256xf32>
    %cst = arith.constant 1.000000e-18 : f32
    %26 = vector.broadcast %cst : f32 to vector<8x256xf32>
    %27 = arith.addf %25, %26 : vector<8x256xf32>
    %28 = math.rsqrt %27 : vector<8x256xf32>
    %29 = arith.mulf %25, %28 : vector<8x256xf32>
    %30 = arith.mulf %14, %28 : vector<8x256xf32>
    %31 = arith.mulf %17, %28 : vector<8x256xf32>
    %32 = arith.mulf %20, %28 : vector<8x256xf32>
    %cst_14 = arith.constant 5.000000e+00 : f32
    %33 = vector.broadcast %cst_14 : f32 to vector<8x256xf32>
    %34 = arith.cmpf olt, %29, %33 : vector<8x256xf32>
    %35 = vector.broadcast %6 : vector<8x1xf32> to vector<8x256xf32>
    %36 = vector.broadcast %11 : vector<1x256xf32> to vector<8x256xf32>
    %37 = arith.cmpf oeq, %35, %36 : vector<8x256xf32>
    %38 = arith.andi %34, %37 : vector<8x256xi1>
    %cst_15 = arith.constant 1.000000e+00 : f32
    %cst_16 = arith.constant 0.000000e+00 : f32
    %39 = vector.broadcast %cst_15 : f32 to vector<8x256xf32>
    %40 = vector.broadcast %cst_16 : f32 to vector<8x256xf32>
    %41 = arith.select %38, %39, %40 : vector<8x256xi1>, vector<8x256xf32>
    %42 = vector.broadcast %7 : vector<8x1xf32> to vector<8x256xf32>
    %43 = arith.mulf %41, %42 : vector<8x256xf32>
    %cst_17 = arith.constant 5.000000e+00 : f32
    %44 = vector.broadcast %cst_17 : f32 to vector<8x256xf32>
    %45 = arith.subf %44, %29 : vector<8x256xf32>
    %cst_18 = arith.constant 0.000000e+00 : f32
    %46 = vector.broadcast %cst_18 : f32 to vector<8x256xf32>
    %47 = arith.maximumf %45, %46 : vector<8x256xf32>
    %48 = arith.mulf %47, %47 : vector<8x256xf32>
    %49 = arith.mulf %48, %47 : vector<8x256xf32>
    %cst_19 = arith.constant 0.00946572795 : f32
    %50 = vector.broadcast %cst_19 : f32 to vector<8x256xf32>
    %51 = arith.mulf %49, %50 : vector<8x256xf32>
    %52 = arith.mulf %49, %47 : vector<8x256xf32>
    %cst_20 = arith.constant 0.00214662519 : f32
    %53 = vector.broadcast %cst_20 : f32 to vector<8x256xf32>
    %54 = arith.mulf %52, %53 : vector<8x256xf32>
    %55 = arith.mulf %52, %47 : vector<8x256xf32>
    %cst_21 = arith.constant 4.74636705E-4 : f32
    %56 = vector.broadcast %cst_21 : f32 to vector<8x256xf32>
    %57 = arith.mulf %55, %56 : vector<8x256xf32>
    %58 = arith.mulf %55, %47 : vector<8x256xf32>
    %cst_22 = arith.constant 1.03196893E-4 : f32
    %59 = vector.broadcast %cst_22 : f32 to vector<8x256xf32>
    %60 = arith.mulf %58, %59 : vector<8x256xf32>
    %cst_23 = arith.constant 31.6194744 : f32
    %61 = vector.broadcast %cst_23 : f32 to vector<8x256xf32>
    %62 = arith.mulf %51, %61 : vector<8x256xf32>
    %cst_24 = arith.constant -82.8996048 : f32
    %63 = vector.broadcast %cst_24 : f32 to vector<8x256xf32>
    %64 = arith.mulf %54, %63 : vector<8x256xf32>
    %65 = arith.addf %62, %64 : vector<8x256xf32>
    %cst_25 = arith.constant 76.8760681 : f32
    %66 = vector.broadcast %cst_25 : f32 to vector<8x256xf32>
    %67 = arith.mulf %57, %66 : vector<8x256xf32>
    %68 = arith.addf %65, %67 : vector<8x256xf32>
    %cst_26 = arith.constant -24.8582897 : f32
    %69 = vector.broadcast %cst_26 : f32 to vector<8x256xf32>
    %70 = arith.mulf %60, %69 : vector<8x256xf32>
    %71 = arith.addf %68, %70 : vector<8x256xf32>
    %cst_27 = arith.constant -82.8996048 : f32
    %72 = vector.broadcast %cst_27 : f32 to vector<8x256xf32>
    %73 = arith.mulf %51, %72 : vector<8x256xf32>
    %cst_28 = arith.constant 278.763611 : f32
    %74 = vector.broadcast %cst_28 : f32 to vector<8x256xf32>
    %75 = arith.mulf %54, %74 : vector<8x256xf32>
    %76 = arith.addf %73, %75 : vector<8x256xf32>
    %cst_29 = arith.constant -309.813599 : f32
    %77 = vector.broadcast %cst_29 : f32 to vector<8x256xf32>
    %78 = arith.mulf %57, %77 : vector<8x256xf32>
    %79 = arith.addf %76, %78 : vector<8x256xf32>
    %cst_30 = arith.constant 114.166679 : f32
    %80 = vector.broadcast %cst_30 : f32 to vector<8x256xf32>
    %81 = arith.mulf %60, %80 : vector<8x256xf32>
    %82 = arith.addf %79, %81 : vector<8x256xf32>
    %cst_31 = arith.constant 76.8760681 : f32
    %83 = vector.broadcast %cst_31 : f32 to vector<8x256xf32>
    %84 = arith.mulf %51, %83 : vector<8x256xf32>
    %cst_32 = arith.constant -309.813599 : f32
    %85 = vector.broadcast %cst_32 : f32 to vector<8x256xf32>
    %86 = arith.mulf %54, %85 : vector<8x256xf32>
    %87 = arith.addf %84, %86 : vector<8x256xf32>
    %cst_33 = arith.constant 401.668976 : f32
    %88 = vector.broadcast %cst_33 : f32 to vector<8x256xf32>
    %89 = arith.mulf %57, %88 : vector<8x256xf32>
    %90 = arith.addf %87, %89 : vector<8x256xf32>
    %cst_34 = arith.constant -168.426926 : f32
    %91 = vector.broadcast %cst_34 : f32 to vector<8x256xf32>
    %92 = arith.mulf %60, %91 : vector<8x256xf32>
    %93 = arith.addf %90, %92 : vector<8x256xf32>
    %cst_35 = arith.constant -24.8582897 : f32
    %94 = vector.broadcast %cst_35 : f32 to vector<8x256xf32>
    %95 = arith.mulf %51, %94 : vector<8x256xf32>
    %cst_36 = arith.constant 114.166679 : f32
    %96 = vector.broadcast %cst_36 : f32 to vector<8x256xf32>
    %97 = arith.mulf %54, %96 : vector<8x256xf32>
    %98 = arith.addf %95, %97 : vector<8x256xf32>
    %cst_37 = arith.constant -168.426926 : f32
    %99 = vector.broadcast %cst_37 : f32 to vector<8x256xf32>
    %100 = arith.mulf %57, %99 : vector<8x256xf32>
    %101 = arith.addf %98, %100 : vector<8x256xf32>
    %cst_38 = arith.constant 79.877449 : f32
    %102 = vector.broadcast %cst_38 : f32 to vector<8x256xf32>
    %103 = arith.mulf %60, %102 : vector<8x256xf32>
    %104 = arith.addf %101, %103 : vector<8x256xf32>
    %c4_39 = arith.constant 4 : index
    %c0_40 = arith.constant 0 : index
    %105 = vector.load %arg3[%c4_39, %c0_40] : memref<8x256xf32, #tpu.memory_space<vmem>>, vector<1x256xf32>
    %106 = vector.broadcast %105 : vector<1x256xf32> to vector<8x256xf32>
    %107 = arith.mulf %43, %106 : vector<8x256xf32>
    %108 = arith.mulf %107, %71 : vector<8x256xf32>
    %109 = arith.mulf %107, %82 : vector<8x256xf32>
    %110 = arith.mulf %107, %93 : vector<8x256xf32>
    %111 = arith.mulf %107, %104 : vector<8x256xf32>
    %c5 = arith.constant 5 : index
    %c0_41 = arith.constant 0 : index
    %112 = vector.load %arg3[%c5, %c0_41] : memref<8x256xf32, #tpu.memory_space<vmem>>, vector<1x256xf32>
    %113 = vector.broadcast %112 : vector<1x256xf32> to vector<8x256xf32>
    %114 = arith.mulf %43, %113 : vector<8x256xf32>
    %115 = arith.mulf %114, %71 : vector<8x256xf32>
    %116 = arith.mulf %114, %82 : vector<8x256xf32>
    %117 = arith.mulf %114, %93 : vector<8x256xf32>
    %118 = arith.mulf %114, %104 : vector<8x256xf32>
    %119 = tpu.iota {dimensions = array<i32: 1>} : vector<8x256xi32>
    %cst_42 = arith.constant 0.000000e+00 : f32
    %120 = vector.broadcast %cst_42 : f32 to vector<8x256xf32>
    %121 = arith.mulf %30, %30 : vector<8x256xf32>
    %122 = arith.mulf %31, %31 : vector<8x256xf32>
    %123 = arith.mulf %32, %32 : vector<8x256xf32>
    %124 = arith.mulf %30, %31 : vector<8x256xf32>
    %125 = arith.mulf %31, %32 : vector<8x256xf32>
    %126 = arith.mulf %30, %32 : vector<8x256xf32>
    %cst_43 = arith.constant 3.54490781 : f32
    %127 = vector.broadcast %cst_43 : f32 to vector<8x256xf32>
    %128 = arith.mulf %108, %127 : vector<8x256xf32>
    %cst_44 = arith.constant dense<0.000000e+00> : vector<8xf32>
    %129 = vector.multi_reduction <add>, %128, %cst_44 [1] : vector<8x256xf32> to vector<8xf32>
    %130 = vector.shape_cast %129 : vector<8xf32> to vector<8x1xf32>
    %c0_i32_45 = arith.constant 0 : i32
    %131 = vector.broadcast %c0_i32_45 : i32 to vector<8x256xi32>
    %132 = arith.cmpi eq, %119, %131 : vector<8x256xi32>
    %cst_46 = arith.constant 0.000000e+00 : f32
    %133 = vector.shape_cast %130 : vector<8x1xf32> to vector<8x1xf32>
    %134 = vector.broadcast %133 : vector<8x1xf32> to vector<8x256xf32>
    %135 = vector.broadcast %cst_46 : f32 to vector<8x256xf32>
    %136 = arith.select %132, %134, %135 : vector<8x256xi1>, vector<8x256xf32>
    %cst_47 = arith.constant 3.54490781 : f32
    %137 = vector.broadcast %cst_47 : f32 to vector<8x256xf32>
    %138 = arith.mulf %109, %137 : vector<8x256xf32>
    %cst_48 = arith.constant dense<0.000000e+00> : vector<8xf32>
    %139 = vector.multi_reduction <add>, %138, %cst_48 [1] : vector<8x256xf32> to vector<8xf32>
    %140 = vector.shape_cast %139 : vector<8xf32> to vector<8x1xf32>
    %c25_i32 = arith.constant 25 : i32
    %141 = vector.broadcast %c25_i32 : i32 to vector<8x256xi32>
    %142 = arith.cmpi eq, %119, %141 : vector<8x256xi32>
    %cst_49 = arith.constant 0.000000e+00 : f32
    %143 = vector.shape_cast %140 : vector<8x1xf32> to vector<8x1xf32>
    %144 = vector.broadcast %143 : vector<8x1xf32> to vector<8x256xf32>
    %145 = vector.broadcast %cst_49 : f32 to vector<8x256xf32>
    %146 = arith.select %142, %144, %145 : vector<8x256xi1>, vector<8x256xf32>
    %147 = arith.addf %136, %146 : vector<8x256xf32>
    %cst_50 = arith.constant 3.54490781 : f32
    %148 = vector.broadcast %cst_50 : f32 to vector<8x256xf32>
    %149 = arith.mulf %110, %148 : vector<8x256xf32>
    %cst_51 = arith.constant dense<0.000000e+00> : vector<8xf32>
    %150 = vector.multi_reduction <add>, %149, %cst_51 [1] : vector<8x256xf32> to vector<8xf32>
    %151 = vector.shape_cast %150 : vector<8xf32> to vector<8x1xf32>
    %c50_i32 = arith.constant 50 : i32
    %152 = vector.broadcast %c50_i32 : i32 to vector<8x256xi32>
    %153 = arith.cmpi eq, %119, %152 : vector<8x256xi32>
    %cst_52 = arith.constant 0.000000e+00 : f32
    %154 = vector.shape_cast %151 : vector<8x1xf32> to vector<8x1xf32>
    %155 = vector.broadcast %154 : vector<8x1xf32> to vector<8x256xf32>
    %156 = vector.broadcast %cst_52 : f32 to vector<8x256xf32>
    %157 = arith.select %153, %155, %156 : vector<8x256xi1>, vector<8x256xf32>
    %158 = arith.addf %147, %157 : vector<8x256xf32>
    %cst_53 = arith.constant 3.54490781 : f32
    %159 = vector.broadcast %cst_53 : f32 to vector<8x256xf32>
    %160 = arith.mulf %111, %159 : vector<8x256xf32>
    %cst_54 = arith.constant dense<0.000000e+00> : vector<8xf32>
    %161 = vector.multi_reduction <add>, %160, %cst_54 [1] : vector<8x256xf32> to vector<8xf32>
    %162 = vector.shape_cast %161 : vector<8xf32> to vector<8x1xf32>
    %c75_i32 = arith.constant 75 : i32
    %163 = vector.broadcast %c75_i32 : i32 to vector<8x256xi32>
    %164 = arith.cmpi eq, %119, %163 : vector<8x256xi32>
    %cst_55 = arith.constant 0.000000e+00 : f32
    %165 = vector.shape_cast %162 : vector<8x1xf32> to vector<8x1xf32>
    %166 = vector.broadcast %165 : vector<8x1xf32> to vector<8x256xf32>
    %167 = vector.broadcast %cst_55 : f32 to vector<8x256xf32>
    %168 = arith.select %164, %166, %167 : vector<8x256xi1>, vector<8x256xf32>
    %169 = arith.addf %158, %168 : vector<8x256xf32>
    %cst_56 = arith.constant 3.54490781 : f32
    %170 = vector.broadcast %cst_56 : f32 to vector<8x256xf32>
    %171 = arith.mulf %115, %170 : vector<8x256xf32>
    %cst_57 = arith.constant dense<0.000000e+00> : vector<8xf32>
    %172 = vector.multi_reduction <add>, %171, %cst_57 [1] : vector<8x256xf32> to vector<8xf32>
    %173 = vector.shape_cast %172 : vector<8xf32> to vector<8x1xf32>
    %c100_i32 = arith.constant 100 : i32
    %174 = vector.broadcast %c100_i32 : i32 to vector<8x256xi32>
    %175 = arith.cmpi eq, %119, %174 : vector<8x256xi32>
    %cst_58 = arith.constant 0.000000e+00 : f32
    %176 = vector.shape_cast %173 : vector<8x1xf32> to vector<8x1xf32>
    %177 = vector.broadcast %176 : vector<8x1xf32> to vector<8x256xf32>
    %178 = vector.broadcast %cst_58 : f32 to vector<8x256xf32>
    %179 = arith.select %175, %177, %178 : vector<8x256xi1>, vector<8x256xf32>
    %180 = arith.addf %169, %179 : vector<8x256xf32>
    %cst_59 = arith.constant 3.54490781 : f32
    %181 = vector.broadcast %cst_59 : f32 to vector<8x256xf32>
    %182 = arith.mulf %116, %181 : vector<8x256xf32>
    %cst_60 = arith.constant dense<0.000000e+00> : vector<8xf32>
    %183 = vector.multi_reduction <add>, %182, %cst_60 [1] : vector<8x256xf32> to vector<8xf32>
    %184 = vector.shape_cast %183 : vector<8xf32> to vector<8x1xf32>
    %c125_i32 = arith.constant 125 : i32
    %185 = vector.broadcast %c125_i32 : i32 to vector<8x256xi32>
    %186 = arith.cmpi eq, %119, %185 : vector<8x256xi32>
    %cst_61 = arith.constant 0.000000e+00 : f32
    %187 = vector.shape_cast %184 : vector<8x1xf32> to vector<8x1xf32>
    %188 = vector.broadcast %187 : vector<8x1xf32> to vector<8x256xf32>
    %189 = vector.broadcast %cst_61 : f32 to vector<8x256xf32>
    %190 = arith.select %186, %188, %189 : vector<8x256xi1>, vector<8x256xf32>
    %191 = arith.addf %180, %190 : vector<8x256xf32>
    %cst_62 = arith.constant 3.54490781 : f32
    %192 = vector.broadcast %cst_62 : f32 to vector<8x256xf32>
    %193 = arith.mulf %117, %192 : vector<8x256xf32>
    %cst_63 = arith.constant dense<0.000000e+00> : vector<8xf32>
    %194 = vector.multi_reduction <add>, %193, %cst_63 [1] : vector<8x256xf32> to vector<8xf32>
    %195 = vector.shape_cast %194 : vector<8xf32> to vector<8x1xf32>
    %c150_i32 = arith.constant 150 : i32
    %196 = vector.broadcast %c150_i32 : i32 to vector<8x256xi32>
    %197 = arith.cmpi eq, %119, %196 : vector<8x256xi32>
    %cst_64 = arith.constant 0.000000e+00 : f32
    %198 = vector.shape_cast %195 : vector<8x1xf32> to vector<8x1xf32>
    %199 = vector.broadcast %198 : vector<8x1xf32> to vector<8x256xf32>
    %200 = vector.broadcast %cst_64 : f32 to vector<8x256xf32>
    %201 = arith.select %197, %199, %200 : vector<8x256xi1>, vector<8x256xf32>
    %202 = arith.addf %191, %201 : vector<8x256xf32>
    %cst_65 = arith.constant 3.54490781 : f32
    %203 = vector.broadcast %cst_65 : f32 to vector<8x256xf32>
    %204 = arith.mulf %118, %203 : vector<8x256xf32>
    %cst_66 = arith.constant dense<0.000000e+00> : vector<8xf32>
    %205 = vector.multi_reduction <add>, %204, %cst_66 [1] : vector<8x256xf32> to vector<8xf32>
    %206 = vector.shape_cast %205 : vector<8xf32> to vector<8x1xf32>
    %c175_i32 = arith.constant 175 : i32
    %207 = vector.broadcast %c175_i32 : i32 to vector<8x256xi32>
    %208 = arith.cmpi eq, %119, %207 : vector<8x256xi32>
    %cst_67 = arith.constant 0.000000e+00 : f32
    %209 = vector.shape_cast %206 : vector<8x1xf32> to vector<8x1xf32>
    %210 = vector.broadcast %209 : vector<8x1xf32> to vector<8x256xf32>
    %211 = vector.broadcast %cst_67 : f32 to vector<8x256xf32>
    %212 = arith.select %208, %210, %211 : vector<8x256xi1>, vector<8x256xf32>
    %213 = arith.addf %202, %212 : vector<8x256xf32>
    %214 = arith.addf %120, %213 : vector<8x256xf32>
    %cst_68 = arith.constant 6.13996028 : f32
    %215 = vector.broadcast %cst_68 : f32 to vector<8x256xf32>
    %216 = arith.mulf %215, %31 : vector<8x256xf32>
    %217 = arith.mulf %108, %216 : vector<8x256xf32>
    %cst_69 = arith.constant dense<0.000000e+00> : vector<8xf32>
    %218 = vector.multi_reduction <add>, %217, %cst_69 [1] : vector<8x256xf32> to vector<8xf32>
    %219 = vector.shape_cast %218 : vector<8xf32> to vector<8x1xf32>
    %c1_i32 = arith.constant 1 : i32
    %220 = vector.broadcast %c1_i32 : i32 to vector<8x256xi32>
    %221 = arith.cmpi eq, %119, %220 : vector<8x256xi32>
    %cst_70 = arith.constant 0.000000e+00 : f32
    %222 = vector.shape_cast %219 : vector<8x1xf32> to vector<8x1xf32>
    %223 = vector.broadcast %222 : vector<8x1xf32> to vector<8x256xf32>
    %224 = vector.broadcast %cst_70 : f32 to vector<8x256xf32>
    %225 = arith.select %221, %223, %224 : vector<8x256xi1>, vector<8x256xf32>
    %226 = arith.mulf %109, %216 : vector<8x256xf32>
    %cst_71 = arith.constant dense<0.000000e+00> : vector<8xf32>
    %227 = vector.multi_reduction <add>, %226, %cst_71 [1] : vector<8x256xf32> to vector<8xf32>
    %228 = vector.shape_cast %227 : vector<8xf32> to vector<8x1xf32>
    %c26_i32 = arith.constant 26 : i32
    %229 = vector.broadcast %c26_i32 : i32 to vector<8x256xi32>
    %230 = arith.cmpi eq, %119, %229 : vector<8x256xi32>
    %cst_72 = arith.constant 0.000000e+00 : f32
    %231 = vector.shape_cast %228 : vector<8x1xf32> to vector<8x1xf32>
    %232 = vector.broadcast %231 : vector<8x1xf32> to vector<8x256xf32>
    %233 = vector.broadcast %cst_72 : f32 to vector<8x256xf32>
    %234 = arith.select %230, %232, %233 : vector<8x256xi1>, vector<8x256xf32>
    %235 = arith.addf %225, %234 : vector<8x256xf32>
    %236 = arith.mulf %110, %216 : vector<8x256xf32>
    %cst_73 = arith.constant dense<0.000000e+00> : vector<8xf32>
    %237 = vector.multi_reduction <add>, %236, %cst_73 [1] : vector<8x256xf32> to vector<8xf32>
    %238 = vector.shape_cast %237 : vector<8xf32> to vector<8x1xf32>
    %c51_i32 = arith.constant 51 : i32
    %239 = vector.broadcast %c51_i32 : i32 to vector<8x256xi32>
    %240 = arith.cmpi eq, %119, %239 : vector<8x256xi32>
    %cst_74 = arith.constant 0.000000e+00 : f32
    %241 = vector.shape_cast %238 : vector<8x1xf32> to vector<8x1xf32>
    %242 = vector.broadcast %241 : vector<8x1xf32> to vector<8x256xf32>
    %243 = vector.broadcast %cst_74 : f32 to vector<8x256xf32>
    %244 = arith.select %240, %242, %243 : vector<8x256xi1>, vector<8x256xf32>
    %245 = arith.addf %235, %244 : vector<8x256xf32>
    %246 = arith.mulf %111, %216 : vector<8x256xf32>
    %cst_75 = arith.constant dense<0.000000e+00> : vector<8xf32>
    %247 = vector.multi_reduction <add>, %246, %cst_75 [1] : vector<8x256xf32> to vector<8xf32>
    %248 = vector.shape_cast %247 : vector<8xf32> to vector<8x1xf32>
    %c76_i32 = arith.constant 76 : i32
    %249 = vector.broadcast %c76_i32 : i32 to vector<8x256xi32>
    %250 = arith.cmpi eq, %119, %249 : vector<8x256xi32>
    %cst_76 = arith.constant 0.000000e+00 : f32
    %251 = vector.shape_cast %248 : vector<8x1xf32> to vector<8x1xf32>
    %252 = vector.broadcast %251 : vector<8x1xf32> to vector<8x256xf32>
    %253 = vector.broadcast %cst_76 : f32 to vector<8x256xf32>
    %254 = arith.select %250, %252, %253 : vector<8x256xi1>, vector<8x256xf32>
    %255 = arith.addf %245, %254 : vector<8x256xf32>
    %256 = arith.mulf %115, %216 : vector<8x256xf32>
    %cst_77 = arith.constant dense<0.000000e+00> : vector<8xf32>
    %257 = vector.multi_reduction <add>, %256, %cst_77 [1] : vector<8x256xf32> to vector<8xf32>
    %258 = vector.shape_cast %257 : vector<8xf32> to vector<8x1xf32>
    %c101_i32 = arith.constant 101 : i32
    %259 = vector.broadcast %c101_i32 : i32 to vector<8x256xi32>
    %260 = arith.cmpi eq, %119, %259 : vector<8x256xi32>
    %cst_78 = arith.constant 0.000000e+00 : f32
    %261 = vector.shape_cast %258 : vector<8x1xf32> to vector<8x1xf32>
    %262 = vector.broadcast %261 : vector<8x1xf32> to vector<8x256xf32>
    %263 = vector.broadcast %cst_78 : f32 to vector<8x256xf32>
    %264 = arith.select %260, %262, %263 : vector<8x256xi1>, vector<8x256xf32>
    %265 = arith.addf %255, %264 : vector<8x256xf32>
    %266 = arith.mulf %116, %216 : vector<8x256xf32>
    %cst_79 = arith.constant dense<0.000000e+00> : vector<8xf32>
    %267 = vector.multi_reduction <add>, %266, %cst_79 [1] : vector<8x256xf32> to vector<8xf32>
    %268 = vector.shape_cast %267 : vector<8xf32> to vector<8x1xf32>
    %c126_i32 = arith.constant 126 : i32
    %269 = vector.broadcast %c126_i32 : i32 to vector<8x256xi32>
    %270 = arith.cmpi eq, %119, %269 : vector<8x256xi32>
    %cst_80 = arith.constant 0.000000e+00 : f32
    %271 = vector.shape_cast %268 : vector<8x1xf32> to vector<8x1xf32>
    %272 = vector.broadcast %271 : vector<8x1xf32> to vector<8x256xf32>
    %273 = vector.broadcast %cst_80 : f32 to vector<8x256xf32>
    %274 = arith.select %270, %272, %273 : vector<8x256xi1>, vector<8x256xf32>
    %275 = arith.addf %265, %274 : vector<8x256xf32>
    %276 = arith.mulf %117, %216 : vector<8x256xf32>
    %cst_81 = arith.constant dense<0.000000e+00> : vector<8xf32>
    %277 = vector.multi_reduction <add>, %276, %cst_81 [1] : vector<8x256xf32> to vector<8xf32>
    %278 = vector.shape_cast %277 : vector<8xf32> to vector<8x1xf32>
    %c151_i32 = arith.constant 151 : i32
    %279 = vector.broadcast %c151_i32 : i32 to vector<8x256xi32>
    %280 = arith.cmpi eq, %119, %279 : vector<8x256xi32>
    %cst_82 = arith.constant 0.000000e+00 : f32
    %281 = vector.shape_cast %278 : vector<8x1xf32> to vector<8x1xf32>
    %282 = vector.broadcast %281 : vector<8x1xf32> to vector<8x256xf32>
    %283 = vector.broadcast %cst_82 : f32 to vector<8x256xf32>
    %284 = arith.select %280, %282, %283 : vector<8x256xi1>, vector<8x256xf32>
    %285 = arith.addf %275, %284 : vector<8x256xf32>
    %286 = arith.mulf %118, %216 : vector<8x256xf32>
    %cst_83 = arith.constant dense<0.000000e+00> : vector<8xf32>
    %287 = vector.multi_reduction <add>, %286, %cst_83 [1] : vector<8x256xf32> to vector<8xf32>
    %288 = vector.shape_cast %287 : vector<8xf32> to vector<8x1xf32>
    %c176_i32 = arith.constant 176 : i32
    %289 = vector.broadcast %c176_i32 : i32 to vector<8x256xi32>
    %290 = arith.cmpi eq, %119, %289 : vector<8x256xi32>
    %cst_84 = arith.constant 0.000000e+00 : f32
    %291 = vector.shape_cast %288 : vector<8x1xf32> to vector<8x1xf32>
    %292 = vector.broadcast %291 : vector<8x1xf32> to vector<8x256xf32>
    %293 = vector.broadcast %cst_84 : f32 to vector<8x256xf32>
    %294 = arith.select %290, %292, %293 : vector<8x256xi1>, vector<8x256xf32>
    %295 = arith.addf %285, %294 : vector<8x256xf32>
    %296 = arith.addf %214, %295 : vector<8x256xf32>
    %cst_85 = arith.constant 6.13996028 : f32
    %297 = vector.broadcast %cst_85 : f32 to vector<8x256xf32>
    %298 = arith.mulf %297, %32 : vector<8x256xf32>
    %299 = arith.mulf %108, %298 : vector<8x256xf32>
    %cst_86 = arith.constant dense<0.000000e+00> : vector<8xf32>
    %300 = vector.multi_reduction <add>, %299, %cst_86 [1] : vector<8x256xf32> to vector<8xf32>
    %301 = vector.shape_cast %300 : vector<8xf32> to vector<8x1xf32>
    %c2_i32 = arith.constant 2 : i32
    %302 = vector.broadcast %c2_i32 : i32 to vector<8x256xi32>
    %303 = arith.cmpi eq, %119, %302 : vector<8x256xi32>
    %cst_87 = arith.constant 0.000000e+00 : f32
    %304 = vector.shape_cast %301 : vector<8x1xf32> to vector<8x1xf32>
    %305 = vector.broadcast %304 : vector<8x1xf32> to vector<8x256xf32>
    %306 = vector.broadcast %cst_87 : f32 to vector<8x256xf32>
    %307 = arith.select %303, %305, %306 : vector<8x256xi1>, vector<8x256xf32>
    %308 = arith.mulf %109, %298 : vector<8x256xf32>
    %cst_88 = arith.constant dense<0.000000e+00> : vector<8xf32>
    %309 = vector.multi_reduction <add>, %308, %cst_88 [1] : vector<8x256xf32> to vector<8xf32>
    %310 = vector.shape_cast %309 : vector<8xf32> to vector<8x1xf32>
    %c27_i32 = arith.constant 27 : i32
    %311 = vector.broadcast %c27_i32 : i32 to vector<8x256xi32>
    %312 = arith.cmpi eq, %119, %311 : vector<8x256xi32>
    %cst_89 = arith.constant 0.000000e+00 : f32
    %313 = vector.shape_cast %310 : vector<8x1xf32> to vector<8x1xf32>
    %314 = vector.broadcast %313 : vector<8x1xf32> to vector<8x256xf32>
    %315 = vector.broadcast %cst_89 : f32 to vector<8x256xf32>
    %316 = arith.select %312, %314, %315 : vector<8x256xi1>, vector<8x256xf32>
    %317 = arith.addf %307, %316 : vector<8x256xf32>
    %318 = arith.mulf %110, %298 : vector<8x256xf32>
    %cst_90 = arith.constant dense<0.000000e+00> : vector<8xf32>
    %319 = vector.multi_reduction <add>, %318, %cst_90 [1] : vector<8x256xf32> to vector<8xf32>
    %320 = vector.shape_cast %319 : vector<8xf32> to vector<8x1xf32>
    %c52_i32 = arith.constant 52 : i32
    %321 = vector.broadcast %c52_i32 : i32 to vector<8x256xi32>
    %322 = arith.cmpi eq, %119, %321 : vector<8x256xi32>
    %cst_91 = arith.constant 0.000000e+00 : f32
    %323 = vector.shape_cast %320 : vector<8x1xf32> to vector<8x1xf32>
    %324 = vector.broadcast %323 : vector<8x1xf32> to vector<8x256xf32>
    %325 = vector.broadcast %cst_91 : f32 to vector<8x256xf32>
    %326 = arith.select %322, %324, %325 : vector<8x256xi1>, vector<8x256xf32>
    %327 = arith.addf %317, %326 : vector<8x256xf32>
    %328 = arith.mulf %111, %298 : vector<8x256xf32>
    %cst_92 = arith.constant dense<0.000000e+00> : vector<8xf32>
    %329 = vector.multi_reduction <add>, %328, %cst_92 [1] : vector<8x256xf32> to vector<8xf32>
    %330 = vector.shape_cast %329 : vector<8xf32> to vector<8x1xf32>
    %c77_i32 = arith.constant 77 : i32
    %331 = vector.broadcast %c77_i32 : i32 to vector<8x256xi32>
    %332 = arith.cmpi eq, %119, %331 : vector<8x256xi32>
    %cst_93 = arith.constant 0.000000e+00 : f32
    %333 = vector.shape_cast %330 : vector<8x1xf32> to vector<8x1xf32>
    %334 = vector.broadcast %333 : vector<8x1xf32> to vector<8x256xf32>
    %335 = vector.broadcast %cst_93 : f32 to vector<8x256xf32>
    %336 = arith.select %332, %334, %335 : vector<8x256xi1>, vector<8x256xf32>
    %337 = arith.addf %327, %336 : vector<8x256xf32>
    %338 = arith.mulf %115, %298 : vector<8x256xf32>
    %cst_94 = arith.constant dense<0.000000e+00> : vector<8xf32>
    %339 = vector.multi_reduction <add>, %338, %cst_94 [1] : vector<8x256xf32> to vector<8xf32>
    %340 = vector.shape_cast %339 : vector<8xf32> to vector<8x1xf32>
    %c102_i32 = arith.constant 102 : i32
    %341 = vector.broadcast %c102_i32 : i32 to vector<8x256xi32>
    %342 = arith.cmpi eq, %119, %341 : vector<8x256xi32>
    %cst_95 = arith.constant 0.000000e+00 : f32
    %343 = vector.shape_cast %340 : vector<8x1xf32> to vector<8x1xf32>
    %344 = vector.broadcast %343 : vector<8x1xf32> to vector<8x256xf32>
    %345 = vector.broadcast %cst_95 : f32 to vector<8x256xf32>
    %346 = arith.select %342, %344, %345 : vector<8x256xi1>, vector<8x256xf32>
    %347 = arith.addf %337, %346 : vector<8x256xf32>
    %348 = arith.mulf %116, %298 : vector<8x256xf32>
    %cst_96 = arith.constant dense<0.000000e+00> : vector<8xf32>
    %349 = vector.multi_reduction <add>, %348, %cst_96 [1] : vector<8x256xf32> to vector<8xf32>
    %350 = vector.shape_cast %349 : vector<8xf32> to vector<8x1xf32>
    %c127_i32 = arith.constant 127 : i32
    %351 = vector.broadcast %c127_i32 : i32 to vector<8x256xi32>
    %352 = arith.cmpi eq, %119, %351 : vector<8x256xi32>
    %cst_97 = arith.constant 0.000000e+00 : f32
    %353 = vector.shape_cast %350 : vector<8x1xf32> to vector<8x1xf32>
    %354 = vector.broadcast %353 : vector<8x1xf32> to vector<8x256xf32>
    %355 = vector.broadcast %cst_97 : f32 to vector<8x256xf32>
    %356 = arith.select %352, %354, %355 : vector<8x256xi1>, vector<8x256xf32>
    %357 = arith.addf %347, %356 : vector<8x256xf32>
    %358 = arith.mulf %117, %298 : vector<8x256xf32>
    %cst_98 = arith.constant dense<0.000000e+00> : vector<8xf32>
    %359 = vector.multi_reduction <add>, %358, %cst_98 [1] : vector<8x256xf32> to vector<8xf32>
    %360 = vector.shape_cast %359 : vector<8xf32> to vector<8x1xf32>
    %c152_i32 = arith.constant 152 : i32
    %361 = vector.broadcast %c152_i32 : i32 to vector<8x256xi32>
    %362 = arith.cmpi eq, %119, %361 : vector<8x256xi32>
    %cst_99 = arith.constant 0.000000e+00 : f32
    %363 = vector.shape_cast %360 : vector<8x1xf32> to vector<8x1xf32>
    %364 = vector.broadcast %363 : vector<8x1xf32> to vector<8x256xf32>
    %365 = vector.broadcast %cst_99 : f32 to vector<8x256xf32>
    %366 = arith.select %362, %364, %365 : vector<8x256xi1>, vector<8x256xf32>
    %367 = arith.addf %357, %366 : vector<8x256xf32>
    %368 = arith.mulf %118, %298 : vector<8x256xf32>
    %cst_100 = arith.constant dense<0.000000e+00> : vector<8xf32>
    %369 = vector.multi_reduction <add>, %368, %cst_100 [1] : vector<8x256xf32> to vector<8xf32>
    %370 = vector.shape_cast %369 : vector<8xf32> to vector<8x1xf32>
    %c177_i32 = arith.constant 177 : i32
    %371 = vector.broadcast %c177_i32 : i32 to vector<8x256xi32>
    %372 = arith.cmpi eq, %119, %371 : vector<8x256xi32>
    %cst_101 = arith.constant 0.000000e+00 : f32
    %373 = vector.shape_cast %370 : vector<8x1xf32> to vector<8x1xf32>
    %374 = vector.broadcast %373 : vector<8x1xf32> to vector<8x256xf32>
    %375 = vector.broadcast %cst_101 : f32 to vector<8x256xf32>
    %376 = arith.select %372, %374, %375 : vector<8x256xi1>, vector<8x256xf32>
    %377 = arith.addf %367, %376 : vector<8x256xf32>
    %378 = arith.addf %296, %377 : vector<8x256xf32>
    %cst_102 = arith.constant 6.13996028 : f32
    %379 = vector.broadcast %cst_102 : f32 to vector<8x256xf32>
    %380 = arith.mulf %379, %30 : vector<8x256xf32>
    %381 = arith.mulf %108, %380 : vector<8x256xf32>
    %cst_103 = arith.constant dense<0.000000e+00> : vector<8xf32>
    %382 = vector.multi_reduction <add>, %381, %cst_103 [1] : vector<8x256xf32> to vector<8xf32>
    %383 = vector.shape_cast %382 : vector<8xf32> to vector<8x1xf32>
    %c3_i32 = arith.constant 3 : i32
    %384 = vector.broadcast %c3_i32 : i32 to vector<8x256xi32>
    %385 = arith.cmpi eq, %119, %384 : vector<8x256xi32>
    %cst_104 = arith.constant 0.000000e+00 : f32
    %386 = vector.shape_cast %383 : vector<8x1xf32> to vector<8x1xf32>
    %387 = vector.broadcast %386 : vector<8x1xf32> to vector<8x256xf32>
    %388 = vector.broadcast %cst_104 : f32 to vector<8x256xf32>
    %389 = arith.select %385, %387, %388 : vector<8x256xi1>, vector<8x256xf32>
    %390 = arith.mulf %109, %380 : vector<8x256xf32>
    %cst_105 = arith.constant dense<0.000000e+00> : vector<8xf32>
    %391 = vector.multi_reduction <add>, %390, %cst_105 [1] : vector<8x256xf32> to vector<8xf32>
    %392 = vector.shape_cast %391 : vector<8xf32> to vector<8x1xf32>
    %c28_i32 = arith.constant 28 : i32
    %393 = vector.broadcast %c28_i32 : i32 to vector<8x256xi32>
    %394 = arith.cmpi eq, %119, %393 : vector<8x256xi32>
    %cst_106 = arith.constant 0.000000e+00 : f32
    %395 = vector.shape_cast %392 : vector<8x1xf32> to vector<8x1xf32>
    %396 = vector.broadcast %395 : vector<8x1xf32> to vector<8x256xf32>
    %397 = vector.broadcast %cst_106 : f32 to vector<8x256xf32>
    %398 = arith.select %394, %396, %397 : vector<8x256xi1>, vector<8x256xf32>
    %399 = arith.addf %389, %398 : vector<8x256xf32>
    %400 = arith.mulf %110, %380 : vector<8x256xf32>
    %cst_107 = arith.constant dense<0.000000e+00> : vector<8xf32>
    %401 = vector.multi_reduction <add>, %400, %cst_107 [1] : vector<8x256xf32> to vector<8xf32>
    %402 = vector.shape_cast %401 : vector<8xf32> to vector<8x1xf32>
    %c53_i32 = arith.constant 53 : i32
    %403 = vector.broadcast %c53_i32 : i32 to vector<8x256xi32>
    %404 = arith.cmpi eq, %119, %403 : vector<8x256xi32>
    %cst_108 = arith.constant 0.000000e+00 : f32
    %405 = vector.shape_cast %402 : vector<8x1xf32> to vector<8x1xf32>
    %406 = vector.broadcast %405 : vector<8x1xf32> to vector<8x256xf32>
    %407 = vector.broadcast %cst_108 : f32 to vector<8x256xf32>
    %408 = arith.select %404, %406, %407 : vector<8x256xi1>, vector<8x256xf32>
    %409 = arith.addf %399, %408 : vector<8x256xf32>
    %410 = arith.mulf %111, %380 : vector<8x256xf32>
    %cst_109 = arith.constant dense<0.000000e+00> : vector<8xf32>
    %411 = vector.multi_reduction <add>, %410, %cst_109 [1] : vector<8x256xf32> to vector<8xf32>
    %412 = vector.shape_cast %411 : vector<8xf32> to vector<8x1xf32>
    %c78_i32 = arith.constant 78 : i32
    %413 = vector.broadcast %c78_i32 : i32 to vector<8x256xi32>
    %414 = arith.cmpi eq, %119, %413 : vector<8x256xi32>
    %cst_110 = arith.constant 0.000000e+00 : f32
    %415 = vector.shape_cast %412 : vector<8x1xf32> to vector<8x1xf32>
    %416 = vector.broadcast %415 : vector<8x1xf32> to vector<8x256xf32>
    %417 = vector.broadcast %cst_110 : f32 to vector<8x256xf32>
    %418 = arith.select %414, %416, %417 : vector<8x256xi1>, vector<8x256xf32>
    %419 = arith.addf %409, %418 : vector<8x256xf32>
    %420 = arith.mulf %115, %380 : vector<8x256xf32>
    %cst_111 = arith.constant dense<0.000000e+00> : vector<8xf32>
    %421 = vector.multi_reduction <add>, %420, %cst_111 [1] : vector<8x256xf32> to vector<8xf32>
    %422 = vector.shape_cast %421 : vector<8xf32> to vector<8x1xf32>
    %c103_i32 = arith.constant 103 : i32
    %423 = vector.broadcast %c103_i32 : i32 to vector<8x256xi32>
    %424 = arith.cmpi eq, %119, %423 : vector<8x256xi32>
    %cst_112 = arith.constant 0.000000e+00 : f32
    %425 = vector.shape_cast %422 : vector<8x1xf32> to vector<8x1xf32>
    %426 = vector.broadcast %425 : vector<8x1xf32> to vector<8x256xf32>
    %427 = vector.broadcast %cst_112 : f32 to vector<8x256xf32>
    %428 = arith.select %424, %426, %427 : vector<8x256xi1>, vector<8x256xf32>
    %429 = arith.addf %419, %428 : vector<8x256xf32>
    %430 = arith.mulf %116, %380 : vector<8x256xf32>
    %cst_113 = arith.constant dense<0.000000e+00> : vector<8xf32>
    %431 = vector.multi_reduction <add>, %430, %cst_113 [1] : vector<8x256xf32> to vector<8xf32>
    %432 = vector.shape_cast %431 : vector<8xf32> to vector<8x1xf32>
    %c128_i32 = arith.constant 128 : i32
    %433 = vector.broadcast %c128_i32 : i32 to vector<8x256xi32>
    %434 = arith.cmpi eq, %119, %433 : vector<8x256xi32>
    %cst_114 = arith.constant 0.000000e+00 : f32
    %435 = vector.shape_cast %432 : vector<8x1xf32> to vector<8x1xf32>
    %436 = vector.broadcast %435 : vector<8x1xf32> to vector<8x256xf32>
    %437 = vector.broadcast %cst_114 : f32 to vector<8x256xf32>
    %438 = arith.select %434, %436, %437 : vector<8x256xi1>, vector<8x256xf32>
    %439 = arith.addf %429, %438 : vector<8x256xf32>
    %440 = arith.mulf %117, %380 : vector<8x256xf32>
    %cst_115 = arith.constant dense<0.000000e+00> : vector<8xf32>
    %441 = vector.multi_reduction <add>, %440, %cst_115 [1] : vector<8x256xf32> to vector<8xf32>
    %442 = vector.shape_cast %441 : vector<8xf32> to vector<8x1xf32>
    %c153_i32 = arith.constant 153 : i32
    %443 = vector.broadcast %c153_i32 : i32 to vector<8x256xi32>
    %444 = arith.cmpi eq, %119, %443 : vector<8x256xi32>
    %cst_116 = arith.constant 0.000000e+00 : f32
    %445 = vector.shape_cast %442 : vector<8x1xf32> to vector<8x1xf32>
    %446 = vector.broadcast %445 : vector<8x1xf32> to vector<8x256xf32>
    %447 = vector.broadcast %cst_116 : f32 to vector<8x256xf32>
    %448 = arith.select %444, %446, %447 : vector<8x256xi1>, vector<8x256xf32>
    %449 = arith.addf %439, %448 : vector<8x256xf32>
    %450 = arith.mulf %118, %380 : vector<8x256xf32>
    %cst_117 = arith.constant dense<0.000000e+00> : vector<8xf32>
    %451 = vector.multi_reduction <add>, %450, %cst_117 [1] : vector<8x256xf32> to vector<8xf32>
    %452 = vector.shape_cast %451 : vector<8xf32> to vector<8x1xf32>
    %c178_i32 = arith.constant 178 : i32
    %453 = vector.broadcast %c178_i32 : i32 to vector<8x256xi32>
    %454 = arith.cmpi eq, %119, %453 : vector<8x256xi32>
    %cst_118 = arith.constant 0.000000e+00 : f32
    %455 = vector.shape_cast %452 : vector<8x1xf32> to vector<8x1xf32>
    %456 = vector.broadcast %455 : vector<8x1xf32> to vector<8x256xf32>
    %457 = vector.broadcast %cst_118 : f32 to vector<8x256xf32>
    %458 = arith.select %454, %456, %457 : vector<8x256xi1>, vector<8x256xf32>
    %459 = arith.addf %449, %458 : vector<8x256xf32>
    %460 = arith.addf %378, %459 : vector<8x256xf32>
    %cst_119 = arith.constant 13.7293682 : f32
    %461 = vector.broadcast %cst_119 : f32 to vector<8x256xf32>
    %462 = arith.mulf %461, %124 : vector<8x256xf32>
    %463 = arith.mulf %108, %462 : vector<8x256xf32>
    %cst_120 = arith.constant dense<0.000000e+00> : vector<8xf32>
    %464 = vector.multi_reduction <add>, %463, %cst_120 [1] : vector<8x256xf32> to vector<8xf32>
    %465 = vector.shape_cast %464 : vector<8xf32> to vector<8x1xf32>
    %c4_i32 = arith.constant 4 : i32
    %466 = vector.broadcast %c4_i32 : i32 to vector<8x256xi32>
    %467 = arith.cmpi eq, %119, %466 : vector<8x256xi32>
    %cst_121 = arith.constant 0.000000e+00 : f32
    %468 = vector.shape_cast %465 : vector<8x1xf32> to vector<8x1xf32>
    %469 = vector.broadcast %468 : vector<8x1xf32> to vector<8x256xf32>
    %470 = vector.broadcast %cst_121 : f32 to vector<8x256xf32>
    %471 = arith.select %467, %469, %470 : vector<8x256xi1>, vector<8x256xf32>
    %472 = arith.mulf %109, %462 : vector<8x256xf32>
    %cst_122 = arith.constant dense<0.000000e+00> : vector<8xf32>
    %473 = vector.multi_reduction <add>, %472, %cst_122 [1] : vector<8x256xf32> to vector<8xf32>
    %474 = vector.shape_cast %473 : vector<8xf32> to vector<8x1xf32>
    %c29_i32 = arith.constant 29 : i32
    %475 = vector.broadcast %c29_i32 : i32 to vector<8x256xi32>
    %476 = arith.cmpi eq, %119, %475 : vector<8x256xi32>
    %cst_123 = arith.constant 0.000000e+00 : f32
    %477 = vector.shape_cast %474 : vector<8x1xf32> to vector<8x1xf32>
    %478 = vector.broadcast %477 : vector<8x1xf32> to vector<8x256xf32>
    %479 = vector.broadcast %cst_123 : f32 to vector<8x256xf32>
    %480 = arith.select %476, %478, %479 : vector<8x256xi1>, vector<8x256xf32>
    %481 = arith.addf %471, %480 : vector<8x256xf32>
    %482 = arith.mulf %110, %462 : vector<8x256xf32>
    %cst_124 = arith.constant dense<0.000000e+00> : vector<8xf32>
    %483 = vector.multi_reduction <add>, %482, %cst_124 [1] : vector<8x256xf32> to vector<8xf32>
    %484 = vector.shape_cast %483 : vector<8xf32> to vector<8x1xf32>
    %c54_i32 = arith.constant 54 : i32
    %485 = vector.broadcast %c54_i32 : i32 to vector<8x256xi32>
    %486 = arith.cmpi eq, %119, %485 : vector<8x256xi32>
    %cst_125 = arith.constant 0.000000e+00 : f32
    %487 = vector.shape_cast %484 : vector<8x1xf32> to vector<8x1xf32>
    %488 = vector.broadcast %487 : vector<8x1xf32> to vector<8x256xf32>
    %489 = vector.broadcast %cst_125 : f32 to vector<8x256xf32>
    %490 = arith.select %486, %488, %489 : vector<8x256xi1>, vector<8x256xf32>
    %491 = arith.addf %481, %490 : vector<8x256xf32>
    %492 = arith.mulf %111, %462 : vector<8x256xf32>
    %cst_126 = arith.constant dense<0.000000e+00> : vector<8xf32>
    %493 = vector.multi_reduction <add>, %492, %cst_126 [1] : vector<8x256xf32> to vector<8xf32>
    %494 = vector.shape_cast %493 : vector<8xf32> to vector<8x1xf32>
    %c79_i32 = arith.constant 79 : i32
    %495 = vector.broadcast %c79_i32 : i32 to vector<8x256xi32>
    %496 = arith.cmpi eq, %119, %495 : vector<8x256xi32>
    %cst_127 = arith.constant 0.000000e+00 : f32
    %497 = vector.shape_cast %494 : vector<8x1xf32> to vector<8x1xf32>
    %498 = vector.broadcast %497 : vector<8x1xf32> to vector<8x256xf32>
    %499 = vector.broadcast %cst_127 : f32 to vector<8x256xf32>
    %500 = arith.select %496, %498, %499 : vector<8x256xi1>, vector<8x256xf32>
    %501 = arith.addf %491, %500 : vector<8x256xf32>
    %502 = arith.mulf %115, %462 : vector<8x256xf32>
    %cst_128 = arith.constant dense<0.000000e+00> : vector<8xf32>
    %503 = vector.multi_reduction <add>, %502, %cst_128 [1] : vector<8x256xf32> to vector<8xf32>
    %504 = vector.shape_cast %503 : vector<8xf32> to vector<8x1xf32>
    %c104_i32 = arith.constant 104 : i32
    %505 = vector.broadcast %c104_i32 : i32 to vector<8x256xi32>
    %506 = arith.cmpi eq, %119, %505 : vector<8x256xi32>
    %cst_129 = arith.constant 0.000000e+00 : f32
    %507 = vector.shape_cast %504 : vector<8x1xf32> to vector<8x1xf32>
    %508 = vector.broadcast %507 : vector<8x1xf32> to vector<8x256xf32>
    %509 = vector.broadcast %cst_129 : f32 to vector<8x256xf32>
    %510 = arith.select %506, %508, %509 : vector<8x256xi1>, vector<8x256xf32>
    %511 = arith.addf %501, %510 : vector<8x256xf32>
    %512 = arith.mulf %116, %462 : vector<8x256xf32>
    %cst_130 = arith.constant dense<0.000000e+00> : vector<8xf32>
    %513 = vector.multi_reduction <add>, %512, %cst_130 [1] : vector<8x256xf32> to vector<8xf32>
    %514 = vector.shape_cast %513 : vector<8xf32> to vector<8x1xf32>
    %c129_i32 = arith.constant 129 : i32
    %515 = vector.broadcast %c129_i32 : i32 to vector<8x256xi32>
    %516 = arith.cmpi eq, %119, %515 : vector<8x256xi32>
    %cst_131 = arith.constant 0.000000e+00 : f32
    %517 = vector.shape_cast %514 : vector<8x1xf32> to vector<8x1xf32>
    %518 = vector.broadcast %517 : vector<8x1xf32> to vector<8x256xf32>
    %519 = vector.broadcast %cst_131 : f32 to vector<8x256xf32>
    %520 = arith.select %516, %518, %519 : vector<8x256xi1>, vector<8x256xf32>
    %521 = arith.addf %511, %520 : vector<8x256xf32>
    %522 = arith.mulf %117, %462 : vector<8x256xf32>
    %cst_132 = arith.constant dense<0.000000e+00> : vector<8xf32>
    %523 = vector.multi_reduction <add>, %522, %cst_132 [1] : vector<8x256xf32> to vector<8xf32>
    %524 = vector.shape_cast %523 : vector<8xf32> to vector<8x1xf32>
    %c154_i32 = arith.constant 154 : i32
    %525 = vector.broadcast %c154_i32 : i32 to vector<8x256xi32>
    %526 = arith.cmpi eq, %119, %525 : vector<8x256xi32>
    %cst_133 = arith.constant 0.000000e+00 : f32
    %527 = vector.shape_cast %524 : vector<8x1xf32> to vector<8x1xf32>
    %528 = vector.broadcast %527 : vector<8x1xf32> to vector<8x256xf32>
    %529 = vector.broadcast %cst_133 : f32 to vector<8x256xf32>
    %530 = arith.select %526, %528, %529 : vector<8x256xi1>, vector<8x256xf32>
    %531 = arith.addf %521, %530 : vector<8x256xf32>
    %532 = arith.mulf %118, %462 : vector<8x256xf32>
    %cst_134 = arith.constant dense<0.000000e+00> : vector<8xf32>
    %533 = vector.multi_reduction <add>, %532, %cst_134 [1] : vector<8x256xf32> to vector<8xf32>
    %534 = vector.shape_cast %533 : vector<8xf32> to vector<8x1xf32>
    %c179_i32 = arith.constant 179 : i32
    %535 = vector.broadcast %c179_i32 : i32 to vector<8x256xi32>
    %536 = arith.cmpi eq, %119, %535 : vector<8x256xi32>
    %cst_135 = arith.constant 0.000000e+00 : f32
    %537 = vector.shape_cast %534 : vector<8x1xf32> to vector<8x1xf32>
    %538 = vector.broadcast %537 : vector<8x1xf32> to vector<8x256xf32>
    %539 = vector.broadcast %cst_135 : f32 to vector<8x256xf32>
    %540 = arith.select %536, %538, %539 : vector<8x256xi1>, vector<8x256xf32>
    %541 = arith.addf %531, %540 : vector<8x256xf32>
    %542 = arith.addf %460, %541 : vector<8x256xf32>
    %cst_136 = arith.constant 13.7293682 : f32
    %543 = vector.broadcast %cst_136 : f32 to vector<8x256xf32>
    %544 = arith.mulf %543, %125 : vector<8x256xf32>
    %545 = arith.mulf %108, %544 : vector<8x256xf32>
    %cst_137 = arith.constant dense<0.000000e+00> : vector<8xf32>
    %546 = vector.multi_reduction <add>, %545, %cst_137 [1] : vector<8x256xf32> to vector<8xf32>
    %547 = vector.shape_cast %546 : vector<8xf32> to vector<8x1xf32>
    %c5_i32 = arith.constant 5 : i32
    %548 = vector.broadcast %c5_i32 : i32 to vector<8x256xi32>
    %549 = arith.cmpi eq, %119, %548 : vector<8x256xi32>
    %cst_138 = arith.constant 0.000000e+00 : f32
    %550 = vector.shape_cast %547 : vector<8x1xf32> to vector<8x1xf32>
    %551 = vector.broadcast %550 : vector<8x1xf32> to vector<8x256xf32>
    %552 = vector.broadcast %cst_138 : f32 to vector<8x256xf32>
    %553 = arith.select %549, %551, %552 : vector<8x256xi1>, vector<8x256xf32>
    %554 = arith.mulf %109, %544 : vector<8x256xf32>
    %cst_139 = arith.constant dense<0.000000e+00> : vector<8xf32>
    %555 = vector.multi_reduction <add>, %554, %cst_139 [1] : vector<8x256xf32> to vector<8xf32>
    %556 = vector.shape_cast %555 : vector<8xf32> to vector<8x1xf32>
    %c30_i32 = arith.constant 30 : i32
    %557 = vector.broadcast %c30_i32 : i32 to vector<8x256xi32>
    %558 = arith.cmpi eq, %119, %557 : vector<8x256xi32>
    %cst_140 = arith.constant 0.000000e+00 : f32
    %559 = vector.shape_cast %556 : vector<8x1xf32> to vector<8x1xf32>
    %560 = vector.broadcast %559 : vector<8x1xf32> to vector<8x256xf32>
    %561 = vector.broadcast %cst_140 : f32 to vector<8x256xf32>
    %562 = arith.select %558, %560, %561 : vector<8x256xi1>, vector<8x256xf32>
    %563 = arith.addf %553, %562 : vector<8x256xf32>
    %564 = arith.mulf %110, %544 : vector<8x256xf32>
    %cst_141 = arith.constant dense<0.000000e+00> : vector<8xf32>
    %565 = vector.multi_reduction <add>, %564, %cst_141 [1] : vector<8x256xf32> to vector<8xf32>
    %566 = vector.shape_cast %565 : vector<8xf32> to vector<8x1xf32>
    %c55_i32 = arith.constant 55 : i32
    %567 = vector.broadcast %c55_i32 : i32 to vector<8x256xi32>
    %568 = arith.cmpi eq, %119, %567 : vector<8x256xi32>
    %cst_142 = arith.constant 0.000000e+00 : f32
    %569 = vector.shape_cast %566 : vector<8x1xf32> to vector<8x1xf32>
    %570 = vector.broadcast %569 : vector<8x1xf32> to vector<8x256xf32>
    %571 = vector.broadcast %cst_142 : f32 to vector<8x256xf32>
    %572 = arith.select %568, %570, %571 : vector<8x256xi1>, vector<8x256xf32>
    %573 = arith.addf %563, %572 : vector<8x256xf32>
    %574 = arith.mulf %111, %544 : vector<8x256xf32>
    %cst_143 = arith.constant dense<0.000000e+00> : vector<8xf32>
    %575 = vector.multi_reduction <add>, %574, %cst_143 [1] : vector<8x256xf32> to vector<8xf32>
    %576 = vector.shape_cast %575 : vector<8xf32> to vector<8x1xf32>
    %c80_i32 = arith.constant 80 : i32
    %577 = vector.broadcast %c80_i32 : i32 to vector<8x256xi32>
    %578 = arith.cmpi eq, %119, %577 : vector<8x256xi32>
    %cst_144 = arith.constant 0.000000e+00 : f32
    %579 = vector.shape_cast %576 : vector<8x1xf32> to vector<8x1xf32>
    %580 = vector.broadcast %579 : vector<8x1xf32> to vector<8x256xf32>
    %581 = vector.broadcast %cst_144 : f32 to vector<8x256xf32>
    %582 = arith.select %578, %580, %581 : vector<8x256xi1>, vector<8x256xf32>
    %583 = arith.addf %573, %582 : vector<8x256xf32>
    %584 = arith.mulf %115, %544 : vector<8x256xf32>
    %cst_145 = arith.constant dense<0.000000e+00> : vector<8xf32>
    %585 = vector.multi_reduction <add>, %584, %cst_145 [1] : vector<8x256xf32> to vector<8xf32>
    %586 = vector.shape_cast %585 : vector<8xf32> to vector<8x1xf32>
    %c105_i32 = arith.constant 105 : i32
    %587 = vector.broadcast %c105_i32 : i32 to vector<8x256xi32>
    %588 = arith.cmpi eq, %119, %587 : vector<8x256xi32>
    %cst_146 = arith.constant 0.000000e+00 : f32
    %589 = vector.shape_cast %586 : vector<8x1xf32> to vector<8x1xf32>
    %590 = vector.broadcast %589 : vector<8x1xf32> to vector<8x256xf32>
    %591 = vector.broadcast %cst_146 : f32 to vector<8x256xf32>
    %592 = arith.select %588, %590, %591 : vector<8x256xi1>, vector<8x256xf32>
    %593 = arith.addf %583, %592 : vector<8x256xf32>
    %594 = arith.mulf %116, %544 : vector<8x256xf32>
    %cst_147 = arith.constant dense<0.000000e+00> : vector<8xf32>
    %595 = vector.multi_reduction <add>, %594, %cst_147 [1] : vector<8x256xf32> to vector<8xf32>
    %596 = vector.shape_cast %595 : vector<8xf32> to vector<8x1xf32>
    %c130_i32 = arith.constant 130 : i32
    %597 = vector.broadcast %c130_i32 : i32 to vector<8x256xi32>
    %598 = arith.cmpi eq, %119, %597 : vector<8x256xi32>
    %cst_148 = arith.constant 0.000000e+00 : f32
    %599 = vector.shape_cast %596 : vector<8x1xf32> to vector<8x1xf32>
    %600 = vector.broadcast %599 : vector<8x1xf32> to vector<8x256xf32>
    %601 = vector.broadcast %cst_148 : f32 to vector<8x256xf32>
    %602 = arith.select %598, %600, %601 : vector<8x256xi1>, vector<8x256xf32>
    %603 = arith.addf %593, %602 : vector<8x256xf32>
    %604 = arith.mulf %117, %544 : vector<8x256xf32>
    %cst_149 = arith.constant dense<0.000000e+00> : vector<8xf32>
    %605 = vector.multi_reduction <add>, %604, %cst_149 [1] : vector<8x256xf32> to vector<8xf32>
    %606 = vector.shape_cast %605 : vector<8xf32> to vector<8x1xf32>
    %c155_i32 = arith.constant 155 : i32
    %607 = vector.broadcast %c155_i32 : i32 to vector<8x256xi32>
    %608 = arith.cmpi eq, %119, %607 : vector<8x256xi32>
    %cst_150 = arith.constant 0.000000e+00 : f32
    %609 = vector.shape_cast %606 : vector<8x1xf32> to vector<8x1xf32>
    %610 = vector.broadcast %609 : vector<8x1xf32> to vector<8x256xf32>
    %611 = vector.broadcast %cst_150 : f32 to vector<8x256xf32>
    %612 = arith.select %608, %610, %611 : vector<8x256xi1>, vector<8x256xf32>
    %613 = arith.addf %603, %612 : vector<8x256xf32>
    %614 = arith.mulf %118, %544 : vector<8x256xf32>
    %cst_151 = arith.constant dense<0.000000e+00> : vector<8xf32>
    %615 = vector.multi_reduction <add>, %614, %cst_151 [1] : vector<8x256xf32> to vector<8xf32>
    %616 = vector.shape_cast %615 : vector<8xf32> to vector<8x1xf32>
    %c180_i32 = arith.constant 180 : i32
    %617 = vector.broadcast %c180_i32 : i32 to vector<8x256xi32>
    %618 = arith.cmpi eq, %119, %617 : vector<8x256xi32>
    %cst_152 = arith.constant 0.000000e+00 : f32
    %619 = vector.shape_cast %616 : vector<8x1xf32> to vector<8x1xf32>
    %620 = vector.broadcast %619 : vector<8x1xf32> to vector<8x256xf32>
    %621 = vector.broadcast %cst_152 : f32 to vector<8x256xf32>
    %622 = arith.select %618, %620, %621 : vector<8x256xi1>, vector<8x256xf32>
    %623 = arith.addf %613, %622 : vector<8x256xf32>
    %624 = arith.addf %542, %623 : vector<8x256xf32>
    %cst_153 = arith.constant 2.000000e+00 : f32
    %625 = vector.broadcast %cst_153 : f32 to vector<8x256xf32>
    %626 = arith.mulf %625, %123 : vector<8x256xf32>
    %627 = arith.subf %626, %121 : vector<8x256xf32>
    %628 = arith.subf %627, %122 : vector<8x256xf32>
    %cst_154 = arith.constant 3.96332741 : f32
    %629 = vector.broadcast %cst_154 : f32 to vector<8x256xf32>
    %630 = arith.mulf %629, %628 : vector<8x256xf32>
    %631 = arith.mulf %108, %630 : vector<8x256xf32>
    %cst_155 = arith.constant dense<0.000000e+00> : vector<8xf32>
    %632 = vector.multi_reduction <add>, %631, %cst_155 [1] : vector<8x256xf32> to vector<8xf32>
    %633 = vector.shape_cast %632 : vector<8xf32> to vector<8x1xf32>
    %c6_i32 = arith.constant 6 : i32
    %634 = vector.broadcast %c6_i32 : i32 to vector<8x256xi32>
    %635 = arith.cmpi eq, %119, %634 : vector<8x256xi32>
    %cst_156 = arith.constant 0.000000e+00 : f32
    %636 = vector.shape_cast %633 : vector<8x1xf32> to vector<8x1xf32>
    %637 = vector.broadcast %636 : vector<8x1xf32> to vector<8x256xf32>
    %638 = vector.broadcast %cst_156 : f32 to vector<8x256xf32>
    %639 = arith.select %635, %637, %638 : vector<8x256xi1>, vector<8x256xf32>
    %640 = arith.mulf %109, %630 : vector<8x256xf32>
    %cst_157 = arith.constant dense<0.000000e+00> : vector<8xf32>
    %641 = vector.multi_reduction <add>, %640, %cst_157 [1] : vector<8x256xf32> to vector<8xf32>
    %642 = vector.shape_cast %641 : vector<8xf32> to vector<8x1xf32>
    %c31_i32 = arith.constant 31 : i32
    %643 = vector.broadcast %c31_i32 : i32 to vector<8x256xi32>
    %644 = arith.cmpi eq, %119, %643 : vector<8x256xi32>
    %cst_158 = arith.constant 0.000000e+00 : f32
    %645 = vector.shape_cast %642 : vector<8x1xf32> to vector<8x1xf32>
    %646 = vector.broadcast %645 : vector<8x1xf32> to vector<8x256xf32>
    %647 = vector.broadcast %cst_158 : f32 to vector<8x256xf32>
    %648 = arith.select %644, %646, %647 : vector<8x256xi1>, vector<8x256xf32>
    %649 = arith.addf %639, %648 : vector<8x256xf32>
    %650 = arith.mulf %110, %630 : vector<8x256xf32>
    %cst_159 = arith.constant dense<0.000000e+00> : vector<8xf32>
    %651 = vector.multi_reduction <add>, %650, %cst_159 [1] : vector<8x256xf32> to vector<8xf32>
    %652 = vector.shape_cast %651 : vector<8xf32> to vector<8x1xf32>
    %c56_i32 = arith.constant 56 : i32
    %653 = vector.broadcast %c56_i32 : i32 to vector<8x256xi32>
    %654 = arith.cmpi eq, %119, %653 : vector<8x256xi32>
    %cst_160 = arith.constant 0.000000e+00 : f32
    %655 = vector.shape_cast %652 : vector<8x1xf32> to vector<8x1xf32>
    %656 = vector.broadcast %655 : vector<8x1xf32> to vector<8x256xf32>
    %657 = vector.broadcast %cst_160 : f32 to vector<8x256xf32>
    %658 = arith.select %654, %656, %657 : vector<8x256xi1>, vector<8x256xf32>
    %659 = arith.addf %649, %658 : vector<8x256xf32>
    %660 = arith.mulf %111, %630 : vector<8x256xf32>
    %cst_161 = arith.constant dense<0.000000e+00> : vector<8xf32>
    %661 = vector.multi_reduction <add>, %660, %cst_161 [1] : vector<8x256xf32> to vector<8xf32>
    %662 = vector.shape_cast %661 : vector<8xf32> to vector<8x1xf32>
    %c81_i32 = arith.constant 81 : i32
    %663 = vector.broadcast %c81_i32 : i32 to vector<8x256xi32>
    %664 = arith.cmpi eq, %119, %663 : vector<8x256xi32>
    %cst_162 = arith.constant 0.000000e+00 : f32
    %665 = vector.shape_cast %662 : vector<8x1xf32> to vector<8x1xf32>
    %666 = vector.broadcast %665 : vector<8x1xf32> to vector<8x256xf32>
    %667 = vector.broadcast %cst_162 : f32 to vector<8x256xf32>
    %668 = arith.select %664, %666, %667 : vector<8x256xi1>, vector<8x256xf32>
    %669 = arith.addf %659, %668 : vector<8x256xf32>
    %670 = arith.mulf %115, %630 : vector<8x256xf32>
    %cst_163 = arith.constant dense<0.000000e+00> : vector<8xf32>
    %671 = vector.multi_reduction <add>, %670, %cst_163 [1] : vector<8x256xf32> to vector<8xf32>
    %672 = vector.shape_cast %671 : vector<8xf32> to vector<8x1xf32>
    %c106_i32 = arith.constant 106 : i32
    %673 = vector.broadcast %c106_i32 : i32 to vector<8x256xi32>
    %674 = arith.cmpi eq, %119, %673 : vector<8x256xi32>
    %cst_164 = arith.constant 0.000000e+00 : f32
    %675 = vector.shape_cast %672 : vector<8x1xf32> to vector<8x1xf32>
    %676 = vector.broadcast %675 : vector<8x1xf32> to vector<8x256xf32>
    %677 = vector.broadcast %cst_164 : f32 to vector<8x256xf32>
    %678 = arith.select %674, %676, %677 : vector<8x256xi1>, vector<8x256xf32>
    %679 = arith.addf %669, %678 : vector<8x256xf32>
    %680 = arith.mulf %116, %630 : vector<8x256xf32>
    %cst_165 = arith.constant dense<0.000000e+00> : vector<8xf32>
    %681 = vector.multi_reduction <add>, %680, %cst_165 [1] : vector<8x256xf32> to vector<8xf32>
    %682 = vector.shape_cast %681 : vector<8xf32> to vector<8x1xf32>
    %c131_i32 = arith.constant 131 : i32
    %683 = vector.broadcast %c131_i32 : i32 to vector<8x256xi32>
    %684 = arith.cmpi eq, %119, %683 : vector<8x256xi32>
    %cst_166 = arith.constant 0.000000e+00 : f32
    %685 = vector.shape_cast %682 : vector<8x1xf32> to vector<8x1xf32>
    %686 = vector.broadcast %685 : vector<8x1xf32> to vector<8x256xf32>
    %687 = vector.broadcast %cst_166 : f32 to vector<8x256xf32>
    %688 = arith.select %684, %686, %687 : vector<8x256xi1>, vector<8x256xf32>
    %689 = arith.addf %679, %688 : vector<8x256xf32>
    %690 = arith.mulf %117, %630 : vector<8x256xf32>
    %cst_167 = arith.constant dense<0.000000e+00> : vector<8xf32>
    %691 = vector.multi_reduction <add>, %690, %cst_167 [1] : vector<8x256xf32> to vector<8xf32>
    %692 = vector.shape_cast %691 : vector<8xf32> to vector<8x1xf32>
    %c156_i32 = arith.constant 156 : i32
    %693 = vector.broadcast %c156_i32 : i32 to vector<8x256xi32>
    %694 = arith.cmpi eq, %119, %693 : vector<8x256xi32>
    %cst_168 = arith.constant 0.000000e+00 : f32
    %695 = vector.shape_cast %692 : vector<8x1xf32> to vector<8x1xf32>
    %696 = vector.broadcast %695 : vector<8x1xf32> to vector<8x256xf32>
    %697 = vector.broadcast %cst_168 : f32 to vector<8x256xf32>
    %698 = arith.select %694, %696, %697 : vector<8x256xi1>, vector<8x256xf32>
    %699 = arith.addf %689, %698 : vector<8x256xf32>
    %700 = arith.mulf %118, %630 : vector<8x256xf32>
    %cst_169 = arith.constant dense<0.000000e+00> : vector<8xf32>
    %701 = vector.multi_reduction <add>, %700, %cst_169 [1] : vector<8x256xf32> to vector<8xf32>
    %702 = vector.shape_cast %701 : vector<8xf32> to vector<8x1xf32>
    %c181_i32 = arith.constant 181 : i32
    %703 = vector.broadcast %c181_i32 : i32 to vector<8x256xi32>
    %704 = arith.cmpi eq, %119, %703 : vector<8x256xi32>
    %cst_170 = arith.constant 0.000000e+00 : f32
    %705 = vector.shape_cast %702 : vector<8x1xf32> to vector<8x1xf32>
    %706 = vector.broadcast %705 : vector<8x1xf32> to vector<8x256xf32>
    %707 = vector.broadcast %cst_170 : f32 to vector<8x256xf32>
    %708 = arith.select %704, %706, %707 : vector<8x256xi1>, vector<8x256xf32>
    %709 = arith.addf %699, %708 : vector<8x256xf32>
    %710 = arith.addf %624, %709 : vector<8x256xf32>
    %cst_171 = arith.constant 13.7293682 : f32
    %711 = vector.broadcast %cst_171 : f32 to vector<8x256xf32>
    %712 = arith.mulf %711, %126 : vector<8x256xf32>
    %713 = arith.mulf %108, %712 : vector<8x256xf32>
    %cst_172 = arith.constant dense<0.000000e+00> : vector<8xf32>
    %714 = vector.multi_reduction <add>, %713, %cst_172 [1] : vector<8x256xf32> to vector<8xf32>
    %715 = vector.shape_cast %714 : vector<8xf32> to vector<8x1xf32>
    %c7_i32 = arith.constant 7 : i32
    %716 = vector.broadcast %c7_i32 : i32 to vector<8x256xi32>
    %717 = arith.cmpi eq, %119, %716 : vector<8x256xi32>
    %cst_173 = arith.constant 0.000000e+00 : f32
    %718 = vector.shape_cast %715 : vector<8x1xf32> to vector<8x1xf32>
    %719 = vector.broadcast %718 : vector<8x1xf32> to vector<8x256xf32>
    %720 = vector.broadcast %cst_173 : f32 to vector<8x256xf32>
    %721 = arith.select %717, %719, %720 : vector<8x256xi1>, vector<8x256xf32>
    %722 = arith.mulf %109, %712 : vector<8x256xf32>
    %cst_174 = arith.constant dense<0.000000e+00> : vector<8xf32>
    %723 = vector.multi_reduction <add>, %722, %cst_174 [1] : vector<8x256xf32> to vector<8xf32>
    %724 = vector.shape_cast %723 : vector<8xf32> to vector<8x1xf32>
    %c32_i32 = arith.constant 32 : i32
    %725 = vector.broadcast %c32_i32 : i32 to vector<8x256xi32>
    %726 = arith.cmpi eq, %119, %725 : vector<8x256xi32>
    %cst_175 = arith.constant 0.000000e+00 : f32
    %727 = vector.shape_cast %724 : vector<8x1xf32> to vector<8x1xf32>
    %728 = vector.broadcast %727 : vector<8x1xf32> to vector<8x256xf32>
    %729 = vector.broadcast %cst_175 : f32 to vector<8x256xf32>
    %730 = arith.select %726, %728, %729 : vector<8x256xi1>, vector<8x256xf32>
    %731 = arith.addf %721, %730 : vector<8x256xf32>
    %732 = arith.mulf %110, %712 : vector<8x256xf32>
    %cst_176 = arith.constant dense<0.000000e+00> : vector<8xf32>
    %733 = vector.multi_reduction <add>, %732, %cst_176 [1] : vector<8x256xf32> to vector<8xf32>
    %734 = vector.shape_cast %733 : vector<8xf32> to vector<8x1xf32>
    %c57_i32 = arith.constant 57 : i32
    %735 = vector.broadcast %c57_i32 : i32 to vector<8x256xi32>
    %736 = arith.cmpi eq, %119, %735 : vector<8x256xi32>
    %cst_177 = arith.constant 0.000000e+00 : f32
    %737 = vector.shape_cast %734 : vector<8x1xf32> to vector<8x1xf32>
    %738 = vector.broadcast %737 : vector<8x1xf32> to vector<8x256xf32>
    %739 = vector.broadcast %cst_177 : f32 to vector<8x256xf32>
    %740 = arith.select %736, %738, %739 : vector<8x256xi1>, vector<8x256xf32>
    %741 = arith.addf %731, %740 : vector<8x256xf32>
    %742 = arith.mulf %111, %712 : vector<8x256xf32>
    %cst_178 = arith.constant dense<0.000000e+00> : vector<8xf32>
    %743 = vector.multi_reduction <add>, %742, %cst_178 [1] : vector<8x256xf32> to vector<8xf32>
    %744 = vector.shape_cast %743 : vector<8xf32> to vector<8x1xf32>
    %c82_i32 = arith.constant 82 : i32
    %745 = vector.broadcast %c82_i32 : i32 to vector<8x256xi32>
    %746 = arith.cmpi eq, %119, %745 : vector<8x256xi32>
    %cst_179 = arith.constant 0.000000e+00 : f32
    %747 = vector.shape_cast %744 : vector<8x1xf32> to vector<8x1xf32>
    %748 = vector.broadcast %747 : vector<8x1xf32> to vector<8x256xf32>
    %749 = vector.broadcast %cst_179 : f32 to vector<8x256xf32>
    %750 = arith.select %746, %748, %749 : vector<8x256xi1>, vector<8x256xf32>
    %751 = arith.addf %741, %750 : vector<8x256xf32>
    %752 = arith.mulf %115, %712 : vector<8x256xf32>
    %cst_180 = arith.constant dense<0.000000e+00> : vector<8xf32>
    %753 = vector.multi_reduction <add>, %752, %cst_180 [1] : vector<8x256xf32> to vector<8xf32>
    %754 = vector.shape_cast %753 : vector<8xf32> to vector<8x1xf32>
    %c107_i32 = arith.constant 107 : i32
    %755 = vector.broadcast %c107_i32 : i32 to vector<8x256xi32>
    %756 = arith.cmpi eq, %119, %755 : vector<8x256xi32>
    %cst_181 = arith.constant 0.000000e+00 : f32
    %757 = vector.shape_cast %754 : vector<8x1xf32> to vector<8x1xf32>
    %758 = vector.broadcast %757 : vector<8x1xf32> to vector<8x256xf32>
    %759 = vector.broadcast %cst_181 : f32 to vector<8x256xf32>
    %760 = arith.select %756, %758, %759 : vector<8x256xi1>, vector<8x256xf32>
    %761 = arith.addf %751, %760 : vector<8x256xf32>
    %762 = arith.mulf %116, %712 : vector<8x256xf32>
    %cst_182 = arith.constant dense<0.000000e+00> : vector<8xf32>
    %763 = vector.multi_reduction <add>, %762, %cst_182 [1] : vector<8x256xf32> to vector<8xf32>
    %764 = vector.shape_cast %763 : vector<8xf32> to vector<8x1xf32>
    %c132_i32 = arith.constant 132 : i32
    %765 = vector.broadcast %c132_i32 : i32 to vector<8x256xi32>
    %766 = arith.cmpi eq, %119, %765 : vector<8x256xi32>
    %cst_183 = arith.constant 0.000000e+00 : f32
    %767 = vector.shape_cast %764 : vector<8x1xf32> to vector<8x1xf32>
    %768 = vector.broadcast %767 : vector<8x1xf32> to vector<8x256xf32>
    %769 = vector.broadcast %cst_183 : f32 to vector<8x256xf32>
    %770 = arith.select %766, %768, %769 : vector<8x256xi1>, vector<8x256xf32>
    %771 = arith.addf %761, %770 : vector<8x256xf32>
    %772 = arith.mulf %117, %712 : vector<8x256xf32>
    %cst_184 = arith.constant dense<0.000000e+00> : vector<8xf32>
    %773 = vector.multi_reduction <add>, %772, %cst_184 [1] : vector<8x256xf32> to vector<8xf32>
    %774 = vector.shape_cast %773 : vector<8xf32> to vector<8x1xf32>
    %c157_i32 = arith.constant 157 : i32
    %775 = vector.broadcast %c157_i32 : i32 to vector<8x256xi32>
    %776 = arith.cmpi eq, %119, %775 : vector<8x256xi32>
    %cst_185 = arith.constant 0.000000e+00 : f32
    %777 = vector.shape_cast %774 : vector<8x1xf32> to vector<8x1xf32>
    %778 = vector.broadcast %777 : vector<8x1xf32> to vector<8x256xf32>
    %779 = vector.broadcast %cst_185 : f32 to vector<8x256xf32>
    %780 = arith.select %776, %778, %779 : vector<8x256xi1>, vector<8x256xf32>
    %781 = arith.addf %771, %780 : vector<8x256xf32>
    %782 = arith.mulf %118, %712 : vector<8x256xf32>
    %cst_186 = arith.constant dense<0.000000e+00> : vector<8xf32>
    %783 = vector.multi_reduction <add>, %782, %cst_186 [1] : vector<8x256xf32> to vector<8xf32>
    %784 = vector.shape_cast %783 : vector<8xf32> to vector<8x1xf32>
    %c182_i32 = arith.constant 182 : i32
    %785 = vector.broadcast %c182_i32 : i32 to vector<8x256xi32>
    %786 = arith.cmpi eq, %119, %785 : vector<8x256xi32>
    %cst_187 = arith.constant 0.000000e+00 : f32
    %787 = vector.shape_cast %784 : vector<8x1xf32> to vector<8x1xf32>
    %788 = vector.broadcast %787 : vector<8x1xf32> to vector<8x256xf32>
    %789 = vector.broadcast %cst_187 : f32 to vector<8x256xf32>
    %790 = arith.select %786, %788, %789 : vector<8x256xi1>, vector<8x256xf32>
    %791 = arith.addf %781, %790 : vector<8x256xf32>
    %792 = arith.addf %710, %791 : vector<8x256xf32>
    %793 = arith.subf %121, %122 : vector<8x256xf32>
    %cst_188 = arith.constant 6.8646841 : f32
    %794 = vector.broadcast %cst_188 : f32 to vector<8x256xf32>
    %795 = arith.mulf %794, %793 : vector<8x256xf32>
    %796 = arith.mulf %108, %795 : vector<8x256xf32>
    %cst_189 = arith.constant dense<0.000000e+00> : vector<8xf32>
    %797 = vector.multi_reduction <add>, %796, %cst_189 [1] : vector<8x256xf32> to vector<8xf32>
    %798 = vector.shape_cast %797 : vector<8xf32> to vector<8x1xf32>
    %c8_i32 = arith.constant 8 : i32
    %799 = vector.broadcast %c8_i32 : i32 to vector<8x256xi32>
    %800 = arith.cmpi eq, %119, %799 : vector<8x256xi32>
    %cst_190 = arith.constant 0.000000e+00 : f32
    %801 = vector.shape_cast %798 : vector<8x1xf32> to vector<8x1xf32>
    %802 = vector.broadcast %801 : vector<8x1xf32> to vector<8x256xf32>
    %803 = vector.broadcast %cst_190 : f32 to vector<8x256xf32>
    %804 = arith.select %800, %802, %803 : vector<8x256xi1>, vector<8x256xf32>
    %805 = arith.mulf %109, %795 : vector<8x256xf32>
    %cst_191 = arith.constant dense<0.000000e+00> : vector<8xf32>
    %806 = vector.multi_reduction <add>, %805, %cst_191 [1] : vector<8x256xf32> to vector<8xf32>
    %807 = vector.shape_cast %806 : vector<8xf32> to vector<8x1xf32>
    %c33_i32 = arith.constant 33 : i32
    %808 = vector.broadcast %c33_i32 : i32 to vector<8x256xi32>
    %809 = arith.cmpi eq, %119, %808 : vector<8x256xi32>
    %cst_192 = arith.constant 0.000000e+00 : f32
    %810 = vector.shape_cast %807 : vector<8x1xf32> to vector<8x1xf32>
    %811 = vector.broadcast %810 : vector<8x1xf32> to vector<8x256xf32>
    %812 = vector.broadcast %cst_192 : f32 to vector<8x256xf32>
    %813 = arith.select %809, %811, %812 : vector<8x256xi1>, vector<8x256xf32>
    %814 = arith.addf %804, %813 : vector<8x256xf32>
    %815 = arith.mulf %110, %795 : vector<8x256xf32>
    %cst_193 = arith.constant dense<0.000000e+00> : vector<8xf32>
    %816 = vector.multi_reduction <add>, %815, %cst_193 [1] : vector<8x256xf32> to vector<8xf32>
    %817 = vector.shape_cast %816 : vector<8xf32> to vector<8x1xf32>
    %c58_i32 = arith.constant 58 : i32
    %818 = vector.broadcast %c58_i32 : i32 to vector<8x256xi32>
    %819 = arith.cmpi eq, %119, %818 : vector<8x256xi32>
    %cst_194 = arith.constant 0.000000e+00 : f32
    %820 = vector.shape_cast %817 : vector<8x1xf32> to vector<8x1xf32>
    %821 = vector.broadcast %820 : vector<8x1xf32> to vector<8x256xf32>
    %822 = vector.broadcast %cst_194 : f32 to vector<8x256xf32>
    %823 = arith.select %819, %821, %822 : vector<8x256xi1>, vector<8x256xf32>
    %824 = arith.addf %814, %823 : vector<8x256xf32>
    %825 = arith.mulf %111, %795 : vector<8x256xf32>
    %cst_195 = arith.constant dense<0.000000e+00> : vector<8xf32>
    %826 = vector.multi_reduction <add>, %825, %cst_195 [1] : vector<8x256xf32> to vector<8xf32>
    %827 = vector.shape_cast %826 : vector<8xf32> to vector<8x1xf32>
    %c83_i32 = arith.constant 83 : i32
    %828 = vector.broadcast %c83_i32 : i32 to vector<8x256xi32>
    %829 = arith.cmpi eq, %119, %828 : vector<8x256xi32>
    %cst_196 = arith.constant 0.000000e+00 : f32
    %830 = vector.shape_cast %827 : vector<8x1xf32> to vector<8x1xf32>
    %831 = vector.broadcast %830 : vector<8x1xf32> to vector<8x256xf32>
    %832 = vector.broadcast %cst_196 : f32 to vector<8x256xf32>
    %833 = arith.select %829, %831, %832 : vector<8x256xi1>, vector<8x256xf32>
    %834 = arith.addf %824, %833 : vector<8x256xf32>
    %835 = arith.mulf %115, %795 : vector<8x256xf32>
    %cst_197 = arith.constant dense<0.000000e+00> : vector<8xf32>
    %836 = vector.multi_reduction <add>, %835, %cst_197 [1] : vector<8x256xf32> to vector<8xf32>
    %837 = vector.shape_cast %836 : vector<8xf32> to vector<8x1xf32>
    %c108_i32 = arith.constant 108 : i32
    %838 = vector.broadcast %c108_i32 : i32 to vector<8x256xi32>
    %839 = arith.cmpi eq, %119, %838 : vector<8x256xi32>
    %cst_198 = arith.constant 0.000000e+00 : f32
    %840 = vector.shape_cast %837 : vector<8x1xf32> to vector<8x1xf32>
    %841 = vector.broadcast %840 : vector<8x1xf32> to vector<8x256xf32>
    %842 = vector.broadcast %cst_198 : f32 to vector<8x256xf32>
    %843 = arith.select %839, %841, %842 : vector<8x256xi1>, vector<8x256xf32>
    %844 = arith.addf %834, %843 : vector<8x256xf32>
    %845 = arith.mulf %116, %795 : vector<8x256xf32>
    %cst_199 = arith.constant dense<0.000000e+00> : vector<8xf32>
    %846 = vector.multi_reduction <add>, %845, %cst_199 [1] : vector<8x256xf32> to vector<8xf32>
    %847 = vector.shape_cast %846 : vector<8xf32> to vector<8x1xf32>
    %c133_i32 = arith.constant 133 : i32
    %848 = vector.broadcast %c133_i32 : i32 to vector<8x256xi32>
    %849 = arith.cmpi eq, %119, %848 : vector<8x256xi32>
    %cst_200 = arith.constant 0.000000e+00 : f32
    %850 = vector.shape_cast %847 : vector<8x1xf32> to vector<8x1xf32>
    %851 = vector.broadcast %850 : vector<8x1xf32> to vector<8x256xf32>
    %852 = vector.broadcast %cst_200 : f32 to vector<8x256xf32>
    %853 = arith.select %849, %851, %852 : vector<8x256xi1>, vector<8x256xf32>
    %854 = arith.addf %844, %853 : vector<8x256xf32>
    %855 = arith.mulf %117, %795 : vector<8x256xf32>
    %cst_201 = arith.constant dense<0.000000e+00> : vector<8xf32>
    %856 = vector.multi_reduction <add>, %855, %cst_201 [1] : vector<8x256xf32> to vector<8xf32>
    %857 = vector.shape_cast %856 : vector<8xf32> to vector<8x1xf32>
    %c158_i32 = arith.constant 158 : i32
    %858 = vector.broadcast %c158_i32 : i32 to vector<8x256xi32>
    %859 = arith.cmpi eq, %119, %858 : vector<8x256xi32>
    %cst_202 = arith.constant 0.000000e+00 : f32
    %860 = vector.shape_cast %857 : vector<8x1xf32> to vector<8x1xf32>
    %861 = vector.broadcast %860 : vector<8x1xf32> to vector<8x256xf32>
    %862 = vector.broadcast %cst_202 : f32 to vector<8x256xf32>
    %863 = arith.select %859, %861, %862 : vector<8x256xi1>, vector<8x256xf32>
    %864 = arith.addf %854, %863 : vector<8x256xf32>
    %865 = arith.mulf %118, %795 : vector<8x256xf32>
    %cst_203 = arith.constant dense<0.000000e+00> : vector<8xf32>
    %866 = vector.multi_reduction <add>, %865, %cst_203 [1] : vector<8x256xf32> to vector<8xf32>
    %867 = vector.shape_cast %866 : vector<8xf32> to vector<8x1xf32>
    %c183_i32 = arith.constant 183 : i32
    %868 = vector.broadcast %c183_i32 : i32 to vector<8x256xi32>
    %869 = arith.cmpi eq, %119, %868 : vector<8x256xi32>
    %cst_204 = arith.constant 0.000000e+00 : f32
    %870 = vector.shape_cast %867 : vector<8x1xf32> to vector<8x1xf32>
    %871 = vector.broadcast %870 : vector<8x1xf32> to vector<8x256xf32>
    %872 = vector.broadcast %cst_204 : f32 to vector<8x256xf32>
    %873 = arith.select %869, %871, %872 : vector<8x256xi1>, vector<8x256xf32>
    %874 = arith.addf %864, %873 : vector<8x256xf32>
    %875 = arith.addf %792, %874 : vector<8x256xf32>
    %cst_205 = arith.constant 7.41470623 : f32
    %876 = vector.broadcast %cst_205 : f32 to vector<8x256xf32>
    %877 = arith.mulf %876, %31 : vector<8x256xf32>
    %cst_206 = arith.constant 3.000000e+00 : f32
    %878 = vector.broadcast %cst_206 : f32 to vector<8x256xf32>
    %879 = arith.mulf %878, %121 : vector<8x256xf32>
    %880 = arith.subf %879, %122 : vector<8x256xf32>
    %881 = arith.mulf %877, %880 : vector<8x256xf32>
    %882 = arith.mulf %108, %881 : vector<8x256xf32>
    %cst_207 = arith.constant dense<0.000000e+00> : vector<8xf32>
    %883 = vector.multi_reduction <add>, %882, %cst_207 [1] : vector<8x256xf32> to vector<8xf32>
    %884 = vector.shape_cast %883 : vector<8xf32> to vector<8x1xf32>
    %c9_i32 = arith.constant 9 : i32
    %885 = vector.broadcast %c9_i32 : i32 to vector<8x256xi32>
    %886 = arith.cmpi eq, %119, %885 : vector<8x256xi32>
    %cst_208 = arith.constant 0.000000e+00 : f32
    %887 = vector.shape_cast %884 : vector<8x1xf32> to vector<8x1xf32>
    %888 = vector.broadcast %887 : vector<8x1xf32> to vector<8x256xf32>
    %889 = vector.broadcast %cst_208 : f32 to vector<8x256xf32>
    %890 = arith.select %886, %888, %889 : vector<8x256xi1>, vector<8x256xf32>
    %891 = arith.mulf %109, %881 : vector<8x256xf32>
    %cst_209 = arith.constant dense<0.000000e+00> : vector<8xf32>
    %892 = vector.multi_reduction <add>, %891, %cst_209 [1] : vector<8x256xf32> to vector<8xf32>
    %893 = vector.shape_cast %892 : vector<8xf32> to vector<8x1xf32>
    %c34_i32 = arith.constant 34 : i32
    %894 = vector.broadcast %c34_i32 : i32 to vector<8x256xi32>
    %895 = arith.cmpi eq, %119, %894 : vector<8x256xi32>
    %cst_210 = arith.constant 0.000000e+00 : f32
    %896 = vector.shape_cast %893 : vector<8x1xf32> to vector<8x1xf32>
    %897 = vector.broadcast %896 : vector<8x1xf32> to vector<8x256xf32>
    %898 = vector.broadcast %cst_210 : f32 to vector<8x256xf32>
    %899 = arith.select %895, %897, %898 : vector<8x256xi1>, vector<8x256xf32>
    %900 = arith.addf %890, %899 : vector<8x256xf32>
    %901 = arith.mulf %110, %881 : vector<8x256xf32>
    %cst_211 = arith.constant dense<0.000000e+00> : vector<8xf32>
    %902 = vector.multi_reduction <add>, %901, %cst_211 [1] : vector<8x256xf32> to vector<8xf32>
    %903 = vector.shape_cast %902 : vector<8xf32> to vector<8x1xf32>
    %c59_i32 = arith.constant 59 : i32
    %904 = vector.broadcast %c59_i32 : i32 to vector<8x256xi32>
    %905 = arith.cmpi eq, %119, %904 : vector<8x256xi32>
    %cst_212 = arith.constant 0.000000e+00 : f32
    %906 = vector.shape_cast %903 : vector<8x1xf32> to vector<8x1xf32>
    %907 = vector.broadcast %906 : vector<8x1xf32> to vector<8x256xf32>
    %908 = vector.broadcast %cst_212 : f32 to vector<8x256xf32>
    %909 = arith.select %905, %907, %908 : vector<8x256xi1>, vector<8x256xf32>
    %910 = arith.addf %900, %909 : vector<8x256xf32>
    %911 = arith.mulf %111, %881 : vector<8x256xf32>
    %cst_213 = arith.constant dense<0.000000e+00> : vector<8xf32>
    %912 = vector.multi_reduction <add>, %911, %cst_213 [1] : vector<8x256xf32> to vector<8xf32>
    %913 = vector.shape_cast %912 : vector<8xf32> to vector<8x1xf32>
    %c84_i32 = arith.constant 84 : i32
    %914 = vector.broadcast %c84_i32 : i32 to vector<8x256xi32>
    %915 = arith.cmpi eq, %119, %914 : vector<8x256xi32>
    %cst_214 = arith.constant 0.000000e+00 : f32
    %916 = vector.shape_cast %913 : vector<8x1xf32> to vector<8x1xf32>
    %917 = vector.broadcast %916 : vector<8x1xf32> to vector<8x256xf32>
    %918 = vector.broadcast %cst_214 : f32 to vector<8x256xf32>
    %919 = arith.select %915, %917, %918 : vector<8x256xi1>, vector<8x256xf32>
    %920 = arith.addf %910, %919 : vector<8x256xf32>
    %921 = arith.mulf %115, %881 : vector<8x256xf32>
    %cst_215 = arith.constant dense<0.000000e+00> : vector<8xf32>
    %922 = vector.multi_reduction <add>, %921, %cst_215 [1] : vector<8x256xf32> to vector<8xf32>
    %923 = vector.shape_cast %922 : vector<8xf32> to vector<8x1xf32>
    %c109_i32 = arith.constant 109 : i32
    %924 = vector.broadcast %c109_i32 : i32 to vector<8x256xi32>
    %925 = arith.cmpi eq, %119, %924 : vector<8x256xi32>
    %cst_216 = arith.constant 0.000000e+00 : f32
    %926 = vector.shape_cast %923 : vector<8x1xf32> to vector<8x1xf32>
    %927 = vector.broadcast %926 : vector<8x1xf32> to vector<8x256xf32>
    %928 = vector.broadcast %cst_216 : f32 to vector<8x256xf32>
    %929 = arith.select %925, %927, %928 : vector<8x256xi1>, vector<8x256xf32>
    %930 = arith.addf %920, %929 : vector<8x256xf32>
    %931 = arith.mulf %116, %881 : vector<8x256xf32>
    %cst_217 = arith.constant dense<0.000000e+00> : vector<8xf32>
    %932 = vector.multi_reduction <add>, %931, %cst_217 [1] : vector<8x256xf32> to vector<8xf32>
    %933 = vector.shape_cast %932 : vector<8xf32> to vector<8x1xf32>
    %c134_i32 = arith.constant 134 : i32
    %934 = vector.broadcast %c134_i32 : i32 to vector<8x256xi32>
    %935 = arith.cmpi eq, %119, %934 : vector<8x256xi32>
    %cst_218 = arith.constant 0.000000e+00 : f32
    %936 = vector.shape_cast %933 : vector<8x1xf32> to vector<8x1xf32>
    %937 = vector.broadcast %936 : vector<8x1xf32> to vector<8x256xf32>
    %938 = vector.broadcast %cst_218 : f32 to vector<8x256xf32>
    %939 = arith.select %935, %937, %938 : vector<8x256xi1>, vector<8x256xf32>
    %940 = arith.addf %930, %939 : vector<8x256xf32>
    %941 = arith.mulf %117, %881 : vector<8x256xf32>
    %cst_219 = arith.constant dense<0.000000e+00> : vector<8xf32>
    %942 = vector.multi_reduction <add>, %941, %cst_219 [1] : vector<8x256xf32> to vector<8xf32>
    %943 = vector.shape_cast %942 : vector<8xf32> to vector<8x1xf32>
    %c159_i32 = arith.constant 159 : i32
    %944 = vector.broadcast %c159_i32 : i32 to vector<8x256xi32>
    %945 = arith.cmpi eq, %119, %944 : vector<8x256xi32>
    %cst_220 = arith.constant 0.000000e+00 : f32
    %946 = vector.shape_cast %943 : vector<8x1xf32> to vector<8x1xf32>
    %947 = vector.broadcast %946 : vector<8x1xf32> to vector<8x256xf32>
    %948 = vector.broadcast %cst_220 : f32 to vector<8x256xf32>
    %949 = arith.select %945, %947, %948 : vector<8x256xi1>, vector<8x256xf32>
    %950 = arith.addf %940, %949 : vector<8x256xf32>
    %951 = arith.mulf %118, %881 : vector<8x256xf32>
    %cst_221 = arith.constant dense<0.000000e+00> : vector<8xf32>
    %952 = vector.multi_reduction <add>, %951, %cst_221 [1] : vector<8x256xf32> to vector<8xf32>
    %953 = vector.shape_cast %952 : vector<8xf32> to vector<8x1xf32>
    %c184_i32 = arith.constant 184 : i32
    %954 = vector.broadcast %c184_i32 : i32 to vector<8x256xi32>
    %955 = arith.cmpi eq, %119, %954 : vector<8x256xi32>
    %cst_222 = arith.constant 0.000000e+00 : f32
    %956 = vector.shape_cast %953 : vector<8x1xf32> to vector<8x1xf32>
    %957 = vector.broadcast %956 : vector<8x1xf32> to vector<8x256xf32>
    %958 = vector.broadcast %cst_222 : f32 to vector<8x256xf32>
    %959 = arith.select %955, %957, %958 : vector<8x256xi1>, vector<8x256xf32>
    %960 = arith.addf %950, %959 : vector<8x256xf32>
    %961 = arith.addf %875, %960 : vector<8x256xf32>
    %cst_223 = arith.constant 36.3244934 : f32
    %962 = vector.broadcast %cst_223 : f32 to vector<8x256xf32>
    %963 = arith.mulf %962, %124 : vector<8x256xf32>
    %964 = arith.mulf %963, %32 : vector<8x256xf32>
    %965 = arith.mulf %108, %964 : vector<8x256xf32>
    %cst_224 = arith.constant dense<0.000000e+00> : vector<8xf32>
    %966 = vector.multi_reduction <add>, %965, %cst_224 [1] : vector<8x256xf32> to vector<8xf32>
    %967 = vector.shape_cast %966 : vector<8xf32> to vector<8x1xf32>
    %c10_i32 = arith.constant 10 : i32
    %968 = vector.broadcast %c10_i32 : i32 to vector<8x256xi32>
    %969 = arith.cmpi eq, %119, %968 : vector<8x256xi32>
    %cst_225 = arith.constant 0.000000e+00 : f32
    %970 = vector.shape_cast %967 : vector<8x1xf32> to vector<8x1xf32>
    %971 = vector.broadcast %970 : vector<8x1xf32> to vector<8x256xf32>
    %972 = vector.broadcast %cst_225 : f32 to vector<8x256xf32>
    %973 = arith.select %969, %971, %972 : vector<8x256xi1>, vector<8x256xf32>
    %974 = arith.mulf %109, %964 : vector<8x256xf32>
    %cst_226 = arith.constant dense<0.000000e+00> : vector<8xf32>
    %975 = vector.multi_reduction <add>, %974, %cst_226 [1] : vector<8x256xf32> to vector<8xf32>
    %976 = vector.shape_cast %975 : vector<8xf32> to vector<8x1xf32>
    %c35_i32 = arith.constant 35 : i32
    %977 = vector.broadcast %c35_i32 : i32 to vector<8x256xi32>
    %978 = arith.cmpi eq, %119, %977 : vector<8x256xi32>
    %cst_227 = arith.constant 0.000000e+00 : f32
    %979 = vector.shape_cast %976 : vector<8x1xf32> to vector<8x1xf32>
    %980 = vector.broadcast %979 : vector<8x1xf32> to vector<8x256xf32>
    %981 = vector.broadcast %cst_227 : f32 to vector<8x256xf32>
    %982 = arith.select %978, %980, %981 : vector<8x256xi1>, vector<8x256xf32>
    %983 = arith.addf %973, %982 : vector<8x256xf32>
    %984 = arith.mulf %110, %964 : vector<8x256xf32>
    %cst_228 = arith.constant dense<0.000000e+00> : vector<8xf32>
    %985 = vector.multi_reduction <add>, %984, %cst_228 [1] : vector<8x256xf32> to vector<8xf32>
    %986 = vector.shape_cast %985 : vector<8xf32> to vector<8x1xf32>
    %c60_i32 = arith.constant 60 : i32
    %987 = vector.broadcast %c60_i32 : i32 to vector<8x256xi32>
    %988 = arith.cmpi eq, %119, %987 : vector<8x256xi32>
    %cst_229 = arith.constant 0.000000e+00 : f32
    %989 = vector.shape_cast %986 : vector<8x1xf32> to vector<8x1xf32>
    %990 = vector.broadcast %989 : vector<8x1xf32> to vector<8x256xf32>
    %991 = vector.broadcast %cst_229 : f32 to vector<8x256xf32>
    %992 = arith.select %988, %990, %991 : vector<8x256xi1>, vector<8x256xf32>
    %993 = arith.addf %983, %992 : vector<8x256xf32>
    %994 = arith.mulf %111, %964 : vector<8x256xf32>
    %cst_230 = arith.constant dense<0.000000e+00> : vector<8xf32>
    %995 = vector.multi_reduction <add>, %994, %cst_230 [1] : vector<8x256xf32> to vector<8xf32>
    %996 = vector.shape_cast %995 : vector<8xf32> to vector<8x1xf32>
    %c85_i32 = arith.constant 85 : i32
    %997 = vector.broadcast %c85_i32 : i32 to vector<8x256xi32>
    %998 = arith.cmpi eq, %119, %997 : vector<8x256xi32>
    %cst_231 = arith.constant 0.000000e+00 : f32
    %999 = vector.shape_cast %996 : vector<8x1xf32> to vector<8x1xf32>
    %1000 = vector.broadcast %999 : vector<8x1xf32> to vector<8x256xf32>
    %1001 = vector.broadcast %cst_231 : f32 to vector<8x256xf32>
    %1002 = arith.select %998, %1000, %1001 : vector<8x256xi1>, vector<8x256xf32>
    %1003 = arith.addf %993, %1002 : vector<8x256xf32>
    %1004 = arith.mulf %115, %964 : vector<8x256xf32>
    %cst_232 = arith.constant dense<0.000000e+00> : vector<8xf32>
    %1005 = vector.multi_reduction <add>, %1004, %cst_232 [1] : vector<8x256xf32> to vector<8xf32>
    %1006 = vector.shape_cast %1005 : vector<8xf32> to vector<8x1xf32>
    %c110_i32 = arith.constant 110 : i32
    %1007 = vector.broadcast %c110_i32 : i32 to vector<8x256xi32>
    %1008 = arith.cmpi eq, %119, %1007 : vector<8x256xi32>
    %cst_233 = arith.constant 0.000000e+00 : f32
    %1009 = vector.shape_cast %1006 : vector<8x1xf32> to vector<8x1xf32>
    %1010 = vector.broadcast %1009 : vector<8x1xf32> to vector<8x256xf32>
    %1011 = vector.broadcast %cst_233 : f32 to vector<8x256xf32>
    %1012 = arith.select %1008, %1010, %1011 : vector<8x256xi1>, vector<8x256xf32>
    %1013 = arith.addf %1003, %1012 : vector<8x256xf32>
    %1014 = arith.mulf %116, %964 : vector<8x256xf32>
    %cst_234 = arith.constant dense<0.000000e+00> : vector<8xf32>
    %1015 = vector.multi_reduction <add>, %1014, %cst_234 [1] : vector<8x256xf32> to vector<8xf32>
    %1016 = vector.shape_cast %1015 : vector<8xf32> to vector<8x1xf32>
    %c135_i32 = arith.constant 135 : i32
    %1017 = vector.broadcast %c135_i32 : i32 to vector<8x256xi32>
    %1018 = arith.cmpi eq, %119, %1017 : vector<8x256xi32>
    %cst_235 = arith.constant 0.000000e+00 : f32
    %1019 = vector.shape_cast %1016 : vector<8x1xf32> to vector<8x1xf32>
    %1020 = vector.broadcast %1019 : vector<8x1xf32> to vector<8x256xf32>
    %1021 = vector.broadcast %cst_235 : f32 to vector<8x256xf32>
    %1022 = arith.select %1018, %1020, %1021 : vector<8x256xi1>, vector<8x256xf32>
    %1023 = arith.addf %1013, %1022 : vector<8x256xf32>
    %1024 = arith.mulf %117, %964 : vector<8x256xf32>
    %cst_236 = arith.constant dense<0.000000e+00> : vector<8xf32>
    %1025 = vector.multi_reduction <add>, %1024, %cst_236 [1] : vector<8x256xf32> to vector<8xf32>
    %1026 = vector.shape_cast %1025 : vector<8xf32> to vector<8x1xf32>
    %c160_i32 = arith.constant 160 : i32
    %1027 = vector.broadcast %c160_i32 : i32 to vector<8x256xi32>
    %1028 = arith.cmpi eq, %119, %1027 : vector<8x256xi32>
    %cst_237 = arith.constant 0.000000e+00 : f32
    %1029 = vector.shape_cast %1026 : vector<8x1xf32> to vector<8x1xf32>
    %1030 = vector.broadcast %1029 : vector<8x1xf32> to vector<8x256xf32>
    %1031 = vector.broadcast %cst_237 : f32 to vector<8x256xf32>
    %1032 = arith.select %1028, %1030, %1031 : vector<8x256xi1>, vector<8x256xf32>
    %1033 = arith.addf %1023, %1032 : vector<8x256xf32>
    %1034 = arith.mulf %118, %964 : vector<8x256xf32>
    %cst_238 = arith.constant dense<0.000000e+00> : vector<8xf32>
    %1035 = vector.multi_reduction <add>, %1034, %cst_238 [1] : vector<8x256xf32> to vector<8xf32>
    %1036 = vector.shape_cast %1035 : vector<8xf32> to vector<8x1xf32>
    %c185_i32 = arith.constant 185 : i32
    %1037 = vector.broadcast %c185_i32 : i32 to vector<8x256xi32>
    %1038 = arith.cmpi eq, %119, %1037 : vector<8x256xi32>
    %cst_239 = arith.constant 0.000000e+00 : f32
    %1039 = vector.shape_cast %1036 : vector<8x1xf32> to vector<8x1xf32>
    %1040 = vector.broadcast %1039 : vector<8x1xf32> to vector<8x256xf32>
    %1041 = vector.broadcast %cst_239 : f32 to vector<8x256xf32>
    %1042 = arith.select %1038, %1040, %1041 : vector<8x256xi1>, vector<8x256xf32>
    %1043 = arith.addf %1033, %1042 : vector<8x256xf32>
    %1044 = arith.addf %961, %1043 : vector<8x256xf32>
    %cst_240 = arith.constant 5.74340677 : f32
    %1045 = vector.broadcast %cst_240 : f32 to vector<8x256xf32>
    %1046 = arith.mulf %1045, %31 : vector<8x256xf32>
    %cst_241 = arith.constant 4.000000e+00 : f32
    %1047 = vector.broadcast %cst_241 : f32 to vector<8x256xf32>
    %1048 = arith.mulf %1047, %123 : vector<8x256xf32>
    %1049 = arith.subf %1048, %121 : vector<8x256xf32>
    %1050 = arith.subf %1049, %122 : vector<8x256xf32>
    %1051 = arith.mulf %1046, %1050 : vector<8x256xf32>
    %1052 = arith.mulf %108, %1051 : vector<8x256xf32>
    %cst_242 = arith.constant dense<0.000000e+00> : vector<8xf32>
    %1053 = vector.multi_reduction <add>, %1052, %cst_242 [1] : vector<8x256xf32> to vector<8xf32>
    %1054 = vector.shape_cast %1053 : vector<8xf32> to vector<8x1xf32>
    %c11_i32 = arith.constant 11 : i32
    %1055 = vector.broadcast %c11_i32 : i32 to vector<8x256xi32>
    %1056 = arith.cmpi eq, %119, %1055 : vector<8x256xi32>
    %cst_243 = arith.constant 0.000000e+00 : f32
    %1057 = vector.shape_cast %1054 : vector<8x1xf32> to vector<8x1xf32>
    %1058 = vector.broadcast %1057 : vector<8x1xf32> to vector<8x256xf32>
    %1059 = vector.broadcast %cst_243 : f32 to vector<8x256xf32>
    %1060 = arith.select %1056, %1058, %1059 : vector<8x256xi1>, vector<8x256xf32>
    %1061 = arith.mulf %109, %1051 : vector<8x256xf32>
    %cst_244 = arith.constant dense<0.000000e+00> : vector<8xf32>
    %1062 = vector.multi_reduction <add>, %1061, %cst_244 [1] : vector<8x256xf32> to vector<8xf32>
    %1063 = vector.shape_cast %1062 : vector<8xf32> to vector<8x1xf32>
    %c36_i32 = arith.constant 36 : i32
    %1064 = vector.broadcast %c36_i32 : i32 to vector<8x256xi32>
    %1065 = arith.cmpi eq, %119, %1064 : vector<8x256xi32>
    %cst_245 = arith.constant 0.000000e+00 : f32
    %1066 = vector.shape_cast %1063 : vector<8x1xf32> to vector<8x1xf32>
    %1067 = vector.broadcast %1066 : vector<8x1xf32> to vector<8x256xf32>
    %1068 = vector.broadcast %cst_245 : f32 to vector<8x256xf32>
    %1069 = arith.select %1065, %1067, %1068 : vector<8x256xi1>, vector<8x256xf32>
    %1070 = arith.addf %1060, %1069 : vector<8x256xf32>
    %1071 = arith.mulf %110, %1051 : vector<8x256xf32>
    %cst_246 = arith.constant dense<0.000000e+00> : vector<8xf32>
    %1072 = vector.multi_reduction <add>, %1071, %cst_246 [1] : vector<8x256xf32> to vector<8xf32>
    %1073 = vector.shape_cast %1072 : vector<8xf32> to vector<8x1xf32>
    %c61_i32 = arith.constant 61 : i32
    %1074 = vector.broadcast %c61_i32 : i32 to vector<8x256xi32>
    %1075 = arith.cmpi eq, %119, %1074 : vector<8x256xi32>
    %cst_247 = arith.constant 0.000000e+00 : f32
    %1076 = vector.shape_cast %1073 : vector<8x1xf32> to vector<8x1xf32>
    %1077 = vector.broadcast %1076 : vector<8x1xf32> to vector<8x256xf32>
    %1078 = vector.broadcast %cst_247 : f32 to vector<8x256xf32>
    %1079 = arith.select %1075, %1077, %1078 : vector<8x256xi1>, vector<8x256xf32>
    %1080 = arith.addf %1070, %1079 : vector<8x256xf32>
    %1081 = arith.mulf %111, %1051 : vector<8x256xf32>
    %cst_248 = arith.constant dense<0.000000e+00> : vector<8xf32>
    %1082 = vector.multi_reduction <add>, %1081, %cst_248 [1] : vector<8x256xf32> to vector<8xf32>
    %1083 = vector.shape_cast %1082 : vector<8xf32> to vector<8x1xf32>
    %c86_i32 = arith.constant 86 : i32
    %1084 = vector.broadcast %c86_i32 : i32 to vector<8x256xi32>
    %1085 = arith.cmpi eq, %119, %1084 : vector<8x256xi32>
    %cst_249 = arith.constant 0.000000e+00 : f32
    %1086 = vector.shape_cast %1083 : vector<8x1xf32> to vector<8x1xf32>
    %1087 = vector.broadcast %1086 : vector<8x1xf32> to vector<8x256xf32>
    %1088 = vector.broadcast %cst_249 : f32 to vector<8x256xf32>
    %1089 = arith.select %1085, %1087, %1088 : vector<8x256xi1>, vector<8x256xf32>
    %1090 = arith.addf %1080, %1089 : vector<8x256xf32>
    %1091 = arith.mulf %115, %1051 : vector<8x256xf32>
    %cst_250 = arith.constant dense<0.000000e+00> : vector<8xf32>
    %1092 = vector.multi_reduction <add>, %1091, %cst_250 [1] : vector<8x256xf32> to vector<8xf32>
    %1093 = vector.shape_cast %1092 : vector<8xf32> to vector<8x1xf32>
    %c111_i32 = arith.constant 111 : i32
    %1094 = vector.broadcast %c111_i32 : i32 to vector<8x256xi32>
    %1095 = arith.cmpi eq, %119, %1094 : vector<8x256xi32>
    %cst_251 = arith.constant 0.000000e+00 : f32
    %1096 = vector.shape_cast %1093 : vector<8x1xf32> to vector<8x1xf32>
    %1097 = vector.broadcast %1096 : vector<8x1xf32> to vector<8x256xf32>
    %1098 = vector.broadcast %cst_251 : f32 to vector<8x256xf32>
    %1099 = arith.select %1095, %1097, %1098 : vector<8x256xi1>, vector<8x256xf32>
    %1100 = arith.addf %1090, %1099 : vector<8x256xf32>
    %1101 = arith.mulf %116, %1051 : vector<8x256xf32>
    %cst_252 = arith.constant dense<0.000000e+00> : vector<8xf32>
    %1102 = vector.multi_reduction <add>, %1101, %cst_252 [1] : vector<8x256xf32> to vector<8xf32>
    %1103 = vector.shape_cast %1102 : vector<8xf32> to vector<8x1xf32>
    %c136_i32 = arith.constant 136 : i32
    %1104 = vector.broadcast %c136_i32 : i32 to vector<8x256xi32>
    %1105 = arith.cmpi eq, %119, %1104 : vector<8x256xi32>
    %cst_253 = arith.constant 0.000000e+00 : f32
    %1106 = vector.shape_cast %1103 : vector<8x1xf32> to vector<8x1xf32>
    %1107 = vector.broadcast %1106 : vector<8x1xf32> to vector<8x256xf32>
    %1108 = vector.broadcast %cst_253 : f32 to vector<8x256xf32>
    %1109 = arith.select %1105, %1107, %1108 : vector<8x256xi1>, vector<8x256xf32>
    %1110 = arith.addf %1100, %1109 : vector<8x256xf32>
    %1111 = arith.mulf %117, %1051 : vector<8x256xf32>
    %cst_254 = arith.constant dense<0.000000e+00> : vector<8xf32>
    %1112 = vector.multi_reduction <add>, %1111, %cst_254 [1] : vector<8x256xf32> to vector<8xf32>
    %1113 = vector.shape_cast %1112 : vector<8xf32> to vector<8x1xf32>
    %c161_i32 = arith.constant 161 : i32
    %1114 = vector.broadcast %c161_i32 : i32 to vector<8x256xi32>
    %1115 = arith.cmpi eq, %119, %1114 : vector<8x256xi32>
    %cst_255 = arith.constant 0.000000e+00 : f32
    %1116 = vector.shape_cast %1113 : vector<8x1xf32> to vector<8x1xf32>
    %1117 = vector.broadcast %1116 : vector<8x1xf32> to vector<8x256xf32>
    %1118 = vector.broadcast %cst_255 : f32 to vector<8x256xf32>
    %1119 = arith.select %1115, %1117, %1118 : vector<8x256xi1>, vector<8x256xf32>
    %1120 = arith.addf %1110, %1119 : vector<8x256xf32>
    %1121 = arith.mulf %118, %1051 : vector<8x256xf32>
    %cst_256 = arith.constant dense<0.000000e+00> : vector<8xf32>
    %1122 = vector.multi_reduction <add>, %1121, %cst_256 [1] : vector<8x256xf32> to vector<8xf32>
    %1123 = vector.shape_cast %1122 : vector<8xf32> to vector<8x1xf32>
    %c186_i32 = arith.constant 186 : i32
    %1124 = vector.broadcast %c186_i32 : i32 to vector<8x256xi32>
    %1125 = arith.cmpi eq, %119, %1124 : vector<8x256xi32>
    %cst_257 = arith.constant 0.000000e+00 : f32
    %1126 = vector.shape_cast %1123 : vector<8x1xf32> to vector<8x1xf32>
    %1127 = vector.broadcast %1126 : vector<8x1xf32> to vector<8x256xf32>
    %1128 = vector.broadcast %cst_257 : f32 to vector<8x256xf32>
    %1129 = arith.select %1125, %1127, %1128 : vector<8x256xi1>, vector<8x256xf32>
    %1130 = arith.addf %1120, %1129 : vector<8x256xf32>
    %1131 = arith.addf %1044, %1130 : vector<8x256xf32>
    %cst_258 = arith.constant 4.6894722 : f32
    %1132 = vector.broadcast %cst_258 : f32 to vector<8x256xf32>
    %1133 = arith.mulf %1132, %32 : vector<8x256xf32>
    %cst_259 = arith.constant 2.000000e+00 : f32
    %1134 = vector.broadcast %cst_259 : f32 to vector<8x256xf32>
    %1135 = arith.mulf %1134, %123 : vector<8x256xf32>
    %cst_260 = arith.constant 3.000000e+00 : f32
    %1136 = vector.broadcast %cst_260 : f32 to vector<8x256xf32>
    %1137 = arith.mulf %1136, %121 : vector<8x256xf32>
    %1138 = arith.subf %1135, %1137 : vector<8x256xf32>
    %cst_261 = arith.constant 3.000000e+00 : f32
    %1139 = vector.broadcast %cst_261 : f32 to vector<8x256xf32>
    %1140 = arith.mulf %1139, %122 : vector<8x256xf32>
    %1141 = arith.subf %1138, %1140 : vector<8x256xf32>
    %1142 = arith.mulf %1133, %1141 : vector<8x256xf32>
    %1143 = arith.mulf %108, %1142 : vector<8x256xf32>
    %cst_262 = arith.constant dense<0.000000e+00> : vector<8xf32>
    %1144 = vector.multi_reduction <add>, %1143, %cst_262 [1] : vector<8x256xf32> to vector<8xf32>
    %1145 = vector.shape_cast %1144 : vector<8xf32> to vector<8x1xf32>
    %c12_i32 = arith.constant 12 : i32
    %1146 = vector.broadcast %c12_i32 : i32 to vector<8x256xi32>
    %1147 = arith.cmpi eq, %119, %1146 : vector<8x256xi32>
    %cst_263 = arith.constant 0.000000e+00 : f32
    %1148 = vector.shape_cast %1145 : vector<8x1xf32> to vector<8x1xf32>
    %1149 = vector.broadcast %1148 : vector<8x1xf32> to vector<8x256xf32>
    %1150 = vector.broadcast %cst_263 : f32 to vector<8x256xf32>
    %1151 = arith.select %1147, %1149, %1150 : vector<8x256xi1>, vector<8x256xf32>
    %1152 = arith.mulf %109, %1142 : vector<8x256xf32>
    %cst_264 = arith.constant dense<0.000000e+00> : vector<8xf32>
    %1153 = vector.multi_reduction <add>, %1152, %cst_264 [1] : vector<8x256xf32> to vector<8xf32>
    %1154 = vector.shape_cast %1153 : vector<8xf32> to vector<8x1xf32>
    %c37_i32 = arith.constant 37 : i32
    %1155 = vector.broadcast %c37_i32 : i32 to vector<8x256xi32>
    %1156 = arith.cmpi eq, %119, %1155 : vector<8x256xi32>
    %cst_265 = arith.constant 0.000000e+00 : f32
    %1157 = vector.shape_cast %1154 : vector<8x1xf32> to vector<8x1xf32>
    %1158 = vector.broadcast %1157 : vector<8x1xf32> to vector<8x256xf32>
    %1159 = vector.broadcast %cst_265 : f32 to vector<8x256xf32>
    %1160 = arith.select %1156, %1158, %1159 : vector<8x256xi1>, vector<8x256xf32>
    %1161 = arith.addf %1151, %1160 : vector<8x256xf32>
    %1162 = arith.mulf %110, %1142 : vector<8x256xf32>
    %cst_266 = arith.constant dense<0.000000e+00> : vector<8xf32>
    %1163 = vector.multi_reduction <add>, %1162, %cst_266 [1] : vector<8x256xf32> to vector<8xf32>
    %1164 = vector.shape_cast %1163 : vector<8xf32> to vector<8x1xf32>
    %c62_i32 = arith.constant 62 : i32
    %1165 = vector.broadcast %c62_i32 : i32 to vector<8x256xi32>
    %1166 = arith.cmpi eq, %119, %1165 : vector<8x256xi32>
    %cst_267 = arith.constant 0.000000e+00 : f32
    %1167 = vector.shape_cast %1164 : vector<8x1xf32> to vector<8x1xf32>
    %1168 = vector.broadcast %1167 : vector<8x1xf32> to vector<8x256xf32>
    %1169 = vector.broadcast %cst_267 : f32 to vector<8x256xf32>
    %1170 = arith.select %1166, %1168, %1169 : vector<8x256xi1>, vector<8x256xf32>
    %1171 = arith.addf %1161, %1170 : vector<8x256xf32>
    %1172 = arith.mulf %111, %1142 : vector<8x256xf32>
    %cst_268 = arith.constant dense<0.000000e+00> : vector<8xf32>
    %1173 = vector.multi_reduction <add>, %1172, %cst_268 [1] : vector<8x256xf32> to vector<8xf32>
    %1174 = vector.shape_cast %1173 : vector<8xf32> to vector<8x1xf32>
    %c87_i32 = arith.constant 87 : i32
    %1175 = vector.broadcast %c87_i32 : i32 to vector<8x256xi32>
    %1176 = arith.cmpi eq, %119, %1175 : vector<8x256xi32>
    %cst_269 = arith.constant 0.000000e+00 : f32
    %1177 = vector.shape_cast %1174 : vector<8x1xf32> to vector<8x1xf32>
    %1178 = vector.broadcast %1177 : vector<8x1xf32> to vector<8x256xf32>
    %1179 = vector.broadcast %cst_269 : f32 to vector<8x256xf32>
    %1180 = arith.select %1176, %1178, %1179 : vector<8x256xi1>, vector<8x256xf32>
    %1181 = arith.addf %1171, %1180 : vector<8x256xf32>
    %1182 = arith.mulf %115, %1142 : vector<8x256xf32>
    %cst_270 = arith.constant dense<0.000000e+00> : vector<8xf32>
    %1183 = vector.multi_reduction <add>, %1182, %cst_270 [1] : vector<8x256xf32> to vector<8xf32>
    %1184 = vector.shape_cast %1183 : vector<8xf32> to vector<8x1xf32>
    %c112_i32 = arith.constant 112 : i32
    %1185 = vector.broadcast %c112_i32 : i32 to vector<8x256xi32>
    %1186 = arith.cmpi eq, %119, %1185 : vector<8x256xi32>
    %cst_271 = arith.constant 0.000000e+00 : f32
    %1187 = vector.shape_cast %1184 : vector<8x1xf32> to vector<8x1xf32>
    %1188 = vector.broadcast %1187 : vector<8x1xf32> to vector<8x256xf32>
    %1189 = vector.broadcast %cst_271 : f32 to vector<8x256xf32>
    %1190 = arith.select %1186, %1188, %1189 : vector<8x256xi1>, vector<8x256xf32>
    %1191 = arith.addf %1181, %1190 : vector<8x256xf32>
    %1192 = arith.mulf %116, %1142 : vector<8x256xf32>
    %cst_272 = arith.constant dense<0.000000e+00> : vector<8xf32>
    %1193 = vector.multi_reduction <add>, %1192, %cst_272 [1] : vector<8x256xf32> to vector<8xf32>
    %1194 = vector.shape_cast %1193 : vector<8xf32> to vector<8x1xf32>
    %c137_i32 = arith.constant 137 : i32
    %1195 = vector.broadcast %c137_i32 : i32 to vector<8x256xi32>
    %1196 = arith.cmpi eq, %119, %1195 : vector<8x256xi32>
    %cst_273 = arith.constant 0.000000e+00 : f32
    %1197 = vector.shape_cast %1194 : vector<8x1xf32> to vector<8x1xf32>
    %1198 = vector.broadcast %1197 : vector<8x1xf32> to vector<8x256xf32>
    %1199 = vector.broadcast %cst_273 : f32 to vector<8x256xf32>
    %1200 = arith.select %1196, %1198, %1199 : vector<8x256xi1>, vector<8x256xf32>
    %1201 = arith.addf %1191, %1200 : vector<8x256xf32>
    %1202 = arith.mulf %117, %1142 : vector<8x256xf32>
    %cst_274 = arith.constant dense<0.000000e+00> : vector<8xf32>
    %1203 = vector.multi_reduction <add>, %1202, %cst_274 [1] : vector<8x256xf32> to vector<8xf32>
    %1204 = vector.shape_cast %1203 : vector<8xf32> to vector<8x1xf32>
    %c162_i32 = arith.constant 162 : i32
    %1205 = vector.broadcast %c162_i32 : i32 to vector<8x256xi32>
    %1206 = arith.cmpi eq, %119, %1205 : vector<8x256xi32>
    %cst_275 = arith.constant 0.000000e+00 : f32
    %1207 = vector.shape_cast %1204 : vector<8x1xf32> to vector<8x1xf32>
    %1208 = vector.broadcast %1207 : vector<8x1xf32> to vector<8x256xf32>
    %1209 = vector.broadcast %cst_275 : f32 to vector<8x256xf32>
    %1210 = arith.select %1206, %1208, %1209 : vector<8x256xi1>, vector<8x256xf32>
    %1211 = arith.addf %1201, %1210 : vector<8x256xf32>
    %1212 = arith.mulf %118, %1142 : vector<8x256xf32>
    %cst_276 = arith.constant dense<0.000000e+00> : vector<8xf32>
    %1213 = vector.multi_reduction <add>, %1212, %cst_276 [1] : vector<8x256xf32> to vector<8xf32>
    %1214 = vector.shape_cast %1213 : vector<8xf32> to vector<8x1xf32>
    %c187_i32 = arith.constant 187 : i32
    %1215 = vector.broadcast %c187_i32 : i32 to vector<8x256xi32>
    %1216 = arith.cmpi eq, %119, %1215 : vector<8x256xi32>
    %cst_277 = arith.constant 0.000000e+00 : f32
    %1217 = vector.shape_cast %1214 : vector<8x1xf32> to vector<8x1xf32>
    %1218 = vector.broadcast %1217 : vector<8x1xf32> to vector<8x256xf32>
    %1219 = vector.broadcast %cst_277 : f32 to vector<8x256xf32>
    %1220 = arith.select %1216, %1218, %1219 : vector<8x256xi1>, vector<8x256xf32>
    %1221 = arith.addf %1211, %1220 : vector<8x256xf32>
    %1222 = arith.addf %1131, %1221 : vector<8x256xf32>
    %cst_278 = arith.constant 5.74340677 : f32
    %1223 = vector.broadcast %cst_278 : f32 to vector<8x256xf32>
    %1224 = arith.mulf %1223, %30 : vector<8x256xf32>
    %cst_279 = arith.constant 4.000000e+00 : f32
    %1225 = vector.broadcast %cst_279 : f32 to vector<8x256xf32>
    %1226 = arith.mulf %1225, %123 : vector<8x256xf32>
    %1227 = arith.subf %1226, %121 : vector<8x256xf32>
    %1228 = arith.subf %1227, %122 : vector<8x256xf32>
    %1229 = arith.mulf %1224, %1228 : vector<8x256xf32>
    %1230 = arith.mulf %108, %1229 : vector<8x256xf32>
    %cst_280 = arith.constant dense<0.000000e+00> : vector<8xf32>
    %1231 = vector.multi_reduction <add>, %1230, %cst_280 [1] : vector<8x256xf32> to vector<8xf32>
    %1232 = vector.shape_cast %1231 : vector<8xf32> to vector<8x1xf32>
    %c13_i32 = arith.constant 13 : i32
    %1233 = vector.broadcast %c13_i32 : i32 to vector<8x256xi32>
    %1234 = arith.cmpi eq, %119, %1233 : vector<8x256xi32>
    %cst_281 = arith.constant 0.000000e+00 : f32
    %1235 = vector.shape_cast %1232 : vector<8x1xf32> to vector<8x1xf32>
    %1236 = vector.broadcast %1235 : vector<8x1xf32> to vector<8x256xf32>
    %1237 = vector.broadcast %cst_281 : f32 to vector<8x256xf32>
    %1238 = arith.select %1234, %1236, %1237 : vector<8x256xi1>, vector<8x256xf32>
    %1239 = arith.mulf %109, %1229 : vector<8x256xf32>
    %cst_282 = arith.constant dense<0.000000e+00> : vector<8xf32>
    %1240 = vector.multi_reduction <add>, %1239, %cst_282 [1] : vector<8x256xf32> to vector<8xf32>
    %1241 = vector.shape_cast %1240 : vector<8xf32> to vector<8x1xf32>
    %c38_i32 = arith.constant 38 : i32
    %1242 = vector.broadcast %c38_i32 : i32 to vector<8x256xi32>
    %1243 = arith.cmpi eq, %119, %1242 : vector<8x256xi32>
    %cst_283 = arith.constant 0.000000e+00 : f32
    %1244 = vector.shape_cast %1241 : vector<8x1xf32> to vector<8x1xf32>
    %1245 = vector.broadcast %1244 : vector<8x1xf32> to vector<8x256xf32>
    %1246 = vector.broadcast %cst_283 : f32 to vector<8x256xf32>
    %1247 = arith.select %1243, %1245, %1246 : vector<8x256xi1>, vector<8x256xf32>
    %1248 = arith.addf %1238, %1247 : vector<8x256xf32>
    %1249 = arith.mulf %110, %1229 : vector<8x256xf32>
    %cst_284 = arith.constant dense<0.000000e+00> : vector<8xf32>
    %1250 = vector.multi_reduction <add>, %1249, %cst_284 [1] : vector<8x256xf32> to vector<8xf32>
    %1251 = vector.shape_cast %1250 : vector<8xf32> to vector<8x1xf32>
    %c63_i32 = arith.constant 63 : i32
    %1252 = vector.broadcast %c63_i32 : i32 to vector<8x256xi32>
    %1253 = arith.cmpi eq, %119, %1252 : vector<8x256xi32>
    %cst_285 = arith.constant 0.000000e+00 : f32
    %1254 = vector.shape_cast %1251 : vector<8x1xf32> to vector<8x1xf32>
    %1255 = vector.broadcast %1254 : vector<8x1xf32> to vector<8x256xf32>
    %1256 = vector.broadcast %cst_285 : f32 to vector<8x256xf32>
    %1257 = arith.select %1253, %1255, %1256 : vector<8x256xi1>, vector<8x256xf32>
    %1258 = arith.addf %1248, %1257 : vector<8x256xf32>
    %1259 = arith.mulf %111, %1229 : vector<8x256xf32>
    %cst_286 = arith.constant dense<0.000000e+00> : vector<8xf32>
    %1260 = vector.multi_reduction <add>, %1259, %cst_286 [1] : vector<8x256xf32> to vector<8xf32>
    %1261 = vector.shape_cast %1260 : vector<8xf32> to vector<8x1xf32>
    %c88_i32 = arith.constant 88 : i32
    %1262 = vector.broadcast %c88_i32 : i32 to vector<8x256xi32>
    %1263 = arith.cmpi eq, %119, %1262 : vector<8x256xi32>
    %cst_287 = arith.constant 0.000000e+00 : f32
    %1264 = vector.shape_cast %1261 : vector<8x1xf32> to vector<8x1xf32>
    %1265 = vector.broadcast %1264 : vector<8x1xf32> to vector<8x256xf32>
    %1266 = vector.broadcast %cst_287 : f32 to vector<8x256xf32>
    %1267 = arith.select %1263, %1265, %1266 : vector<8x256xi1>, vector<8x256xf32>
    %1268 = arith.addf %1258, %1267 : vector<8x256xf32>
    %1269 = arith.mulf %115, %1229 : vector<8x256xf32>
    %cst_288 = arith.constant dense<0.000000e+00> : vector<8xf32>
    %1270 = vector.multi_reduction <add>, %1269, %cst_288 [1] : vector<8x256xf32> to vector<8xf32>
    %1271 = vector.shape_cast %1270 : vector<8xf32> to vector<8x1xf32>
    %c113_i32 = arith.constant 113 : i32
    %1272 = vector.broadcast %c113_i32 : i32 to vector<8x256xi32>
    %1273 = arith.cmpi eq, %119, %1272 : vector<8x256xi32>
    %cst_289 = arith.constant 0.000000e+00 : f32
    %1274 = vector.shape_cast %1271 : vector<8x1xf32> to vector<8x1xf32>
    %1275 = vector.broadcast %1274 : vector<8x1xf32> to vector<8x256xf32>
    %1276 = vector.broadcast %cst_289 : f32 to vector<8x256xf32>
    %1277 = arith.select %1273, %1275, %1276 : vector<8x256xi1>, vector<8x256xf32>
    %1278 = arith.addf %1268, %1277 : vector<8x256xf32>
    %1279 = arith.mulf %116, %1229 : vector<8x256xf32>
    %cst_290 = arith.constant dense<0.000000e+00> : vector<8xf32>
    %1280 = vector.multi_reduction <add>, %1279, %cst_290 [1] : vector<8x256xf32> to vector<8xf32>
    %1281 = vector.shape_cast %1280 : vector<8xf32> to vector<8x1xf32>
    %c138_i32 = arith.constant 138 : i32
    %1282 = vector.broadcast %c138_i32 : i32 to vector<8x256xi32>
    %1283 = arith.cmpi eq, %119, %1282 : vector<8x256xi32>
    %cst_291 = arith.constant 0.000000e+00 : f32
    %1284 = vector.shape_cast %1281 : vector<8x1xf32> to vector<8x1xf32>
    %1285 = vector.broadcast %1284 : vector<8x1xf32> to vector<8x256xf32>
    %1286 = vector.broadcast %cst_291 : f32 to vector<8x256xf32>
    %1287 = arith.select %1283, %1285, %1286 : vector<8x256xi1>, vector<8x256xf32>
    %1288 = arith.addf %1278, %1287 : vector<8x256xf32>
    %1289 = arith.mulf %117, %1229 : vector<8x256xf32>
    %cst_292 = arith.constant dense<0.000000e+00> : vector<8xf32>
    %1290 = vector.multi_reduction <add>, %1289, %cst_292 [1] : vector<8x256xf32> to vector<8xf32>
    %1291 = vector.shape_cast %1290 : vector<8xf32> to vector<8x1xf32>
    %c163_i32 = arith.constant 163 : i32
    %1292 = vector.broadcast %c163_i32 : i32 to vector<8x256xi32>
    %1293 = arith.cmpi eq, %119, %1292 : vector<8x256xi32>
    %cst_293 = arith.constant 0.000000e+00 : f32
    %1294 = vector.shape_cast %1291 : vector<8x1xf32> to vector<8x1xf32>
    %1295 = vector.broadcast %1294 : vector<8x1xf32> to vector<8x256xf32>
    %1296 = vector.broadcast %cst_293 : f32 to vector<8x256xf32>
    %1297 = arith.select %1293, %1295, %1296 : vector<8x256xi1>, vector<8x256xf32>
    %1298 = arith.addf %1288, %1297 : vector<8x256xf32>
    %1299 = arith.mulf %118, %1229 : vector<8x256xf32>
    %cst_294 = arith.constant dense<0.000000e+00> : vector<8xf32>
    %1300 = vector.multi_reduction <add>, %1299, %cst_294 [1] : vector<8x256xf32> to vector<8xf32>
    %1301 = vector.shape_cast %1300 : vector<8xf32> to vector<8x1xf32>
    %c188_i32 = arith.constant 188 : i32
    %1302 = vector.broadcast %c188_i32 : i32 to vector<8x256xi32>
    %1303 = arith.cmpi eq, %119, %1302 : vector<8x256xi32>
    %cst_295 = arith.constant 0.000000e+00 : f32
    %1304 = vector.shape_cast %1301 : vector<8x1xf32> to vector<8x1xf32>
    %1305 = vector.broadcast %1304 : vector<8x1xf32> to vector<8x256xf32>
    %1306 = vector.broadcast %cst_295 : f32 to vector<8x256xf32>
    %1307 = arith.select %1303, %1305, %1306 : vector<8x256xi1>, vector<8x256xf32>
    %1308 = arith.addf %1298, %1307 : vector<8x256xf32>
    %1309 = arith.addf %1222, %1308 : vector<8x256xf32>
    %cst_296 = arith.constant 18.1622467 : f32
    %1310 = vector.broadcast %cst_296 : f32 to vector<8x256xf32>
    %1311 = arith.mulf %1310, %32 : vector<8x256xf32>
    %1312 = arith.subf %121, %122 : vector<8x256xf32>
    %1313 = arith.mulf %1311, %1312 : vector<8x256xf32>
    %1314 = arith.mulf %108, %1313 : vector<8x256xf32>
    %cst_297 = arith.constant dense<0.000000e+00> : vector<8xf32>
    %1315 = vector.multi_reduction <add>, %1314, %cst_297 [1] : vector<8x256xf32> to vector<8xf32>
    %1316 = vector.shape_cast %1315 : vector<8xf32> to vector<8x1xf32>
    %c14_i32 = arith.constant 14 : i32
    %1317 = vector.broadcast %c14_i32 : i32 to vector<8x256xi32>
    %1318 = arith.cmpi eq, %119, %1317 : vector<8x256xi32>
    %cst_298 = arith.constant 0.000000e+00 : f32
    %1319 = vector.shape_cast %1316 : vector<8x1xf32> to vector<8x1xf32>
    %1320 = vector.broadcast %1319 : vector<8x1xf32> to vector<8x256xf32>
    %1321 = vector.broadcast %cst_298 : f32 to vector<8x256xf32>
    %1322 = arith.select %1318, %1320, %1321 : vector<8x256xi1>, vector<8x256xf32>
    %1323 = arith.mulf %109, %1313 : vector<8x256xf32>
    %cst_299 = arith.constant dense<0.000000e+00> : vector<8xf32>
    %1324 = vector.multi_reduction <add>, %1323, %cst_299 [1] : vector<8x256xf32> to vector<8xf32>
    %1325 = vector.shape_cast %1324 : vector<8xf32> to vector<8x1xf32>
    %c39_i32 = arith.constant 39 : i32
    %1326 = vector.broadcast %c39_i32 : i32 to vector<8x256xi32>
    %1327 = arith.cmpi eq, %119, %1326 : vector<8x256xi32>
    %cst_300 = arith.constant 0.000000e+00 : f32
    %1328 = vector.shape_cast %1325 : vector<8x1xf32> to vector<8x1xf32>
    %1329 = vector.broadcast %1328 : vector<8x1xf32> to vector<8x256xf32>
    %1330 = vector.broadcast %cst_300 : f32 to vector<8x256xf32>
    %1331 = arith.select %1327, %1329, %1330 : vector<8x256xi1>, vector<8x256xf32>
    %1332 = arith.addf %1322, %1331 : vector<8x256xf32>
    %1333 = arith.mulf %110, %1313 : vector<8x256xf32>
    %cst_301 = arith.constant dense<0.000000e+00> : vector<8xf32>
    %1334 = vector.multi_reduction <add>, %1333, %cst_301 [1] : vector<8x256xf32> to vector<8xf32>
    %1335 = vector.shape_cast %1334 : vector<8xf32> to vector<8x1xf32>
    %c64_i32 = arith.constant 64 : i32
    %1336 = vector.broadcast %c64_i32 : i32 to vector<8x256xi32>
    %1337 = arith.cmpi eq, %119, %1336 : vector<8x256xi32>
    %cst_302 = arith.constant 0.000000e+00 : f32
    %1338 = vector.shape_cast %1335 : vector<8x1xf32> to vector<8x1xf32>
    %1339 = vector.broadcast %1338 : vector<8x1xf32> to vector<8x256xf32>
    %1340 = vector.broadcast %cst_302 : f32 to vector<8x256xf32>
    %1341 = arith.select %1337, %1339, %1340 : vector<8x256xi1>, vector<8x256xf32>
    %1342 = arith.addf %1332, %1341 : vector<8x256xf32>
    %1343 = arith.mulf %111, %1313 : vector<8x256xf32>
    %cst_303 = arith.constant dense<0.000000e+00> : vector<8xf32>
    %1344 = vector.multi_reduction <add>, %1343, %cst_303 [1] : vector<8x256xf32> to vector<8xf32>
    %1345 = vector.shape_cast %1344 : vector<8xf32> to vector<8x1xf32>
    %c89_i32 = arith.constant 89 : i32
    %1346 = vector.broadcast %c89_i32 : i32 to vector<8x256xi32>
    %1347 = arith.cmpi eq, %119, %1346 : vector<8x256xi32>
    %cst_304 = arith.constant 0.000000e+00 : f32
    %1348 = vector.shape_cast %1345 : vector<8x1xf32> to vector<8x1xf32>
    %1349 = vector.broadcast %1348 : vector<8x1xf32> to vector<8x256xf32>
    %1350 = vector.broadcast %cst_304 : f32 to vector<8x256xf32>
    %1351 = arith.select %1347, %1349, %1350 : vector<8x256xi1>, vector<8x256xf32>
    %1352 = arith.addf %1342, %1351 : vector<8x256xf32>
    %1353 = arith.mulf %115, %1313 : vector<8x256xf32>
    %cst_305 = arith.constant dense<0.000000e+00> : vector<8xf32>
    %1354 = vector.multi_reduction <add>, %1353, %cst_305 [1] : vector<8x256xf32> to vector<8xf32>
    %1355 = vector.shape_cast %1354 : vector<8xf32> to vector<8x1xf32>
    %c114_i32 = arith.constant 114 : i32
    %1356 = vector.broadcast %c114_i32 : i32 to vector<8x256xi32>
    %1357 = arith.cmpi eq, %119, %1356 : vector<8x256xi32>
    %cst_306 = arith.constant 0.000000e+00 : f32
    %1358 = vector.shape_cast %1355 : vector<8x1xf32> to vector<8x1xf32>
    %1359 = vector.broadcast %1358 : vector<8x1xf32> to vector<8x256xf32>
    %1360 = vector.broadcast %cst_306 : f32 to vector<8x256xf32>
    %1361 = arith.select %1357, %1359, %1360 : vector<8x256xi1>, vector<8x256xf32>
    %1362 = arith.addf %1352, %1361 : vector<8x256xf32>
    %1363 = arith.mulf %116, %1313 : vector<8x256xf32>
    %cst_307 = arith.constant dense<0.000000e+00> : vector<8xf32>
    %1364 = vector.multi_reduction <add>, %1363, %cst_307 [1] : vector<8x256xf32> to vector<8xf32>
    %1365 = vector.shape_cast %1364 : vector<8xf32> to vector<8x1xf32>
    %c139_i32 = arith.constant 139 : i32
    %1366 = vector.broadcast %c139_i32 : i32 to vector<8x256xi32>
    %1367 = arith.cmpi eq, %119, %1366 : vector<8x256xi32>
    %cst_308 = arith.constant 0.000000e+00 : f32
    %1368 = vector.shape_cast %1365 : vector<8x1xf32> to vector<8x1xf32>
    %1369 = vector.broadcast %1368 : vector<8x1xf32> to vector<8x256xf32>
    %1370 = vector.broadcast %cst_308 : f32 to vector<8x256xf32>
    %1371 = arith.select %1367, %1369, %1370 : vector<8x256xi1>, vector<8x256xf32>
    %1372 = arith.addf %1362, %1371 : vector<8x256xf32>
    %1373 = arith.mulf %117, %1313 : vector<8x256xf32>
    %cst_309 = arith.constant dense<0.000000e+00> : vector<8xf32>
    %1374 = vector.multi_reduction <add>, %1373, %cst_309 [1] : vector<8x256xf32> to vector<8xf32>
    %1375 = vector.shape_cast %1374 : vector<8xf32> to vector<8x1xf32>
    %c164_i32 = arith.constant 164 : i32
    %1376 = vector.broadcast %c164_i32 : i32 to vector<8x256xi32>
    %1377 = arith.cmpi eq, %119, %1376 : vector<8x256xi32>
    %cst_310 = arith.constant 0.000000e+00 : f32
    %1378 = vector.shape_cast %1375 : vector<8x1xf32> to vector<8x1xf32>
    %1379 = vector.broadcast %1378 : vector<8x1xf32> to vector<8x256xf32>
    %1380 = vector.broadcast %cst_310 : f32 to vector<8x256xf32>
    %1381 = arith.select %1377, %1379, %1380 : vector<8x256xi1>, vector<8x256xf32>
    %1382 = arith.addf %1372, %1381 : vector<8x256xf32>
    %1383 = arith.mulf %118, %1313 : vector<8x256xf32>
    %cst_311 = arith.constant dense<0.000000e+00> : vector<8xf32>
    %1384 = vector.multi_reduction <add>, %1383, %cst_311 [1] : vector<8x256xf32> to vector<8xf32>
    %1385 = vector.shape_cast %1384 : vector<8xf32> to vector<8x1xf32>
    %c189_i32 = arith.constant 189 : i32
    %1386 = vector.broadcast %c189_i32 : i32 to vector<8x256xi32>
    %1387 = arith.cmpi eq, %119, %1386 : vector<8x256xi32>
    %cst_312 = arith.constant 0.000000e+00 : f32
    %1388 = vector.shape_cast %1385 : vector<8x1xf32> to vector<8x1xf32>
    %1389 = vector.broadcast %1388 : vector<8x1xf32> to vector<8x256xf32>
    %1390 = vector.broadcast %cst_312 : f32 to vector<8x256xf32>
    %1391 = arith.select %1387, %1389, %1390 : vector<8x256xi1>, vector<8x256xf32>
    %1392 = arith.addf %1382, %1391 : vector<8x256xf32>
    %1393 = arith.addf %1309, %1392 : vector<8x256xf32>
    %cst_313 = arith.constant 7.41470623 : f32
    %1394 = vector.broadcast %cst_313 : f32 to vector<8x256xf32>
    %1395 = arith.mulf %1394, %30 : vector<8x256xf32>
    %cst_314 = arith.constant 3.000000e+00 : f32
    %1396 = vector.broadcast %cst_314 : f32 to vector<8x256xf32>
    %1397 = arith.mulf %1396, %122 : vector<8x256xf32>
    %1398 = arith.subf %121, %1397 : vector<8x256xf32>
    %1399 = arith.mulf %1395, %1398 : vector<8x256xf32>
    %1400 = arith.mulf %108, %1399 : vector<8x256xf32>
    %cst_315 = arith.constant dense<0.000000e+00> : vector<8xf32>
    %1401 = vector.multi_reduction <add>, %1400, %cst_315 [1] : vector<8x256xf32> to vector<8xf32>
    %1402 = vector.shape_cast %1401 : vector<8xf32> to vector<8x1xf32>
    %c15_i32 = arith.constant 15 : i32
    %1403 = vector.broadcast %c15_i32 : i32 to vector<8x256xi32>
    %1404 = arith.cmpi eq, %119, %1403 : vector<8x256xi32>
    %cst_316 = arith.constant 0.000000e+00 : f32
    %1405 = vector.shape_cast %1402 : vector<8x1xf32> to vector<8x1xf32>
    %1406 = vector.broadcast %1405 : vector<8x1xf32> to vector<8x256xf32>
    %1407 = vector.broadcast %cst_316 : f32 to vector<8x256xf32>
    %1408 = arith.select %1404, %1406, %1407 : vector<8x256xi1>, vector<8x256xf32>
    %1409 = arith.mulf %109, %1399 : vector<8x256xf32>
    %cst_317 = arith.constant dense<0.000000e+00> : vector<8xf32>
    %1410 = vector.multi_reduction <add>, %1409, %cst_317 [1] : vector<8x256xf32> to vector<8xf32>
    %1411 = vector.shape_cast %1410 : vector<8xf32> to vector<8x1xf32>
    %c40_i32 = arith.constant 40 : i32
    %1412 = vector.broadcast %c40_i32 : i32 to vector<8x256xi32>
    %1413 = arith.cmpi eq, %119, %1412 : vector<8x256xi32>
    %cst_318 = arith.constant 0.000000e+00 : f32
    %1414 = vector.shape_cast %1411 : vector<8x1xf32> to vector<8x1xf32>
    %1415 = vector.broadcast %1414 : vector<8x1xf32> to vector<8x256xf32>
    %1416 = vector.broadcast %cst_318 : f32 to vector<8x256xf32>
    %1417 = arith.select %1413, %1415, %1416 : vector<8x256xi1>, vector<8x256xf32>
    %1418 = arith.addf %1408, %1417 : vector<8x256xf32>
    %1419 = arith.mulf %110, %1399 : vector<8x256xf32>
    %cst_319 = arith.constant dense<0.000000e+00> : vector<8xf32>
    %1420 = vector.multi_reduction <add>, %1419, %cst_319 [1] : vector<8x256xf32> to vector<8xf32>
    %1421 = vector.shape_cast %1420 : vector<8xf32> to vector<8x1xf32>
    %c65_i32 = arith.constant 65 : i32
    %1422 = vector.broadcast %c65_i32 : i32 to vector<8x256xi32>
    %1423 = arith.cmpi eq, %119, %1422 : vector<8x256xi32>
    %cst_320 = arith.constant 0.000000e+00 : f32
    %1424 = vector.shape_cast %1421 : vector<8x1xf32> to vector<8x1xf32>
    %1425 = vector.broadcast %1424 : vector<8x1xf32> to vector<8x256xf32>
    %1426 = vector.broadcast %cst_320 : f32 to vector<8x256xf32>
    %1427 = arith.select %1423, %1425, %1426 : vector<8x256xi1>, vector<8x256xf32>
    %1428 = arith.addf %1418, %1427 : vector<8x256xf32>
    %1429 = arith.mulf %111, %1399 : vector<8x256xf32>
    %cst_321 = arith.constant dense<0.000000e+00> : vector<8xf32>
    %1430 = vector.multi_reduction <add>, %1429, %cst_321 [1] : vector<8x256xf32> to vector<8xf32>
    %1431 = vector.shape_cast %1430 : vector<8xf32> to vector<8x1xf32>
    %c90_i32 = arith.constant 90 : i32
    %1432 = vector.broadcast %c90_i32 : i32 to vector<8x256xi32>
    %1433 = arith.cmpi eq, %119, %1432 : vector<8x256xi32>
    %cst_322 = arith.constant 0.000000e+00 : f32
    %1434 = vector.shape_cast %1431 : vector<8x1xf32> to vector<8x1xf32>
    %1435 = vector.broadcast %1434 : vector<8x1xf32> to vector<8x256xf32>
    %1436 = vector.broadcast %cst_322 : f32 to vector<8x256xf32>
    %1437 = arith.select %1433, %1435, %1436 : vector<8x256xi1>, vector<8x256xf32>
    %1438 = arith.addf %1428, %1437 : vector<8x256xf32>
    %1439 = arith.mulf %115, %1399 : vector<8x256xf32>
    %cst_323 = arith.constant dense<0.000000e+00> : vector<8xf32>
    %1440 = vector.multi_reduction <add>, %1439, %cst_323 [1] : vector<8x256xf32> to vector<8xf32>
    %1441 = vector.shape_cast %1440 : vector<8xf32> to vector<8x1xf32>
    %c115_i32 = arith.constant 115 : i32
    %1442 = vector.broadcast %c115_i32 : i32 to vector<8x256xi32>
    %1443 = arith.cmpi eq, %119, %1442 : vector<8x256xi32>
    %cst_324 = arith.constant 0.000000e+00 : f32
    %1444 = vector.shape_cast %1441 : vector<8x1xf32> to vector<8x1xf32>
    %1445 = vector.broadcast %1444 : vector<8x1xf32> to vector<8x256xf32>
    %1446 = vector.broadcast %cst_324 : f32 to vector<8x256xf32>
    %1447 = arith.select %1443, %1445, %1446 : vector<8x256xi1>, vector<8x256xf32>
    %1448 = arith.addf %1438, %1447 : vector<8x256xf32>
    %1449 = arith.mulf %116, %1399 : vector<8x256xf32>
    %cst_325 = arith.constant dense<0.000000e+00> : vector<8xf32>
    %1450 = vector.multi_reduction <add>, %1449, %cst_325 [1] : vector<8x256xf32> to vector<8xf32>
    %1451 = vector.shape_cast %1450 : vector<8xf32> to vector<8x1xf32>
    %c140_i32 = arith.constant 140 : i32
    %1452 = vector.broadcast %c140_i32 : i32 to vector<8x256xi32>
    %1453 = arith.cmpi eq, %119, %1452 : vector<8x256xi32>
    %cst_326 = arith.constant 0.000000e+00 : f32
    %1454 = vector.shape_cast %1451 : vector<8x1xf32> to vector<8x1xf32>
    %1455 = vector.broadcast %1454 : vector<8x1xf32> to vector<8x256xf32>
    %1456 = vector.broadcast %cst_326 : f32 to vector<8x256xf32>
    %1457 = arith.select %1453, %1455, %1456 : vector<8x256xi1>, vector<8x256xf32>
    %1458 = arith.addf %1448, %1457 : vector<8x256xf32>
    %1459 = arith.mulf %117, %1399 : vector<8x256xf32>
    %cst_327 = arith.constant dense<0.000000e+00> : vector<8xf32>
    %1460 = vector.multi_reduction <add>, %1459, %cst_327 [1] : vector<8x256xf32> to vector<8xf32>
    %1461 = vector.shape_cast %1460 : vector<8xf32> to vector<8x1xf32>
    %c165_i32 = arith.constant 165 : i32
    %1462 = vector.broadcast %c165_i32 : i32 to vector<8x256xi32>
    %1463 = arith.cmpi eq, %119, %1462 : vector<8x256xi32>
    %cst_328 = arith.constant 0.000000e+00 : f32
    %1464 = vector.shape_cast %1461 : vector<8x1xf32> to vector<8x1xf32>
    %1465 = vector.broadcast %1464 : vector<8x1xf32> to vector<8x256xf32>
    %1466 = vector.broadcast %cst_328 : f32 to vector<8x256xf32>
    %1467 = arith.select %1463, %1465, %1466 : vector<8x256xi1>, vector<8x256xf32>
    %1468 = arith.addf %1458, %1467 : vector<8x256xf32>
    %1469 = arith.mulf %118, %1399 : vector<8x256xf32>
    %cst_329 = arith.constant dense<0.000000e+00> : vector<8xf32>
    %1470 = vector.multi_reduction <add>, %1469, %cst_329 [1] : vector<8x256xf32> to vector<8xf32>
    %1471 = vector.shape_cast %1470 : vector<8xf32> to vector<8x1xf32>
    %c190_i32 = arith.constant 190 : i32
    %1472 = vector.broadcast %c190_i32 : i32 to vector<8x256xi32>
    %1473 = arith.cmpi eq, %119, %1472 : vector<8x256xi32>
    %cst_330 = arith.constant 0.000000e+00 : f32
    %1474 = vector.shape_cast %1471 : vector<8x1xf32> to vector<8x1xf32>
    %1475 = vector.broadcast %1474 : vector<8x1xf32> to vector<8x256xf32>
    %1476 = vector.broadcast %cst_330 : f32 to vector<8x256xf32>
    %1477 = arith.select %1473, %1475, %1476 : vector<8x256xi1>, vector<8x256xf32>
    %1478 = arith.addf %1468, %1477 : vector<8x256xf32>
    %1479 = arith.addf %1393, %1478 : vector<8x256xf32>
    %cst_331 = arith.constant 31.4579353 : f32
    %1480 = vector.broadcast %cst_331 : f32 to vector<8x256xf32>
    %1481 = arith.mulf %1480, %124 : vector<8x256xf32>
    %1482 = arith.subf %121, %122 : vector<8x256xf32>
    %1483 = arith.mulf %1481, %1482 : vector<8x256xf32>
    %1484 = arith.mulf %108, %1483 : vector<8x256xf32>
    %cst_332 = arith.constant dense<0.000000e+00> : vector<8xf32>
    %1485 = vector.multi_reduction <add>, %1484, %cst_332 [1] : vector<8x256xf32> to vector<8xf32>
    %1486 = vector.shape_cast %1485 : vector<8xf32> to vector<8x1xf32>
    %c16_i32 = arith.constant 16 : i32
    %1487 = vector.broadcast %c16_i32 : i32 to vector<8x256xi32>
    %1488 = arith.cmpi eq, %119, %1487 : vector<8x256xi32>
    %cst_333 = arith.constant 0.000000e+00 : f32
    %1489 = vector.shape_cast %1486 : vector<8x1xf32> to vector<8x1xf32>
    %1490 = vector.broadcast %1489 : vector<8x1xf32> to vector<8x256xf32>
    %1491 = vector.broadcast %cst_333 : f32 to vector<8x256xf32>
    %1492 = arith.select %1488, %1490, %1491 : vector<8x256xi1>, vector<8x256xf32>
    %1493 = arith.mulf %109, %1483 : vector<8x256xf32>
    %cst_334 = arith.constant dense<0.000000e+00> : vector<8xf32>
    %1494 = vector.multi_reduction <add>, %1493, %cst_334 [1] : vector<8x256xf32> to vector<8xf32>
    %1495 = vector.shape_cast %1494 : vector<8xf32> to vector<8x1xf32>
    %c41_i32 = arith.constant 41 : i32
    %1496 = vector.broadcast %c41_i32 : i32 to vector<8x256xi32>
    %1497 = arith.cmpi eq, %119, %1496 : vector<8x256xi32>
    %cst_335 = arith.constant 0.000000e+00 : f32
    %1498 = vector.shape_cast %1495 : vector<8x1xf32> to vector<8x1xf32>
    %1499 = vector.broadcast %1498 : vector<8x1xf32> to vector<8x256xf32>
    %1500 = vector.broadcast %cst_335 : f32 to vector<8x256xf32>
    %1501 = arith.select %1497, %1499, %1500 : vector<8x256xi1>, vector<8x256xf32>
    %1502 = arith.addf %1492, %1501 : vector<8x256xf32>
    %1503 = arith.mulf %110, %1483 : vector<8x256xf32>
    %cst_336 = arith.constant dense<0.000000e+00> : vector<8xf32>
    %1504 = vector.multi_reduction <add>, %1503, %cst_336 [1] : vector<8x256xf32> to vector<8xf32>
    %1505 = vector.shape_cast %1504 : vector<8xf32> to vector<8x1xf32>
    %c66_i32 = arith.constant 66 : i32
    %1506 = vector.broadcast %c66_i32 : i32 to vector<8x256xi32>
    %1507 = arith.cmpi eq, %119, %1506 : vector<8x256xi32>
    %cst_337 = arith.constant 0.000000e+00 : f32
    %1508 = vector.shape_cast %1505 : vector<8x1xf32> to vector<8x1xf32>
    %1509 = vector.broadcast %1508 : vector<8x1xf32> to vector<8x256xf32>
    %1510 = vector.broadcast %cst_337 : f32 to vector<8x256xf32>
    %1511 = arith.select %1507, %1509, %1510 : vector<8x256xi1>, vector<8x256xf32>
    %1512 = arith.addf %1502, %1511 : vector<8x256xf32>
    %1513 = arith.mulf %111, %1483 : vector<8x256xf32>
    %cst_338 = arith.constant dense<0.000000e+00> : vector<8xf32>
    %1514 = vector.multi_reduction <add>, %1513, %cst_338 [1] : vector<8x256xf32> to vector<8xf32>
    %1515 = vector.shape_cast %1514 : vector<8xf32> to vector<8x1xf32>
    %c91_i32 = arith.constant 91 : i32
    %1516 = vector.broadcast %c91_i32 : i32 to vector<8x256xi32>
    %1517 = arith.cmpi eq, %119, %1516 : vector<8x256xi32>
    %cst_339 = arith.constant 0.000000e+00 : f32
    %1518 = vector.shape_cast %1515 : vector<8x1xf32> to vector<8x1xf32>
    %1519 = vector.broadcast %1518 : vector<8x1xf32> to vector<8x256xf32>
    %1520 = vector.broadcast %cst_339 : f32 to vector<8x256xf32>
    %1521 = arith.select %1517, %1519, %1520 : vector<8x256xi1>, vector<8x256xf32>
    %1522 = arith.addf %1512, %1521 : vector<8x256xf32>
    %1523 = arith.mulf %115, %1483 : vector<8x256xf32>
    %cst_340 = arith.constant dense<0.000000e+00> : vector<8xf32>
    %1524 = vector.multi_reduction <add>, %1523, %cst_340 [1] : vector<8x256xf32> to vector<8xf32>
    %1525 = vector.shape_cast %1524 : vector<8xf32> to vector<8x1xf32>
    %c116_i32 = arith.constant 116 : i32
    %1526 = vector.broadcast %c116_i32 : i32 to vector<8x256xi32>
    %1527 = arith.cmpi eq, %119, %1526 : vector<8x256xi32>
    %cst_341 = arith.constant 0.000000e+00 : f32
    %1528 = vector.shape_cast %1525 : vector<8x1xf32> to vector<8x1xf32>
    %1529 = vector.broadcast %1528 : vector<8x1xf32> to vector<8x256xf32>
    %1530 = vector.broadcast %cst_341 : f32 to vector<8x256xf32>
    %1531 = arith.select %1527, %1529, %1530 : vector<8x256xi1>, vector<8x256xf32>
    %1532 = arith.addf %1522, %1531 : vector<8x256xf32>
    %1533 = arith.mulf %116, %1483 : vector<8x256xf32>
    %cst_342 = arith.constant dense<0.000000e+00> : vector<8xf32>
    %1534 = vector.multi_reduction <add>, %1533, %cst_342 [1] : vector<8x256xf32> to vector<8xf32>
    %1535 = vector.shape_cast %1534 : vector<8xf32> to vector<8x1xf32>
    %c141_i32 = arith.constant 141 : i32
    %1536 = vector.broadcast %c141_i32 : i32 to vector<8x256xi32>
    %1537 = arith.cmpi eq, %119, %1536 : vector<8x256xi32>
    %cst_343 = arith.constant 0.000000e+00 : f32
    %1538 = vector.shape_cast %1535 : vector<8x1xf32> to vector<8x1xf32>
    %1539 = vector.broadcast %1538 : vector<8x1xf32> to vector<8x256xf32>
    %1540 = vector.broadcast %cst_343 : f32 to vector<8x256xf32>
    %1541 = arith.select %1537, %1539, %1540 : vector<8x256xi1>, vector<8x256xf32>
    %1542 = arith.addf %1532, %1541 : vector<8x256xf32>
    %1543 = arith.mulf %117, %1483 : vector<8x256xf32>
    %cst_344 = arith.constant dense<0.000000e+00> : vector<8xf32>
    %1544 = vector.multi_reduction <add>, %1543, %cst_344 [1] : vector<8x256xf32> to vector<8xf32>
    %1545 = vector.shape_cast %1544 : vector<8xf32> to vector<8x1xf32>
    %c166_i32 = arith.constant 166 : i32
    %1546 = vector.broadcast %c166_i32 : i32 to vector<8x256xi32>
    %1547 = arith.cmpi eq, %119, %1546 : vector<8x256xi32>
    %cst_345 = arith.constant 0.000000e+00 : f32
    %1548 = vector.shape_cast %1545 : vector<8x1xf32> to vector<8x1xf32>
    %1549 = vector.broadcast %1548 : vector<8x1xf32> to vector<8x256xf32>
    %1550 = vector.broadcast %cst_345 : f32 to vector<8x256xf32>
    %1551 = arith.select %1547, %1549, %1550 : vector<8x256xi1>, vector<8x256xf32>
    %1552 = arith.addf %1542, %1551 : vector<8x256xf32>
    %1553 = arith.mulf %118, %1483 : vector<8x256xf32>
    %cst_346 = arith.constant dense<0.000000e+00> : vector<8xf32>
    %1554 = vector.multi_reduction <add>, %1553, %cst_346 [1] : vector<8x256xf32> to vector<8xf32>
    %1555 = vector.shape_cast %1554 : vector<8xf32> to vector<8x1xf32>
    %c191_i32 = arith.constant 191 : i32
    %1556 = vector.broadcast %c191_i32 : i32 to vector<8x256xi32>
    %1557 = arith.cmpi eq, %119, %1556 : vector<8x256xi32>
    %cst_347 = arith.constant 0.000000e+00 : f32
    %1558 = vector.shape_cast %1555 : vector<8x1xf32> to vector<8x1xf32>
    %1559 = vector.broadcast %1558 : vector<8x1xf32> to vector<8x256xf32>
    %1560 = vector.broadcast %cst_347 : f32 to vector<8x256xf32>
    %1561 = arith.select %1557, %1559, %1560 : vector<8x256xi1>, vector<8x256xf32>
    %1562 = arith.addf %1552, %1561 : vector<8x256xf32>
    %1563 = arith.addf %1479, %1562 : vector<8x256xf32>
    %cst_348 = arith.constant 22.2441196 : f32
    %1564 = vector.broadcast %cst_348 : f32 to vector<8x256xf32>
    %1565 = arith.mulf %1564, %125 : vector<8x256xf32>
    %cst_349 = arith.constant 3.000000e+00 : f32
    %1566 = vector.broadcast %cst_349 : f32 to vector<8x256xf32>
    %1567 = arith.mulf %1566, %121 : vector<8x256xf32>
    %1568 = arith.subf %1567, %122 : vector<8x256xf32>
    %1569 = arith.mulf %1565, %1568 : vector<8x256xf32>
    %1570 = arith.mulf %108, %1569 : vector<8x256xf32>
    %cst_350 = arith.constant dense<0.000000e+00> : vector<8xf32>
    %1571 = vector.multi_reduction <add>, %1570, %cst_350 [1] : vector<8x256xf32> to vector<8xf32>
    %1572 = vector.shape_cast %1571 : vector<8xf32> to vector<8x1xf32>
    %c17_i32 = arith.constant 17 : i32
    %1573 = vector.broadcast %c17_i32 : i32 to vector<8x256xi32>
    %1574 = arith.cmpi eq, %119, %1573 : vector<8x256xi32>
    %cst_351 = arith.constant 0.000000e+00 : f32
    %1575 = vector.shape_cast %1572 : vector<8x1xf32> to vector<8x1xf32>
    %1576 = vector.broadcast %1575 : vector<8x1xf32> to vector<8x256xf32>
    %1577 = vector.broadcast %cst_351 : f32 to vector<8x256xf32>
    %1578 = arith.select %1574, %1576, %1577 : vector<8x256xi1>, vector<8x256xf32>
    %1579 = arith.mulf %109, %1569 : vector<8x256xf32>
    %cst_352 = arith.constant dense<0.000000e+00> : vector<8xf32>
    %1580 = vector.multi_reduction <add>, %1579, %cst_352 [1] : vector<8x256xf32> to vector<8xf32>
    %1581 = vector.shape_cast %1580 : vector<8xf32> to vector<8x1xf32>
    %c42_i32 = arith.constant 42 : i32
    %1582 = vector.broadcast %c42_i32 : i32 to vector<8x256xi32>
    %1583 = arith.cmpi eq, %119, %1582 : vector<8x256xi32>
    %cst_353 = arith.constant 0.000000e+00 : f32
    %1584 = vector.shape_cast %1581 : vector<8x1xf32> to vector<8x1xf32>
    %1585 = vector.broadcast %1584 : vector<8x1xf32> to vector<8x256xf32>
    %1586 = vector.broadcast %cst_353 : f32 to vector<8x256xf32>
    %1587 = arith.select %1583, %1585, %1586 : vector<8x256xi1>, vector<8x256xf32>
    %1588 = arith.addf %1578, %1587 : vector<8x256xf32>
    %1589 = arith.mulf %110, %1569 : vector<8x256xf32>
    %cst_354 = arith.constant dense<0.000000e+00> : vector<8xf32>
    %1590 = vector.multi_reduction <add>, %1589, %cst_354 [1] : vector<8x256xf32> to vector<8xf32>
    %1591 = vector.shape_cast %1590 : vector<8xf32> to vector<8x1xf32>
    %c67_i32 = arith.constant 67 : i32
    %1592 = vector.broadcast %c67_i32 : i32 to vector<8x256xi32>
    %1593 = arith.cmpi eq, %119, %1592 : vector<8x256xi32>
    %cst_355 = arith.constant 0.000000e+00 : f32
    %1594 = vector.shape_cast %1591 : vector<8x1xf32> to vector<8x1xf32>
    %1595 = vector.broadcast %1594 : vector<8x1xf32> to vector<8x256xf32>
    %1596 = vector.broadcast %cst_355 : f32 to vector<8x256xf32>
    %1597 = arith.select %1593, %1595, %1596 : vector<8x256xi1>, vector<8x256xf32>
    %1598 = arith.addf %1588, %1597 : vector<8x256xf32>
    %1599 = arith.mulf %111, %1569 : vector<8x256xf32>
    %cst_356 = arith.constant dense<0.000000e+00> : vector<8xf32>
    %1600 = vector.multi_reduction <add>, %1599, %cst_356 [1] : vector<8x256xf32> to vector<8xf32>
    %1601 = vector.shape_cast %1600 : vector<8xf32> to vector<8x1xf32>
    %c92_i32 = arith.constant 92 : i32
    %1602 = vector.broadcast %c92_i32 : i32 to vector<8x256xi32>
    %1603 = arith.cmpi eq, %119, %1602 : vector<8x256xi32>
    %cst_357 = arith.constant 0.000000e+00 : f32
    %1604 = vector.shape_cast %1601 : vector<8x1xf32> to vector<8x1xf32>
    %1605 = vector.broadcast %1604 : vector<8x1xf32> to vector<8x256xf32>
    %1606 = vector.broadcast %cst_357 : f32 to vector<8x256xf32>
    %1607 = arith.select %1603, %1605, %1606 : vector<8x256xi1>, vector<8x256xf32>
    %1608 = arith.addf %1598, %1607 : vector<8x256xf32>
    %1609 = arith.mulf %115, %1569 : vector<8x256xf32>
    %cst_358 = arith.constant dense<0.000000e+00> : vector<8xf32>
    %1610 = vector.multi_reduction <add>, %1609, %cst_358 [1] : vector<8x256xf32> to vector<8xf32>
    %1611 = vector.shape_cast %1610 : vector<8xf32> to vector<8x1xf32>
    %c117_i32 = arith.constant 117 : i32
    %1612 = vector.broadcast %c117_i32 : i32 to vector<8x256xi32>
    %1613 = arith.cmpi eq, %119, %1612 : vector<8x256xi32>
    %cst_359 = arith.constant 0.000000e+00 : f32
    %1614 = vector.shape_cast %1611 : vector<8x1xf32> to vector<8x1xf32>
    %1615 = vector.broadcast %1614 : vector<8x1xf32> to vector<8x256xf32>
    %1616 = vector.broadcast %cst_359 : f32 to vector<8x256xf32>
    %1617 = arith.select %1613, %1615, %1616 : vector<8x256xi1>, vector<8x256xf32>
    %1618 = arith.addf %1608, %1617 : vector<8x256xf32>
    %1619 = arith.mulf %116, %1569 : vector<8x256xf32>
    %cst_360 = arith.constant dense<0.000000e+00> : vector<8xf32>
    %1620 = vector.multi_reduction <add>, %1619, %cst_360 [1] : vector<8x256xf32> to vector<8xf32>
    %1621 = vector.shape_cast %1620 : vector<8xf32> to vector<8x1xf32>
    %c142_i32 = arith.constant 142 : i32
    %1622 = vector.broadcast %c142_i32 : i32 to vector<8x256xi32>
    %1623 = arith.cmpi eq, %119, %1622 : vector<8x256xi32>
    %cst_361 = arith.constant 0.000000e+00 : f32
    %1624 = vector.shape_cast %1621 : vector<8x1xf32> to vector<8x1xf32>
    %1625 = vector.broadcast %1624 : vector<8x1xf32> to vector<8x256xf32>
    %1626 = vector.broadcast %cst_361 : f32 to vector<8x256xf32>
    %1627 = arith.select %1623, %1625, %1626 : vector<8x256xi1>, vector<8x256xf32>
    %1628 = arith.addf %1618, %1627 : vector<8x256xf32>
    %1629 = arith.mulf %117, %1569 : vector<8x256xf32>
    %cst_362 = arith.constant dense<0.000000e+00> : vector<8xf32>
    %1630 = vector.multi_reduction <add>, %1629, %cst_362 [1] : vector<8x256xf32> to vector<8xf32>
    %1631 = vector.shape_cast %1630 : vector<8xf32> to vector<8x1xf32>
    %c167_i32 = arith.constant 167 : i32
    %1632 = vector.broadcast %c167_i32 : i32 to vector<8x256xi32>
    %1633 = arith.cmpi eq, %119, %1632 : vector<8x256xi32>
    %cst_363 = arith.constant 0.000000e+00 : f32
    %1634 = vector.shape_cast %1631 : vector<8x1xf32> to vector<8x1xf32>
    %1635 = vector.broadcast %1634 : vector<8x1xf32> to vector<8x256xf32>
    %1636 = vector.broadcast %cst_363 : f32 to vector<8x256xf32>
    %1637 = arith.select %1633, %1635, %1636 : vector<8x256xi1>, vector<8x256xf32>
    %1638 = arith.addf %1628, %1637 : vector<8x256xf32>
    %1639 = arith.mulf %118, %1569 : vector<8x256xf32>
    %cst_364 = arith.constant dense<0.000000e+00> : vector<8xf32>
    %1640 = vector.multi_reduction <add>, %1639, %cst_364 [1] : vector<8x256xf32> to vector<8xf32>
    %1641 = vector.shape_cast %1640 : vector<8xf32> to vector<8x1xf32>
    %c192_i32 = arith.constant 192 : i32
    %1642 = vector.broadcast %c192_i32 : i32 to vector<8x256xi32>
    %1643 = arith.cmpi eq, %119, %1642 : vector<8x256xi32>
    %cst_365 = arith.constant 0.000000e+00 : f32
    %1644 = vector.shape_cast %1641 : vector<8x1xf32> to vector<8x1xf32>
    %1645 = vector.broadcast %1644 : vector<8x1xf32> to vector<8x256xf32>
    %1646 = vector.broadcast %cst_365 : f32 to vector<8x256xf32>
    %1647 = arith.select %1643, %1645, %1646 : vector<8x256xi1>, vector<8x256xf32>
    %1648 = arith.addf %1638, %1647 : vector<8x256xf32>
    %1649 = arith.addf %1563, %1648 : vector<8x256xf32>
    %cst_366 = arith.constant 11.8899822 : f32
    %1650 = vector.broadcast %cst_366 : f32 to vector<8x256xf32>
    %1651 = arith.mulf %1650, %124 : vector<8x256xf32>
    %cst_367 = arith.constant 6.000000e+00 : f32
    %1652 = vector.broadcast %cst_367 : f32 to vector<8x256xf32>
    %1653 = arith.mulf %1652, %123 : vector<8x256xf32>
    %1654 = arith.subf %1653, %121 : vector<8x256xf32>
    %1655 = arith.subf %1654, %122 : vector<8x256xf32>
    %1656 = arith.mulf %1651, %1655 : vector<8x256xf32>
    %1657 = arith.mulf %108, %1656 : vector<8x256xf32>
    %cst_368 = arith.constant dense<0.000000e+00> : vector<8xf32>
    %1658 = vector.multi_reduction <add>, %1657, %cst_368 [1] : vector<8x256xf32> to vector<8xf32>
    %1659 = vector.shape_cast %1658 : vector<8xf32> to vector<8x1xf32>
    %c18_i32 = arith.constant 18 : i32
    %1660 = vector.broadcast %c18_i32 : i32 to vector<8x256xi32>
    %1661 = arith.cmpi eq, %119, %1660 : vector<8x256xi32>
    %cst_369 = arith.constant 0.000000e+00 : f32
    %1662 = vector.shape_cast %1659 : vector<8x1xf32> to vector<8x1xf32>
    %1663 = vector.broadcast %1662 : vector<8x1xf32> to vector<8x256xf32>
    %1664 = vector.broadcast %cst_369 : f32 to vector<8x256xf32>
    %1665 = arith.select %1661, %1663, %1664 : vector<8x256xi1>, vector<8x256xf32>
    %1666 = arith.mulf %109, %1656 : vector<8x256xf32>
    %cst_370 = arith.constant dense<0.000000e+00> : vector<8xf32>
    %1667 = vector.multi_reduction <add>, %1666, %cst_370 [1] : vector<8x256xf32> to vector<8xf32>
    %1668 = vector.shape_cast %1667 : vector<8xf32> to vector<8x1xf32>
    %c43_i32 = arith.constant 43 : i32
    %1669 = vector.broadcast %c43_i32 : i32 to vector<8x256xi32>
    %1670 = arith.cmpi eq, %119, %1669 : vector<8x256xi32>
    %cst_371 = arith.constant 0.000000e+00 : f32
    %1671 = vector.shape_cast %1668 : vector<8x1xf32> to vector<8x1xf32>
    %1672 = vector.broadcast %1671 : vector<8x1xf32> to vector<8x256xf32>
    %1673 = vector.broadcast %cst_371 : f32 to vector<8x256xf32>
    %1674 = arith.select %1670, %1672, %1673 : vector<8x256xi1>, vector<8x256xf32>
    %1675 = arith.addf %1665, %1674 : vector<8x256xf32>
    %1676 = arith.mulf %110, %1656 : vector<8x256xf32>
    %cst_372 = arith.constant dense<0.000000e+00> : vector<8xf32>
    %1677 = vector.multi_reduction <add>, %1676, %cst_372 [1] : vector<8x256xf32> to vector<8xf32>
    %1678 = vector.shape_cast %1677 : vector<8xf32> to vector<8x1xf32>
    %c68_i32 = arith.constant 68 : i32
    %1679 = vector.broadcast %c68_i32 : i32 to vector<8x256xi32>
    %1680 = arith.cmpi eq, %119, %1679 : vector<8x256xi32>
    %cst_373 = arith.constant 0.000000e+00 : f32
    %1681 = vector.shape_cast %1678 : vector<8x1xf32> to vector<8x1xf32>
    %1682 = vector.broadcast %1681 : vector<8x1xf32> to vector<8x256xf32>
    %1683 = vector.broadcast %cst_373 : f32 to vector<8x256xf32>
    %1684 = arith.select %1680, %1682, %1683 : vector<8x256xi1>, vector<8x256xf32>
    %1685 = arith.addf %1675, %1684 : vector<8x256xf32>
    %1686 = arith.mulf %111, %1656 : vector<8x256xf32>
    %cst_374 = arith.constant dense<0.000000e+00> : vector<8xf32>
    %1687 = vector.multi_reduction <add>, %1686, %cst_374 [1] : vector<8x256xf32> to vector<8xf32>
    %1688 = vector.shape_cast %1687 : vector<8xf32> to vector<8x1xf32>
    %c93_i32 = arith.constant 93 : i32
    %1689 = vector.broadcast %c93_i32 : i32 to vector<8x256xi32>
    %1690 = arith.cmpi eq, %119, %1689 : vector<8x256xi32>
    %cst_375 = arith.constant 0.000000e+00 : f32
    %1691 = vector.shape_cast %1688 : vector<8x1xf32> to vector<8x1xf32>
    %1692 = vector.broadcast %1691 : vector<8x1xf32> to vector<8x256xf32>
    %1693 = vector.broadcast %cst_375 : f32 to vector<8x256xf32>
    %1694 = arith.select %1690, %1692, %1693 : vector<8x256xi1>, vector<8x256xf32>
    %1695 = arith.addf %1685, %1694 : vector<8x256xf32>
    %1696 = arith.mulf %115, %1656 : vector<8x256xf32>
    %cst_376 = arith.constant dense<0.000000e+00> : vector<8xf32>
    %1697 = vector.multi_reduction <add>, %1696, %cst_376 [1] : vector<8x256xf32> to vector<8xf32>
    %1698 = vector.shape_cast %1697 : vector<8xf32> to vector<8x1xf32>
    %c118_i32 = arith.constant 118 : i32
    %1699 = vector.broadcast %c118_i32 : i32 to vector<8x256xi32>
    %1700 = arith.cmpi eq, %119, %1699 : vector<8x256xi32>
    %cst_377 = arith.constant 0.000000e+00 : f32
    %1701 = vector.shape_cast %1698 : vector<8x1xf32> to vector<8x1xf32>
    %1702 = vector.broadcast %1701 : vector<8x1xf32> to vector<8x256xf32>
    %1703 = vector.broadcast %cst_377 : f32 to vector<8x256xf32>
    %1704 = arith.select %1700, %1702, %1703 : vector<8x256xi1>, vector<8x256xf32>
    %1705 = arith.addf %1695, %1704 : vector<8x256xf32>
    %1706 = arith.mulf %116, %1656 : vector<8x256xf32>
    %cst_378 = arith.constant dense<0.000000e+00> : vector<8xf32>
    %1707 = vector.multi_reduction <add>, %1706, %cst_378 [1] : vector<8x256xf32> to vector<8xf32>
    %1708 = vector.shape_cast %1707 : vector<8xf32> to vector<8x1xf32>
    %c143_i32 = arith.constant 143 : i32
    %1709 = vector.broadcast %c143_i32 : i32 to vector<8x256xi32>
    %1710 = arith.cmpi eq, %119, %1709 : vector<8x256xi32>
    %cst_379 = arith.constant 0.000000e+00 : f32
    %1711 = vector.shape_cast %1708 : vector<8x1xf32> to vector<8x1xf32>
    %1712 = vector.broadcast %1711 : vector<8x1xf32> to vector<8x256xf32>
    %1713 = vector.broadcast %cst_379 : f32 to vector<8x256xf32>
    %1714 = arith.select %1710, %1712, %1713 : vector<8x256xi1>, vector<8x256xf32>
    %1715 = arith.addf %1705, %1714 : vector<8x256xf32>
    %1716 = arith.mulf %117, %1656 : vector<8x256xf32>
    %cst_380 = arith.constant dense<0.000000e+00> : vector<8xf32>
    %1717 = vector.multi_reduction <add>, %1716, %cst_380 [1] : vector<8x256xf32> to vector<8xf32>
    %1718 = vector.shape_cast %1717 : vector<8xf32> to vector<8x1xf32>
    %c168_i32 = arith.constant 168 : i32
    %1719 = vector.broadcast %c168_i32 : i32 to vector<8x256xi32>
    %1720 = arith.cmpi eq, %119, %1719 : vector<8x256xi32>
    %cst_381 = arith.constant 0.000000e+00 : f32
    %1721 = vector.shape_cast %1718 : vector<8x1xf32> to vector<8x1xf32>
    %1722 = vector.broadcast %1721 : vector<8x1xf32> to vector<8x256xf32>
    %1723 = vector.broadcast %cst_381 : f32 to vector<8x256xf32>
    %1724 = arith.select %1720, %1722, %1723 : vector<8x256xi1>, vector<8x256xf32>
    %1725 = arith.addf %1715, %1724 : vector<8x256xf32>
    %1726 = arith.mulf %118, %1656 : vector<8x256xf32>
    %cst_382 = arith.constant dense<0.000000e+00> : vector<8xf32>
    %1727 = vector.multi_reduction <add>, %1726, %cst_382 [1] : vector<8x256xf32> to vector<8xf32>
    %1728 = vector.shape_cast %1727 : vector<8xf32> to vector<8x1xf32>
    %c193_i32 = arith.constant 193 : i32
    %1729 = vector.broadcast %c193_i32 : i32 to vector<8x256xi32>
    %1730 = arith.cmpi eq, %119, %1729 : vector<8x256xi32>
    %cst_383 = arith.constant 0.000000e+00 : f32
    %1731 = vector.shape_cast %1728 : vector<8x1xf32> to vector<8x1xf32>
    %1732 = vector.broadcast %1731 : vector<8x1xf32> to vector<8x256xf32>
    %1733 = vector.broadcast %cst_383 : f32 to vector<8x256xf32>
    %1734 = arith.select %1730, %1732, %1733 : vector<8x256xi1>, vector<8x256xf32>
    %1735 = arith.addf %1725, %1734 : vector<8x256xf32>
    %1736 = arith.addf %1649, %1735 : vector<8x256xf32>
    %cst_384 = arith.constant 8.40748691 : f32
    %1737 = vector.broadcast %cst_384 : f32 to vector<8x256xf32>
    %1738 = arith.mulf %1737, %125 : vector<8x256xf32>
    %cst_385 = arith.constant 4.000000e+00 : f32
    %1739 = vector.broadcast %cst_385 : f32 to vector<8x256xf32>
    %1740 = arith.mulf %1739, %123 : vector<8x256xf32>
    %cst_386 = arith.constant 3.000000e+00 : f32
    %1741 = vector.broadcast %cst_386 : f32 to vector<8x256xf32>
    %1742 = arith.mulf %1741, %121 : vector<8x256xf32>
    %1743 = arith.subf %1740, %1742 : vector<8x256xf32>
    %cst_387 = arith.constant 3.000000e+00 : f32
    %1744 = vector.broadcast %cst_387 : f32 to vector<8x256xf32>
    %1745 = arith.mulf %1744, %122 : vector<8x256xf32>
    %1746 = arith.subf %1743, %1745 : vector<8x256xf32>
    %1747 = arith.mulf %1738, %1746 : vector<8x256xf32>
    %1748 = arith.mulf %108, %1747 : vector<8x256xf32>
    %cst_388 = arith.constant dense<0.000000e+00> : vector<8xf32>
    %1749 = vector.multi_reduction <add>, %1748, %cst_388 [1] : vector<8x256xf32> to vector<8xf32>
    %1750 = vector.shape_cast %1749 : vector<8xf32> to vector<8x1xf32>
    %c19_i32 = arith.constant 19 : i32
    %1751 = vector.broadcast %c19_i32 : i32 to vector<8x256xi32>
    %1752 = arith.cmpi eq, %119, %1751 : vector<8x256xi32>
    %cst_389 = arith.constant 0.000000e+00 : f32
    %1753 = vector.shape_cast %1750 : vector<8x1xf32> to vector<8x1xf32>
    %1754 = vector.broadcast %1753 : vector<8x1xf32> to vector<8x256xf32>
    %1755 = vector.broadcast %cst_389 : f32 to vector<8x256xf32>
    %1756 = arith.select %1752, %1754, %1755 : vector<8x256xi1>, vector<8x256xf32>
    %1757 = arith.mulf %109, %1747 : vector<8x256xf32>
    %cst_390 = arith.constant dense<0.000000e+00> : vector<8xf32>
    %1758 = vector.multi_reduction <add>, %1757, %cst_390 [1] : vector<8x256xf32> to vector<8xf32>
    %1759 = vector.shape_cast %1758 : vector<8xf32> to vector<8x1xf32>
    %c44_i32 = arith.constant 44 : i32
    %1760 = vector.broadcast %c44_i32 : i32 to vector<8x256xi32>
    %1761 = arith.cmpi eq, %119, %1760 : vector<8x256xi32>
    %cst_391 = arith.constant 0.000000e+00 : f32
    %1762 = vector.shape_cast %1759 : vector<8x1xf32> to vector<8x1xf32>
    %1763 = vector.broadcast %1762 : vector<8x1xf32> to vector<8x256xf32>
    %1764 = vector.broadcast %cst_391 : f32 to vector<8x256xf32>
    %1765 = arith.select %1761, %1763, %1764 : vector<8x256xi1>, vector<8x256xf32>
    %1766 = arith.addf %1756, %1765 : vector<8x256xf32>
    %1767 = arith.mulf %110, %1747 : vector<8x256xf32>
    %cst_392 = arith.constant dense<0.000000e+00> : vector<8xf32>
    %1768 = vector.multi_reduction <add>, %1767, %cst_392 [1] : vector<8x256xf32> to vector<8xf32>
    %1769 = vector.shape_cast %1768 : vector<8xf32> to vector<8x1xf32>
    %c69_i32 = arith.constant 69 : i32
    %1770 = vector.broadcast %c69_i32 : i32 to vector<8x256xi32>
    %1771 = arith.cmpi eq, %119, %1770 : vector<8x256xi32>
    %cst_393 = arith.constant 0.000000e+00 : f32
    %1772 = vector.shape_cast %1769 : vector<8x1xf32> to vector<8x1xf32>
    %1773 = vector.broadcast %1772 : vector<8x1xf32> to vector<8x256xf32>
    %1774 = vector.broadcast %cst_393 : f32 to vector<8x256xf32>
    %1775 = arith.select %1771, %1773, %1774 : vector<8x256xi1>, vector<8x256xf32>
    %1776 = arith.addf %1766, %1775 : vector<8x256xf32>
    %1777 = arith.mulf %111, %1747 : vector<8x256xf32>
    %cst_394 = arith.constant dense<0.000000e+00> : vector<8xf32>
    %1778 = vector.multi_reduction <add>, %1777, %cst_394 [1] : vector<8x256xf32> to vector<8xf32>
    %1779 = vector.shape_cast %1778 : vector<8xf32> to vector<8x1xf32>
    %c94_i32 = arith.constant 94 : i32
    %1780 = vector.broadcast %c94_i32 : i32 to vector<8x256xi32>
    %1781 = arith.cmpi eq, %119, %1780 : vector<8x256xi32>
    %cst_395 = arith.constant 0.000000e+00 : f32
    %1782 = vector.shape_cast %1779 : vector<8x1xf32> to vector<8x1xf32>
    %1783 = vector.broadcast %1782 : vector<8x1xf32> to vector<8x256xf32>
    %1784 = vector.broadcast %cst_395 : f32 to vector<8x256xf32>
    %1785 = arith.select %1781, %1783, %1784 : vector<8x256xi1>, vector<8x256xf32>
    %1786 = arith.addf %1776, %1785 : vector<8x256xf32>
    %1787 = arith.mulf %115, %1747 : vector<8x256xf32>
    %cst_396 = arith.constant dense<0.000000e+00> : vector<8xf32>
    %1788 = vector.multi_reduction <add>, %1787, %cst_396 [1] : vector<8x256xf32> to vector<8xf32>
    %1789 = vector.shape_cast %1788 : vector<8xf32> to vector<8x1xf32>
    %c119_i32 = arith.constant 119 : i32
    %1790 = vector.broadcast %c119_i32 : i32 to vector<8x256xi32>
    %1791 = arith.cmpi eq, %119, %1790 : vector<8x256xi32>
    %cst_397 = arith.constant 0.000000e+00 : f32
    %1792 = vector.shape_cast %1789 : vector<8x1xf32> to vector<8x1xf32>
    %1793 = vector.broadcast %1792 : vector<8x1xf32> to vector<8x256xf32>
    %1794 = vector.broadcast %cst_397 : f32 to vector<8x256xf32>
    %1795 = arith.select %1791, %1793, %1794 : vector<8x256xi1>, vector<8x256xf32>
    %1796 = arith.addf %1786, %1795 : vector<8x256xf32>
    %1797 = arith.mulf %116, %1747 : vector<8x256xf32>
    %cst_398 = arith.constant dense<0.000000e+00> : vector<8xf32>
    %1798 = vector.multi_reduction <add>, %1797, %cst_398 [1] : vector<8x256xf32> to vector<8xf32>
    %1799 = vector.shape_cast %1798 : vector<8xf32> to vector<8x1xf32>
    %c144_i32 = arith.constant 144 : i32
    %1800 = vector.broadcast %c144_i32 : i32 to vector<8x256xi32>
    %1801 = arith.cmpi eq, %119, %1800 : vector<8x256xi32>
    %cst_399 = arith.constant 0.000000e+00 : f32
    %1802 = vector.shape_cast %1799 : vector<8x1xf32> to vector<8x1xf32>
    %1803 = vector.broadcast %1802 : vector<8x1xf32> to vector<8x256xf32>
    %1804 = vector.broadcast %cst_399 : f32 to vector<8x256xf32>
    %1805 = arith.select %1801, %1803, %1804 : vector<8x256xi1>, vector<8x256xf32>
    %1806 = arith.addf %1796, %1805 : vector<8x256xf32>
    %1807 = arith.mulf %117, %1747 : vector<8x256xf32>
    %cst_400 = arith.constant dense<0.000000e+00> : vector<8xf32>
    %1808 = vector.multi_reduction <add>, %1807, %cst_400 [1] : vector<8x256xf32> to vector<8xf32>
    %1809 = vector.shape_cast %1808 : vector<8xf32> to vector<8x1xf32>
    %c169_i32 = arith.constant 169 : i32
    %1810 = vector.broadcast %c169_i32 : i32 to vector<8x256xi32>
    %1811 = arith.cmpi eq, %119, %1810 : vector<8x256xi32>
    %cst_401 = arith.constant 0.000000e+00 : f32
    %1812 = vector.shape_cast %1809 : vector<8x1xf32> to vector<8x1xf32>
    %1813 = vector.broadcast %1812 : vector<8x1xf32> to vector<8x256xf32>
    %1814 = vector.broadcast %cst_401 : f32 to vector<8x256xf32>
    %1815 = arith.select %1811, %1813, %1814 : vector<8x256xi1>, vector<8x256xf32>
    %1816 = arith.addf %1806, %1815 : vector<8x256xf32>
    %1817 = arith.mulf %118, %1747 : vector<8x256xf32>
    %cst_402 = arith.constant dense<0.000000e+00> : vector<8xf32>
    %1818 = vector.multi_reduction <add>, %1817, %cst_402 [1] : vector<8x256xf32> to vector<8xf32>
    %1819 = vector.shape_cast %1818 : vector<8xf32> to vector<8x1xf32>
    %c194_i32 = arith.constant 194 : i32
    %1820 = vector.broadcast %c194_i32 : i32 to vector<8x256xi32>
    %1821 = arith.cmpi eq, %119, %1820 : vector<8x256xi32>
    %cst_403 = arith.constant 0.000000e+00 : f32
    %1822 = vector.shape_cast %1819 : vector<8x1xf32> to vector<8x1xf32>
    %1823 = vector.broadcast %1822 : vector<8x1xf32> to vector<8x256xf32>
    %1824 = vector.broadcast %cst_403 : f32 to vector<8x256xf32>
    %1825 = arith.select %1821, %1823, %1824 : vector<8x256xi1>, vector<8x256xf32>
    %1826 = arith.addf %1816, %1825 : vector<8x256xf32>
    %1827 = arith.addf %1736, %1826 : vector<8x256xf32>
    %1828 = arith.addf %121, %122 : vector<8x256xf32>
    %cst_404 = arith.constant 3.000000e+00 : f32
    %1829 = vector.broadcast %cst_404 : f32 to vector<8x256xf32>
    %1830 = arith.mulf %1829, %1828 : vector<8x256xf32>
    %1831 = arith.addf %121, %122 : vector<8x256xf32>
    %1832 = arith.mulf %1830, %1831 : vector<8x256xf32>
    %cst_405 = arith.constant 8.000000e+00 : f32
    %1833 = vector.broadcast %cst_405 : f32 to vector<8x256xf32>
    %1834 = arith.mulf %1833, %123 : vector<8x256xf32>
    %1835 = arith.mulf %1834, %123 : vector<8x256xf32>
    %1836 = arith.addf %1832, %1835 : vector<8x256xf32>
    %cst_406 = arith.constant 2.400000e+01 : f32
    %1837 = vector.broadcast %cst_406 : f32 to vector<8x256xf32>
    %1838 = arith.mulf %1837, %123 : vector<8x256xf32>
    %1839 = arith.addf %121, %122 : vector<8x256xf32>
    %1840 = arith.mulf %1838, %1839 : vector<8x256xf32>
    %1841 = arith.subf %1836, %1840 : vector<8x256xf32>
    %cst_407 = arith.constant 1.32934034 : f32
    %1842 = vector.broadcast %cst_407 : f32 to vector<8x256xf32>
    %1843 = arith.mulf %1842, %1841 : vector<8x256xf32>
    %1844 = arith.mulf %108, %1843 : vector<8x256xf32>
    %cst_408 = arith.constant dense<0.000000e+00> : vector<8xf32>
    %1845 = vector.multi_reduction <add>, %1844, %cst_408 [1] : vector<8x256xf32> to vector<8xf32>
    %1846 = vector.shape_cast %1845 : vector<8xf32> to vector<8x1xf32>
    %c20_i32 = arith.constant 20 : i32
    %1847 = vector.broadcast %c20_i32 : i32 to vector<8x256xi32>
    %1848 = arith.cmpi eq, %119, %1847 : vector<8x256xi32>
    %cst_409 = arith.constant 0.000000e+00 : f32
    %1849 = vector.shape_cast %1846 : vector<8x1xf32> to vector<8x1xf32>
    %1850 = vector.broadcast %1849 : vector<8x1xf32> to vector<8x256xf32>
    %1851 = vector.broadcast %cst_409 : f32 to vector<8x256xf32>
    %1852 = arith.select %1848, %1850, %1851 : vector<8x256xi1>, vector<8x256xf32>
    %1853 = arith.mulf %109, %1843 : vector<8x256xf32>
    %cst_410 = arith.constant dense<0.000000e+00> : vector<8xf32>
    %1854 = vector.multi_reduction <add>, %1853, %cst_410 [1] : vector<8x256xf32> to vector<8xf32>
    %1855 = vector.shape_cast %1854 : vector<8xf32> to vector<8x1xf32>
    %c45_i32 = arith.constant 45 : i32
    %1856 = vector.broadcast %c45_i32 : i32 to vector<8x256xi32>
    %1857 = arith.cmpi eq, %119, %1856 : vector<8x256xi32>
    %cst_411 = arith.constant 0.000000e+00 : f32
    %1858 = vector.shape_cast %1855 : vector<8x1xf32> to vector<8x1xf32>
    %1859 = vector.broadcast %1858 : vector<8x1xf32> to vector<8x256xf32>
    %1860 = vector.broadcast %cst_411 : f32 to vector<8x256xf32>
    %1861 = arith.select %1857, %1859, %1860 : vector<8x256xi1>, vector<8x256xf32>
    %1862 = arith.addf %1852, %1861 : vector<8x256xf32>
    %1863 = arith.mulf %110, %1843 : vector<8x256xf32>
    %cst_412 = arith.constant dense<0.000000e+00> : vector<8xf32>
    %1864 = vector.multi_reduction <add>, %1863, %cst_412 [1] : vector<8x256xf32> to vector<8xf32>
    %1865 = vector.shape_cast %1864 : vector<8xf32> to vector<8x1xf32>
    %c70_i32 = arith.constant 70 : i32
    %1866 = vector.broadcast %c70_i32 : i32 to vector<8x256xi32>
    %1867 = arith.cmpi eq, %119, %1866 : vector<8x256xi32>
    %cst_413 = arith.constant 0.000000e+00 : f32
    %1868 = vector.shape_cast %1865 : vector<8x1xf32> to vector<8x1xf32>
    %1869 = vector.broadcast %1868 : vector<8x1xf32> to vector<8x256xf32>
    %1870 = vector.broadcast %cst_413 : f32 to vector<8x256xf32>
    %1871 = arith.select %1867, %1869, %1870 : vector<8x256xi1>, vector<8x256xf32>
    %1872 = arith.addf %1862, %1871 : vector<8x256xf32>
    %1873 = arith.mulf %111, %1843 : vector<8x256xf32>
    %cst_414 = arith.constant dense<0.000000e+00> : vector<8xf32>
    %1874 = vector.multi_reduction <add>, %1873, %cst_414 [1] : vector<8x256xf32> to vector<8xf32>
    %1875 = vector.shape_cast %1874 : vector<8xf32> to vector<8x1xf32>
    %c95_i32 = arith.constant 95 : i32
    %1876 = vector.broadcast %c95_i32 : i32 to vector<8x256xi32>
    %1877 = arith.cmpi eq, %119, %1876 : vector<8x256xi32>
    %cst_415 = arith.constant 0.000000e+00 : f32
    %1878 = vector.shape_cast %1875 : vector<8x1xf32> to vector<8x1xf32>
    %1879 = vector.broadcast %1878 : vector<8x1xf32> to vector<8x256xf32>
    %1880 = vector.broadcast %cst_415 : f32 to vector<8x256xf32>
    %1881 = arith.select %1877, %1879, %1880 : vector<8x256xi1>, vector<8x256xf32>
    %1882 = arith.addf %1872, %1881 : vector<8x256xf32>
    %1883 = arith.mulf %115, %1843 : vector<8x256xf32>
    %cst_416 = arith.constant dense<0.000000e+00> : vector<8xf32>
    %1884 = vector.multi_reduction <add>, %1883, %cst_416 [1] : vector<8x256xf32> to vector<8xf32>
    %1885 = vector.shape_cast %1884 : vector<8xf32> to vector<8x1xf32>
    %c120_i32 = arith.constant 120 : i32
    %1886 = vector.broadcast %c120_i32 : i32 to vector<8x256xi32>
    %1887 = arith.cmpi eq, %119, %1886 : vector<8x256xi32>
    %cst_417 = arith.constant 0.000000e+00 : f32
    %1888 = vector.shape_cast %1885 : vector<8x1xf32> to vector<8x1xf32>
    %1889 = vector.broadcast %1888 : vector<8x1xf32> to vector<8x256xf32>
    %1890 = vector.broadcast %cst_417 : f32 to vector<8x256xf32>
    %1891 = arith.select %1887, %1889, %1890 : vector<8x256xi1>, vector<8x256xf32>
    %1892 = arith.addf %1882, %1891 : vector<8x256xf32>
    %1893 = arith.mulf %116, %1843 : vector<8x256xf32>
    %cst_418 = arith.constant dense<0.000000e+00> : vector<8xf32>
    %1894 = vector.multi_reduction <add>, %1893, %cst_418 [1] : vector<8x256xf32> to vector<8xf32>
    %1895 = vector.shape_cast %1894 : vector<8xf32> to vector<8x1xf32>
    %c145_i32 = arith.constant 145 : i32
    %1896 = vector.broadcast %c145_i32 : i32 to vector<8x256xi32>
    %1897 = arith.cmpi eq, %119, %1896 : vector<8x256xi32>
    %cst_419 = arith.constant 0.000000e+00 : f32
    %1898 = vector.shape_cast %1895 : vector<8x1xf32> to vector<8x1xf32>
    %1899 = vector.broadcast %1898 : vector<8x1xf32> to vector<8x256xf32>
    %1900 = vector.broadcast %cst_419 : f32 to vector<8x256xf32>
    %1901 = arith.select %1897, %1899, %1900 : vector<8x256xi1>, vector<8x256xf32>
    %1902 = arith.addf %1892, %1901 : vector<8x256xf32>
    %1903 = arith.mulf %117, %1843 : vector<8x256xf32>
    %cst_420 = arith.constant dense<0.000000e+00> : vector<8xf32>
    %1904 = vector.multi_reduction <add>, %1903, %cst_420 [1] : vector<8x256xf32> to vector<8xf32>
    %1905 = vector.shape_cast %1904 : vector<8xf32> to vector<8x1xf32>
    %c170_i32 = arith.constant 170 : i32
    %1906 = vector.broadcast %c170_i32 : i32 to vector<8x256xi32>
    %1907 = arith.cmpi eq, %119, %1906 : vector<8x256xi32>
    %cst_421 = arith.constant 0.000000e+00 : f32
    %1908 = vector.shape_cast %1905 : vector<8x1xf32> to vector<8x1xf32>
    %1909 = vector.broadcast %1908 : vector<8x1xf32> to vector<8x256xf32>
    %1910 = vector.broadcast %cst_421 : f32 to vector<8x256xf32>
    %1911 = arith.select %1907, %1909, %1910 : vector<8x256xi1>, vector<8x256xf32>
    %1912 = arith.addf %1902, %1911 : vector<8x256xf32>
    %1913 = arith.mulf %118, %1843 : vector<8x256xf32>
    %cst_422 = arith.constant dense<0.000000e+00> : vector<8xf32>
    %1914 = vector.multi_reduction <add>, %1913, %cst_422 [1] : vector<8x256xf32> to vector<8xf32>
    %1915 = vector.shape_cast %1914 : vector<8xf32> to vector<8x1xf32>
    %c195_i32 = arith.constant 195 : i32
    %1916 = vector.broadcast %c195_i32 : i32 to vector<8x256xi32>
    %1917 = arith.cmpi eq, %119, %1916 : vector<8x256xi32>
    %cst_423 = arith.constant 0.000000e+00 : f32
    %1918 = vector.shape_cast %1915 : vector<8x1xf32> to vector<8x1xf32>
    %1919 = vector.broadcast %1918 : vector<8x1xf32> to vector<8x256xf32>
    %1920 = vector.broadcast %cst_423 : f32 to vector<8x256xf32>
    %1921 = arith.select %1917, %1919, %1920 : vector<8x256xi1>, vector<8x256xf32>
    %1922 = arith.addf %1912, %1921 : vector<8x256xf32>
    %1923 = arith.addf %1827, %1922 : vector<8x256xf32>
    %cst_424 = arith.constant 8.40748691 : f32
    %1924 = vector.broadcast %cst_424 : f32 to vector<8x256xf32>
    %1925 = arith.mulf %1924, %126 : vector<8x256xf32>
    %cst_425 = arith.constant 4.000000e+00 : f32
    %1926 = vector.broadcast %cst_425 : f32 to vector<8x256xf32>
    %1927 = arith.mulf %1926, %123 : vector<8x256xf32>
    %cst_426 = arith.constant 3.000000e+00 : f32
    %1928 = vector.broadcast %cst_426 : f32 to vector<8x256xf32>
    %1929 = arith.mulf %1928, %121 : vector<8x256xf32>
    %1930 = arith.subf %1927, %1929 : vector<8x256xf32>
    %cst_427 = arith.constant 3.000000e+00 : f32
    %1931 = vector.broadcast %cst_427 : f32 to vector<8x256xf32>
    %1932 = arith.mulf %1931, %122 : vector<8x256xf32>
    %1933 = arith.subf %1930, %1932 : vector<8x256xf32>
    %1934 = arith.mulf %1925, %1933 : vector<8x256xf32>
    %1935 = arith.mulf %108, %1934 : vector<8x256xf32>
    %cst_428 = arith.constant dense<0.000000e+00> : vector<8xf32>
    %1936 = vector.multi_reduction <add>, %1935, %cst_428 [1] : vector<8x256xf32> to vector<8xf32>
    %1937 = vector.shape_cast %1936 : vector<8xf32> to vector<8x1xf32>
    %c21_i32 = arith.constant 21 : i32
    %1938 = vector.broadcast %c21_i32 : i32 to vector<8x256xi32>
    %1939 = arith.cmpi eq, %119, %1938 : vector<8x256xi32>
    %cst_429 = arith.constant 0.000000e+00 : f32
    %1940 = vector.shape_cast %1937 : vector<8x1xf32> to vector<8x1xf32>
    %1941 = vector.broadcast %1940 : vector<8x1xf32> to vector<8x256xf32>
    %1942 = vector.broadcast %cst_429 : f32 to vector<8x256xf32>
    %1943 = arith.select %1939, %1941, %1942 : vector<8x256xi1>, vector<8x256xf32>
    %1944 = arith.mulf %109, %1934 : vector<8x256xf32>
    %cst_430 = arith.constant dense<0.000000e+00> : vector<8xf32>
    %1945 = vector.multi_reduction <add>, %1944, %cst_430 [1] : vector<8x256xf32> to vector<8xf32>
    %1946 = vector.shape_cast %1945 : vector<8xf32> to vector<8x1xf32>
    %c46_i32 = arith.constant 46 : i32
    %1947 = vector.broadcast %c46_i32 : i32 to vector<8x256xi32>
    %1948 = arith.cmpi eq, %119, %1947 : vector<8x256xi32>
    %cst_431 = arith.constant 0.000000e+00 : f32
    %1949 = vector.shape_cast %1946 : vector<8x1xf32> to vector<8x1xf32>
    %1950 = vector.broadcast %1949 : vector<8x1xf32> to vector<8x256xf32>
    %1951 = vector.broadcast %cst_431 : f32 to vector<8x256xf32>
    %1952 = arith.select %1948, %1950, %1951 : vector<8x256xi1>, vector<8x256xf32>
    %1953 = arith.addf %1943, %1952 : vector<8x256xf32>
    %1954 = arith.mulf %110, %1934 : vector<8x256xf32>
    %cst_432 = arith.constant dense<0.000000e+00> : vector<8xf32>
    %1955 = vector.multi_reduction <add>, %1954, %cst_432 [1] : vector<8x256xf32> to vector<8xf32>
    %1956 = vector.shape_cast %1955 : vector<8xf32> to vector<8x1xf32>
    %c71_i32 = arith.constant 71 : i32
    %1957 = vector.broadcast %c71_i32 : i32 to vector<8x256xi32>
    %1958 = arith.cmpi eq, %119, %1957 : vector<8x256xi32>
    %cst_433 = arith.constant 0.000000e+00 : f32
    %1959 = vector.shape_cast %1956 : vector<8x1xf32> to vector<8x1xf32>
    %1960 = vector.broadcast %1959 : vector<8x1xf32> to vector<8x256xf32>
    %1961 = vector.broadcast %cst_433 : f32 to vector<8x256xf32>
    %1962 = arith.select %1958, %1960, %1961 : vector<8x256xi1>, vector<8x256xf32>
    %1963 = arith.addf %1953, %1962 : vector<8x256xf32>
    %1964 = arith.mulf %111, %1934 : vector<8x256xf32>
    %cst_434 = arith.constant dense<0.000000e+00> : vector<8xf32>
    %1965 = vector.multi_reduction <add>, %1964, %cst_434 [1] : vector<8x256xf32> to vector<8xf32>
    %1966 = vector.shape_cast %1965 : vector<8xf32> to vector<8x1xf32>
    %c96_i32 = arith.constant 96 : i32
    %1967 = vector.broadcast %c96_i32 : i32 to vector<8x256xi32>
    %1968 = arith.cmpi eq, %119, %1967 : vector<8x256xi32>
    %cst_435 = arith.constant 0.000000e+00 : f32
    %1969 = vector.shape_cast %1966 : vector<8x1xf32> to vector<8x1xf32>
    %1970 = vector.broadcast %1969 : vector<8x1xf32> to vector<8x256xf32>
    %1971 = vector.broadcast %cst_435 : f32 to vector<8x256xf32>
    %1972 = arith.select %1968, %1970, %1971 : vector<8x256xi1>, vector<8x256xf32>
    %1973 = arith.addf %1963, %1972 : vector<8x256xf32>
    %1974 = arith.mulf %115, %1934 : vector<8x256xf32>
    %cst_436 = arith.constant dense<0.000000e+00> : vector<8xf32>
    %1975 = vector.multi_reduction <add>, %1974, %cst_436 [1] : vector<8x256xf32> to vector<8xf32>
    %1976 = vector.shape_cast %1975 : vector<8xf32> to vector<8x1xf32>
    %c121_i32 = arith.constant 121 : i32
    %1977 = vector.broadcast %c121_i32 : i32 to vector<8x256xi32>
    %1978 = arith.cmpi eq, %119, %1977 : vector<8x256xi32>
    %cst_437 = arith.constant 0.000000e+00 : f32
    %1979 = vector.shape_cast %1976 : vector<8x1xf32> to vector<8x1xf32>
    %1980 = vector.broadcast %1979 : vector<8x1xf32> to vector<8x256xf32>
    %1981 = vector.broadcast %cst_437 : f32 to vector<8x256xf32>
    %1982 = arith.select %1978, %1980, %1981 : vector<8x256xi1>, vector<8x256xf32>
    %1983 = arith.addf %1973, %1982 : vector<8x256xf32>
    %1984 = arith.mulf %116, %1934 : vector<8x256xf32>
    %cst_438 = arith.constant dense<0.000000e+00> : vector<8xf32>
    %1985 = vector.multi_reduction <add>, %1984, %cst_438 [1] : vector<8x256xf32> to vector<8xf32>
    %1986 = vector.shape_cast %1985 : vector<8xf32> to vector<8x1xf32>
    %c146_i32 = arith.constant 146 : i32
    %1987 = vector.broadcast %c146_i32 : i32 to vector<8x256xi32>
    %1988 = arith.cmpi eq, %119, %1987 : vector<8x256xi32>
    %cst_439 = arith.constant 0.000000e+00 : f32
    %1989 = vector.shape_cast %1986 : vector<8x1xf32> to vector<8x1xf32>
    %1990 = vector.broadcast %1989 : vector<8x1xf32> to vector<8x256xf32>
    %1991 = vector.broadcast %cst_439 : f32 to vector<8x256xf32>
    %1992 = arith.select %1988, %1990, %1991 : vector<8x256xi1>, vector<8x256xf32>
    %1993 = arith.addf %1983, %1992 : vector<8x256xf32>
    %1994 = arith.mulf %117, %1934 : vector<8x256xf32>
    %cst_440 = arith.constant dense<0.000000e+00> : vector<8xf32>
    %1995 = vector.multi_reduction <add>, %1994, %cst_440 [1] : vector<8x256xf32> to vector<8xf32>
    %1996 = vector.shape_cast %1995 : vector<8xf32> to vector<8x1xf32>
    %c171_i32 = arith.constant 171 : i32
    %1997 = vector.broadcast %c171_i32 : i32 to vector<8x256xi32>
    %1998 = arith.cmpi eq, %119, %1997 : vector<8x256xi32>
    %cst_441 = arith.constant 0.000000e+00 : f32
    %1999 = vector.shape_cast %1996 : vector<8x1xf32> to vector<8x1xf32>
    %2000 = vector.broadcast %1999 : vector<8x1xf32> to vector<8x256xf32>
    %2001 = vector.broadcast %cst_441 : f32 to vector<8x256xf32>
    %2002 = arith.select %1998, %2000, %2001 : vector<8x256xi1>, vector<8x256xf32>
    %2003 = arith.addf %1993, %2002 : vector<8x256xf32>
    %2004 = arith.mulf %118, %1934 : vector<8x256xf32>
    %cst_442 = arith.constant dense<0.000000e+00> : vector<8xf32>
    %2005 = vector.multi_reduction <add>, %2004, %cst_442 [1] : vector<8x256xf32> to vector<8xf32>
    %2006 = vector.shape_cast %2005 : vector<8xf32> to vector<8x1xf32>
    %c196_i32 = arith.constant 196 : i32
    %2007 = vector.broadcast %c196_i32 : i32 to vector<8x256xi32>
    %2008 = arith.cmpi eq, %119, %2007 : vector<8x256xi32>
    %cst_443 = arith.constant 0.000000e+00 : f32
    %2009 = vector.shape_cast %2006 : vector<8x1xf32> to vector<8x1xf32>
    %2010 = vector.broadcast %2009 : vector<8x1xf32> to vector<8x256xf32>
    %2011 = vector.broadcast %cst_443 : f32 to vector<8x256xf32>
    %2012 = arith.select %2008, %2010, %2011 : vector<8x256xi1>, vector<8x256xf32>
    %2013 = arith.addf %2003, %2012 : vector<8x256xf32>
    %2014 = arith.addf %1923, %2013 : vector<8x256xf32>
    %2015 = arith.subf %121, %122 : vector<8x256xf32>
    %cst_444 = arith.constant 5.94499111 : f32
    %2016 = vector.broadcast %cst_444 : f32 to vector<8x256xf32>
    %2017 = arith.mulf %2016, %2015 : vector<8x256xf32>
    %cst_445 = arith.constant 6.000000e+00 : f32
    %2018 = vector.broadcast %cst_445 : f32 to vector<8x256xf32>
    %2019 = arith.mulf %2018, %123 : vector<8x256xf32>
    %2020 = arith.subf %2019, %121 : vector<8x256xf32>
    %2021 = arith.subf %2020, %122 : vector<8x256xf32>
    %2022 = arith.mulf %2017, %2021 : vector<8x256xf32>
    %2023 = arith.mulf %108, %2022 : vector<8x256xf32>
    %cst_446 = arith.constant dense<0.000000e+00> : vector<8xf32>
    %2024 = vector.multi_reduction <add>, %2023, %cst_446 [1] : vector<8x256xf32> to vector<8xf32>
    %2025 = vector.shape_cast %2024 : vector<8xf32> to vector<8x1xf32>
    %c22_i32 = arith.constant 22 : i32
    %2026 = vector.broadcast %c22_i32 : i32 to vector<8x256xi32>
    %2027 = arith.cmpi eq, %119, %2026 : vector<8x256xi32>
    %cst_447 = arith.constant 0.000000e+00 : f32
    %2028 = vector.shape_cast %2025 : vector<8x1xf32> to vector<8x1xf32>
    %2029 = vector.broadcast %2028 : vector<8x1xf32> to vector<8x256xf32>
    %2030 = vector.broadcast %cst_447 : f32 to vector<8x256xf32>
    %2031 = arith.select %2027, %2029, %2030 : vector<8x256xi1>, vector<8x256xf32>
    %2032 = arith.mulf %109, %2022 : vector<8x256xf32>
    %cst_448 = arith.constant dense<0.000000e+00> : vector<8xf32>
    %2033 = vector.multi_reduction <add>, %2032, %cst_448 [1] : vector<8x256xf32> to vector<8xf32>
    %2034 = vector.shape_cast %2033 : vector<8xf32> to vector<8x1xf32>
    %c47_i32 = arith.constant 47 : i32
    %2035 = vector.broadcast %c47_i32 : i32 to vector<8x256xi32>
    %2036 = arith.cmpi eq, %119, %2035 : vector<8x256xi32>
    %cst_449 = arith.constant 0.000000e+00 : f32
    %2037 = vector.shape_cast %2034 : vector<8x1xf32> to vector<8x1xf32>
    %2038 = vector.broadcast %2037 : vector<8x1xf32> to vector<8x256xf32>
    %2039 = vector.broadcast %cst_449 : f32 to vector<8x256xf32>
    %2040 = arith.select %2036, %2038, %2039 : vector<8x256xi1>, vector<8x256xf32>
    %2041 = arith.addf %2031, %2040 : vector<8x256xf32>
    %2042 = arith.mulf %110, %2022 : vector<8x256xf32>
    %cst_450 = arith.constant dense<0.000000e+00> : vector<8xf32>
    %2043 = vector.multi_reduction <add>, %2042, %cst_450 [1] : vector<8x256xf32> to vector<8xf32>
    %2044 = vector.shape_cast %2043 : vector<8xf32> to vector<8x1xf32>
    %c72_i32 = arith.constant 72 : i32
    %2045 = vector.broadcast %c72_i32 : i32 to vector<8x256xi32>
    %2046 = arith.cmpi eq, %119, %2045 : vector<8x256xi32>
    %cst_451 = arith.constant 0.000000e+00 : f32
    %2047 = vector.shape_cast %2044 : vector<8x1xf32> to vector<8x1xf32>
    %2048 = vector.broadcast %2047 : vector<8x1xf32> to vector<8x256xf32>
    %2049 = vector.broadcast %cst_451 : f32 to vector<8x256xf32>
    %2050 = arith.select %2046, %2048, %2049 : vector<8x256xi1>, vector<8x256xf32>
    %2051 = arith.addf %2041, %2050 : vector<8x256xf32>
    %2052 = arith.mulf %111, %2022 : vector<8x256xf32>
    %cst_452 = arith.constant dense<0.000000e+00> : vector<8xf32>
    %2053 = vector.multi_reduction <add>, %2052, %cst_452 [1] : vector<8x256xf32> to vector<8xf32>
    %2054 = vector.shape_cast %2053 : vector<8xf32> to vector<8x1xf32>
    %c97_i32 = arith.constant 97 : i32
    %2055 = vector.broadcast %c97_i32 : i32 to vector<8x256xi32>
    %2056 = arith.cmpi eq, %119, %2055 : vector<8x256xi32>
    %cst_453 = arith.constant 0.000000e+00 : f32
    %2057 = vector.shape_cast %2054 : vector<8x1xf32> to vector<8x1xf32>
    %2058 = vector.broadcast %2057 : vector<8x1xf32> to vector<8x256xf32>
    %2059 = vector.broadcast %cst_453 : f32 to vector<8x256xf32>
    %2060 = arith.select %2056, %2058, %2059 : vector<8x256xi1>, vector<8x256xf32>
    %2061 = arith.addf %2051, %2060 : vector<8x256xf32>
    %2062 = arith.mulf %115, %2022 : vector<8x256xf32>
    %cst_454 = arith.constant dense<0.000000e+00> : vector<8xf32>
    %2063 = vector.multi_reduction <add>, %2062, %cst_454 [1] : vector<8x256xf32> to vector<8xf32>
    %2064 = vector.shape_cast %2063 : vector<8xf32> to vector<8x1xf32>
    %c122_i32 = arith.constant 122 : i32
    %2065 = vector.broadcast %c122_i32 : i32 to vector<8x256xi32>
    %2066 = arith.cmpi eq, %119, %2065 : vector<8x256xi32>
    %cst_455 = arith.constant 0.000000e+00 : f32
    %2067 = vector.shape_cast %2064 : vector<8x1xf32> to vector<8x1xf32>
    %2068 = vector.broadcast %2067 : vector<8x1xf32> to vector<8x256xf32>
    %2069 = vector.broadcast %cst_455 : f32 to vector<8x256xf32>
    %2070 = arith.select %2066, %2068, %2069 : vector<8x256xi1>, vector<8x256xf32>
    %2071 = arith.addf %2061, %2070 : vector<8x256xf32>
    %2072 = arith.mulf %116, %2022 : vector<8x256xf32>
    %cst_456 = arith.constant dense<0.000000e+00> : vector<8xf32>
    %2073 = vector.multi_reduction <add>, %2072, %cst_456 [1] : vector<8x256xf32> to vector<8xf32>
    %2074 = vector.shape_cast %2073 : vector<8xf32> to vector<8x1xf32>
    %c147_i32 = arith.constant 147 : i32
    %2075 = vector.broadcast %c147_i32 : i32 to vector<8x256xi32>
    %2076 = arith.cmpi eq, %119, %2075 : vector<8x256xi32>
    %cst_457 = arith.constant 0.000000e+00 : f32
    %2077 = vector.shape_cast %2074 : vector<8x1xf32> to vector<8x1xf32>
    %2078 = vector.broadcast %2077 : vector<8x1xf32> to vector<8x256xf32>
    %2079 = vector.broadcast %cst_457 : f32 to vector<8x256xf32>
    %2080 = arith.select %2076, %2078, %2079 : vector<8x256xi1>, vector<8x256xf32>
    %2081 = arith.addf %2071, %2080 : vector<8x256xf32>
    %2082 = arith.mulf %117, %2022 : vector<8x256xf32>
    %cst_458 = arith.constant dense<0.000000e+00> : vector<8xf32>
    %2083 = vector.multi_reduction <add>, %2082, %cst_458 [1] : vector<8x256xf32> to vector<8xf32>
    %2084 = vector.shape_cast %2083 : vector<8xf32> to vector<8x1xf32>
    %c172_i32 = arith.constant 172 : i32
    %2085 = vector.broadcast %c172_i32 : i32 to vector<8x256xi32>
    %2086 = arith.cmpi eq, %119, %2085 : vector<8x256xi32>
    %cst_459 = arith.constant 0.000000e+00 : f32
    %2087 = vector.shape_cast %2084 : vector<8x1xf32> to vector<8x1xf32>
    %2088 = vector.broadcast %2087 : vector<8x1xf32> to vector<8x256xf32>
    %2089 = vector.broadcast %cst_459 : f32 to vector<8x256xf32>
    %2090 = arith.select %2086, %2088, %2089 : vector<8x256xi1>, vector<8x256xf32>
    %2091 = arith.addf %2081, %2090 : vector<8x256xf32>
    %2092 = arith.mulf %118, %2022 : vector<8x256xf32>
    %cst_460 = arith.constant dense<0.000000e+00> : vector<8xf32>
    %2093 = vector.multi_reduction <add>, %2092, %cst_460 [1] : vector<8x256xf32> to vector<8xf32>
    %2094 = vector.shape_cast %2093 : vector<8xf32> to vector<8x1xf32>
    %c197_i32 = arith.constant 197 : i32
    %2095 = vector.broadcast %c197_i32 : i32 to vector<8x256xi32>
    %2096 = arith.cmpi eq, %119, %2095 : vector<8x256xi32>
    %cst_461 = arith.constant 0.000000e+00 : f32
    %2097 = vector.shape_cast %2094 : vector<8x1xf32> to vector<8x1xf32>
    %2098 = vector.broadcast %2097 : vector<8x1xf32> to vector<8x256xf32>
    %2099 = vector.broadcast %cst_461 : f32 to vector<8x256xf32>
    %2100 = arith.select %2096, %2098, %2099 : vector<8x256xi1>, vector<8x256xf32>
    %2101 = arith.addf %2091, %2100 : vector<8x256xf32>
    %2102 = arith.addf %2014, %2101 : vector<8x256xf32>
    %cst_462 = arith.constant 22.2441196 : f32
    %2103 = vector.broadcast %cst_462 : f32 to vector<8x256xf32>
    %2104 = arith.mulf %2103, %126 : vector<8x256xf32>
    %cst_463 = arith.constant 3.000000e+00 : f32
    %2105 = vector.broadcast %cst_463 : f32 to vector<8x256xf32>
    %2106 = arith.mulf %2105, %122 : vector<8x256xf32>
    %2107 = arith.subf %121, %2106 : vector<8x256xf32>
    %2108 = arith.mulf %2104, %2107 : vector<8x256xf32>
    %2109 = arith.mulf %108, %2108 : vector<8x256xf32>
    %cst_464 = arith.constant dense<0.000000e+00> : vector<8xf32>
    %2110 = vector.multi_reduction <add>, %2109, %cst_464 [1] : vector<8x256xf32> to vector<8xf32>
    %2111 = vector.shape_cast %2110 : vector<8xf32> to vector<8x1xf32>
    %c23_i32 = arith.constant 23 : i32
    %2112 = vector.broadcast %c23_i32 : i32 to vector<8x256xi32>
    %2113 = arith.cmpi eq, %119, %2112 : vector<8x256xi32>
    %cst_465 = arith.constant 0.000000e+00 : f32
    %2114 = vector.shape_cast %2111 : vector<8x1xf32> to vector<8x1xf32>
    %2115 = vector.broadcast %2114 : vector<8x1xf32> to vector<8x256xf32>
    %2116 = vector.broadcast %cst_465 : f32 to vector<8x256xf32>
    %2117 = arith.select %2113, %2115, %2116 : vector<8x256xi1>, vector<8x256xf32>
    %2118 = arith.mulf %109, %2108 : vector<8x256xf32>
    %cst_466 = arith.constant dense<0.000000e+00> : vector<8xf32>
    %2119 = vector.multi_reduction <add>, %2118, %cst_466 [1] : vector<8x256xf32> to vector<8xf32>
    %2120 = vector.shape_cast %2119 : vector<8xf32> to vector<8x1xf32>
    %c48_i32 = arith.constant 48 : i32
    %2121 = vector.broadcast %c48_i32 : i32 to vector<8x256xi32>
    %2122 = arith.cmpi eq, %119, %2121 : vector<8x256xi32>
    %cst_467 = arith.constant 0.000000e+00 : f32
    %2123 = vector.shape_cast %2120 : vector<8x1xf32> to vector<8x1xf32>
    %2124 = vector.broadcast %2123 : vector<8x1xf32> to vector<8x256xf32>
    %2125 = vector.broadcast %cst_467 : f32 to vector<8x256xf32>
    %2126 = arith.select %2122, %2124, %2125 : vector<8x256xi1>, vector<8x256xf32>
    %2127 = arith.addf %2117, %2126 : vector<8x256xf32>
    %2128 = arith.mulf %110, %2108 : vector<8x256xf32>
    %cst_468 = arith.constant dense<0.000000e+00> : vector<8xf32>
    %2129 = vector.multi_reduction <add>, %2128, %cst_468 [1] : vector<8x256xf32> to vector<8xf32>
    %2130 = vector.shape_cast %2129 : vector<8xf32> to vector<8x1xf32>
    %c73_i32 = arith.constant 73 : i32
    %2131 = vector.broadcast %c73_i32 : i32 to vector<8x256xi32>
    %2132 = arith.cmpi eq, %119, %2131 : vector<8x256xi32>
    %cst_469 = arith.constant 0.000000e+00 : f32
    %2133 = vector.shape_cast %2130 : vector<8x1xf32> to vector<8x1xf32>
    %2134 = vector.broadcast %2133 : vector<8x1xf32> to vector<8x256xf32>
    %2135 = vector.broadcast %cst_469 : f32 to vector<8x256xf32>
    %2136 = arith.select %2132, %2134, %2135 : vector<8x256xi1>, vector<8x256xf32>
    %2137 = arith.addf %2127, %2136 : vector<8x256xf32>
    %2138 = arith.mulf %111, %2108 : vector<8x256xf32>
    %cst_470 = arith.constant dense<0.000000e+00> : vector<8xf32>
    %2139 = vector.multi_reduction <add>, %2138, %cst_470 [1] : vector<8x256xf32> to vector<8xf32>
    %2140 = vector.shape_cast %2139 : vector<8xf32> to vector<8x1xf32>
    %c98_i32 = arith.constant 98 : i32
    %2141 = vector.broadcast %c98_i32 : i32 to vector<8x256xi32>
    %2142 = arith.cmpi eq, %119, %2141 : vector<8x256xi32>
    %cst_471 = arith.constant 0.000000e+00 : f32
    %2143 = vector.shape_cast %2140 : vector<8x1xf32> to vector<8x1xf32>
    %2144 = vector.broadcast %2143 : vector<8x1xf32> to vector<8x256xf32>
    %2145 = vector.broadcast %cst_471 : f32 to vector<8x256xf32>
    %2146 = arith.select %2142, %2144, %2145 : vector<8x256xi1>, vector<8x256xf32>
    %2147 = arith.addf %2137, %2146 : vector<8x256xf32>
    %2148 = arith.mulf %115, %2108 : vector<8x256xf32>
    %cst_472 = arith.constant dense<0.000000e+00> : vector<8xf32>
    %2149 = vector.multi_reduction <add>, %2148, %cst_472 [1] : vector<8x256xf32> to vector<8xf32>
    %2150 = vector.shape_cast %2149 : vector<8xf32> to vector<8x1xf32>
    %c123_i32 = arith.constant 123 : i32
    %2151 = vector.broadcast %c123_i32 : i32 to vector<8x256xi32>
    %2152 = arith.cmpi eq, %119, %2151 : vector<8x256xi32>
    %cst_473 = arith.constant 0.000000e+00 : f32
    %2153 = vector.shape_cast %2150 : vector<8x1xf32> to vector<8x1xf32>
    %2154 = vector.broadcast %2153 : vector<8x1xf32> to vector<8x256xf32>
    %2155 = vector.broadcast %cst_473 : f32 to vector<8x256xf32>
    %2156 = arith.select %2152, %2154, %2155 : vector<8x256xi1>, vector<8x256xf32>
    %2157 = arith.addf %2147, %2156 : vector<8x256xf32>
    %2158 = arith.mulf %116, %2108 : vector<8x256xf32>
    %cst_474 = arith.constant dense<0.000000e+00> : vector<8xf32>
    %2159 = vector.multi_reduction <add>, %2158, %cst_474 [1] : vector<8x256xf32> to vector<8xf32>
    %2160 = vector.shape_cast %2159 : vector<8xf32> to vector<8x1xf32>
    %c148_i32 = arith.constant 148 : i32
    %2161 = vector.broadcast %c148_i32 : i32 to vector<8x256xi32>
    %2162 = arith.cmpi eq, %119, %2161 : vector<8x256xi32>
    %cst_475 = arith.constant 0.000000e+00 : f32
    %2163 = vector.shape_cast %2160 : vector<8x1xf32> to vector<8x1xf32>
    %2164 = vector.broadcast %2163 : vector<8x1xf32> to vector<8x256xf32>
    %2165 = vector.broadcast %cst_475 : f32 to vector<8x256xf32>
    %2166 = arith.select %2162, %2164, %2165 : vector<8x256xi1>, vector<8x256xf32>
    %2167 = arith.addf %2157, %2166 : vector<8x256xf32>
    %2168 = arith.mulf %117, %2108 : vector<8x256xf32>
    %cst_476 = arith.constant dense<0.000000e+00> : vector<8xf32>
    %2169 = vector.multi_reduction <add>, %2168, %cst_476 [1] : vector<8x256xf32> to vector<8xf32>
    %2170 = vector.shape_cast %2169 : vector<8xf32> to vector<8x1xf32>
    %c173_i32 = arith.constant 173 : i32
    %2171 = vector.broadcast %c173_i32 : i32 to vector<8x256xi32>
    %2172 = arith.cmpi eq, %119, %2171 : vector<8x256xi32>
    %cst_477 = arith.constant 0.000000e+00 : f32
    %2173 = vector.shape_cast %2170 : vector<8x1xf32> to vector<8x1xf32>
    %2174 = vector.broadcast %2173 : vector<8x1xf32> to vector<8x256xf32>
    %2175 = vector.broadcast %cst_477 : f32 to vector<8x256xf32>
    %2176 = arith.select %2172, %2174, %2175 : vector<8x256xi1>, vector<8x256xf32>
    %2177 = arith.addf %2167, %2176 : vector<8x256xf32>
    %2178 = arith.mulf %118, %2108 : vector<8x256xf32>
    %cst_478 = arith.constant dense<0.000000e+00> : vector<8xf32>
    %2179 = vector.multi_reduction <add>, %2178, %cst_478 [1] : vector<8x256xf32> to vector<8xf32>
    %2180 = vector.shape_cast %2179 : vector<8xf32> to vector<8x1xf32>
    %c198_i32 = arith.constant 198 : i32
    %2181 = vector.broadcast %c198_i32 : i32 to vector<8x256xi32>
    %2182 = arith.cmpi eq, %119, %2181 : vector<8x256xi32>
    %cst_479 = arith.constant 0.000000e+00 : f32
    %2183 = vector.shape_cast %2180 : vector<8x1xf32> to vector<8x1xf32>
    %2184 = vector.broadcast %2183 : vector<8x1xf32> to vector<8x256xf32>
    %2185 = vector.broadcast %cst_479 : f32 to vector<8x256xf32>
    %2186 = arith.select %2182, %2184, %2185 : vector<8x256xi1>, vector<8x256xf32>
    %2187 = arith.addf %2177, %2186 : vector<8x256xf32>
    %2188 = arith.addf %2102, %2187 : vector<8x256xf32>
    %2189 = arith.mulf %121, %121 : vector<8x256xf32>
    %cst_480 = arith.constant 6.000000e+00 : f32
    %2190 = vector.broadcast %cst_480 : f32 to vector<8x256xf32>
    %2191 = arith.mulf %2190, %121 : vector<8x256xf32>
    %2192 = arith.mulf %2191, %122 : vector<8x256xf32>
    %2193 = arith.subf %2189, %2192 : vector<8x256xf32>
    %2194 = arith.mulf %122, %122 : vector<8x256xf32>
    %2195 = arith.addf %2193, %2194 : vector<8x256xf32>
    %cst_481 = arith.constant 7.86448383 : f32
    %2196 = vector.broadcast %cst_481 : f32 to vector<8x256xf32>
    %2197 = arith.mulf %2196, %2195 : vector<8x256xf32>
    %2198 = arith.mulf %108, %2197 : vector<8x256xf32>
    %cst_482 = arith.constant dense<0.000000e+00> : vector<8xf32>
    %2199 = vector.multi_reduction <add>, %2198, %cst_482 [1] : vector<8x256xf32> to vector<8xf32>
    %2200 = vector.shape_cast %2199 : vector<8xf32> to vector<8x1xf32>
    %c24_i32 = arith.constant 24 : i32
    %2201 = vector.broadcast %c24_i32 : i32 to vector<8x256xi32>
    %2202 = arith.cmpi eq, %119, %2201 : vector<8x256xi32>
    %cst_483 = arith.constant 0.000000e+00 : f32
    %2203 = vector.shape_cast %2200 : vector<8x1xf32> to vector<8x1xf32>
    %2204 = vector.broadcast %2203 : vector<8x1xf32> to vector<8x256xf32>
    %2205 = vector.broadcast %cst_483 : f32 to vector<8x256xf32>
    %2206 = arith.select %2202, %2204, %2205 : vector<8x256xi1>, vector<8x256xf32>
    %2207 = arith.mulf %109, %2197 : vector<8x256xf32>
    %cst_484 = arith.constant dense<0.000000e+00> : vector<8xf32>
    %2208 = vector.multi_reduction <add>, %2207, %cst_484 [1] : vector<8x256xf32> to vector<8xf32>
    %2209 = vector.shape_cast %2208 : vector<8xf32> to vector<8x1xf32>
    %c49_i32 = arith.constant 49 : i32
    %2210 = vector.broadcast %c49_i32 : i32 to vector<8x256xi32>
    %2211 = arith.cmpi eq, %119, %2210 : vector<8x256xi32>
    %cst_485 = arith.constant 0.000000e+00 : f32
    %2212 = vector.shape_cast %2209 : vector<8x1xf32> to vector<8x1xf32>
    %2213 = vector.broadcast %2212 : vector<8x1xf32> to vector<8x256xf32>
    %2214 = vector.broadcast %cst_485 : f32 to vector<8x256xf32>
    %2215 = arith.select %2211, %2213, %2214 : vector<8x256xi1>, vector<8x256xf32>
    %2216 = arith.addf %2206, %2215 : vector<8x256xf32>
    %2217 = arith.mulf %110, %2197 : vector<8x256xf32>
    %cst_486 = arith.constant dense<0.000000e+00> : vector<8xf32>
    %2218 = vector.multi_reduction <add>, %2217, %cst_486 [1] : vector<8x256xf32> to vector<8xf32>
    %2219 = vector.shape_cast %2218 : vector<8xf32> to vector<8x1xf32>
    %c74_i32 = arith.constant 74 : i32
    %2220 = vector.broadcast %c74_i32 : i32 to vector<8x256xi32>
    %2221 = arith.cmpi eq, %119, %2220 : vector<8x256xi32>
    %cst_487 = arith.constant 0.000000e+00 : f32
    %2222 = vector.shape_cast %2219 : vector<8x1xf32> to vector<8x1xf32>
    %2223 = vector.broadcast %2222 : vector<8x1xf32> to vector<8x256xf32>
    %2224 = vector.broadcast %cst_487 : f32 to vector<8x256xf32>
    %2225 = arith.select %2221, %2223, %2224 : vector<8x256xi1>, vector<8x256xf32>
    %2226 = arith.addf %2216, %2225 : vector<8x256xf32>
    %2227 = arith.mulf %111, %2197 : vector<8x256xf32>
    %cst_488 = arith.constant dense<0.000000e+00> : vector<8xf32>
    %2228 = vector.multi_reduction <add>, %2227, %cst_488 [1] : vector<8x256xf32> to vector<8xf32>
    %2229 = vector.shape_cast %2228 : vector<8xf32> to vector<8x1xf32>
    %c99_i32 = arith.constant 99 : i32
    %2230 = vector.broadcast %c99_i32 : i32 to vector<8x256xi32>
    %2231 = arith.cmpi eq, %119, %2230 : vector<8x256xi32>
    %cst_489 = arith.constant 0.000000e+00 : f32
    %2232 = vector.shape_cast %2229 : vector<8x1xf32> to vector<8x1xf32>
    %2233 = vector.broadcast %2232 : vector<8x1xf32> to vector<8x256xf32>
    %2234 = vector.broadcast %cst_489 : f32 to vector<8x256xf32>
    %2235 = arith.select %2231, %2233, %2234 : vector<8x256xi1>, vector<8x256xf32>
    %2236 = arith.addf %2226, %2235 : vector<8x256xf32>
    %2237 = arith.mulf %115, %2197 : vector<8x256xf32>
    %cst_490 = arith.constant dense<0.000000e+00> : vector<8xf32>
    %2238 = vector.multi_reduction <add>, %2237, %cst_490 [1] : vector<8x256xf32> to vector<8xf32>
    %2239 = vector.shape_cast %2238 : vector<8xf32> to vector<8x1xf32>
    %c124_i32 = arith.constant 124 : i32
    %2240 = vector.broadcast %c124_i32 : i32 to vector<8x256xi32>
    %2241 = arith.cmpi eq, %119, %2240 : vector<8x256xi32>
    %cst_491 = arith.constant 0.000000e+00 : f32
    %2242 = vector.shape_cast %2239 : vector<8x1xf32> to vector<8x1xf32>
    %2243 = vector.broadcast %2242 : vector<8x1xf32> to vector<8x256xf32>
    %2244 = vector.broadcast %cst_491 : f32 to vector<8x256xf32>
    %2245 = arith.select %2241, %2243, %2244 : vector<8x256xi1>, vector<8x256xf32>
    %2246 = arith.addf %2236, %2245 : vector<8x256xf32>
    %2247 = arith.mulf %116, %2197 : vector<8x256xf32>
    %cst_492 = arith.constant dense<0.000000e+00> : vector<8xf32>
    %2248 = vector.multi_reduction <add>, %2247, %cst_492 [1] : vector<8x256xf32> to vector<8xf32>
    %2249 = vector.shape_cast %2248 : vector<8xf32> to vector<8x1xf32>
    %c149_i32 = arith.constant 149 : i32
    %2250 = vector.broadcast %c149_i32 : i32 to vector<8x256xi32>
    %2251 = arith.cmpi eq, %119, %2250 : vector<8x256xi32>
    %cst_493 = arith.constant 0.000000e+00 : f32
    %2252 = vector.shape_cast %2249 : vector<8x1xf32> to vector<8x1xf32>
    %2253 = vector.broadcast %2252 : vector<8x1xf32> to vector<8x256xf32>
    %2254 = vector.broadcast %cst_493 : f32 to vector<8x256xf32>
    %2255 = arith.select %2251, %2253, %2254 : vector<8x256xi1>, vector<8x256xf32>
    %2256 = arith.addf %2246, %2255 : vector<8x256xf32>
    %2257 = arith.mulf %117, %2197 : vector<8x256xf32>
    %cst_494 = arith.constant dense<0.000000e+00> : vector<8xf32>
    %2258 = vector.multi_reduction <add>, %2257, %cst_494 [1] : vector<8x256xf32> to vector<8xf32>
    %2259 = vector.shape_cast %2258 : vector<8xf32> to vector<8x1xf32>
    %c174_i32 = arith.constant 174 : i32
    %2260 = vector.broadcast %c174_i32 : i32 to vector<8x256xi32>
    %2261 = arith.cmpi eq, %119, %2260 : vector<8x256xi32>
    %cst_495 = arith.constant 0.000000e+00 : f32
    %2262 = vector.shape_cast %2259 : vector<8x1xf32> to vector<8x1xf32>
    %2263 = vector.broadcast %2262 : vector<8x1xf32> to vector<8x256xf32>
    %2264 = vector.broadcast %cst_495 : f32 to vector<8x256xf32>
    %2265 = arith.select %2261, %2263, %2264 : vector<8x256xi1>, vector<8x256xf32>
    %2266 = arith.addf %2256, %2265 : vector<8x256xf32>
    %2267 = arith.mulf %118, %2197 : vector<8x256xf32>
    %cst_496 = arith.constant dense<0.000000e+00> : vector<8xf32>
    %2268 = vector.multi_reduction <add>, %2267, %cst_496 [1] : vector<8x256xf32> to vector<8xf32>
    %2269 = vector.shape_cast %2268 : vector<8xf32> to vector<8x1xf32>
    %c199_i32 = arith.constant 199 : i32
    %2270 = vector.broadcast %c199_i32 : i32 to vector<8x256xi32>
    %2271 = arith.cmpi eq, %119, %2270 : vector<8x256xi32>
    %cst_497 = arith.constant 0.000000e+00 : f32
    %2272 = vector.shape_cast %2269 : vector<8x1xf32> to vector<8x1xf32>
    %2273 = vector.broadcast %2272 : vector<8x1xf32> to vector<8x256xf32>
    %2274 = vector.broadcast %cst_497 : f32 to vector<8x256xf32>
    %2275 = arith.select %2271, %2273, %2274 : vector<8x256xi1>, vector<8x256xf32>
    %2276 = arith.addf %2266, %2275 : vector<8x256xf32>
    %2277 = arith.addf %2188, %2276 : vector<8x256xf32>
    %c0_498 = arith.constant 0 : index
    %c0_499 = arith.constant 0 : index
    %2278 = vector.load %arg8[%c0_498, %c0_499] : memref<8x256xf32, #tpu.memory_space<vmem>>, vector<8x256xf32>
    %2279 = arith.addf %2278, %2277 : vector<8x256xf32>
    %c0_500 = arith.constant 0 : index
    %c0_501 = arith.constant 0 : index
    %2280 = vector.load %arg8[%c0_500, %c0_501] : memref<8x256xf32, #tpu.memory_space<vmem>>, vector<8x256xf32>
    tpu.vector_store %arg8[%c0_500, %c0_501], %2279 {strides = array<i32>} : memref<8x256xf32, #tpu.memory_space<vmem>>, vector<8x256xf32>,
    %c0_i32_502 = arith.constant 0 : i32
    %2281 = arith.cmpi eq, %arg1, %c0_i32_502 : i32
    %2282 = arith.extui %2281 : i1 to i32
    %c0_i32_503 = arith.constant 0 : i32
    %2283 = arith.cmpi ne, %2282, %c0_i32_503 : i32
    scf.if %2283 {
      %c0_504 = arith.constant 0 : index
      %c0_505 = arith.constant 0 : index
      %2284 = vector.load %arg8[%c0_504, %c0_505] : memref<8x256xf32, #tpu.memory_space<vmem>>, vector<8x256xf32>
      %c0_506 = arith.constant 0 : index
      %c0_507 = arith.constant 0 : index
      %2285 = vector.load %arg4[%c0_506, %c0_507] : memref<256x768xf32, #tpu.memory_space<vmem>>, vector<256x768xf32>
      %cst_508 = arith.constant dense<0.000000e+00> : vector<8x768xf32>
      %2286 = tpu.matmul %2284, %2285, %cst_508 {dimension_numbers = #tpu.dot_dimension_numbers<[1], [0], [0], [1], [0, 0, 1, 1], [], []>} : vector<8x256xf32>, vector<256x768xf32>, vector<8x768xf32> -> vector<8x768xf32>
      %c0_509 = arith.constant 0 : index
      %c0_510 = arith.constant 0 : index
      %2287 = vector.load %arg5[%c0_509, %c0_510] : memref<256x768xf32, #tpu.memory_space<vmem>>, vector<256x768xf32>
      %cst_511 = arith.constant dense<0.000000e+00> : vector<8x768xf32>
      %2288 = tpu.matmul %2284, %2287, %cst_511 {dimension_numbers = #tpu.dot_dimension_numbers<[1], [0], [0], [1], [0, 0, 1, 1], [], []>} : vector<8x256xf32>, vector<256x768xf32>, vector<8x768xf32> -> vector<8x768xf32>
      %2289 = arith.mulf %2286, %2288 : vector<8x768xf32>
      %c0_512 = arith.constant 0 : index
      %c0_513 = arith.constant 0 : index
      %2290 = vector.load %arg6[%c0_512, %c0_513] : memref<768x256xf32, #tpu.memory_space<vmem>>, vector<768x256xf32>
      %cst_514 = arith.constant dense<0.000000e+00> : vector<8x256xf32>
      %2291 = tpu.matmul %2289, %2290, %cst_514 {dimension_numbers = #tpu.dot_dimension_numbers<[1], [0], [0], [1], [0, 0, 1, 1], [], []>} : vector<8x768xf32>, vector<768x256xf32>, vector<8x256xf32> -> vector<8x256xf32>
      %c0_515 = arith.constant 0 : index
      %c0_516 = arith.constant 0 : index
      %2292 = vector.load %arg7[%c0_515, %c0_516] : memref<8x256xf32, #tpu.memory_space<vmem>>, vector<8x256xf32>
      tpu.vector_store %arg7[%c0_515, %c0_516], %2291 {strides = array<i32>} : memref<8x256xf32, #tpu.memory_space<vmem>>, vector<8x256xf32>,
    } else {
    }
    return
  }
  func.func @transform_0(%arg0: i32, %arg1: i32) -> (i32, i32) {
    %c0_i32 = arith.constant 0 : i32
    %c0_i32_0 = arith.constant 0 : i32
    return %arg0, %c0_i32 : i32, i32
  }
  func.func @transform_1(%arg0: i32, %arg1: i32) -> (i32, i32) {
    %c0_i32 = arith.constant 0 : i32
    %c0_i32_0 = arith.constant 0 : i32
    return %c0_i32, %arg1 : i32, i32
  }
  func.func @transform_2(%arg0: i32, %arg1: i32) -> (i32, i32) {
    %c0_i32 = arith.constant 0 : i32
    %c0_i32_0 = arith.constant 0 : i32
    %c0_i32_1 = arith.constant 0 : i32
    return %c0_i32, %c0_i32_0 : i32, i32
  }
  func.func @transform_3(%arg0: i32, %arg1: i32) -> (i32, i32) {
    %c0_i32 = arith.constant 0 : i32
    %c0_i32_0 = arith.constant 0 : i32
    %c0_i32_1 = arith.constant 0 : i32
    return %c0_i32, %c0_i32_0 : i32, i32
  }
  func.func @transform_4(%arg0: i32, %arg1: i32) -> (i32, i32) {
    %c0_i32 = arith.constant 0 : i32
    %c0_i32_0 = arith.constant 0 : i32
    %c0_i32_1 = arith.constant 0 : i32
    return %c0_i32, %c0_i32_0 : i32, i32
  }
  func.func @transform_5(%arg0: i32, %arg1: i32) -> (i32, i32) {
    %c0_i32 = arith.constant 0 : i32
    %c0_i32_0 = arith.constant 0 : i32
    return %arg0, %c0_i32 : i32, i32
  }
}

</mosaic_0001>

<bundles_post_ra>
// kernel: eq.8
= control target key start
LH: loop header
LB: loop body
LE: loop exit
PB: predicated region body
PF: predicated region fallthrough
CT: control target
= control target key end

     0   :  { %vm7_vm0 = vcmask 64512   ;;  %vm13_vm1 = vcmask 130112   ;;  %s39_s0 = inlined_call_operand.vmem [shape: s32[2,8], index: 0, kind: input, shape index: {}]   ;;  %s40_s1 = inlined_call_operand.vmem [shape: s32[16], index: 1, kind: output, shape index: {}]  }
   0x1   :  { %v4_v0 = vld [vmem:[%s39_s0] sm:$0x3]  ;;  %s22_s0 = smov 8  }
   0x2   :  { %5 = vst [vmem:[#allocation1] sm:$0x3] %v4_v0 }
   0x9   :  { %v10_v1 = vld [vmem:[#allocation1 + $0x1] sm:$0x1]   ;;  %v6_v2 = vld [vmem:[#allocation1] sm:$0x1]  }
   0xa   :  { %11 = vrot.lane.b32.xlu0 %v10_v1, %s22_s0  ;;  %8 = vst.msk [vmem:[#allocation0] sm:$0x1] %vm7_vm0, %v6_v2  }
  0x7c   :  { %v12_v3 = vpop.permute.xlu0 %11  }
  0x7d   :  { %14 = vst.msk [vmem:[#allocation0] sm:$0x1] %vm13_vm1, %v12_v3  }
  0x84   :  { %v17_v4 = vld [vmem:[#allocation0] sm:$0x1] }
  0x85   :  { %20 = vst [vmem:[%s40_s1] sm:$0x1] %v17_v4 }

// kernel: soap_forward.1
= control target key start
LH: loop header
LB: loop body
LE: loop exit
PB: predicated region body
PF: predicated region fallthrough
CT: control target
= control target key end

     0   :  { %10 = vsyncpa [#allocation4], 0  ;;  %s6845_s0 = inlined_call_operand.vmem [shape: f32[16,8], index: 0, kind: input, shape index: {}]   ;;  %s6846_s1 = inlined_call_operand.vmem [shape: f32[8,256], index: 1, kind: input, shape index: {}]   ;;  %s6847_s2 = inlined_call_operand.hbm [shape: f32[256,768], index: 2, kind: input, shape index: {}]   ;;  %s6848_s3 = inlined_call_operand.hbm [shape: f32[256,768], index: 3, kind: input, shape index: {}]   ;;  %s6849_s4 = inlined_call_operand.hbm [shape: f32[768,256], index: 4, kind: input, shape index: {}]   ;;  %s6850_s5 = inlined_call_operand.vmem [shape: f32[16,256], index: 5, kind: output, shape index: {}]  }
   0x1   :  { %11 = vsyncpa [#allocation6], 0  ;;  %s4574_s18 = smov 0   ;;  %s4576_s19 = smov 0  }
   0x2   :  { %s4578_s20 = smov 0  }
   0x3 LB: > { %s4311_s21 = sadd.s32 4294967295, %s4529_s20   ;;  %p4313_p0 = scmp.ge.s32.totalorder %s4529_s20, 1  ;;  %s4529_s20 = sphi %s4578_s20, %s17_s20   ;;  %s4525_s19 = sphi %s4576_s19, %s7254_s19   ;;  %s4521_s18 = sphi %s4574_s18, %s7253_s18  }
   0x4   : > { %p175_p1 = scmp.lt.s32.totalorder %s4529_s20, 3  ;;  %p4592_p2 = scmp.eq.s32.totalorder %s4311_s21, 0 }
   0x5   : > { %s209_s25 = sshll.u32 %s6848_s3, 4  ;;  %s4531_s27 = smov [#allocation5]   ;;  %s210_s25 = int_to_ptr.hbm [resolvable:$true] %s209_s25 }
   0x6   : > { %p4599_p3 = pnand %p4313_p0, %p175_p1  ;;  %s211_s28 = sshll.u32 %s4531_s27, 4  ;;  %s212_s28 = int_to_ptr.vmem [resolvable:$true] %s211_s28 }
   0x7   : > { %s29_s30 = sadd.s32 1, %s4525_s19  ;;  %s4532_s6 = smov 768  }
   0x8   : > { %p4346_p4 = pneg %p4599_p3  ;;  %p31_p6 = scmp.ge.s32.totalorder %s29_s30, 2 }
   0x9   : > { %s4533_s7 = smov 48   ;;  %s195_s10 = sshll.u32 %s6847_s2, 4  ;;  %s196_s10 = int_to_ptr.hbm [resolvable:$true] %s195_s10 }
   0xa   : > { %p4607_p5 = pnand %p4592_p2, %p4346_p4  ;;  %s7256_s30 = smov (%p31_p6, %s29_s30), 0 }
   0xb   : > { %s4534_s11 = smov [#allocation3]   ;;  %s223_s15 = sshll.u32 %s6849_s4, 4  ;;  %s224_s15 = int_to_ptr.hbm [resolvable:$true] %s223_s15 }
   0xc   : > { %4352 = dma.hbm_to_vmem [thread:$0]  (!%p4607_p5), %s210_s25, 24576, %s212_s28, [#allocation6], %s4532_s6, %s4532_s6, %s4533_s7  }
   0xd   : > { %s197_s12 = sshll.u32 %s4534_s11, 4  ;;  %s4535_s16 = smov [#allocation7]   ;;  %s198_s12 = int_to_ptr.vmem [resolvable:$true] %s197_s12 }
   0xe   : > { %4349 = dma.hbm_to_vmem [thread:$0]  (!%p4607_p5), %s196_s10, 24576, %s198_s12, [#allocation4], %s4532_s6, %s4532_s6, %s4533_s7  }
   0xf   : > { %s225_s17 = sshll.u32 %s4535_s16, 4  ;;  %s4536_s21 = smov 256   ;;  %s226_s17 = int_to_ptr.vmem [resolvable:$true] %s225_s17 }
  0x10   : > { %s4537_s23 = smov 16   ;;  %248 = sbr.rel (%p4599_p3) target bundleno = 1301 (0x515), region = 40 }
  0x11   : > { %4355 = dma.hbm_to_vmem [thread:$0]  (!%p4607_p5), %s224_s15, 24576, %s226_s17, [#allocation6], %s4536_s21, %s4536_s21, %s4537_s23  }
  0x15   : > { %4512 = dma.done.wait (%p4592_p2), [#allocation4], 24576  }
  0x16   : > { %4514 = vsyncadd (%p4592_p2), [#allocation4], 4294942720 }
  0x17   : > { %4516 = dma.done.wait (%p4592_p2), [#allocation6], 49152  }
  0x18   : > { %4518 = vsyncadd (%p4592_p2), [#allocation6], 4294918144  ;;  %p291_p7 = scmp.lt.s32.totalorder %s4521_s18, 1  ;;  %v4538_v0 = vmov 0   ;;  %v4539_v1 = vmov 2   ;;  %v4540_v2 = vmov 4  }
  0x19   : > { %4399 = vset.pattern.permute.xlu0 %v4538_v0  ;;  %4401 = vset.pattern.permute.xlu1 %v4539_v1  ;;  %v4541_v4 = vmov 1   ;;  %v4542_v5 = vmov 3   ;;  %v313_v6 = vld [vmem:[%s6846_s1] ss:$8 sm:$0x3] }
  0x1a   : > { %s7258_s18 = smov (!%p291_p7, %s4521_s18), 1  ;;  %4403 = vset.pattern.permute.xlu2 %v4540_v2  ;;  %v4327_v8 = vld [vmem:[%s6846_s1 + $0x2] ss:$8 sm:$0x3]  ;;  %v326_v9 = vperm.slane %v313_v6, 0  ;;  %v327_v10 = vperm.slane %v313_v6, 1 }
  0x1b   : > { %s4323_s24 = sshll.u32 %s7258_s18, 3  ;;  %v4326_v11 = vld [vmem:[%s6846_s1 + $0x1] ss:$8 sm:$0x3]  ;;  %v348_v12 = vperm.slane %v4327_v8, 0  ;;  %v349_v13 = vperm.slane %v4327_v8, 1 }
  0x1c   : > { %s294_s27 = scalar_lea.vmem %s6845_s0, %s4323_s24  ;;  %v337_v15 = vperm.slane %v4326_v11, 0  ;;  %v338_v16 = vperm.slane %v4326_v11, 1  ;;  %s4333_s15 = sshll.u32 %s7258_s18, 4 }
  0x1d   : > { %v312_v3 = vld [vmem:[%s294_s27] sm:$0xff]  ;;  %s305_s21 = scalar_lea.vmem %s6850_s5, %s4333_s15 }
  0x1e   : > { %322 = vperm.xlu0 %4399, %v312_v3   ;;  %344 = vperm.xlu1 %4401, %v312_v3  }
  0x1f   : > { %412 = vperm.xlu2 %4403, %v312_v3  }
  0x26   : > { %4400 = vset.pattern.permute.xlu0 %v4541_v4  ;;  %4402 = vset.pattern.permute.xlu1 %v4542_v5 }
  0x27   : > { %333 = vperm.xlu0 %4400, %v312_v3   ;;  %397 = vperm.xlu1 %4402, %v312_v3  }
  0x2f   : > { %4404 = vset.pattern.permute.xlu0 %v4540_v2  ;;  %v4328_v2 = vld [vmem:[%s6846_s1 + $0x3] ss:$8 sm:$0x3] }
  0x30   : > { %v402_v8 = vperm.slane %v4328_v2, 1 }
  0x90   : > { %v323_v7 = vpop.permute.xlu0 %322  ;;  %v345_v14 = vpop.permute.xlu1 %344 }
  0x91   : > { %v330_v17 = vsub.f32 %v323_v7, %v326_v9  ;;  %v331_v18 = vsub.f32 %v323_v7, %v327_v10  ;;  %v352_v19 = vsub.f32 %v345_v14, %v348_v12  ;;  %v353_v20 = vsub.f32 %v345_v14, %v349_v13 }
  0x92   : > { %v401_v7 = vperm.slane %v4328_v2, 0 }
  0x93   : > { %v354_v24 = vmul.f32 %v330_v17, %v330_v17  ;;  %v355_v25 = vmul.f32 %v331_v18, %v331_v18  ;;  %v360_v28 = vmul.f32 %v352_v19, %v352_v19  ;;  %v361_v29 = vmul.f32 %v353_v20, %v353_v20 }
  0x99   : > { %v334_v21 = vpop.permute.xlu0 %333  ;;  %v398_v11 = vpop.permute.xlu1 %397 }
  0x9a   : > { %v341_v22 = vsub.f32 %v334_v21, %v337_v15  ;;  %v342_v23 = vsub.f32 %v334_v21, %v338_v16  ;;  %vm4735_vm6 = vcmp.eq.f32.partialorder %v398_v11, %v401_v7  ;;  %vm4739_vm7 = vcmp.eq.f32.partialorder %v398_v11, %v402_v8 }
  0x9c   : > { %v356_v26 = vmul.f32 %v341_v22, %v341_v22  ;;  %v357_v27 = vmul.f32 %v342_v23, %v342_v23 }
  0x9e   : > { %v358_v30 = vadd.f32 %v356_v26, %v354_v24  ;;  %v359_v31 = vadd.f32 %v357_v27, %v355_v25 }
  0xa0   : > { %v362_v32 = vadd.f32 %v360_v28, %v358_v30  ;;  %v363_v33 = vadd.f32 %v361_v29, %v359_v31 }
  0xa2   : > { %v364_v34 = vadd.f32 1e-18, %v362_v32  ;;  %v365_v35 = vadd.f32 1e-18, %v363_v33 }
  0xa4   : > { %4405 = vrsqrt.f32 %v364_v34  ;;  %vm372_vm2 = vweird.f32 %v364_v34  ;;  %vm382_vm4 = vweird.f32 %v365_v35 }
  0xa5   : > { %4407 = vrsqrt.f32 %v365_v35 }
  0xaa   : > { %v4406_v36 = vpop.eup %4405 }
  0xab   : > { %v4408_v37 = vpop.eup %4407  ;;  %v367_v38 = vmul.f32 %v4406_v36, %v364_v34  ;;  %vm373_vm0 = vweird.f32 %v4406_v36 }
  0xac   : > { %v377_v39 = vmul.f32 %v4408_v37, %v365_v35  ;;  %vm383_vm1 = vweird.f32 %v4408_v37  ;;  %vm374_vm3 = vmor %vm372_vm2, %vm373_vm0 }
  0xad   : > { %v368_v40 = vmul.f32 %v4406_v36, %v367_v38  ;;  %vm384_vm5 = vmor %vm382_vm4, %vm383_vm1 }
  0xae   : > { %v378_v41 = vmul.f32 %v4408_v37, %v377_v39 }
  0xaf   : > { %v369_v42 = vmul.f32 0.5, %v368_v40 }
  0xb0   : > { %v379_v43 = vmul.f32 0.5, %v378_v41 }
  0xb1   : > { %v370_v44 = vsub.f32 1.5, %v369_v42 }
  0xb2   : > { %v380_v45 = vsub.f32 1.5, %v379_v43  ;;  %v4329_v43 = vld [vmem:[%s6846_s1 + $0x4] ss:$8 sm:$0x3] }
  0xb3   : > { %v371_v46 = vmul.f32 %v4406_v36, %v370_v44  ;;  %v498_v8 = vperm.slane %v4329_v43, 0  ;;  %v499_v11 = vperm.slane %v4329_v43, 1 }
  0xb4   : > { %v381_v47 = vmul.f32 %v4408_v37, %v380_v45  ;;  %v4778_v45 = vld [vmem:[%s6846_s1 + $0x5] ss:$8 sm:$0x3] }
  0xb5   : > { %v375_v48 = vsel %vm374_vm3, %v4406_v36, %v371_v46 }
  0xb6   : > { %v385_v49 = vsel %vm384_vm5, %v4408_v37, %v381_v47  ;;  %v4653_v50 = vmul.f32 %v375_v48, %v330_v17  ;;  %v4655_v51 = vmul.f32 %v375_v48, %v341_v22  ;;  %v4657_v52 = vmul.f32 %v375_v48, %v352_v19  ;;  %v413_v47 = vpop.permute.xlu2 %412 }
  0xb7   : > { %v4659_v53 = vmul.f32 %v385_v49, %v331_v18  ;;  %v4661_v54 = vmul.f32 %v385_v49, %v342_v23  ;;  %v4663_v55 = vmul.f32 %v385_v49, %v353_v20  ;;  %v386_v12 = vmul.f32 %v375_v48, %v362_v32 }
  0xb8   : > { %v4667_v56 = vmul.f32 %v4657_v52, %v4655_v51  ;;  %v4675_v58 = vmul.f32 %v4657_v52, %v4653_v50  ;;  %v4683_v60 = vmul.f32 %v4655_v51, %v4655_v51  ;;  %v4691_v62 = vmul.f32 %v4653_v50, %v4653_v50 }
  0xb9   : > { %v4671_v57 = vmul.f32 %v4663_v55, %v4661_v54  ;;  %v4679_v59 = vmul.f32 %v4663_v55, %v4659_v53  ;;  %v4687_v61 = vmul.f32 %v4661_v54, %v4661_v54  ;;  %v4695_v63 = vmul.f32 %v4657_v52, %v4657_v52 }
  0xba   : > { %6914 = vst [vmem:[#allocation10_spill] sm:$0xff] %v4667_v56  ;;  %v4699_v0 = vmul.f32 %v4659_v53, %v4659_v53  ;;  %v4703_v1 = vmul.f32 %v4663_v55, %v4663_v55  ;;  %v4709_v3 = vmul.f32 3.0, %v4683_v60  ;;  %v4715_v5 = vmul.f32 3.0, %v4691_v62 }
  0xbb   : > { %6915 = vst [vmem:[#allocation11_spill] sm:$0xff] %v4671_v57  ;;  %v4712_v4 = vmul.f32 3.0, %v4687_v61  ;;  %v4718_v6 = vmul.f32 4.0, %v4695_v63  ;;  %v387_v13 = vmul.f32 %v385_v49, %v363_v33  ;;  %v1928_v14 = vmul.f32 7.414706, %v4653_v50 }
  0xbc   : > { %6916 = vst [vmem:[#allocation12_spill] sm:$0xff] %v4683_v60  ;;  %v4721_v9 = vmul.f32 3.0, %v4699_v0  ;;  %v4724_v10 = vmul.f32 4.0, %v4703_v1  ;;  %v1929_v15 = vmul.f32 7.414706, %v4659_v53  ;;  %v1930_v16 = vsub.f32 %v4691_v62, %v4709_v3 }
  0xbd   : > { %6917 = vst [vmem:[#allocation13_spill] sm:$0xff] %v4687_v61  ;;  %v1931_v17 = vsub.f32 %v4699_v0, %v4712_v4  ;;  %v2304_v18 = vmul.f32 8.407487, %v4667_v56  ;;  %v2306_v19 = vsub.f32 %v4718_v6, %v4715_v5  ;;  %v2305_v24 = vmul.f32 8.407487, %v4671_v57 }
  0xbe   : > { %6918 = vst [vmem:[#allocation14_spill] sm:$0xff] %v4691_v62  ;;  %v4743_v22 = vmul.f32 %v1930_v16, %v1928_v14  ;;  %v2307_v25 = vsub.f32 %v4724_v10, %v4721_v9  ;;  %v2508_v27 = vmul.f32 8.407487, %v4675_v58  ;;  %v2509_v28 = vmul.f32 8.407487, %v4679_v59 }
  0xbf   : > { %6919 = vst [vmem:[#allocation15_spill] sm:$0xff] %v4695_v63  ;;  %v4745_v23 = vmul.f32 %v1931_v17, %v1929_v15  ;;  %v2308_v26 = vsub.f32 %v2306_v19, %v4709_v3  ;;  %v2692_v29 = vmul.f32 22.24412, %v4675_v58  ;;  %v2693_v31 = vmul.f32 22.24412, %v4679_v59 }
  0xc0   : > { %6920 = vst [vmem:[#allocation16_spill] sm:$0xff] %v4699_v0  ;;  %v2309_v30 = vsub.f32 %v2307_v25, %v4712_v4  ;;  %vm394_vm8 = vcmp.lt.f32.partialorder %v386_v12, 5.0  ;;  %vm395_vm9 = vcmp.lt.f32.partialorder %v387_v13, 5.0  ;;  %v417_v35 = vsub.f32 5.0, %v386_v12 }
  0xc1   : > { %6921 = vst [vmem:[#allocation17_spill] sm:$0xff] %v4703_v1  ;;  %v4756_v32 = vmul.f32 %v2308_v26, %v2304_v18  ;;  %v4758_v33 = vmul.f32 %v2508_v27, %v2308_v26  ;;  %v4760_v34 = vmul.f32 %v2692_v29, %v1930_v16  ;;  %v4766_v38 = vmul.f32 %v2693_v31, %v1931_v17  ;;  %vm407_vm10 = vmand %vm394_vm8, %vm4735_vm6 }
  0xc2   : > { %6922 = vst [vmem:[#allocation18_spill] sm:$0xff] %v4709_v3  ;;  %v4762_v36 = vmul.f32 %v2309_v30, %v2305_v24  ;;  %v4764_v37 = vmul.f32 %v2509_v28, %v2309_v30  ;;  %v418_v39 = vsub.f32 5.0, %v387_v13  ;;  %v419_v40 = vmax.f32 %v417_v35, 0.0  ;;  %vm408_vm11 = vmand %vm395_vm9, %vm4739_vm7 }
  0xc3   : > { %6923 = vst [vmem:[#allocation19_spill] sm:$0xff] %v4712_v4  ;;  %v4543_v48 = vmov 0.0  }
  0xc4   : > { %6924 = vst [vmem:[#allocation20_spill] sm:$0xff] %v4724_v10  ;;  %v420_v41 = vmax.f32 %v418_v39, 0.0  ;;  %v421_v42 = vmul.f32 %v419_v40, %v419_v40  ;;  %v409_v49 = vsel %vm407_vm10, 1.0, %v4543_v48  ;;  %v410_v2 = vsel %vm408_vm11, 1.0, %v4543_v48 }
  0xc5   : > { %6929 = vst [vmem:[#allocation21_spill] sm:$0xff] %v4743_v22  ;;  %v4782_v18 = vmul.f32 %v413_v47, %v409_v49  ;;  %v4784_v19 = vmul.f32 %v413_v47, %v410_v2 }
  0xc6   : > { %6930 = vst [vmem:[#allocation22_spill] sm:$0xff] %v4745_v23  ;;  %v422_v44 = vmul.f32 %v420_v41, %v420_v41  ;;  %v423_v46 = vmul.f32 %v421_v42, %v419_v40 }
  0xc7   : > { %6931 = vst [vmem:[#allocation23_spill] sm:$0xff] %v4756_v32 }
  0xc8   : > { %6932 = vst [vmem:[#allocation24_spill] sm:$0xff] %v4758_v33  ;;  %v424_v7 = vmul.f32 %v422_v44, %v420_v41  ;;  %v425_v12 = vmul.f32 0.009465728, %v423_v46  ;;  %v427_v13 = vmul.f32 %v423_v46, %v419_v40 }
  0xc9   : > { %6933 = vst [vmem:[#allocation25_spill] sm:$0xff] %v4760_v34 }
  0xca   : > { %6934 = vst [vmem:[#allocation26_spill] sm:$0xff] %v4762_v36  ;;  %v426_v16 = vmul.f32 0.009465728, %v424_v7  ;;  %v428_v17 = vmul.f32 %v424_v7, %v420_v41  ;;  %v429_v20 = vmul.f32 0.0021466252, %v427_v13  ;;  %v431_v21 = vmul.f32 %v427_v13, %v419_v40 }
  0xcb   : > { %6935 = vst [vmem:[#allocation27_spill] sm:$0xff] %v4764_v37  ;;  %v439_v24 = vmul.f32 31.619474, %v425_v12  ;;  %v453_v25 = vmul.f32 -82.899605, %v425_v12 }
  0xcc   : > { %6936 = vst [vmem:[#allocation28_spill] sm:$0xff] %v4766_v38  ;;  %v430_v26 = vmul.f32 0.0021466252, %v428_v17  ;;  %v432_v27 = vmul.f32 %v428_v17, %v420_v41  ;;  %v440_v28 = vmul.f32 31.619474, %v426_v16  ;;  %v435_v31 = vmul.f32 %v431_v21, %v419_v40 }
  0xcd   : > { %v454_v29 = vmul.f32 -82.899605, %v426_v16  ;;  %v433_v30 = vmul.f32 0.0004746367, %v431_v21  ;;  %v441_v35 = vmul.f32 -82.899605, %v429_v20  ;;  %v502_v21 = vmul.f32 %v498_v8, %v4782_v18 }
  0xce   : > { %v455_v39 = vmul.f32 278.7636, %v429_v20  ;;  %v434_v42 = vmul.f32 0.0004746367, %v432_v27  ;;  %v436_v43 = vmul.f32 %v432_v27, %v420_v41  ;;  %v442_v44 = vmul.f32 -82.899605, %v430_v26 }
  0xcf   : > { %v456_v46 = vmul.f32 278.7636, %v430_v26  ;;  %v437_v48 = vmul.f32 0.00010319689, %v435_v31  ;;  %v443_v49 = vadd.f32 %v441_v35, %v439_v24  ;;  %v445_v47 = vmul.f32 76.87607, %v433_v30 }
  0xd0   : > { %v457_v2 = vadd.f32 %v455_v39, %v453_v25  ;;  %v438_v7 = vmul.f32 0.00010319689, %v436_v43  ;;  %v444_v13 = vadd.f32 %v442_v44, %v440_v28  ;;  %v446_v15 = vmul.f32 76.87607, %v434_v42 }
  0xd1   : > { %v458_v14 = vadd.f32 %v456_v46, %v454_v29  ;;  %v447_v38 = vadd.f32 %v445_v47, %v443_v49  ;;  %v449_v17 = vmul.f32 -24.85829, %v437_v48  ;;  %v459_v34 = vmul.f32 -309.8136, %v433_v30 }
  0xd2   : > { %v460_v37 = vmul.f32 -309.8136, %v434_v42  ;;  %v450_v33 = vmul.f32 -24.85829, %v438_v7  ;;  %v463_v40 = vmul.f32 114.16668, %v437_v48  ;;  %v503_v41 = vmul.f32 %v499_v11, %v4784_v19 }
  0xd3   : > { %v461_v27 = vadd.f32 %v459_v34, %v457_v2  ;;  %v464_v31 = vmul.f32 114.16668, %v438_v7  ;;  %v467_v24 = vmul.f32 76.87607, %v425_v12  ;;  %v448_v35 = vadd.f32 %v446_v15, %v444_v13 }
  0xd4   : > { %v462_v36 = vadd.f32 %v460_v37, %v458_v14  ;;  %v468_v25 = vmul.f32 76.87607, %v426_v16  ;;  %v469_v39 = vmul.f32 -309.8136, %v429_v20  ;;  %v470_v28 = vmul.f32 -309.8136, %v430_v26 }
  0xd5   : > { %v451_v43 = vadd.f32 %v449_v17, %v447_v38  ;;  %v465_v29 = vadd.f32 %v463_v40, %v461_v27  ;;  %v473_v44 = vmul.f32 401.66898, %v433_v30  ;;  %v474_v46 = vmul.f32 401.66898, %v434_v42 }
  0xd6   : > { %v471_v49 = vadd.f32 %v469_v39, %v467_v24  ;;  %v472_v47 = vadd.f32 %v470_v28, %v468_v25  ;;  %v477_v32 = vmul.f32 -168.42693, %v437_v48  ;;  %v478_v23 = vmul.f32 -168.42693, %v438_v7 }
  0xd7   : > { %v466_v22 = vadd.f32 %v464_v31, %v462_v36  ;;  %v481_v8 = vmul.f32 -24.85829, %v425_v12  ;;  %v482_v4 = vmul.f32 -24.85829, %v426_v16  ;;  %v483_v11 = vmul.f32 114.16668, %v429_v20 }
  0xd8   : > { %v475_v34 = vadd.f32 %v473_v44, %v471_v49  ;;  %v476_v37 = vadd.f32 %v474_v46, %v472_v47  ;;  %v484_v14 = vmul.f32 114.16668, %v430_v26  ;;  %v487_v2 = vmul.f32 -168.42693, %v433_v30 }
  0xd9   : > { %v452_v15 = vadd.f32 %v450_v33, %v448_v35  ;;  %v485_v13 = vadd.f32 %v483_v11, %v481_v8  ;;  %v488_v3 = vmul.f32 -168.42693, %v434_v42  ;;  %v491_v10 = vmul.f32 79.87745, %v437_v48 }
  0xda   : > { %v479_v38 = vadd.f32 %v477_v32, %v475_v34  ;;  %v480_v17 = vadd.f32 %v478_v23, %v476_v37  ;;  %v486_v40 = vadd.f32 %v484_v14, %v482_v4  ;;  %v492_v27 = vmul.f32 79.87745, %v438_v7 }
  0xdb   : > { %v489_v24 = vadd.f32 %v487_v2, %v485_v13  ;;  %v4788_v25 = vmul.f32 %v502_v21, %v465_v29  ;;  %v4790_v39 = vmul.f32 %v503_v41, %v466_v22  ;;  %v4792_v12 = vmul.f32 %v502_v21, %v451_v43 }
  0xdc   : > { %v490_v36 = vadd.f32 %v488_v3, %v486_v40  ;;  %v4794_v16 = vmul.f32 %v502_v21, %v479_v38  ;;  %v4796_v20 = vmul.f32 %v503_v41, %v480_v17  ;;  %v4798_v26 = vmul.f32 %v503_v41, %v452_v15 }
  0xdd   : > { %v493_v33 = vadd.f32 %v491_v10, %v489_v24  ;;  %v6938_v23 = vperm.slane %v4778_v45, 0  ;;  %v6939_v32 = vperm.slane %v4778_v45, 1  ;;  %v553_v10 = vmul.f32 3.5449078, %v4788_v25 }
  0xde   : > { %6937 = vst [vmem:[#allocation29_spill] sm:$0xff] %v4796_v20  ;;  %v494_v42 = vadd.f32 %v492_v27, %v490_v36  ;;  %v564_v3 = vmul.f32 3.5449078, %v4794_v16  ;;  %v565_v48 = vmul.f32 3.5449078, %v4796_v20 }
  0xdf   : > { %v519_v4 = vmul.f32 %v6938_v23, %v4782_v18  ;;  %v520_v30 = vmul.f32 %v6939_v32, %v4784_v19  ;;  %v554_v35 = vmul.f32 3.5449078, %v4790_v39  ;;  %v544_v45 = vmul.f32 3.5449078, %v4792_v12 }
  0xe0   : > { %v566_v44 = vadd.f32 %v565_v48, %v564_v3  ;;  %v4819_v19 = vmul.f32 %v502_v21, %v493_v33  ;;  %v4821_v46 = vmul.f32 %v503_v41, %v494_v42  ;;  %v4828_v47 = vmul.f32 6.1399603, %v4661_v54 }
  0xe1   : > { %v4808_v7 = vmul.f32 %v519_v4, %v465_v29  ;;  %v4810_v31 = vmul.f32 %v520_v30, %v466_v22  ;;  %v4814_v28 = vmul.f32 %v519_v4, %v493_v33  ;;  %v4816_v18 = vmul.f32 %v520_v30, %v494_v42 }
  0xe2   : > { %6944 = vst [vmem:[#allocation34_spill] sm:$0xff] %v4819_v19  ;;  %v555_v49 = vadd.f32 %v554_v35, %v553_v10  ;;  %v545_v29 = vmul.f32 3.5449078, %v4798_v26  ;;  %567 = vadd.xlane.f32.xlu0 %v566_v44  ;;  %v4825_v22 = vmul.f32 6.1399603, %v4655_v51  ;;  %v4836_v37 = vmul.f32 %v519_v4, %v451_v43 }
  0xe3   : > { %6940 = vst [vmem:[#allocation30_spill] sm:$0xff] %v4808_v7  ;;  %v4831_v8 = vmul.f32 6.1399603, %v4657_v52  ;;  %v619_v21 = vmul.f32 3.5449078, %v4814_v28  ;;  %v4845_v24 = vmul.f32 %v520_v30, %v452_v15  ;;  %v4847_v36 = vmul.f32 %v519_v4, %v479_v38 }
  0xe4   : > { %6941 = vst [vmem:[#allocation31_spill] sm:$0xff] %v4810_v31  ;;  %556 = vadd.xlane.f32.xlu1 %v555_v49  ;;  %v546_v11 = vadd.f32 %v545_v29, %v544_v45  ;;  %v620_v41 = vmul.f32 3.5449078, %v4816_v18  ;;  %v597_v34 = vmul.f32 3.5449078, %v4808_v7  ;;  %v4849_v33 = vmul.f32 %v520_v30, %v480_v17 }
  0xe5   : > { %6942 = vst [vmem:[#allocation32_spill] sm:$0xff] %v4814_v28  ;;  %v598_v14 = vmul.f32 3.5449078, %v4810_v31  ;;  %v575_v2 = vmul.f32 3.5449078, %v4819_v19  ;;  %v654_v43 = vmul.f32 %v4825_v22, %v4794_v16  ;;  %v655_v23 = vmul.f32 %v4828_v47, %v4796_v20 }
  0xe6   : > { %6943 = vst [vmem:[#allocation33_spill] sm:$0xff] %v4816_v18  ;;  %547 = vadd.xlane.f32.xlu2 %v546_v11  ;;  %v576_v13 = vmul.f32 3.5449078, %v4821_v46  ;;  %v723_v40 = vmul.f32 6.1399603, %v4663_v55  ;;  %v724_v32 = vmul.f32 %v4831_v8, %v4792_v12  ;;  %v621_v42 = vadd.f32 %v620_v41, %v619_v21 }
  0xe7   : > { %6945 = vst [vmem:[#allocation35_spill] sm:$0xff] %v4821_v46  ;;  %v4843_v27 = vmul.f32 6.1399603, %v4653_v50  ;;  %v634_v3 = vmul.f32 %v4825_v22, %v4792_v12  ;;  %v635_v15 = vmul.f32 %v4828_v47, %v4798_v26  ;;  %v4863_v17 = vmul.f32 6.1399603, %v4659_v53 }
  0xe8   : > { %6946 = vst [vmem:[#allocation36_spill] sm:$0xff] %v4836_v37  ;;  %v725_v38 = vmul.f32 %v723_v40, %v4798_v26  ;;  %v599_v4 = vadd.f32 %v598_v14, %v597_v34  ;;  %v577_v30 = vadd.f32 %v576_v13, %v575_v2  ;;  %v586_v48 = vmul.f32 3.5449078, %v4836_v37 }
  0xe9   : > { %6947 = vst [vmem:[#allocation37_spill] sm:$0xff] %v4845_v24  ;;  %v755_v35 = vmul.f32 %v4831_v8, %v4819_v19  ;;  %v756_v44 = vmul.f32 %v723_v40, %v4821_v46  ;;  %v733_v45 = vmul.f32 %v4831_v8, %v4788_v25  ;;  %v656_v49 = vadd.f32 %v655_v23, %v654_v43 }
  0xea   : > { %6948 = vst [vmem:[#allocation38_spill] sm:$0xff] %v4847_v36  ;;  %622 = vadd.xlane.f32.xlu0 %v621_v42  ;;  %v4866_v10 = vadd.f32 %v725_v38, %v724_v32  ;;  %v587_v29 = vmul.f32 3.5449078, %v4845_v24  ;;  %v687_v11 = vmul.f32 %v4825_v22, %v4808_v7  ;;  %v734_v21 = vmul.f32 %v723_v40, %v4790_v39 }
  0xeb   : > { %6949 = vst [vmem:[#allocation39_spill] sm:$0xff] %v4849_v33  ;;  %v636_v41 = vadd.f32 %v635_v15, %v634_v3  ;;  %v4877_v34 = vadd.f32 %v756_v44, %v755_v35  ;;  %v788_v14 = vmul.f32 %v4831_v8, %v4847_v36  ;;  %v789_v2 = vmul.f32 %v723_v40, %v4849_v33 }
  0xec   : > { %600 = vadd.xlane.f32.xlu1 %v599_v4  ;;  %v688_v13 = vmul.f32 %v4828_v47, %v4810_v31  ;;  %v4884_v43 = vadd.f32 %v734_v21, %v733_v45  ;;  %v766_v23 = vmul.f32 %v4831_v8, %v4836_v37  ;;  %v767_v32 = vmul.f32 %v723_v40, %v4845_v24 }
  0xed   : > { %v665_v42 = vmul.f32 %v4825_v22, %v4819_v19  ;;  %v666_v3 = vmul.f32 %v4828_v47, %v4821_v46  ;;  %v4893_v15 = vadd.f32 %v789_v2, %v788_v14  ;;  %v823_v38 = vmul.f32 %v4843_v27, %v4788_v25 }
  0xee   : > { %578 = vadd.xlane.f32.xlu2 %v577_v30  ;;  %6950 = vst [vmem:[#allocation40_spill] sm:$0xff] %v4884_v43  ;;  %v4897_v4 = vadd.f32 %v767_v32, %v766_v23  ;;  %v824_v30 = vmul.f32 %v4863_v17, %v4790_v39  ;;  %v799_v35 = vmul.f32 %v4831_v8, %v4814_v28 }
  0xef   : > { %6951 = vst [vmem:[#allocation41_spill] sm:$0xff] %v4893_v15  ;;  %v800_v44 = vmul.f32 %v723_v40, %v4816_v18  ;;  %v588_v45 = vadd.f32 %v587_v29, %v586_v48  ;;  %v744_v21 = vmul.f32 %v4831_v8, %v4794_v16  ;;  %v745_v14 = vmul.f32 %v723_v40, %v4796_v20 }
  0xf0   : > { %6952 = vst [vmem:[#allocation42_spill] sm:$0xff] %v4897_v4  ;;  %v856_v2 = vmul.f32 %v4843_v27, %v4836_v37  ;;  %v4909_v15 = vadd.f32 %v824_v30, %v823_v38  ;;  %v857_v32 = vmul.f32 %v4863_v17, %v4845_v24  ;;  %v834_v4 = vmul.f32 %v4843_v27, %v4794_v16 }
  0xf1   : > { %v4911_v23 = vadd.f32 %v800_v44, %v799_v35  ;;  %v4917_v48 = vadd.f32 %v745_v14, %v744_v21  ;;  %v835_v29 = vmul.f32 %v4863_v17, %v4796_v20  ;;  %v777_v43 = vmul.f32 %v4831_v8, %v4808_v7 }
  0xf2   : > { %657 = vadd.xlane.f32.xlu0 %v656_v49  ;;  %v778_v38 = vmul.f32 %v723_v40, %v4810_v31  ;;  %v4924_v30 = vadd.f32 %v857_v32, %v856_v2  ;;  %v889_v35 = vmul.f32 %v4843_v27, %v4814_v28  ;;  %v890_v44 = vmul.f32 %v4863_v17, %v4816_v18 }
  0xf3   : > { %6953 = vst [vmem:[#allocation43_spill] sm:$0xff] %v4917_v48  ;;  %v867_v49 = vmul.f32 %v4843_v27, %v4808_v7  ;;  %v4932_v21 = vadd.f32 %v835_v29, %v834_v4  ;;  %v868_v8 = vmul.f32 %v4863_v17, %v4810_v31  ;;  %v814_v40 = vmul.f32 %v4843_v27, %v4792_v12 }
  0xf4   : > { %637 = vadd.xlane.f32.xlu1 %v636_v41  ;;  %6954 = vst [vmem:[#allocation44_spill] sm:$0xff] %v4924_v30  ;;  %v4934_v14 = vadd.f32 %v778_v38, %v777_v43  ;;  %v4940_v41 = vadd.f32 %v890_v44, %v889_v35  ;;  %v815_v2 = vmul.f32 %v4863_v17, %v4798_v26  ;;  %v992_v32 = vmul.f32 13.729368, %v4667_v56 }
  0xf5   : > { %6955 = vst [vmem:[#allocation45_spill] sm:$0xff] %v4932_v21  ;;  %v4945_v30 = vadd.f32 %v868_v8, %v867_v49  ;;  %v845_v43 = vmul.f32 %v4843_v27, %v4819_v19  ;;  %v608_v4 = vmul.f32 3.5449078, %v4847_v36  ;;  %v609_v29 = vmul.f32 3.5449078, %v4849_v33 }
  0xf6   : > { %6956 = vst [vmem:[#allocation46_spill] sm:$0xff] %v4934_v14  ;;  %589 = vadd.xlane.f32.xlu2 %v588_v45  ;;  %v4951_v38 = vadd.f32 %v815_v2, %v814_v40  ;;  %v846_v45 = vmul.f32 %v4863_v17, %v4821_v46  ;;  %v4957_v35 = vmul.f32 %v4655_v51, %v4653_v50  ;;  %v993_v44 = vmul.f32 13.729368, %v4671_v57 }
  0xf7   : > { %6957 = vst [vmem:[#allocation47_spill] sm:$0xff] %v4940_v41  ;;  %v689_v49 = vadd.f32 %v688_v13, %v687_v11  ;;  %v667_v8 = vadd.f32 %v666_v3, %v665_v42  ;;  %v879_v40 = vmul.f32 %v4863_v17, %v4849_v33  ;;  %v994_v2 = vmul.f32 %v992_v32, %v4792_v12 }
  0xf8   : > { %6958 = vst [vmem:[#allocation48_spill] sm:$0xff] %v4945_v30  ;;  %v4960_v56 = vadd.f32 %v846_v45, %v845_v43  ;;  %v878_v30 = vmul.f32 %v4843_v27, %v4847_v36  ;;  %v4973_v41 = vsub.f32 %v4691_v62, %v4683_v60  ;;  %v4977_v11 = vsub.f32 %v4699_v0, %v4687_v61 }
  0xf9   : > { %6959 = vst [vmem:[#allocation49_spill] sm:$0xff] %v4951_v38  ;;  %v4969_v38 = vmul.f32 %v4661_v54, %v4659_v53  ;;  %v995_v27 = vmul.f32 %v993_v44, %v4798_v26  ;;  %v4981_v13 = vmul.f32 2.0, %v4695_v63  ;;  %v4984_v17 = vmul.f32 2.0, %v4703_v1 }
  0xfa   : > { %6960 = vst [vmem:[#allocation50_spill] sm:$0xff] %v4957_v35  ;;  %690 = vadd.xlane.f32.xlu0 %v689_v49  ;;  %v610_v42 = vadd.f32 %v609_v29, %v608_v4  ;;  %v4986_v3 = vadd.f32 %v879_v40, %v878_v30  ;;  %v1025_v45 = vmul.f32 %v992_v32, %v4819_v19 }
  0xfb   : > { %6961 = vst [vmem:[#allocation51_spill] sm:$0xff] %v4960_v56  ;;  %v4988_v43 = vadd.f32 %v995_v27, %v994_v2  ;;  %v1026_v57 = vmul.f32 %v993_v44, %v4821_v46  ;;  %v1003_v49 = vmul.f32 %v992_v32, %v4788_v25  ;;  %v4994_v56 = vmul.f32 13.729368, %v4675_v58 }
  0xfc   : > { %6962 = vst [vmem:[#allocation52_spill] sm:$0xff] %v4969_v38  ;;  %668 = vadd.xlane.f32.xlu1 %v667_v8  ;;  %v698_v1 = vmul.f32 %v4825_v22, %v4847_v36  ;;  %v699_v4 = vmul.f32 %v4828_v47, %v4849_v33  ;;  %v1004_v30 = vmul.f32 %v993_v44, %v4790_v39 }
  0xfd   : > { %6963 = vst [vmem:[#allocation53_spill] sm:$0xff] %v4984_v17  ;;  %v643_v29 = vmul.f32 %v4825_v22, %v4788_v25  ;;  %v5003_v8 = vadd.f32 %v1026_v57, %v1025_v45  ;;  %v1058_v40 = vmul.f32 %v992_v32, %v4847_v36  ;;  %v1059_v2 = vmul.f32 %v993_v44, %v4849_v33 }
  0xfe   : > { %6964 = vst [vmem:[#allocation54_spill] sm:$0xff] %v4986_v3  ;;  %611 = vadd.xlane.f32.xlu2 %v610_v42  ;;  %v644_v58 = vmul.f32 %v4828_v47, %v4790_v39  ;;  %v5009_v27 = vadd.f32 %v1004_v30, %v1003_v49  ;;  %v1036_v42 = vmul.f32 %v992_v32, %v4836_v37  ;;  %v1360_v3 = vmul.f32 7.414706, %v4655_v51 }
  0xff   : > { %6965 = vst [vmem:[#allocation55_spill] sm:$0xff] %v4988_v43  ;;  %v1037_v63 = vmul.f32 %v993_v44, %v4845_v24  ;;  %v5014_v43 = vmul.f32 13.729368, %v4679_v59  ;;  %v1361_v57 = vmul.f32 7.414706, %v4661_v54  ;;  %v5018_v45 = vadd.f32 %v1059_v2, %v1058_v40 }
 0x100   : > { %6966 = vst [vmem:[#allocation56_spill] sm:$0xff] %v5003_v8  ;;  %v700_v8 = vadd.f32 %v699_v4, %v698_v1  ;;  %v1069_v21 = vmul.f32 %v992_v32, %v4814_v28  ;;  %v1070_v49 = vmul.f32 %v993_v44, %v4816_v18  ;;  %v1456_v30 = vmul.f32 36.324493, %v4957_v35 }
 0x101   : > { %6967 = vst [vmem:[#allocation57_spill] sm:$0xff] %v5009_v27  ;;  %v5020_v14 = vadd.f32 %v1037_v63, %v1036_v42  ;;  %v1457_v27 = vmul.f32 36.324493, %v4969_v38  ;;  %v1014_v59 = vmul.f32 %v992_v32, %v4794_v16  ;;  %v1015_v48 = vmul.f32 %v993_v44, %v4796_v20 }
 0x102   : > { %6968 = vst [vmem:[#allocation58_spill] sm:$0xff] %v5018_v45  ;;  %727 = vadd.xlane.f32.xlu0 %v4866_v10  ;;  %v645_v40 = vadd.f32 %v644_v58, %v643_v29  ;;  %v5029_v2 = vadd.f32 %v1070_v49, %v1069_v21  ;;  %v1189_v63 = vmul.f32 %v4994_v56, %v4788_v25  ;;  %v1548_v29 = vmul.f32 5.743407, %v4655_v51 }
 0x103   : > { %6969 = vst [vmem:[#allocation59_spill] sm:$0xff] %v5020_v14  ;;  %v1190_v1 = vmul.f32 %v5014_v43, %v4790_v39  ;;  %v5037_v4 = vsub.f32 %v4715_v5, %v4683_v60  ;;  %v5039_v42 = vadd.f32 %v1015_v48, %v1014_v59  ;;  %v1047_v10 = vmul.f32 %v992_v32, %v4808_v7  ;;  %v6973_v32 = vld [vmem:[#allocation20_spill] sm:$0xff] }
 0x104   : > { %701 = vadd.xlane.f32.xlu1 %v700_v8  ;;  %6970 = vst [vmem:[#allocation60_spill] sm:$0xff] %v5029_v2  ;;  %v1048_v14 = vmul.f32 %v993_v44, %v4810_v31  ;;  %v5045_v21 = vsub.f32 %v4721_v9, %v4687_v61  ;;  %v1552_v8 = vsub.f32 %v4718_v6, %v4691_v62  ;;  %v1549_v48 = vmul.f32 5.743407, %v4661_v54 }
 0x105   : > { %6971 = vst [vmem:[#allocation61_spill] sm:$0xff] %v5039_v42  ;;  %v5050_v58 = vadd.f32 %v1190_v1, %v1189_v63  ;;  %v5053_v49 = vmul.f32 %v1456_v30, %v4657_v52  ;;  %v1553_v44 = vsub.f32 %v6973_v32, %v4699_v0  ;;  %v5061_v42 = vmul.f32 %v1457_v27, %v4663_v55 }
 0x106   : > { %646 = vadd.xlane.f32.xlu2 %v645_v40  ;;  %v5058_v59 = vadd.f32 %v1048_v14, %v1047_v10  ;;  %v1646_v51 = vmul.f32 4.689472, %v4657_v52  ;;  %v676_v6 = vmul.f32 %v4825_v22, %v4836_v37  ;;  %v677_v40 = vmul.f32 %v4828_v47, %v4845_v24 }
 0x107   : > { %6972 = vst [vmem:[#allocation62_spill] sm:$0xff] %v5050_v58  ;;  %v5069_v30 = vmul.f32 %v5037_v4, %v1360_v3  ;;  %v1647_v54 = vmul.f32 4.689472, %v4663_v55  ;;  %v1648_v14 = vsub.f32 %v4981_v13, %v4715_v5  ;;  %v1649_v27 = vsub.f32 %v4984_v17, %v4721_v9 }
 0x108   : > { %6974 = vst [vmem:[#allocation20_spill] sm:$0xff] %v5058_v59  ;;  %v5077_v63 = vmul.f32 %v5045_v21, %v1361_v57  ;;  %v1554_v1 = vsub.f32 %v1552_v8, %v4683_v60  ;;  %v1744_v10 = vmul.f32 5.743407, %v4653_v50  ;;  %v1745_v32 = vmul.f32 5.743407, %v4659_v53  ;;  %v6975_v57 = vld [vmem:[#allocation40_spill] sm:$0xff] }
 0x109   : > { %v1555_v3 = vsub.f32 %v1553_v44, %v4687_v61  ;;  %v1836_v59 = vmul.f32 18.162247, %v4657_v52  ;;  %v1200_v5 = vmul.f32 %v4994_v56, %v4794_v16  ;;  %v1201_v9 = vmul.f32 %v5014_v43, %v4796_v20  ;;  %v6976_v8 = vld [vmem:[#allocation18_spill] sm:$0xff]  ;;  %v6977_v44 = vld [vmem:[#allocation19_spill] sm:$0xff] }
 0x10a   : > { %758 = vadd.xlane.f32.xlu0 %v4877_v34  ;;  %v678_v58 = vadd.f32 %v677_v40, %v676_v6  ;;  %v1180_v50 = vmul.f32 %v4994_v56, %v4792_v12  ;;  %v1181_v53 = vmul.f32 %v5014_v43, %v4798_v26  ;;  %v1211_v52 = vmul.f32 %v4994_v56, %v4819_v19 }
 0x10b   : > { %v1652_v34 = vsub.f32 %v1648_v14, %v6976_v8  ;;  %v1653_v2 = vsub.f32 %v1649_v27, %v6977_v44  ;;  %v5098_v45 = vadd.f32 %v1201_v9, %v1200_v5  ;;  %v1212_v61 = vmul.f32 %v5014_v43, %v4821_v46 }
 0x10c   : > { %736 = vadd.xlane.f32.xlu1 %v6975_v57  ;;  %v1837_v6 = vmul.f32 18.162247, %v4663_v55  ;;  %v709_v40 = vmul.f32 %v4825_v22, %v4814_v28  ;;  %v710_v57 = vmul.f32 %v4828_v47, %v4816_v18  ;;  %v5107_v60 = vadd.f32 %v1181_v53, %v1180_v50  ;;  %v6981_v53 = vld [vmem:[#allocation41_spill] sm:$0xff] }
 0x10d   : > { %v5109_v17 = vmul.f32 %v1554_v1, %v1548_v29  ;;  %v5111_v14 = vmul.f32 %v1744_v10, %v1554_v1  ;;  %v5113_v27 = vadd.f32 %v1212_v61, %v1211_v52  ;;  %v1233_v5 = vmul.f32 %v4994_v56, %v4808_v7 }
 0x10e   : > { %679 = vadd.xlane.f32.xlu2 %v678_v58  ;;  %6978 = vst [vmem:[#allocation40_spill] sm:$0xff] %v5107_v60  ;;  %v5117_v9 = vmul.f32 %v1555_v3, %v1549_v48  ;;  %v5120_v55 = vmul.f32 %v1836_v59, %v4973_v41  ;;  %v5123_v22 = vmul.f32 13.729368, %v4957_v35  ;;  %v1234_v47 = vmul.f32 %v5014_v43, %v4810_v31 }
 0x10f   : > { %6979 = vst [vmem:[#allocation18_spill] sm:$0xff] %v5113_v27  ;;  %v5128_v29 = vmul.f32 13.729368, %v4969_v38  ;;  %v1222_v61 = vmul.f32 %v4994_v56, %v4836_v37  ;;  %v1223_v58 = vmul.f32 %v5014_v43, %v4845_v24  ;;  %v1368_v48 = vmul.f32 %v5069_v30, %v4792_v12 }
 0x110   : > { %v711_v59 = vadd.f32 %v710_v57, %v709_v40  ;;  %v924_v1 = vmul.f32 %v5123_v22, %v4794_v16  ;;  %v5138_v10 = vadd.f32 %v1234_v47, %v1233_v5  ;;  %v1369_v50 = vmul.f32 %v5077_v63, %v4798_v26  ;;  %v6982_v57 = vld [vmem:[#allocation42_spill] sm:$0xff] }
 0x111   : > { %v925_v52 = vmul.f32 %v5128_v29, %v4796_v20  ;;  %v904_v8 = vmul.f32 %v5123_v22, %v4792_v12  ;;  %v905_v44 = vmul.f32 %v5128_v29, %v4798_v26  ;;  %v5149_v40 = vadd.f32 %v1223_v58, %v1222_v61 }
 0x112   : > { %6980 = vst [vmem:[#allocation19_spill] sm:$0xff] %v5138_v10  ;;  %791 = vadd.xlane.f32.xlu0 %v6981_v53  ;;  %v5152_v5 = vadd.f32 %v1369_v50, %v1368_v48  ;;  %v1255_v47 = vmul.f32 %v4994_v56, %v4814_v28  ;;  %v1256_v53 = vmul.f32 %v5014_v43, %v4816_v18 }
 0x113   : > { %v1244_v10 = vmul.f32 %v4994_v56, %v4847_v36  ;;  %v5160_v27 = vmul.f32 %v1652_v34, %v1646_v51  ;;  %v5162_v60 = vmul.f32 %v1653_v2, %v1647_v54  ;;  %v1245_v61 = vmul.f32 %v5014_v43, %v4849_v33 }
 0x114   : > { %769 = vadd.xlane.f32.xlu1 %v6982_v57  ;;  %v1460_v58 = vmul.f32 %v5053_v49, %v4792_v12  ;;  %v5168_v48 = vmul.f32 %v1745_v32, %v1555_v3  ;;  %v5171_v50 = vmul.f32 %v1837_v6, %v4977_v11  ;;  %v5173_v57 = vadd.f32 %v1256_v53, %v1255_v47 }
 0x115   : > { %v1461_v56 = vmul.f32 %v5061_v42, %v4798_v26  ;;  %v5177_v51 = vadd.f32 %v925_v52, %v924_v1  ;;  %v5179_v2 = vadd.f32 %v1245_v61, %v1244_v10  ;;  %v1377_v43 = vmul.f32 %v5069_v30, %v4788_v25 }
 0x116   : > { %712 = vadd.xlane.f32.xlu2 %v711_v59  ;;  %6983 = vst [vmem:[#allocation41_spill] sm:$0xff] %v5173_v57  ;;  %v1378_v54 = vmul.f32 %v5077_v63, %v4790_v39  ;;  %v5185_v32 = vadd.f32 %v905_v44, %v904_v8  ;;  %v5189_v3 = vmul.f32 %v5123_v22, %v4808_v7  ;;  %v5208_v8 = vmul.f32 6.864684, %v4973_v41 }
 0x117   : > { %6984 = vst [vmem:[#allocation42_spill] sm:$0xff] %v5179_v2  ;;  %v5191_v34 = vadd.f32 %v1461_v56, %v1460_v58  ;;  %v1469_v6 = vmul.f32 %v5053_v49, %v4788_v25  ;;  %v5197_v59 = vmul.f32 %v5128_v29, %v4810_v31  ;;  %v5201_v1 = vmul.f32 %v5123_v22, %v4819_v19 }
 0x118   : > { %v5203_v10 = vadd.f32 %v1378_v54, %v1377_v43  ;;  %v1470_v52 = vmul.f32 %v5061_v42, %v4790_v39  ;;  %v1432_v44 = vmul.f32 %v5069_v30, %v4847_v36  ;;  %v1433_v47 = vmul.f32 %v5077_v63, %v4849_v33 }
 0x119   : > { %6985 = vst [vmem:[#allocation63_spill] sm:$0xff] %v5191_v34  ;;  %v1399_v53 = vmul.f32 %v5069_v30, %v4819_v19  ;;  %v5218_v61 = vmul.f32 6.864684, %v4977_v11  ;;  %v1400_v56 = vmul.f32 %v5077_v63, %v4821_v46  ;;  %v1388_v43 = vmul.f32 %v5069_v30, %v4794_v16 }
 0x11a   : > { %6986 = vst [vmem:[#allocation64_spill] sm:$0xff] %v5203_v10  ;;  %826 = vadd.xlane.f32.xlu0 %v4909_v15  ;;  %v5220_v58 = vadd.f32 %v1470_v52, %v1469_v6  ;;  %v5227_v54 = vadd.f32 %v1433_v47, %v1432_v44  ;;  %v1389_v10 = vmul.f32 %v5077_v63, %v4796_v20  ;;  %v6990_v44 = vld [vmem:[#allocation43_spill] sm:$0xff] }
 0x11b   : > { %v1567_v15 = vmul.f32 %v5109_v17, %v4788_v25  ;;  %v1568_v6 = vmul.f32 %v5117_v9, %v4790_v39  ;;  %v5235_v52 = vadd.f32 %v1400_v56, %v1399_v53  ;;  %v1481_v34 = vmul.f32 %v5061_v42, %v4796_v20 }
 0x11c   : > { %6987 = vst [vmem:[#allocation65_spill] sm:$0xff] %v5220_v58  ;;  %802 = vadd.xlane.f32.xlu1 %v4911_v23  ;;  %v1480_v58 = vmul.f32 %v5053_v49, %v4794_v16  ;;  %v1314_v23 = vmul.f32 %v5208_v8, %v4836_v37  ;;  %v5244_v47 = vadd.f32 %v1389_v10, %v1388_v43 }
 0x11d   : > { %6988 = vst [vmem:[#allocation66_spill] sm:$0xff] %v5227_v54  ;;  %v5246_v54 = vadd.f32 %v1568_v6, %v1567_v15  ;;  %v1315_v2 = vmul.f32 %v5218_v61, %v4845_v24  ;;  %v1491_v53 = vmul.f32 %v5053_v49, %v4819_v19  ;;  %v1410_v57 = vmul.f32 %v5069_v30, %v4836_v37 }
 0x11e   : > { %6989 = vst [vmem:[#allocation67_spill] sm:$0xff] %v5235_v52  ;;  %747 = vadd.xlane.f32.xlu2 %v6990_v44  ;;  %v5252_v56 = vadd.f32 %v1481_v34, %v1480_v58  ;;  %v1492_v52 = vmul.f32 %v5061_v42, %v4821_v46  ;;  %v1411_v10 = vmul.f32 %v5077_v63, %v4845_v24 }
 0x11f   : > { %6991 = vst [vmem:[#allocation43_spill] sm:$0xff] %v5244_v47  ;;  %v5260_v43 = vadd.f32 %v1315_v2, %v1314_v23  ;;  %v1421_v15 = vmul.f32 %v5069_v30, %v4808_v7  ;;  %v1422_v6 = vmul.f32 %v5077_v63, %v4810_v31  ;;  %v1578_v34 = vmul.f32 %v5109_v17, %v4794_v16 }
 0x120   : > { %6992 = vst [vmem:[#allocation68_spill] sm:$0xff] %v5246_v54  ;;  %v5268_v58 = vadd.f32 %v1492_v52, %v1491_v53  ;;  %v5270_v44 = vadd.f32 %v1411_v10, %v1410_v57  ;;  %v1513_v2 = vmul.f32 %v5053_v49, %v4808_v7  ;;  %v1558_v54 = vmul.f32 %v5109_v17, %v4792_v12  ;;  %v6998_v53 = vld [vmem:[#allocation44_spill] sm:$0xff] }
 0x121   : > { %6993 = vst [vmem:[#allocation69_spill] sm:$0xff] %v5252_v56  ;;  %v1579_v56 = vmul.f32 %v5117_v9, %v4796_v20  ;;  %v5276_v23 = vadd.f32 %v1422_v6, %v1421_v15  ;;  %v1559_v52 = vmul.f32 %v5117_v9, %v4798_v26  ;;  %v1502_v10 = vmul.f32 %v5053_v49, %v4836_v37 }
 0x122   : > { %6994 = vst [vmem:[#allocation70_spill] sm:$0xff] %v5260_v43  ;;  %v1514_v43 = vmul.f32 %v5061_v42, %v4810_v31  ;;  %859 = vadd.xlane.f32.xlu0 %v6998_v53  ;;  %v1503_v15 = vmul.f32 %v5061_v42, %v4845_v24  ;;  %v1656_v6 = vmul.f32 %v5160_v27, %v4792_v12 }
 0x123   : > { %6995 = vst [vmem:[#allocation71_spill] sm:$0xff] %v5268_v58  ;;  %v5285_v57 = vadd.f32 %v1579_v56, %v1578_v34  ;;  %v5296_v58 = vadd.f32 %v1559_v52, %v1558_v54  ;;  %v1657_v53 = vmul.f32 %v5162_v60, %v4798_v26  ;;  %v1443_v56 = vmul.f32 %v5069_v30, %v4814_v28 }
 0x124   : > { %6996 = vst [vmem:[#allocation72_spill] sm:$0xff] %v5270_v44  ;;  %v5294_v44 = vadd.f32 %v1514_v43, %v1513_v2  ;;  %v5302_v34 = vadd.f32 %v1503_v15, %v1502_v10  ;;  %v1611_v47 = vmul.f32 %v5109_v17, %v4808_v7  ;;  %v1612_v43 = vmul.f32 %v5117_v9, %v4810_v31  ;;  %v7001_v2 = vld [vmem:[#allocation46_spill] sm:$0xff] }
 0x125   : > { %6997 = vst [vmem:[#allocation73_spill] sm:$0xff] %v5276_v23  ;;  %v7000_v23 = vld [vmem:[#allocation45_spill] sm:$0xff]  ;;  %v5311_v54 = vadd.f32 %v1657_v53, %v1656_v6  ;;  %v1536_v30 = vmul.f32 %v5061_v42, %v4816_v18  ;;  %v1524_v52 = vmul.f32 %v5053_v49, %v4847_v36  ;;  %v1525_v15 = vmul.f32 %v5061_v42, %v4849_v33 }
 0x126   : > { %6999 = vst [vmem:[#allocation44_spill] sm:$0xff] %v5285_v57  ;;  %837 = vadd.xlane.f32.xlu1 %v7000_v23  ;;  %v1444_v57 = vmul.f32 %v5077_v63, %v4816_v18  ;;  %780 = vadd.xlane.f32.xlu2 %v7001_v2  ;;  %v1535_v23 = vmul.f32 %v5053_v49, %v4814_v28 }
 0x127   : > { %7002 = vst [vmem:[#allocation45_spill] sm:$0xff] %v5311_v54  ;;  %v5321_v10 = vadd.f32 %v1612_v43, %v1611_v47  ;;  %v1748_v6 = vmul.f32 %v5111_v14, %v4792_v12  ;;  %v1749_v2 = vmul.f32 %v5168_v48, %v4798_v26  ;;  %v1622_v54 = vmul.f32 %v5109_v17, %v4847_v36 }
 0x128   : > { %v5319_v63 = vadd.f32 %v1444_v57, %v1443_v56  ;;  %v5327_v53 = vadd.f32 %v1536_v30, %v1535_v23  ;;  %v1623_v49 = vmul.f32 %v5117_v9, %v4849_v33  ;;  %v5335_v57 = vadd.f32 %v1525_v15, %v1524_v52  ;;  %v7008_v15 = vld [vmem:[#allocation47_spill] sm:$0xff] }
 0x129   : > { %7003 = vst [vmem:[#allocation46_spill] sm:$0xff] %v5321_v10  ;;  %v1665_v47 = vmul.f32 %v5160_v27, %v4788_v25  ;;  %v1666_v42 = vmul.f32 %v5162_v60, %v4790_v39  ;;  %v1633_v56 = vmul.f32 %v5109_v17, %v4814_v28  ;;  %v5343_v43 = vadd.f32 %v1749_v2, %v1748_v6  ;;  %v7010_v6 = vld [vmem:[#allocation48_spill] sm:$0xff] }
 0x12a   : > { %7004 = vst [vmem:[#allocation74_spill] sm:$0xff] %v5327_v53  ;;  %v5345_v23 = vadd.f32 %v1623_v49, %v1622_v54  ;;  %v1634_v30 = vmul.f32 %v5117_v9, %v4816_v18  ;;  %v1757_v52 = vmul.f32 %v5111_v14, %v4788_v25  ;;  %892 = vadd.xlane.f32.xlu0 %v7008_v15 }
 0x12b   : > { %7005 = vst [vmem:[#allocation75_spill] sm:$0xff] %v5335_v57  ;;  %v5352_v57 = vadd.f32 %v1666_v42, %v1665_v47  ;;  %v1758_v53 = vmul.f32 %v5168_v48, %v4790_v39  ;;  %v1589_v10 = vmul.f32 %v5109_v17, %v4819_v19  ;;  %v1590_v54 = vmul.f32 %v5117_v9, %v4821_v46 }
 0x12c   : > { %7006 = vst [vmem:[#allocation76_spill] sm:$0xff] %v5343_v43  ;;  %v5361_v2 = vadd.f32 %v1634_v30, %v1633_v56  ;;  %v1720_v49 = vmul.f32 %v5160_v27, %v4847_v36  ;;  %v1721_v47 = vmul.f32 %v5162_v60, %v4849_v33  ;;  %v1687_v42 = vmul.f32 %v5160_v27, %v4819_v19  ;;  %v7014_v30 = vld [vmem:[#allocation49_spill] sm:$0xff] }
 0x12d   : > { %7007 = vst [vmem:[#allocation77_spill] sm:$0xff] %v5345_v23  ;;  %v5369_v15 = vadd.f32 %v1758_v53, %v1757_v52  ;;  %v1688_v23 = vmul.f32 %v5162_v60, %v4821_v46  ;;  %v1676_v56 = vmul.f32 %v5160_v27, %v4794_v16  ;;  %v1849_v43 = vmul.f32 %v5120_v55, %v4788_v25 }
 0x12e   : > { %7009 = vst [vmem:[#allocation47_spill] sm:$0xff] %v5352_v57  ;;  %870 = vadd.xlane.f32.xlu1 %v7010_v6  ;;  %v5371_v57 = vadd.f32 %v1590_v54, %v1589_v10  ;;  %817 = vadd.xlane.f32.xlu2 %v7014_v30  ;;  %v5378_v6 = vadd.f32 %v1721_v47, %v1720_v49 }
 0x12f   : > { %7011 = vst [vmem:[#allocation48_spill] sm:$0xff] %v5361_v2  ;;  %v1677_v2 = vmul.f32 %v5162_v60, %v4796_v20  ;;  %v1850_v10 = vmul.f32 %v5171_v50, %v4790_v39  ;;  %v5386_v53 = vadd.f32 %v1688_v23, %v1687_v42  ;;  %v1768_v52 = vmul.f32 %v5111_v14, %v4794_v16 }
 0x130   : > { %7012 = vst [vmem:[#allocation78_spill] sm:$0xff] %v5369_v15  ;;  %v1769_v54 = vmul.f32 %v5168_v48, %v4796_v20  ;;  %v1600_v49 = vmul.f32 %v5109_v17, %v4836_v37  ;;  %v1779_v23 = vmul.f32 %v5111_v14, %v4819_v19  ;;  %v1699_v17 = vmul.f32 %v5162_v60, %v4845_v24 }
 0x131   : > { %7013 = vst [vmem:[#allocation79_spill] sm:$0xff] %v5371_v57  ;;  %v5394_v47 = vadd.f32 %v1677_v2, %v1676_v56  ;;  %v5396_v30 = vadd.f32 %v1850_v10, %v1849_v43  ;;  %v1698_v57 = vmul.f32 %v5160_v27, %v4836_v37  ;;  %v1709_v43 = vmul.f32 %v5160_v27, %v4808_v7 }
 0x132   : > { %7015 = vst [vmem:[#allocation49_spill] sm:$0xff] %v5378_v6  ;;  %v1601_v6 = vmul.f32 %v5117_v9, %v4845_v24  ;;  %v5402_v42 = vadd.f32 %v1769_v54, %v1768_v52  ;;  %v1710_v9 = vmul.f32 %v5162_v60, %v4810_v31  ;;  %v1860_v56 = vmul.f32 %v5120_v55, %v4794_v16 }
 0x133   : > { %7016 = vst [vmem:[#allocation80_spill] sm:$0xff] %v5386_v53  ;;  %v1780_v53 = vmul.f32 %v5168_v48, %v4821_v46  ;;  %927 = vadd.xlane.f32.xlu0 %v5177_v51  ;;  %v5421_v52 = vadd.f32 %v1699_v17, %v1698_v57  ;;  %v1861_v54 = vmul.f32 %v5171_v50, %v4796_v20 }
 0x134   : > { %7017 = vst [vmem:[#allocation81_spill] sm:$0xff] %v5394_v47  ;;  %v5410_v2 = vadd.f32 %v1601_v6, %v1600_v49  ;;  %v1801_v6 = vmul.f32 %v5111_v14, %v4808_v7  ;;  %v5428_v49 = vadd.f32 %v1710_v9, %v1709_v43  ;;  %v1840_v51 = vmul.f32 %v5120_v55, %v4792_v12  ;;  %v7026_v9 = vld [vmem:[#allocation51_spill] sm:$0xff] }
 0x135   : > { %7018 = vst [vmem:[#allocation82_spill] sm:$0xff] %v5396_v30  ;;  %v5419_v10 = vadd.f32 %v1780_v53, %v1779_v23  ;;  %v1841_v57 = vmul.f32 %v5171_v50, %v4798_v26  ;;  %v5436_v53 = vadd.f32 %v1861_v54, %v1860_v56  ;;  %v1790_v23 = vmul.f32 %v5111_v14, %v4836_v37  ;;  %v7029_v56 = vld [vmem:[#allocation22_spill] sm:$0xff] }
 0x136   : > { %7019 = vst [vmem:[#allocation83_spill] sm:$0xff] %v5402_v42  ;;  %907 = vadd.xlane.f32.xlu1 %v5185_v32  ;;  %v1791_v17 = vmul.f32 %v5168_v48, %v4845_v24  ;;  %v7025_v32 = vld [vmem:[#allocation21_spill] sm:$0xff]  ;;  %848 = vadd.xlane.f32.xlu2 %v7026_v9  ;;  %v1935_v54 = vmul.f32 %v7029_v56, %v4798_v26 }
 0x137   : > { %7020 = vst [vmem:[#allocation84_spill] sm:$0xff] %v5410_v2  ;;  %v1802_v2 = vmul.f32 %v5168_v48, %v4810_v31  ;;  %v1934_v43 = vmul.f32 %v7025_v32, %v4792_v12  ;;  %v1731_v42 = vmul.f32 %v5160_v27, %v4814_v28  ;;  %v1732_v30 = vmul.f32 %v5162_v60, %v4816_v18 }
 0x138   : > { %7021 = vst [vmem:[#allocation85_spill] sm:$0xff] %v5419_v10  ;;  %v5449_v10 = vadd.f32 %v1841_v57, %v1840_v51  ;;  %v1893_v9 = vmul.f32 %v5120_v55, %v4808_v7  ;;  %v1894_v51 = vmul.f32 %v5171_v50, %v4810_v31  ;;  %v1823_v57 = vmul.f32 %v5111_v14, %v4814_v28 }
 0x139   : > { %7022 = vst [vmem:[#allocation86_spill] sm:$0xff] %v5421_v52  ;;  %v5447_v52 = vadd.f32 %v1802_v2, %v1801_v6  ;;  %v959_v2 = vadd.f32 %v5197_v59, %v5189_v3  ;;  %v5463_v6 = vadd.f32 %v1935_v54, %v1934_v43  ;;  %v1824_v27 = vmul.f32 %v5168_v48, %v4816_v18 }
 0x13a   : > { %7023 = vst [vmem:[#allocation87_spill] sm:$0xff] %v5428_v49  ;;  %v936_v49 = vmul.f32 %v5128_v29, %v4821_v46  ;;  %v1812_v60 = vmul.f32 %v5111_v14, %v4847_v36  ;;  %v5478_v59 = vadd.f32 %v1894_v51, %v1893_v9  ;;  %v1943_v14 = vmul.f32 %v7025_v32, %v4788_v25  ;;  %v7036_v9 = vld [vmem:[#allocation54_spill] sm:$0xff] }
 0x13b   : > { %7024 = vst [vmem:[#allocation88_spill] sm:$0xff] %v5436_v53  ;;  %v5453_v53 = vadd.f32 %v1791_v17, %v1790_v23  ;;  %v5469_v23 = vadd.f32 %v1732_v30, %v1731_v42  ;;  %v1813_v17 = vmul.f32 %v5168_v48, %v4849_v33  ;;  %960 = vadd.xlane.f32.xlu0 %v959_v2 }
 0x13c   : > { %7027 = vst [vmem:[#allocation21_spill] sm:$0xff] %v5447_v52  ;;  %v937_v3 = vadd.f32 %v936_v49, %v5201_v1  ;;  %v5480_v43 = vadd.f32 %v1824_v27, %v1823_v57  ;;  %v1904_v30 = vmul.f32 %v5120_v55, %v4847_v36  ;;  %v1905_v42 = vmul.f32 %v5171_v50, %v4849_v33 }
 0x13d   : > { %7028 = vst [vmem:[#allocation51_spill] sm:$0xff] %v5449_v10  ;;  %v5482_v54 = vadd.f32 %v1813_v17, %v1812_v60  ;;  %v1944_v48 = vmul.f32 %v7029_v56, %v4790_v39  ;;  %v1915_v1 = vmul.f32 %v5120_v55, %v4814_v28  ;;  %v1916_v49 = vmul.f32 %v5171_v50, %v4816_v18 }
 0x13e   : > { %7030 = vst [vmem:[#allocation22_spill] sm:$0xff] %v5453_v53  ;;  %938 = vadd.xlane.f32.xlu1 %v937_v3  ;;  %881 = vadd.xlane.f32.xlu2 %v7036_v9  ;;  %v968_v2 = vmul.f32 %v5123_v22, %v4847_v36  ;;  %v969_v51 = vmul.f32 %v5128_v29, %v4849_v33  ;;  %v7040_v3 = vld [vmem:[#allocation10_spill] sm:$0xff] }
 0x13f   : > { %7031 = vst [vmem:[#allocation89_spill] sm:$0xff] %v5463_v6  ;;  %v5501_v57 = vadd.f32 %v1905_v42, %v1904_v30  ;;  %v5503_v27 = vadd.f32 %v1944_v48, %v1943_v14  ;;  %v5505_v60 = vadd.f32 %v1916_v49, %v1915_v1  ;;  %v1871_v17 = vmul.f32 %v5120_v55, %v4819_v19 }
 0x140   : > { %7032 = vst [vmem:[#allocation90_spill] sm:$0xff] %v5469_v23  ;;  %v913_v9 = vmul.f32 %v5123_v22, %v4788_v25  ;;  %v1872_v30 = vmul.f32 %v5171_v50, %v4821_v46  ;;  %v1998_v42 = vmul.f32 %v7025_v32, %v4847_v36  ;;  %v1999_v14 = vmul.f32 %v7029_v56, %v4849_v33 }
 0x141   : > { %7033 = vst [vmem:[#allocation91_spill] sm:$0xff] %v5478_v59  ;;  %v7041_v59 = vld [vmem:[#allocation11_spill] sm:$0xff]  ;;  %v970_v48 = vadd.f32 %v969_v51, %v968_v2  ;;  %v1965_v1 = vmul.f32 %v7025_v32, %v4819_v19  ;;  %v1966_v49 = vmul.f32 %v7029_v56, %v4821_v46 }
 0x142   : > { %7034 = vst [vmem:[#allocation92_spill] sm:$0xff] %v5480_v43  ;;  %v914_v43 = vmul.f32 %v5128_v29, %v4790_v39  ;;  %v2115_v23 = vmul.f32 22.24412, %v7041_v59  ;;  %v7042_v59 = vld [vmem:[#allocation55_spill] sm:$0xff] }
 0x143   : > { %7035 = vst [vmem:[#allocation93_spill] sm:$0xff] %v5482_v54  ;;  %v2114_v54 = vmul.f32 22.24412, %v7040_v3  ;;  %v1954_v3 = vmul.f32 %v7025_v32, %v4794_v16  ;;  %997 = vadd.xlane.f32.xlu0 %v7042_v59  ;;  %v5537_v6 = vadd.f32 %v1966_v49, %v1965_v1  ;;  %v1084_v1 = vsub.f32 %v4981_v13, %v4691_v62  ;;  %v7050_v59 = vld [vmem:[#allocation56_spill] sm:$0xff] }
 0x144   : > { %7037 = vst [vmem:[#allocation54_spill] sm:$0xff] %v5501_v57  ;;  %v1955_v57 = vmul.f32 %v7029_v56, %v4796_v20  ;;  %v915_v51 = vadd.f32 %v914_v43, %v913_v9  ;;  %v5540_v53 = vmul.f32 %v2115_v23, %v5045_v21  ;;  %v946_v43 = vmul.f32 %v5123_v22, %v4836_v37 }
 0x145   : > { %7038 = vst [vmem:[#allocation94_spill] sm:$0xff] %v5503_v27  ;;  %v5530_v27 = vadd.f32 %v1999_v14, %v1998_v42  ;;  %v5535_v2 = vmul.f32 %v2114_v54, %v5037_v4  ;;  %v1883_v42 = vmul.f32 %v5171_v50, %v4845_v24  ;;  %v1976_v23 = vmul.f32 %v7025_v32, %v4836_v37 }
 0x146   : > { %7039 = vst [vmem:[#allocation95_spill] sm:$0xff] %v5505_v60  ;;  %v5528_v60 = vadd.f32 %v1872_v30, %v1871_v17  ;;  %971 = vadd.xlane.f32.xlu1 %v970_v48  ;;  %v5542_v10 = vadd.f32 %v1955_v57, %v1954_v3  ;;  %v1882_v30 = vmul.f32 %v5120_v55, %v4836_v37 }
 0x147   : > { %7044 = vst [vmem:[#allocation11_spill] sm:$0xff] %v5530_v27  ;;  %v2127_v17 = vmul.f32 %v5535_v2, %v4788_v25  ;;  %916 = vadd.xlane.f32.xlu2 %v915_v51  ;;  %v2128_v4 = vmul.f32 %v5540_v53, %v4790_v39  ;;  %v947_v54 = vmul.f32 %v5128_v29, %v4845_v24  ;;  %v7051_v51 = vld [vmem:[#allocation53_spill] sm:$0xff] }
 0x148   : > { %7043 = vst [vmem:[#allocation10_spill] sm:$0xff] %v5528_v60  ;;  %v5554_v21 = vadd.f32 %v1883_v42, %v1882_v30  ;;  %v1977_v55 = vmul.f32 %v7029_v56, %v4845_v24  ;;  %v1987_v50 = vmul.f32 %v7025_v32, %v4808_v7  ;;  %v1988_v9 = vmul.f32 %v7029_v56, %v4810_v31 }
 0x149   : > { %7045 = vst [vmem:[#allocation55_spill] sm:$0xff] %v5537_v6  ;;  %v5560_v57 = vadd.f32 %v2128_v4, %v2127_v17  ;;  %v2138_v14 = vmul.f32 %v5535_v2, %v4794_v16  ;;  %v2139_v48 = vmul.f32 %v5540_v53, %v4796_v20  ;;  %v2118_v3 = vmul.f32 %v5535_v2, %v4792_v12 }
 0x14a   : > { %7046 = vst [vmem:[#allocation96_spill] sm:$0xff] %v5542_v10  ;;  %v5574_v49 = vadd.f32 %v1977_v55, %v1976_v23  ;;  %v1085_v17 = vsub.f32 %v7051_v51, %v4699_v0  ;;  %v5581_v30 = vadd.f32 %v1988_v9, %v1987_v50  ;;  %v2119_v4 = vmul.f32 %v5540_v53, %v4798_v26  ;;  %v7056_v9 = vld [vmem:[#allocation12_spill] sm:$0xff] }
 0x14b   : > { %7047 = vst [vmem:[#allocation97_spill] sm:$0xff] %v5554_v21  ;;  %1028 = vadd.xlane.f32.xlu0 %v7050_v59  ;;  %v5583_v42 = vadd.f32 %v2139_v48, %v2138_v14  ;;  %v7054_v21 = vld [vmem:[#allocation57_spill] sm:$0xff]  ;;  %v948_v13 = vadd.f32 %v947_v54, %v946_v43  ;;  %v2009_v55 = vmul.f32 %v7025_v32, %v4814_v28 }
 0x14c   : > { %7048 = vst [vmem:[#allocation98_spill] sm:$0xff] %v5560_v57  ;;  %v5588_v23 = vadd.f32 %v2119_v4, %v2118_v3  ;;  %v2010_v59 = vmul.f32 %v7029_v56, %v4816_v18  ;;  %v2171_v50 = vmul.f32 %v5535_v2, %v4808_v7  ;;  %v1086_v14 = vsub.f32 %v1084_v1, %v7056_v9  ;;  %v7057_v48 = vld [vmem:[#allocation13_spill] sm:$0xff]  ;;  %v7060_v56 = vld [vmem:[#allocation23_spill] sm:$0xff]  ;;  %v7061_v1 = vld [vmem:[#allocation26_spill] sm:$0xff] }
 0x14d   : > { %7049 = vst [vmem:[#allocation99_spill] sm:$0xff] %v5574_v49  ;;  %v1087_v51 = vsub.f32 %v1085_v17, %v7057_v48  ;;  %v979_v43 = vmul.f32 %v5123_v22, %v4814_v28  ;;  %v980_v32 = vmul.f32 %v5128_v29, %v4816_v18  ;;  %v2312_v4 = vmul.f32 %v7060_v56, %v4792_v12  ;;  %v7062_v17 = vld [vmem:[#allocation58_spill] sm:$0xff] }
 0x14e   : > { %7052 = vst [vmem:[#allocation56_spill] sm:$0xff] %v5581_v30  ;;  %1006 = vadd.xlane.f32.xlu1 %v7054_v21  ;;  %v2172_v21 = vmul.f32 %v5540_v53, %v4810_v31  ;;  %v5604_v54 = vadd.f32 %v2010_v59, %v2009_v55  ;;  %v2182_v22 = vmul.f32 %v5535_v2, %v4847_v36  ;;  %v7063_v55 = vld [vmem:[#allocation59_spill] sm:$0xff]  ;;  %v7078_v57 = vld [vmem:[#allocation62_spill] sm:$0xff] }
 0x14f   : > { %7053 = vst [vmem:[#allocation53_spill] sm:$0xff] %v5583_v42  ;;  %949 = vadd.xlane.f32.xlu2 %v948_v13  ;;  %v2313_v13 = vmul.f32 %v7061_v1, %v4798_v26  ;;  %v5615_v42 = vmul.f32 3.9633274, %v1087_v51  ;;  %v2183_v29 = vmul.f32 %v5540_v53, %v4849_v33  ;;  %v981_v59 = vadd.f32 %v980_v32, %v979_v43 }
 0x150   : > { %7055 = vst [vmem:[#allocation57_spill] sm:$0xff] %v5588_v23  ;;  %v5606_v3 = vadd.f32 %v2172_v21, %v2171_v50  ;;  %v5613_v23 = vmul.f32 3.9633274, %v1086_v14  ;;  %v2193_v21 = vmul.f32 %v5535_v2, %v4814_v28  ;;  %v2194_v14 = vmul.f32 %v5540_v53, %v4816_v18 }
 0x151   : > { %7058 = vst [vmem:[#allocation100_spill] sm:$0xff] %v5604_v54  ;;  %v5622_v50 = vadd.f32 %v2313_v13, %v2312_v4  ;;  %v2321_v32 = vmul.f32 %v7060_v56, %v4788_v25  ;;  %v2322_v13 = vmul.f32 %v7061_v1, %v4790_v39  ;;  %v2160_v49 = vmul.f32 %v5535_v2, %v4836_v37 }
 0x152   : > { %7059 = vst [vmem:[#allocation101_spill] sm:$0xff] %v5606_v3  ;;  %v1099_v51 = vmul.f32 %v5613_v23, %v4788_v25  ;;  %v5632_v3 = vadd.f32 %v2183_v29, %v2182_v22  ;;  %v5636_v43 = vadd.f32 %v2194_v14, %v2193_v21  ;;  %v7071_v14 = vld [vmem:[#allocation60_spill] sm:$0xff]  ;;  %v1110_v30 = vmul.f32 %v5613_v23, %v4794_v16 }
 0x153   : > { %1061 = vadd.xlane.f32.xlu0 %v7062_v17  ;;  %7064 = vst [vmem:[#allocation23_spill] sm:$0xff] %v5622_v50  ;;  %v1100_v17 = vmul.f32 %v5615_v42, %v4790_v39  ;;  %v5648_v29 = vadd.f32 %v2322_v13, %v2321_v32  ;;  %v2161_v27 = vmul.f32 %v5540_v53, %v4845_v24 }
 0x154   : > { %7065 = vst [vmem:[#allocation26_spill] sm:$0xff] %v5632_v3  ;;  %v2343_v60 = vmul.f32 %v7060_v56, %v4819_v19  ;;  %v2400_v52 = vadd.f32 %v7056_v9, %v4691_v62 }
 0x155   : > { %v5634_v54 = vpop.xlane.xlu0 %567  ;;  %7067 = vst [vmem:[#allocation59_spill] sm:$0xff] %v5636_v43  ;;  %v1101_v22 = vadd.f32 %v1100_v17, %v1099_v51  ;;  %v7072_v43 = vld [vmem:[#allocation61_spill] sm:$0xff]  ;;  %v1111_v51 = vmul.f32 %v5615_v42, %v4796_v20  ;;  %v7074_v17 = vld [vmem:[#allocation15_spill] sm:$0xff] }
 0x156   : > { %1039 = vadd.xlane.f32.xlu1 %v7063_v55  ;;  %7066 = vst [vmem:[#allocation58_spill] sm:$0xff] %v5634_v54  ;;  %v2149_v55 = vmul.f32 %v5535_v2, %v4819_v19  ;;  %v2208_v32 = vmul.f32 6.0, %v7074_v17  ;;  %v2344_v2 = vmul.f32 %v7061_v1, %v4821_v46  ;;  %v1132_v54 = vmul.f32 %v5613_v23, %v4836_v37 }
 0x157   : > { %982 = vadd.xlane.f32.xlu2 %v981_v59  ;;  %v5640_v4 = vpop.xlane.xlu1 %556  ;;  %7069 = vst [vmem:[#allocation103_spill] sm:$0xff] %v5648_v29  ;;  %v2150_v59 = vmul.f32 %v5540_v53, %v4821_v46  ;;  %v7076_v29 = vld [vmem:[#allocation17_spill] sm:$0xff]  ;;  %v1090_v53 = vmul.f32 %v5613_v23, %v4792_v12 }
 0x159   : > { %v5646_v50 = vpop.xlane.xlu2 %547  ;;  %v5652_v21 = vadd.f32 %v2150_v59, %v2149_v55  ;;  %v2332_v59 = vmul.f32 %v7060_v56, %v4794_v16 }
 0x15a   : > { %7068 = vst [vmem:[#allocation102_spill] sm:$0xff] %v5646_v50 }
 0x15b   : > { %1102 = vadd.xlane.f32.xlu0 %v1101_v22  ;;  %7070 = vst [vmem:[#allocation104_spill] sm:$0xff] %v5652_v21  ;;  %v2209_v22 = vmul.f32 6.0, %v7076_v29  ;;  %v2210_v21 = vsub.f32 %v2208_v32, %v4691_v62  ;;  %v1122_v32 = vmul.f32 %v5615_v42, %v4821_v46 }
 0x15d   : > { %v5656_v3 = vpop.xlane.xlu0 %622  ;;  %v2211_v10 = vsub.f32 %v2209_v22, %v4699_v0  ;;  %v5695_v22 = vadd.f32 %v2161_v27, %v2160_v49  ;;  %v2401_v27 = vadd.f32 %v7057_v48, %v4699_v0 }
 0x15e   : > { %1072 = vadd.xlane.f32.xlu1 %v7071_v14  ;;  %7073 = vst [vmem:[#allocation60_spill] sm:$0xff] %v5656_v3  ;;  %v1112_v14 = vadd.f32 %v1111_v51, %v1110_v30  ;;  %v1154_v30 = vmul.f32 %v5613_v23, %v4847_v36  ;;  %v1155_v51 = vmul.f32 %v5615_v42, %v4849_v33 }
 0x15f   : > { %1017 = vadd.xlane.f32.xlu2 %v7072_v43  ;;  %v5663_v13 = vpop.xlane.xlu1 %600  ;;  %v2333_v43 = vmul.f32 %v7061_v1, %v4796_v20  ;;  %7080 = vst [vmem:[#allocation62_spill] sm:$0xff] %v5695_v22  ;;  %v5705_v3 = vadd.f32 %v2344_v2, %v2343_v60  ;;  %v2213_v15 = vsub.f32 %v2211_v10, %v7057_v48  ;;  %v2206_v22 = vmul.f32 11.889982, %v4957_v35 }
 0x160   : > { %7075 = vst [vmem:[#allocation61_spill] sm:$0xff] %v5663_v13  ;;  %v1156_v49 = vadd.f32 %v1155_v51, %v1154_v30  ;;  %v2207_v60 = vmul.f32 11.889982, %v4969_v38  ;;  %v2365_v2 = vmul.f32 %v7060_v56, %v4808_v7  ;;  %v2366_v10 = vmul.f32 %v7061_v1, %v4810_v31 }
 0x161   : > { %v5666_v55 = vpop.xlane.xlu2 %578  ;;  %v5677_v6 = vadd.f32 %v2333_v43, %v2332_v59  ;;  %v7081_v59 = vld [vmem:[#allocation20_spill] sm:$0xff]  ;;  %7083 = vst [vmem:[#allocation105_spill] sm:$0xff] %v5705_v3  ;;  %v2403_v62 = vmul.f32 3.0, %v2401_v27  ;;  %v2354_v38 = vmul.f32 %v7060_v56, %v4836_v37  ;;  %v2406_v35 = vmul.f32 8.0, %v7074_v17 }
 0x162   : > { %7077 = vst [vmem:[#allocation15_spill] sm:$0xff] %v5666_v55  ;;  %v5726_v0 = vmul.f32 %v2213_v15, %v2207_v60  ;;  %v5728_v3 = vadd.f32 %v2366_v10, %v2365_v2 }
 0x163   : > { %1192 = vadd.xlane.f32.xlu0 %v7078_v57  ;;  %7079 = vst [vmem:[#allocation17_spill] sm:$0xff] %v5677_v6  ;;  %v1121_v57 = vmul.f32 %v5613_v23, %v4819_v19  ;;  %v2212_v6 = vsub.f32 %v2210_v21, %v7056_v9  ;;  %v1282_v21 = vmul.f32 %v5218_v61, %v4790_v39  ;;  %v2402_v9 = vmul.f32 3.0, %v2400_v52 }
 0x164   : > { %7087 = vst [vmem:[#allocation109_spill] sm:$0xff] %v5726_v0  ;;  %v2292_v60 = vmul.f32 %v5726_v0, %v4816_v18  ;;  %v2387_v0 = vmul.f32 %v7060_v56, %v4814_v28 }
 0x165   : > { %v5698_v43 = vpop.xlane.xlu0 %657  ;;  %v1123_v48 = vadd.f32 %v1122_v32, %v1121_v57  ;;  %v5724_v51 = vmul.f32 %v2212_v6, %v2206_v22  ;;  %7088 = vst [vmem:[#allocation110_spill] sm:$0xff] %v5728_v3  ;;  %v7089_v57 = vld [vmem:[#allocation24_spill] sm:$0xff]  ;;  %v2404_v10 = vmul.f32 %v2402_v9, %v2400_v52  ;;  %v2376_v9 = vmul.f32 %v7060_v56, %v4847_v36 }
 0x166   : > { %1113 = vadd.xlane.f32.xlu1 %v1112_v14  ;;  %7082 = vst [vmem:[#allocation20_spill] sm:$0xff] %v5698_v43  ;;  %v1091_v14 = vmul.f32 %v5615_v42, %v4798_v26  ;;  %v2512_v32 = vmul.f32 %v7089_v57, %v4792_v12  ;;  %v1133_v56 = vmul.f32 %v5615_v42, %v4845_v24 }
 0x167   : > { %1050 = vadd.xlane.f32.xlu2 %v7081_v59  ;;  %v5707_v47 = vpop.xlane.xlu1 %637  ;;  %v1281_v59 = vmul.f32 %v5208_v8, %v4788_v25  ;;  %7086 = vst [vmem:[#allocation108_spill] sm:$0xff] %v5724_v51 }
 0x168   : > { %7084 = vst [vmem:[#allocation106_spill] sm:$0xff] %v5707_v47  ;;  %v1092_v30 = vadd.f32 %v1091_v14, %v1090_v53  ;;  %v7090_v53 = vld [vmem:[#allocation27_spill] sm:$0xff]  ;;  %v2407_v14 = vmul.f32 8.0, %v7076_v29  ;;  %v2405_v47 = vmul.f32 %v2403_v62, %v2401_v27  ;;  %v2413_v62 = vmul.f32 24.0, %v7076_v29 }
 0x169   : > { %v5715_v13 = vpop.xlane.xlu2 %589  ;;  %v2513_v22 = vmul.f32 %v7090_v53, %v4798_v26  ;;  %v1283_v2 = vadd.f32 %v1282_v21, %v1281_v59  ;;  %v2412_v59 = vmul.f32 24.0, %v7074_v17 }
 0x16a   : > { %7085 = vst [vmem:[#allocation107_spill] sm:$0xff] %v5715_v13  ;;  %v2355_v13 = vmul.f32 %v7061_v1, %v4845_v24  ;;  %v2409_v21 = vmul.f32 %v2407_v14, %v7076_v29 }
 0x16b   : > { %1157 = vadd.xlane.f32.xlu0 %v1156_v49  ;;  %v2291_v49 = vmul.f32 %v5724_v51, %v4814_v28  ;;  %v5748_v43 = vadd.f32 %v2513_v22, %v2512_v32  ;;  %v2377_v32 = vmul.f32 %v7061_v1, %v4849_v33  ;;  %v2600_v22 = vmul.f32 5.944991, %v4973_v41  ;;  %v7147_v51 = vld [vmem:[#allocation75_spill] sm:$0xff] }
 0x16c   : > { %v5746_v3 = vadd.f32 %v2355_v13, %v2354_v38  ;;  %v2388_v38 = vmul.f32 %v7061_v1, %v4816_v18  ;;  %v2411_v14 = vadd.f32 %v2409_v21, %v2405_v47  ;;  %v2414_v1 = vmul.f32 %v2412_v59, %v2400_v52 }
 0x16d   : > { %7092 = vst [vmem:[#allocation27_spill] sm:$0xff] %v5748_v43  ;;  %v5754_v50 = vadd.f32 %v2292_v60, %v2291_v49  ;;  %v2521_v60 = vmul.f32 %v7089_v57, %v4788_v25  ;;  %v5780_v29 = vmul.f32 %v2600_v22, %v2212_v6  ;;  %v1292_v22 = vmul.f32 %v5208_v8, %v4794_v16 }
 0x16e   : > { %1124 = vadd.xlane.f32.xlu1 %v1123_v48  ;;  %v5744_v48 = vpop.xlane.xlu0 %690  ;;  %7091 = vst [vmem:[#allocation24_spill] sm:$0xff] %v5746_v3  ;;  %v5771_v49 = vadd.f32 %v2388_v38, %v2387_v0  ;;  %v1143_v0 = vmul.f32 %v5613_v23, %v4808_v7  ;;  %v2415_v38 = vmul.f32 %v2413_v62, %v2401_v27 }
 0x16f   : > { %1093 = vadd.xlane.f32.xlu2 %v1092_v30  ;;  %v5750_v55 = vpop.xlane.xlu1 %668  ;;  %7093 = vst [vmem:[#allocation111_spill] sm:$0xff] %v5754_v50  ;;  %v2408_v30 = vmul.f32 %v2406_v35, %v7074_v17  ;;  %v2601_v17 = vmul.f32 5.944991, %v4977_v11  ;;  %v5778_v50 = vadd.f32 %v2377_v32, %v2376_v9  ;;  %v2604_v47 = vmul.f32 %v5780_v29, %v4792_v12 }
 0x170   : > { %7094 = vst [vmem:[#allocation112_spill] sm:$0xff] %v5771_v49  ;;  %v2613_v6 = vmul.f32 %v5780_v29, %v4788_v25  ;;  %v2417_v62 = vsub.f32 %v2411_v14, %v2415_v38  ;;  %v1134_v32 = vadd.f32 %v1133_v56, %v1132_v54  ;;  %v2543_v14 = vmul.f32 %v7089_v57, %v4819_v19 }
 0x171   : > { %v5764_v13 = vpop.xlane.xlu2 %611  ;;  %v2410_v35 = vadd.f32 %v2408_v30, %v2404_v10  ;;  %7095 = vst [vmem:[#allocation113_spill] sm:$0xff] %v5778_v50  ;;  %v5785_v10 = vmul.f32 %v2601_v17, %v2213_v15  ;;  %v2522_v30 = vmul.f32 %v7090_v53, %v4790_v39  ;;  %v2544_v56 = vmul.f32 %v7090_v53, %v4821_v46 }
 0x172   : > { %v2532_v38 = vmul.f32 %v7089_v57, %v4794_v16  ;;  %v2624_v50 = vmul.f32 %v5780_v29, %v4794_v16  ;;  %v2566_v49 = vmul.f32 %v7090_v53, %v4810_v31 }
 0x173   : > { %1284 = vadd.xlane.f32.xlu0 %v1283_v2  ;;  %v1144_v2 = vmul.f32 %v5615_v42, %v4810_v31  ;;  %v2416_v52 = vsub.f32 %v2410_v35, %v2414_v1  ;;  %v2605_v15 = vmul.f32 %v5785_v10, %v4798_v26  ;;  %v5800_v59 = vadd.f32 %v2522_v30, %v2521_v60 }
 0x174   : > { %v2614_v21 = vmul.f32 %v5785_v10, %v4790_v39  ;;  %v2576_v60 = vmul.f32 %v7089_v57, %v4847_v36  ;;  %v2577_v30 = vmul.f32 %v7090_v53, %v4849_v33 }
 0x175   : > { %v5808_v17 = vadd.f32 %v2605_v15, %v2604_v47  ;;  %v1145_v1 = vadd.f32 %v1144_v2, %v1143_v0  ;;  %v5820_v54 = vmul.f32 1.3293403, %v2416_v52  ;;  %v2533_v0 = vmul.f32 %v7090_v53, %v4796_v20  ;;  %v7101_v2 = vld [vmem:[#allocation18_spill] sm:$0xff]  ;;  %v7104_v15 = vld [vmem:[#allocation25_spill] sm:$0xff]  ;;  %v7105_v52 = vld [vmem:[#allocation28_spill] sm:$0xff] }
 0x176   : > { %1203 = vadd.xlane.f32.xlu1 %v5098_v45  ;;  %v7096_v45 = vld [vmem:[#allocation40_spill] sm:$0xff]  ;;  %v5796_v9 = vpop.xlane.xlu0 %727  ;;  %v5829_v47 = vmul.f32 1.3293403, %v2417_v62  ;;  %v2625_v62 = vmul.f32 %v5785_v10, %v4796_v20  ;;  %v2696_v3 = vmul.f32 %v7104_v15, %v4792_v12 }
 0x177   : > { %1183 = vadd.xlane.f32.xlu2 %v7096_v45  ;;  %7097 = vst [vmem:[#allocation40_spill] sm:$0xff] %v5800_v59  ;;  %v5804_v27 = vpop.xlane.xlu1 %701  ;;  %v5810_v45 = vadd.f32 %v2614_v21, %v2613_v6  ;;  %v5831_v6 = vadd.f32 %v2577_v30, %v2576_v60  ;;  %v2705_v21 = vmul.f32 %v7104_v15, %v4788_v25 }
 0x178   : > { %7098 = vst [vmem:[#allocation114_spill] sm:$0xff] %v5808_v17  ;;  %v5837_v59 = vadd.f32 %v2544_v56, %v2543_v14  ;;  %v5839_v17 = vadd.f32 %v2533_v0, %v2532_v38  ;;  %v1293_v60 = vmul.f32 %v5218_v61, %v4796_v20  ;;  %v5855_v56 = vadd.f32 %v2625_v62, %v2624_v50 }
 0x179   : > { %7099 = vst [vmem:[#allocation115_spill] sm:$0xff] %v5810_v45  ;;  %v5812_v35 = vpop.xlane.xlu2 %646  ;;  %v2706_v45 = vmul.f32 %v7105_v52, %v4790_v39  ;;  %v2635_v38 = vmul.f32 %v5780_v29, %v4819_v19  ;;  %v2636_v0 = vmul.f32 %v5785_v10, %v4821_v46  ;;  %v2554_v50 = vmul.f32 %v7089_v57, %v4836_v37 }
 0x17a   : > { %7100 = vst [vmem:[#allocation116_spill] sm:$0xff] %v5820_v54 }
 0x17b   : > { %1214 = vadd.xlane.f32.xlu0 %v7101_v2  ;;  %7102 = vst [vmem:[#allocation18_spill] sm:$0xff] %v5829_v47  ;;  %v5847_v30 = vadd.f32 %v2706_v45, %v2705_v21  ;;  %v2462_v2 = vmul.f32 %v5820_v54, %v4836_v37  ;;  %v1272_v45 = vmul.f32 %v5208_v8, %v4792_v12 }
 0x17c   : > { %7103 = vst [vmem:[#allocation117_spill] sm:$0xff] %v5831_v6  ;;  %v1273_v21 = vmul.f32 %v5218_v61, %v4798_v26  ;;  %v2565_v6 = vmul.f32 %v7089_v57, %v4808_v7 }
 0x17d   : > { %7106 = vst [vmem:[#allocation25_spill] sm:$0xff] %v5837_v59  ;;  %v2555_v59 = vmul.f32 %v7090_v53, %v4845_v24 }
 0x17e   : > { %1135 = vadd.xlane.f32.xlu1 %v1134_v32  ;;  %7107 = vst [vmem:[#allocation28_spill] sm:$0xff] %v5839_v17  ;;  %v2463_v32 = vmul.f32 %v5829_v47, %v4845_v24  ;;  %v5853_v14 = vpop.xlane.xlu0 %758  ;;  %v2697_v47 = vmul.f32 %v7105_v52, %v4798_v26 }
 0x17f   : > { %7108 = vst [vmem:[#allocation118_spill] sm:$0xff] %v5847_v30  ;;  %1146 = vadd.xlane.f32.xlu2 %v1145_v1  ;;  %v5861_v17 = vpop.xlane.xlu1 %736  ;;  %v5869_v1 = vadd.f32 %v2636_v0, %v2635_v38  ;;  %v2657_v38 = vmul.f32 %v5780_v29, %v4808_v7  ;;  %v5889_v0 = vadd.f32 %v2566_v49, %v2565_v6 }
 0x180   : > { %7109 = vst [vmem:[#allocation119_spill] sm:$0xff] %v5855_v56  ;;  %v5867_v30 = vadd.f32 %v2463_v32, %v2462_v2  ;;  %v1294_v56 = vadd.f32 %v1293_v60, %v1292_v22  ;;  %v2716_v2 = vmul.f32 %v7104_v15, %v4794_v16  ;;  %v2717_v32 = vmul.f32 %v7105_v52, %v4796_v20  ;;  %v7153_v20 = vld [vmem:[#allocation77_spill] sm:$0xff] }
 0x181   : > { %7111 = vst [vmem:[#allocation121_spill] sm:$0xff] %v5869_v1  ;;  %v5873_v62 = vpop.xlane.xlu2 %679  ;;  %v1274_v22 = vadd.f32 %v1273_v21, %v1272_v45  ;;  %v5887_v60 = vadd.f32 %v2555_v59, %v2554_v50  ;;  %v2658_v1 = vmul.f32 %v5785_v10, %v4810_v31  ;;  %v2647_v49 = vmul.f32 %v5785_v10, %v4845_v24 }
 0x182   : > { %7110 = vst [vmem:[#allocation120_spill] sm:$0xff] %v5867_v30  ;;  %v7114_v30 = vld [vmem:[#allocation19_spill] sm:$0xff]  ;;  %v5894_v43 = vadd.f32 %v2717_v32, %v2716_v2  ;;  %v1165_v50 = vmul.f32 %v5613_v23, %v4814_v28  ;;  %v1166_v2 = vmul.f32 %v5615_v42, %v4816_v18  ;;  %v2587_v32 = vmul.f32 %v7089_v57, %v4814_v28 }
 0x183   : > { %1295 = vadd.xlane.f32.xlu0 %v1294_v56  ;;  %7112 = vst [vmem:[#allocation122_spill] sm:$0xff] %v5887_v60  ;;  %v2646_v56 = vmul.f32 %v5780_v29, %v4836_v37  ;;  %v5902_v59 = vadd.f32 %v2658_v1, %v2657_v38  ;;  %v2588_v38 = vmul.f32 %v7090_v53, %v4816_v18 }
 0x184   : > { %7113 = vst [vmem:[#allocation123_spill] sm:$0xff] %v5889_v0  ;;  %v2750_v23 = vmul.f32 %v7105_v52, %v4810_v31  ;;  %v2679_v42 = vmul.f32 %v5780_v29, %v4814_v28  ;;  %v1325_v57 = vmul.f32 %v5208_v8, %v4808_v7  ;;  %v2680_v53 = vmul.f32 %v5785_v10, %v4816_v18 }
 0x185   : > { %7115 = vst [vmem:[#allocation19_spill] sm:$0xff] %v5894_v43  ;;  %v5912_v21 = vadd.f32 %v2647_v49, %v2646_v56  ;;  %v1326_v56 = vmul.f32 %v5218_v61, %v4810_v31 }
 0x186   : > { %1236 = vadd.xlane.f32.xlu1 %v7114_v30  ;;  %7116 = vst [vmem:[#allocation124_spill] sm:$0xff] %v5902_v59  ;;  %v5906_v6 = vpop.xlane.xlu0 %791  ;;  %v5908_v30 = vadd.f32 %v2697_v47, %v2696_v3  ;;  %v2749_v3 = vmul.f32 %v7104_v15, %v4808_v7  ;;  %v5927_v47 = vadd.f32 %v2588_v38, %v2587_v32  ;;  %v7140_v59 = vld [vmem:[#allocation73_spill] sm:$0xff]  ;;  %v7152_v7 = vld [vmem:[#allocation107_spill] sm:$0xff] }
 0x187   : > { %1275 = vadd.xlane.f32.xlu2 %v1274_v22  ;;  %v5910_v45 = vpop.xlane.xlu1 %769  ;;  %7118 = vst [vmem:[#allocation126_spill] sm:$0xff] %v5912_v21  ;;  %v1167_v22 = vadd.f32 %v1166_v2, %v1165_v50  ;;  %v2669_v32 = vmul.f32 %v5785_v10, %v4849_v33  ;;  %v5950_v2 = vadd.f32 %v2680_v53, %v2679_v42  ;;  %v7125_v53 = vld [vmem:[#allocation41_spill] sm:$0xff] }
 0x188   : > { %7117 = vst [vmem:[#allocation125_spill] sm:$0xff] %v5908_v30  ;;  %v5942_v49 = vadd.f32 %v2750_v23, %v2749_v3  ;;  %v1327_v23 = vadd.f32 %v1326_v56, %v1325_v57  ;;  %v2760_v10 = vmul.f32 %v7104_v15, %v4847_v36  ;;  %v2727_v57 = vmul.f32 %v7104_v15, %v4819_v19  ;;  %v7134_v30 = vld [vmem:[#allocation43_spill] sm:$0xff] }
 0x189   : > { %v5918_v1 = vpop.xlane.xlu2 %712  ;;  %7119 = vst [vmem:[#allocation127_spill] sm:$0xff] %v5927_v47  ;;  %v2728_v56 = vmul.f32 %v7105_v52, %v4821_v46 }
 0x18a   : > { %7120 = vst [vmem:[#allocation128_spill] sm:$0xff] %v5942_v49 }
 0x18b   : > { %1225 = vadd.xlane.f32.xlu0 %v5149_v40  ;;  %v2668_v40 = vmul.f32 %v5780_v29, %v4847_v36  ;;  %7121 = vst [vmem:[#allocation129_spill] sm:$0xff] %v5950_v2  ;;  %v2739_v29 = vmul.f32 %v7105_v52, %v4845_v24  ;;  %v7130_v2 = vld [vmem:[#allocation64_spill] sm:$0xff] }
 0x18d   : > { %v5954_v47 = vadd.f32 %v2669_v32, %v2668_v40  ;;  %v2771_v40 = vmul.f32 %v7104_v15, %v4814_v28  ;;  %v2772_v32 = vmul.f32 %v7105_v52, %v4816_v18 }
 0x18e   : > { %1371 = vadd.xlane.f32.xlu1 %v5152_v5  ;;  %v2738_v5 = vmul.f32 %v7104_v15, %v4836_v37  ;;  %v5948_v50 = vpop.xlane.xlu0 %826 }
 0x18f   : > { %1168 = vadd.xlane.f32.xlu2 %v1167_v22  ;;  %v5952_v38 = vpop.xlane.xlu1 %802  ;;  %7122 = vst [vmem:[#allocation130_spill] sm:$0xff] %v5954_v47  ;;  %v2761_v22 = vmul.f32 %v7105_v52, %v4849_v33  ;;  %v7129_v52 = vld [vmem:[#allocation63_spill] sm:$0xff]  ;;  %v1348_v47 = vmul.f32 %v5218_v61, %v4816_v18  ;;  %v7146_v18 = vld [vmem:[#allocation106_spill] sm:$0xff] }
 0x190   : > { %v5960_v49 = vadd.f32 %v2739_v29, %v2738_v5  ;;  %v7126_v5 = vld [vmem:[#allocation42_spill] sm:$0xff] }
 0x191   : > { %v5958_v3 = vpop.xlane.xlu2 %747  ;;  %v5966_v42 = vadd.f32 %v2761_v22, %v2760_v10  ;;  %v1337_v10 = vmul.f32 %v5218_v61, %v4849_v33 }
 0x192   : > { %7123 = vst [vmem:[#allocation131_spill] sm:$0xff] %v5960_v49 }
 0x193   : > { %1328 = vadd.xlane.f32.xlu0 %v1327_v23  ;;  %7124 = vst [vmem:[#allocation132_spill] sm:$0xff] %v5966_v42  ;;  %v1336_v23 = vmul.f32 %v5208_v8, %v4847_v36  ;;  %v5988_v42 = vadd.f32 %v2728_v56, %v2727_v57  ;;  %v1304_v57 = vmul.f32 %v5218_v61, %v4821_v46  ;;  %v7145_v36 = vld [vmem:[#allocation74_spill] sm:$0xff] }
 0x195   : > { %7128 = vst [vmem:[#allocation42_spill] sm:$0xff] %v5988_v42  ;;  %v1338_v49 = vadd.f32 %v1337_v10, %v1336_v23  ;;  %v7131_v23 = vld [vmem:[#allocation65_spill] sm:$0xff] }
 0x196   : > { %1258 = vadd.xlane.f32.xlu1 %v7125_v53  ;;  %v5978_v29 = vpop.xlane.xlu0 %859  ;;  %v5986_v53 = vadd.f32 %v2772_v32, %v2771_v40  ;;  %v1303_v32 = vmul.f32 %v5208_v8, %v4819_v19 }
 0x197   : > { %1247 = vadd.xlane.f32.xlu2 %v7126_v5  ;;  %v1347_v5 = vmul.f32 %v5208_v8, %v4814_v28  ;;  %v7133_v8 = vld [vmem:[#allocation67_spill] sm:$0xff] }
 0x198   : > { %7127 = vst [vmem:[#allocation41_spill] sm:$0xff] %v5986_v53  ;;  %v1305_v10 = vadd.f32 %v1304_v57, %v1303_v32  ;;  %v7132_v53 = vld [vmem:[#allocation66_spill] sm:$0xff]  ;;  %v7135_v32 = vld [vmem:[#allocation68_spill] sm:$0xff]  ;;  %v7136_v57 = vld [vmem:[#allocation69_spill] sm:$0xff] }
 0x199   : > { %v5984_v22 = vpop.xlane.xlu1 %837  ;;  %v5990_v15 = vpop.xlane.xlu2 %780 }
 0x19b   : > { %1463 = vadd.xlane.f32.xlu0 %v7129_v52 }
 0x19e   : > { %1339 = vadd.xlane.f32.xlu1 %v1338_v49  ;;  %v5998_v21 = vpop.xlane.xlu0 %892  ;;  %v1349_v49 = vadd.f32 %v1348_v47, %v1347_v5 }
 0x19f   : > { %1380 = vadd.xlane.f32.xlu2 %v7130_v2 }
 0x1a1   : > { %v6000_v40 = vpop.xlane.xlu1 %870  ;;  %v6006_v56 = vpop.xlane.xlu2 %817 }
 0x1a3   : > { %1350 = vadd.xlane.f32.xlu0 %v1349_v49  ;;  %v7137_v49 = vld [vmem:[#allocation70_spill] sm:$0xff] }
 0x1a6   : > { %1472 = vadd.xlane.f32.xlu1 %v7131_v23  ;;  %v6009_v52 = vpop.xlane.xlu0 %927 }
 0x1a7   : > { %1306 = vadd.xlane.f32.xlu2 %v1305_v10 }
 0x1a9   : > { %v6011_v2 = vpop.xlane.xlu1 %907  ;;  %v6013_v42 = vpop.xlane.xlu2 %848 }
 0x1ab   : > { %1435 = vadd.xlane.f32.xlu0 %v7132_v53 }
 0x1ae   : > { %1402 = vadd.xlane.f32.xlu1 %v7133_v8  ;;  %v6018_v61 = vpop.xlane.xlu0 %960  ;;  %v7138_v8 = vld [vmem:[#allocation71_spill] sm:$0xff] }
 0x1af   : > { %1391 = vadd.xlane.f32.xlu2 %v7134_v30  ;;  %v7139_v30 = vld [vmem:[#allocation72_spill] sm:$0xff] }
 0x1b1   : > { %v6020_v47 = vpop.xlane.xlu1 %938  ;;  %v6022_v5 = vpop.xlane.xlu2 %881 }
 0x1b3   : > { %1570 = vadd.xlane.f32.xlu0 %v7135_v32 }
 0x1b6   : > { %1483 = vadd.xlane.f32.xlu1 %v7136_v57  ;;  %v6027_v23 = vpop.xlane.xlu0 %997  ;;  %v7141_v57 = vld [vmem:[#allocation44_spill] sm:$0xff] }
 0x1b7   : > { %1317 = vadd.xlane.f32.xlu2 %v7137_v49 }
 0x1b9   : > { %v6029_v10 = vpop.xlane.xlu1 %971 }
 0x1ba   : > { %v6031_v53 = vpop.xlane.xlu2 %916 }
 0x1bb   : > { %1494 = vadd.xlane.f32.xlu0 %v7138_v8  ;;  %v529_v8 = vlaneseq }
 0x1bd   : > { %v6053_v54 = vand.u32 127, %v529_v8 }
 0x1be   : > { %1413 = vadd.xlane.f32.xlu1 %v7139_v30  ;;  %v6036_v43 = vpop.xlane.xlu0 %1028 }
 0x1bf   : > { %1424 = vadd.xlane.f32.xlu2 %v7140_v59  ;;  %v7142_v59 = vld [vmem:[#allocation45_spill] sm:$0xff]  ;;  %vm558_vm12 = vcmp.eq.s32.totalorder %v6053_v54, 25  ;;  %vm549_vm13 = vcmp.eq.s32.totalorder %v6053_v54, 0  ;;  %vm648_vm14 = vcmp.eq.s32.totalorder %v6053_v54, 26  ;;  %vm639_vm15 = vcmp.eq.s32.totalorder %v6053_v54, 1 }
 0x1c0   : > { %v560_v8 = vsel %vm558_vm12, %v5640_v4, 0.0  ;;  %v650_v33 = vsel %vm648_vm14, %v5812_v35, 0.0  ;;  %vm569_vm0 = vcmp.eq.s32.totalorder %v6053_v54, 50  ;;  %v641_v28 = vsel %vm639_vm15, %v7146_v18, 0.0  ;;  %v7148_v18 = vld [vmem:[#allocation58_spill] sm:$0xff]  ;;  %v7149_v35 = vld [vmem:[#allocation15_spill] sm:$0xff] }
 0x1c1   : > { %v6038_v0 = vpop.xlane.xlu1 %1006  ;;  %vm580_vm1 = vcmp.eq.s32.totalorder %v6053_v54, 75  ;;  %vm659_vm2 = vcmp.eq.s32.totalorder %v6053_v54, 51  ;;  %v652_v4 = vadd.f32 %v650_v33, %v641_v28  ;;  %vm591_vm3 = vcmp.eq.s32.totalorder %v6053_v54, 100  ;;  %v7151_v33 = vld [vmem:[#allocation76_spill] sm:$0xff] }
 0x1c2   : > { %v6040_v32 = vpop.xlane.xlu2 %949  ;;  %vm670_vm4 = vcmp.eq.s32.totalorder %v6053_v54, 76  ;;  %vm738_vm5 = vcmp.eq.s32.totalorder %v6053_v54, 27  ;;  %vm729_vm6 = vcmp.eq.s32.totalorder %v6053_v54, 2  ;;  %vm681_vm7 = vcmp.eq.s32.totalorder %v6053_v54, 101 }
 0x1c3   : > { %1581 = vadd.xlane.f32.xlu0 %v7141_v57  ;;  %vm749_vm8 = vcmp.eq.s32.totalorder %v6053_v54, 52  ;;  %v593_v46 = vsel %vm591_vm3, %v7152_v7, 0.0  ;;  %v740_v19 = vsel %vm738_vm5, %v5861_v17, 0.0  ;;  %vm602_vm9 = vcmp.eq.s32.totalorder %v6053_v54, 125 }
 0x1c4   : > { %vm819_vm10 = vcmp.eq.s32.totalorder %v6053_v54, 3  ;;  %vm692_vm11 = vcmp.eq.s32.totalorder %v6053_v54, 126  ;;  %vm760_vm12 = vcmp.eq.s32.totalorder %v6053_v54, 77  ;;  %vm1095_vm14 = vcmp.eq.s32.totalorder %v6053_v54, 6 }
 0x1c5   : > { %vm771_vm15 = vcmp.eq.s32.totalorder %v6053_v54, 102  ;;  %vm929_vm3 = vcmp.eq.s32.totalorder %v6053_v54, 54  ;;  %vm1194_vm5 = vcmp.eq.s32.totalorder %v6053_v54, 32 }
 0x1c6   : > { %1516 = vadd.xlane.f32.xlu1 %v5294_v44  ;;  %v6045_v49 = vpop.xlane.xlu0 %1061 }
 0x1c7   : > { %1561 = vadd.xlane.f32.xlu2 %v5296_v58 }
 0x1c9   : > { %v6047_v60 = vpop.xlane.xlu1 %1039 }
 0x1ca   : > { %v6049_v30 = vpop.xlane.xlu2 %982 }
 0x1cb   : > { %1505 = vadd.xlane.f32.xlu0 %v5302_v34  ;;  %v7143_v34 = vld [vmem:[#allocation46_spill] sm:$0xff] }
 0x1ce   : > { %1659 = vadd.xlane.f32.xlu1 %v7142_v59  ;;  %v6056_v57 = vpop.xlane.xlu0 %1102  ;;  %v7144_v59 = vld [vmem:[#allocation102_spill] sm:$0xff] }
 0x1cf   : > { %1446 = vadd.xlane.f32.xlu2 %v5319_v63  ;;  %v551_v63 = vsel %vm549_vm13, %v7144_v59, 0.0  ;;  %v582_v59 = vsel %vm580_vm1, %v7149_v35, 0.0  ;;  %v751_v35 = vsel %vm749_vm8, %v5958_v3, 0.0  ;;  %vm828_vm13 = vcmp.eq.s32.totalorder %v6053_v54, 28 }
 0x1d0   : > { %v562_v37 = vadd.f32 %v560_v8, %v551_v63  ;;  %v7150_v8 = vld [vmem:[#allocation20_spill] sm:$0xff]  ;;  %v6113_v3 = vadd.s32 128, %v6053_v54  ;;  %vm839_vm1 = vcmp.eq.s32.totalorder %v6053_v54, 53 }
 0x1d1   : > { %v6058_v44 = vpop.xlane.xlu1 %1072  ;;  %v661_v63 = vsel %vm659_vm2, %v7150_v8, 0.0  ;;  %v7154_v8 = vld [vmem:[#allocation47_spill] sm:$0xff]  ;;  %vm782_vm2 = vcmp.eq.s32.totalorder %v6053_v54, 127 }
 0x1d2   : > { %v6063_v58 = vpop.xlane.xlu2 %1017  ;;  %v663_v28 = vadd.f32 %v661_v63, %v652_v4  ;;  %v731_v4 = vsel %vm729_vm6, %v5796_v9, 0.0  ;;  %vm1115_vm6 = vcmp.eq.s32.totalorder %v6053_v54, 56  ;;  %vm625_vm8 = vcmp.eq.s32.totalorder %v6113_v3, 175 }
 0x1d3   : > { %1614 = vadd.xlane.f32.xlu0 %v7143_v34  ;;  %v742_v63 = vadd.f32 %v740_v19, %v731_v4  ;;  %v7155_v19 = vld [vmem:[#allocation61_spill] sm:$0xff]  ;;  %v830_v4 = vsel %vm828_vm13, %v5948_v50, 0.0  ;;  %v7158_v50 = vld [vmem:[#allocation79_spill] sm:$0xff]  ;;  %vm704_vm13 = vcmp.eq.s32.totalorder %v6113_v3, 151 }
 0x1d5   : > { %v753_v9 = vadd.f32 %v751_v35, %v742_v63  ;;  %v7157_v35 = vld [vmem:[#allocation78_spill] sm:$0xff] }
 0x1d6   : > { %1538 = vadd.xlane.f32.xlu1 %v7145_v36  ;;  %v6074_v24 = vpop.xlane.xlu0 %1192 }
 0x1d7   : > { %1527 = vadd.xlane.f32.xlu2 %v7147_v51  ;;  %v571_v51 = vsel %vm569_vm0, %v7148_v18, 0.0  ;;  %vm1104_vm0 = vcmp.eq.s32.totalorder %v6053_v54, 31 }
 0x1d8   : > { %v573_v31 = vadd.f32 %v571_v51, %v562_v37  ;;  %v672_v37 = vsel %vm670_vm4, %v5750_v55, 0.0  ;;  %v683_v51 = vsel %vm681_vm7, %v5873_v62, 0.0  ;;  %vm909_vm4 = vcmp.eq.s32.totalorder %v6053_v54, 4 }
 0x1d9   : > { %v6078_v34 = vpop.xlane.xlu1 %1113  ;;  %vm1185_vm7 = vcmp.eq.s32.totalorder %v6053_v54, 7 }
 0x1da   : > { %v6083_v36 = vpop.xlane.xlu2 %1050  ;;  %v584_v18 = vadd.f32 %v582_v59, %v573_v31  ;;  %v821_v59 = vsel %vm819_vm10, %v6006_v56, 0.0  ;;  %vm850_vm10 = vcmp.eq.s32.totalorder %v6053_v54, 78 }
 0x1db   : > { %1751 = vadd.xlane.f32.xlu0 %v7151_v33  ;;  %v694_v33 = vsel %vm692_vm11, %v5744_v48, 0.0  ;;  %v832_v48 = vadd.f32 %v830_v4, %v821_v59  ;;  %vm999_vm11 = vcmp.eq.s32.totalorder %v6053_v54, 5  ;;  %v7160_v4 = vld [vmem:[#allocation80_spill] sm:$0xff] }
 0x1dc   : > { %v595_v17 = vadd.f32 %v593_v46, %v584_v18  ;;  %v604_v46 = vsel %vm602_vm9, %v7155_v19, 0.0  ;;  %v7156_v18 = vld [vmem:[#allocation48_spill] sm:$0xff]  ;;  %vm614_vm9 = vcmp.eq.s32.totalorder %v6113_v3, 150 }
 0x1de   : > { %1625 = vadd.xlane.f32.xlu1 %v7153_v20  ;;  %v6103_v7 = vpop.xlane.xlu0 %1157  ;;  %v674_v20 = vadd.f32 %v672_v37, %v663_v28  ;;  %v6119_v28 = vadd.f32 %v604_v46, %v595_v17  ;;  %v762_v37 = vsel %vm760_vm12, %v5853_v14, 0.0  ;;  %v773_v17 = vsel %vm771_vm15, %v5910_v45, 0.0 }
 0x1df   : > { %1668 = vadd.xlane.f32.xlu2 %v7154_v8  ;;  %v764_v8 = vadd.f32 %v762_v37, %v753_v9  ;;  %v1106_v14 = vsel %vm1104_vm0, %v6056_v57, 0.0  ;;  %v841_v45 = vsel %vm839_vm1, %v5984_v22, 0.0  ;;  %vm918_vm12 = vcmp.eq.s32.totalorder %v6053_v54, 29  ;;  %v7159_v37 = vld [vmem:[#allocation49_spill] sm:$0xff] }
 0x1e0   : > { %v685_v55 = vadd.f32 %v683_v51, %v674_v20  ;;  %v784_v9 = vsel %vm782_vm2, %v5990_v15, 0.0  ;;  %vm1008_vm15 = vcmp.eq.s32.totalorder %v6053_v54, 30  ;;  %vm861_vm0 = vcmp.eq.s32.totalorder %v6053_v54, 103 }
 0x1e1   : > { %v6106_v31 = vpop.xlane.xlu1 %1124  ;;  %v775_v57 = vadd.f32 %v773_v17, %v764_v8  ;;  %vm940_vm1 = vcmp.eq.s32.totalorder %v6053_v54, 79  ;;  %v1196_v22 = vsel %vm1194_vm5, %v6074_v24, 0.0  ;;  %v1117_v46 = vsel %vm1115_vm6, %v6078_v34, 0.0  ;;  %v7161_v8 = vld [vmem:[#allocation81_spill] sm:$0xff] }
 0x1e2   : > { %v1094_v62 = vpop.xlane.xlu2 %1093  ;;  %v6129_v56 = vadd.f32 %v694_v33, %v685_v55  ;;  %v920_v59 = vsel %vm918_vm12, %v6031_v53, 0.0  ;;  %vm1126_vm2 = vcmp.eq.s32.totalorder %v6053_v54, 81  ;;  %v911_v24 = vsel %vm909_vm4, %v6011_v2, 0.0 }
 0x1e3   : > { %1636 = vadd.xlane.f32.xlu0 %v7156_v18  ;;  %v1097_v51 = vsel %vm1095_vm14, %v1094_v62, 0.0  ;;  %v843_v62 = vadd.f32 %v841_v45, %v832_v48  ;;  %vm1205_vm14 = vcmp.eq.s32.totalorder %v6053_v54, 57  ;;  %v852_v34 = vsel %vm850_vm10, %v6013_v42, 0.0 }
 0x1e4   : > { %v1108_v20 = vadd.f32 %v1106_v14, %v1097_v51  ;;  %vm1019_vm5 = vcmp.eq.s32.totalorder %v6053_v54, 55  ;;  %vm1216_vm6 = vcmp.eq.s32.totalorder %v6053_v54, 82  ;;  %v1001_v53 = vsel %vm999_vm11, %v6027_v23, 0.0 }
 0x1e5   : > { %v1010_v51 = vsel %vm1008_vm15, %v6038_v0, 0.0  ;;  %vm1137_vm4 = vcmp.eq.s32.totalorder %v6053_v54, 106  ;;  %v922_v2 = vadd.f32 %v920_v59, %v911_v24  ;;  %v1128_v42 = vsel %vm1126_vm2, %v6106_v31, 0.0  ;;  %v7163_v24 = vld [vmem:[#allocation82_spill] sm:$0xff] }
 0x1e6   : > { %1760 = vadd.xlane.f32.xlu1 %v7157_v35  ;;  %v6137_v63 = vpop.xlane.xlu0 %1284  ;;  %v1119_v33 = vadd.f32 %v1117_v46, %v1108_v20  ;;  %v1021_v14 = vsel %vm1019_vm5, %v6063_v58, 0.0  ;;  %vm1149_vm10 = vcmp.eq.s32.totalorder %v6113_v3, 131  ;;  %vm1030_vm11 = vcmp.eq.s32.totalorder %v6053_v54, 80 }
 0x1e7   : > { %1592 = vadd.xlane.f32.xlu2 %v7158_v50  ;;  %v1012_v0 = vadd.f32 %v1010_v51, %v1001_v53  ;;  %v931_v31 = vsel %vm929_vm3, %v6009_v52, 0.0  ;;  %vm951_vm12 = vcmp.eq.s32.totalorder %v6053_v54, 104  ;;  %v616_v52 = vsel %vm614_vm9, %v5764_v13, 0.0  ;;  %v7165_v51 = vld [vmem:[#allocation83_spill] sm:$0xff] }
 0x1e8   : > { %v1130_v20 = vadd.f32 %v1128_v42, %v1119_v33  ;;  %v933_v46 = vadd.f32 %v931_v31, %v922_v2  ;;  %vm7164_vm3 = vcmp.eq.s32.totalorder %v6113_v3, 176  ;;  %v786_v53 = vadd.f32 %v784_v9, %v775_v57  ;;  %v7166_v9 = vld [vmem:[#allocation84_spill] sm:$0xff]  ;;  %v7167_v31 = vld [vmem:[#allocation85_spill] sm:$0xff] }
 0x1e9   : > { %v1204_v55 = vpop.xlane.xlu1 %1203  ;;  %v863_v13 = vsel %vm861_vm0, %v5978_v29, 0.0  ;;  %vm794_vm9 = vcmp.eq.s32.totalorder %v6113_v3, 152  ;;  %vm805_vm15 = vcmp.eq.s32.totalorder %v6113_v3, 177  ;;  %vm895_vm0 = vcmp.eq.s32.totalorder %v6113_v3, 178 }
 0x1ea   : > { %v1184_v19 = vpop.xlane.xlu2 %1183  ;;  %v1207_v35 = vsel %vm1205_vm14, %v1204_v55, 0.0  ;;  %vm1277_vm14 = vcmp.eq.s32.totalorder %v6053_v54, 8  ;;  %vm1297_vm2 = vcmp.eq.s32.totalorder %v6053_v54, 58  ;;  %vm873_vm5 = vcmp.eq.s32.totalorder %v6113_v3, 128 }
 0x1eb   : > { %v1187_v15 = vsel %vm1185_vm7, %v1184_v19, 0.0  ;;  %1723 = vadd.xlane.f32.xlu0 %v7159_v37  ;;  %vm1160_vm7 = vcmp.eq.s32.totalorder %v6113_v3, 156  ;;  %v854_v19 = vadd.f32 %v852_v34, %v843_v62  ;;  %v706_v34 = vsel %vm704_vm13, %v5804_v27, 0.0 }
 0x1ec   : > { %v1198_v18 = vadd.f32 %v1196_v22, %v1187_v15  ;;  %v1023_v15 = vadd.f32 %v1021_v14, %v1012_v0  ;;  %v1162_v59 = vsel %vm1160_vm7, %v6103_v7, 0.0  ;;  %v717_v7 = vsel %vm7164_vm3, %v5918_v1, 0.0 }
 0x1ed   : > { %v1032_v27 = vsel %vm1030_vm11, %v6036_v43, 0.0  ;;  %v953_v1 = vsel %vm951_vm12, %v6040_v32, 0.0  ;;  %v719_v2 = vadd.f32 %v717_v7, %v706_v34  ;;  %vm1286_vm13 = vcmp.eq.s32.totalorder %v6053_v54, 33 }
 0x1ee   : > { %1690 = vadd.xlane.f32.xlu1 %v7160_v4  ;;  %v1215_v48 = vpop.xlane.xlu0 %1214  ;;  %v1209_v17 = vadd.f32 %v1207_v35, %v1198_v18  ;;  %v7162_v18 = vld [vmem:[#allocation60_spill] sm:$0xff]  ;;  %v720_v4 = vadd.f32 %v6129_v56, %v6119_v28  ;;  %v942_v35 = vsel %vm940_vm1, %v6020_v47, 0.0  ;;  %v865_v28 = vadd.f32 %v863_v13, %v854_v19 }
 0x1ef   : > { %1679 = vadd.xlane.f32.xlu2 %v7161_v8  ;;  %v1218_v50 = vsel %vm1216_vm6, %v1215_v48, 0.0  ;;  %v627_v37 = vsel %vm625_vm8, %v7162_v18, 0.0  ;;  %v944_v56 = vadd.f32 %v942_v35, %v933_v46  ;;  %vm1041_vm8 = vcmp.eq.s32.totalorder %v6053_v54, 105  ;;  %v7168_v46 = vld [vmem:[#allocation86_spill] sm:$0xff] }
 0x1f0   : > { %v6192_v55 = vadd.f32 %v1218_v50, %v1209_v17  ;;  %v1034_v57 = vadd.f32 %v1032_v27, %v1023_v15  ;;  %v629_v43 = vadd.f32 %v627_v37, %v616_v52  ;;  %v810_v32 = vadd.f32 %v786_v53, %v720_v4 }
 0x1f1   : > { %v1136_v23 = vpop.xlane.xlu1 %1135  ;;  %v955_v42 = vadd.f32 %v953_v1, %v944_v56  ;;  %vm884_vm1 = vcmp.eq.s32.totalorder %v6113_v3, 153  ;;  %v1043_v8 = vsel %vm1041_vm8, %v6047_v60, 0.0  ;;  %v1288_v50 = vsel %vm1286_vm13, %v6137_v63, 0.0  ;;  %v7170_v1 = vld [vmem:[#allocation88_spill] sm:$0xff] }
 0x1f2   : > { %v1139_v45 = vsel %vm1137_vm4, %v1136_v23, 0.0  ;;  %v1147_v58 = vpop.xlane.xlu2 %1146  ;;  %v900_v17 = vadd.f32 %v865_v28, %v810_v32  ;;  %v1045_v14 = vadd.f32 %v1043_v8, %v1034_v57  ;;  %v721_v0 = vadd.f32 %v719_v2, %v629_v43 }
 0x1f3   : > { %v6198_v22 = vadd.f32 %v1139_v45, %v1130_v20  ;;  %v1151_v33 = vsel %vm1149_vm10, %v1147_v58, 0.0  ;;  %1852 = vadd.xlane.f32.xlu0 %v7163_v24  ;;  %v796_v20 = vsel %vm794_vm9, %v5906_v6, 0.0  ;;  %v886_v60 = vsel %vm884_vm1, %v6022_v5, 0.0 }
 0x1f4   : > { %v6209_v62 = vadd.f32 %v1162_v59, %v1151_v33  ;;  %v990_v19 = vadd.f32 %v955_v42, %v900_v17  ;;  %vm1227_vm6 = vcmp.eq.s32.totalorder %v6053_v54, 107  ;;  %vm963_vm4 = vcmp.eq.s32.totalorder %v6113_v3, 129  ;;  %v7169_v59 = vld [vmem:[#allocation87_spill] sm:$0xff] }
 0x1f5   : > { %vm974_vm7 = vcmp.eq.s32.totalorder %v6113_v3, 154  ;;  %vm1053_vm10 = vcmp.eq.s32.totalorder %v6113_v3, 130  ;;  %v807_v63 = vsel %vm805_vm15, %v5952_v38, 0.0  ;;  %v875_v5 = vsel %vm873_vm5, %v6000_v40, 0.0 }
 0x1f6   : > { %1771 = vadd.xlane.f32.xlu1 %v7165_v51  ;;  %v1296_v29 = vpop.xlane.xlu0 %1295  ;;  %vm1064_vm11 = vcmp.eq.s32.totalorder %v6113_v3, 155  ;;  %v1080_v15 = vadd.f32 %v1045_v14, %v990_v19  ;;  %v888_v18 = vadd.f32 %v886_v60, %v875_v5  ;;  %vm985_vm12 = vcmp.eq.s32.totalorder %v6113_v3, 179  ;;  %v7174_v14 = vld [vmem:[#allocation89_spill] sm:$0xff]  ;;  %v7177_v19 = vld [vmem:[#allocation52_spill] sm:$0xff] }
 0x1f7   : > { %1603 = vadd.xlane.f32.xlu2 %v7166_v9  ;;  %v1299_v58 = vsel %vm1297_vm2, %v1296_v29, 0.0  ;;  %vm1171_vm3 = vcmp.eq.s32.totalorder %v6113_v3, 181  ;;  %v976_v24 = vsel %vm974_vm7, %v6029_v10, 0.0  ;;  %v1055_v34 = vsel %vm1053_vm10, %v6083_v36, 0.0  ;;  %v7172_v9 = vld [vmem:[#allocation51_spill] sm:$0xff] }
 0x1f8   : > { %v1176_v38 = vadd.f32 %v6198_v22, %v1080_v15  ;;  %v809_v7 = vadd.f32 %v807_v63, %v796_v20  ;;  %v897_v4 = vsel %vm895_vm0, %v5998_v21, 0.0  ;;  %v965_v53 = vsel %vm963_vm4, %v6018_v61, 0.0  ;;  %v7171_v61 = vld [vmem:[#allocation21_spill] sm:$0xff]  ;;  %v7175_v20 = vld [vmem:[#allocation90_spill] sm:$0xff] }
 0x1f9   : > { %v6237_v47 = vpop.xlane.xlu1 %1236  ;;  %vm1075_vm8 = vcmp.eq.s32.totalorder %v6113_v3, 180  ;;  %v1066_v10 = vsel %vm1064_vm11, %v6045_v49, 0.0  ;;  %v987_v36 = vsel %vm985_vm12, %v6049_v30, 0.0  ;;  %v899_v13 = vadd.f32 %v897_v4, %v888_v18 }
 0x1fa   : > { %v1276_v48 = vpop.xlane.xlu2 %1275  ;;  %v978_v35 = vadd.f32 %v976_v24, %v965_v53  ;;  %v1068_v27 = vadd.f32 %v1066_v10, %v1055_v34  ;;  %v811_v28 = vadd.f32 %v809_v7, %v721_v0  ;;  %v1077_v57 = vsel %vm1075_vm8, %v6058_v44, 0.0  ;;  %v7173_v44 = vld [vmem:[#allocation22_spill] sm:$0xff]  ;;  %v7180_v7 = vld [vmem:[#allocation93_spill] sm:$0xff] }
 0x1fb   : > { %v1279_v23 = vsel %vm1277_vm14, %v1276_v48, 0.0  ;;  %1782 = vadd.xlane.f32.xlu0 %v7167_v31  ;;  %vm1239_vm9 = vcmp.eq.s32.totalorder %v6113_v3, 132  ;;  %vm1250_vm13 = vcmp.eq.s32.totalorder %v6113_v3, 157  ;;  %vm1261_vm14 = vcmp.eq.s32.totalorder %v6113_v3, 182 }
 0x1fc   : > { %v1290_v45 = vadd.f32 %v1288_v50, %v1279_v23  ;;  %v989_v56 = vadd.f32 %v987_v36, %v978_v35  ;;  %v901_v30 = vadd.f32 %v899_v13, %v811_v28  ;;  %v1079_v29 = vadd.f32 %v1077_v57, %v1068_v27 }
 0x1fd   : > { %v1241_v32 = vsel %vm1239_vm9, %v6237_v47, 0.0  ;;  %vm1331_vm15 = vcmp.eq.s32.totalorder %v6113_v3, 133  ;;  %vm1342_vm0 = vcmp.eq.s32.totalorder %v6113_v3, 158  ;;  %vm1373_vm1 = vcmp.eq.s32.totalorder %v6053_v54, 9 }
 0x1fe   : > { %1701 = vadd.xlane.f32.xlu1 %v7168_v46  ;;  %v6257_v6 = vadd.f32 %v1299_v58, %v1290_v45  ;;  %v1226_v33 = vpop.xlane.xlu0 %1225  ;;  %v991_v43 = vadd.f32 %v989_v56, %v901_v30  ;;  %v7176_v45 = vld [vmem:[#allocation50_spill] sm:$0xff]  ;;  %vm1382_vm2 = vcmp.eq.s32.totalorder %v6053_v54, 34  ;;  %v2023_v58 = vmul.f32 31.457935, %v7177_v19 }
 0x1ff   : > { %1712 = vadd.xlane.f32.xlu2 %v7169_v59  ;;  %v1229_v37 = vsel %vm1227_vm6, %v1226_v33, 0.0  ;;  %v2022_v31 = vmul.f32 31.457935, %v7176_v45  ;;  %vm1353_vm5 = vcmp.eq.s32.totalorder %v6113_v3, 183  ;;  %vm1465_vm6 = vcmp.eq.s32.totalorder %v6053_v54, 10  ;;  %v7187_v45 = vld [vmem:[#allocation96_spill] sm:$0xff] }
 0x200   : > { %v1231_v40 = vadd.f32 %v1229_v37, %v6192_v55  ;;  %v1081_v8 = vadd.f32 %v1079_v29, %v991_v43  ;;  %v7178_v37 = vld [vmem:[#allocation91_spill] sm:$0xff]  ;;  %v6307_v34 = vmul.f32 %v2023_v58, %v4977_v11  ;;  %vm1474_vm4 = vcmp.eq.s32.totalorder %v6053_v54, 35 }
 0x201   : > { %v1372_v52 = vpop.xlane.xlu1 %1371  ;;  %v6304_v24 = vmul.f32 %v2022_v31, %v4973_v41  ;;  %vm1308_vm7 = vcmp.eq.s32.totalorder %v6053_v54, 83  ;;  %vm1393_vm10 = vcmp.eq.s32.totalorder %v6053_v54, 59  ;;  %vm1404_vm11 = vcmp.eq.s32.totalorder %v6053_v54, 84 }
 0x202   : > { %v1169_v51 = vpop.xlane.xlu2 %1168  ;;  %v6282_v22 = vadd.f32 %v1231_v40, %v1176_v38  ;;  %v1375_v59 = vsel %vm1373_vm1, %v1372_v52, 0.0  ;;  %v7179_v38 = vld [vmem:[#allocation92_spill] sm:$0xff]  ;;  %v2027_v40 = vmul.f32 %v6307_v34, %v4798_v26  ;;  %v2036_v57 = vmul.f32 %v6307_v34, %v4790_v39 }
 0x203   : > { %v1173_v55 = vsel %vm1171_vm3, %v1169_v51, 0.0  ;;  %1863 = vadd.xlane.f32.xlu0 %v7170_v1  ;;  %v2026_v52 = vmul.f32 %v6304_v24, %v4792_v12  ;;  %v7181_v1 = vld [vmem:[#allocation54_spill] sm:$0xff]  ;;  %v2035_v56 = vmul.f32 %v6304_v24, %v4788_v25  ;;  %vm1485_vm12 = vcmp.eq.s32.totalorder %v6053_v54, 60 }
 0x204   : > { %v1175_v21 = vadd.f32 %v1173_v55, %v6209_v62  ;;  %vm1319_vm3 = vcmp.eq.s32.totalorder %v6053_v54, 108  ;;  %vm1496_vm8 = vcmp.eq.s32.totalorder %v6053_v54, 85  ;;  %vm1415_vm9 = vcmp.eq.s32.totalorder %v6053_v54, 109 }
 0x205   : > { %v2028_v13 = vadd.f32 %v2027_v40, %v2026_v52  ;;  %v7189_v52 = vld [vmem:[#allocation98_spill] sm:$0xff]  ;;  %vm1583_vm1 = vcmp.eq.s32.totalorder %v6053_v54, 61 }
 0x206   : > { %1804 = vadd.xlane.f32.xlu1 %v7171_v61  ;;  %v1329_v49 = vpop.xlane.xlu0 %1328  ;;  %v1177_v50 = vadd.f32 %v1175_v21, %v1081_v8  ;;  %v7182_v61 = vld [vmem:[#allocation94_spill] sm:$0xff] }
 0x207   : > { %1843 = vadd.xlane.f32.xlu2 %v7172_v9  ;;  %v1333_v46 = vsel %vm1331_vm15, %v1329_v49, 0.0  ;;  %v7190_v40 = vld [vmem:[#allocation34_spill] sm:$0xff]  ;;  %vm1572_vm15 = vcmp.eq.s32.totalorder %v6053_v54, 36 }
 0x209   : > { %v1259_v2 = vpop.xlane.xlu1 %1258 }
 0x20a   : > { %v1248_v62 = vpop.xlane.xlu2 %1247  ;;  %v1263_v17 = vsel %vm1261_vm14, %v1259_v2, 0.0  ;;  %v7183_v2 = vld [vmem:[#allocation95_spill] sm:$0xff]  ;;  %vm1427_vm14 = vcmp.eq.s32.totalorder %v6113_v3, 134 }
 0x20b   : > { %v1252_v42 = vsel %vm1250_vm13, %v1248_v62, 0.0  ;;  %1793 = vadd.xlane.f32.xlu0 %v7173_v44  ;;  %vm1438_vm13 = vcmp.eq.s32.totalorder %v6113_v3, 159 }
 0x20c   : > { %v1254_v48 = vadd.f32 %v1252_v42, %v1241_v32  ;;  %v7184_v32 = vld [vmem:[#allocation10_spill] sm:$0xff] }
 0x20e   : > { %1937 = vadd.xlane.f32.xlu1 %v7174_v14  ;;  %v1265_v23 = vadd.f32 %v1263_v17, %v1254_v48  ;;  %v1464_v0 = vpop.xlane.xlu0 %1463 }
 0x20f   : > { %1734 = vadd.xlane.f32.xlu2 %v7175_v20  ;;  %v1467_v53 = vsel %vm1465_vm6, %v1464_v0, 0.0  ;;  %v7186_v20 = vld [vmem:[#allocation55_spill] sm:$0xff]  ;;  %vm1519_vm6 = vcmp.eq.s32.totalorder %v6113_v3, 135 }
 0x210   : > { %v1267_v60 = vadd.f32 %v1265_v23, %v1177_v50  ;;  %v7185_v23 = vld [vmem:[#allocation11_spill] sm:$0xff] }
 0x211   : > { %v1340_v47 = vpop.xlane.xlu1 %1339 }
 0x212   : > { %v1344_v63 = vsel %vm1342_vm0, %v1340_v47, 0.0  ;;  %v1381_v15 = vpop.xlane.xlu2 %1380  ;;  %v2046_v47 = vmul.f32 %v6304_v24, %v4794_v16  ;;  %vm1563_vm0 = vcmp.eq.s32.totalorder %v6053_v54, 11 }
 0x213   : > { %v1346_v5 = vadd.f32 %v1344_v63, %v1333_v46  ;;  %v1384_v33 = vsel %vm1382_vm2, %v1381_v15, 0.0  ;;  %1896 = vadd.xlane.f32.xlu0 %v7178_v37  ;;  %vm1507_vm2 = vcmp.eq.s32.totalorder %v6053_v54, 110 }
 0x214   : > { %v1386_v18 = vadd.f32 %v1384_v33, %v1375_v59 }
 0x216   : > { %1826 = vadd.xlane.f32.xlu1 %v7179_v38  ;;  %v1351_v41 = vpop.xlane.xlu0 %1350 }
 0x217   : > { %1815 = vadd.xlane.f32.xlu2 %v7180_v7  ;;  %v1355_v4 = vsel %vm1353_vm5, %v1351_v41, 0.0  ;;  %v2057_v7 = vmul.f32 %v6304_v24, %v7190_v40  ;;  %v7191_v41 = vld [vmem:[#allocation35_spill] sm:$0xff]  ;;  %vm1449_vm5 = vcmp.eq.s32.totalorder %v6113_v3, 184 }
 0x218   : > { %v1357_v51 = vadd.f32 %v1355_v4, %v1346_v5  ;;  %v2058_v4 = vmul.f32 %v6307_v34, %v7191_v41 }
 0x219   : > { %v1473_v11 = vpop.xlane.xlu1 %1472 }
 0x21a   : > { %v1476_v10 = vsel %vm1474_vm4, %v1473_v11, 0.0  ;;  %v1307_v55 = vpop.xlane.xlu2 %1306  ;;  %v6319_v35 = vadd.f32 %v1357_v51, %v1267_v60  ;;  %v7188_v60 = vld [vmem:[#allocation29_spill] sm:$0xff]  ;;  %vm1530_vm4 = vcmp.eq.s32.totalorder %v6113_v3, 160 }
 0x21b   : > { %v1478_v36 = vadd.f32 %v1476_v10, %v1467_v53  ;;  %v1310_v27 = vsel %vm1308_vm7, %v1307_v55, 0.0  ;;  %2029 = vadd.xlane.f32.xlu0 %v2028_v13  ;;  %v2047_v19 = vmul.f32 %v6307_v34, %v7188_v60  ;;  %v7192_v11 = vld [vmem:[#allocation97_spill] sm:$0xff]  ;;  %vm1541_vm7 = vcmp.eq.s32.totalorder %v6113_v3, 185 }
 0x21c   : > { %v1312_v21 = vadd.f32 %v1310_v27, %v6257_v6  ;;  %v2037_v6 = vadd.f32 %v2036_v57, %v2035_v56  ;;  %v7195_v57 = vld [vmem:[#allocation30_spill] sm:$0xff] }
 0x21e   : > { %1907 = vadd.xlane.f32.xlu1 %v7181_v1  ;;  %v1436_v28 = vpop.xlane.xlu0 %1435  ;;  %v7193_v1 = vld [vmem:[#allocation99_spill] sm:$0xff] }
 0x21f   : > { %1946 = vadd.xlane.f32.xlu2 %v7182_v61  ;;  %v1440_v59 = vsel %vm1438_vm13, %v1436_v28, 0.0  ;;  %v7194_v28 = vld [vmem:[#allocation56_spill] sm:$0xff]  ;;  %vm1762_vm13 = vcmp.eq.s32.totalorder %v6053_v54, 38 }
 0x221   : > { %v1403_v9 = vpop.xlane.xlu1 %1402 }
 0x222   : > { %v1392_v49 = vpop.xlane.xlu2 %1391  ;;  %v1406_v43 = vsel %vm1404_vm11, %v1403_v9, 0.0  ;;  %v2079_v9 = vmul.f32 %v6304_v24, %v7195_v57  ;;  %vm1628_vm11 = vcmp.eq.s32.totalorder %v6113_v3, 161 }
 0x223   : > { %v1395_v30 = vsel %vm1393_vm10, %v1392_v49, 0.0  ;;  %1918 = vadd.xlane.f32.xlu0 %v7183_v2  ;;  %v7196_v49 = vld [vmem:[#allocation31_spill] sm:$0xff]  ;;  %vm1617_vm10 = vcmp.eq.s32.totalorder %v6113_v3, 136 }
 0x224   : > { %v1397_v29 = vadd.f32 %v1395_v30, %v1386_v18  ;;  %v2048_v18 = vadd.f32 %v2047_v19, %v2046_v47  ;;  %v2080_v30 = vmul.f32 %v6307_v34, %v7196_v49  ;;  %v7202_v47 = vld [vmem:[#allocation109_spill] sm:$0xff] }
 0x225   : > { %v2217_v19 = vmul.f32 %v7202_v47, %v4798_v26 }
 0x226   : > { %2038 = vadd.xlane.f32.xlu1 %v2037_v6  ;;  %v1408_v62 = vadd.f32 %v1406_v43, %v1397_v29  ;;  %v1571_v42 = vpop.xlane.xlu0 %1570 }
 0x227   : > { %1874 = vadd.xlane.f32.xlu2 %v7184_v32  ;;  %v1574_v55 = vsel %vm1572_vm15, %v1571_v42, 0.0  ;;  %v2081_v42 = vadd.f32 %v2080_v30, %v2079_v9  ;;  %vm1681_vm15 = vcmp.eq.s32.totalorder %v6053_v54, 62 }
 0x229   : > { %v1484_v8 = vpop.xlane.xlu1 %1483 }
 0x22a   : > { %v1487_v48 = vsel %vm1485_vm12, %v1484_v8, 0.0  ;;  %v1318_v17 = vpop.xlane.xlu2 %1317  ;;  %vm1661_vm12 = vcmp.eq.s32.totalorder %v6053_v54, 12 }
 0x22b   : > { %v1489_v44 = vadd.f32 %v1487_v48, %v1478_v36  ;;  %v1321_v14 = vsel %vm1319_vm3, %v1318_v17, 0.0  ;;  %2001 = vadd.xlane.f32.xlu0 %v7185_v23  ;;  %v2059_v36 = vadd.f32 %v2058_v4, %v2057_v7  ;;  %v7197_v48 = vld [vmem:[#allocation53_spill] sm:$0xff]  ;;  %v7198_v17 = vld [vmem:[#allocation36_spill] sm:$0xff]  ;;  %vm1670_vm3 = vcmp.eq.s32.totalorder %v6053_v54, 37 }
 0x22c   : > { %v1323_v50 = vadd.f32 %v1321_v14, %v1312_v21  ;;  %v2068_v14 = vmul.f32 %v6304_v24, %v7198_v17  ;;  %v7205_v7 = vld [vmem:[#allocation33_spill] sm:$0xff] }
 0x22d   : > { %v2102_v4 = vmul.f32 %v6307_v34, %v7205_v7 }
 0x22e   : > { %1968 = vadd.xlane.f32.xlu1 %v7186_v20  ;;  %v1358_v0 = vadd.f32 %v1323_v50, %v6282_v22  ;;  %v1495_v31 = vpop.xlane.xlu0 %1494  ;;  %v7199_v50 = vld [vmem:[#allocation37_spill] sm:$0xff] }
 0x22f   : > { %1957 = vadd.xlane.f32.xlu2 %v7187_v45  ;;  %v1498_v58 = vsel %vm1496_vm8, %v1495_v31, 0.0  ;;  %v2069_v23 = vmul.f32 %v6307_v34, %v7199_v50  ;;  %v7200_v20 = vld [vmem:[#allocation57_spill] sm:$0xff]  ;;  %v7201_v45 = vld [vmem:[#allocation108_spill] sm:$0xff]  ;;  %vm1639_vm8 = vcmp.eq.s32.totalorder %v6113_v3, 186 }
 0x230   : > { %v1500_v63 = vadd.f32 %v1498_v58, %v1489_v44  ;;  %v2216_v31 = vmul.f32 %v7201_v45, %v4792_v12 }
 0x231   : > { %v1414_v46 = vpop.xlane.xlu1 %1413 }
 0x232   : > { %v1417_v5 = vsel %vm1415_vm9, %v1414_v46, 0.0  ;;  %v1425_v15 = vpop.xlane.xlu2 %1424  ;;  %v2070_v46 = vadd.f32 %v2069_v23, %v2068_v14  ;;  %vm1753_vm9 = vcmp.eq.s32.totalorder %v6053_v54, 13 }
 0x233   : > { %v1419_v22 = vadd.f32 %v1417_v5, %v1408_v62  ;;  %v1429_v33 = vsel %vm1427_vm14, %v1425_v15, 0.0  ;;  %2130 = vadd.xlane.f32.xlu0 %v7189_v52  ;;  %vm1594_vm14 = vcmp.eq.s32.totalorder %v6053_v54, 86 }
 0x234   : > { %v1442_v38 = vadd.f32 %v1440_v59, %v1429_v33 }
 0x235   : > { %v1454_v37 = vadd.f32 %v1419_v22, %v1358_v0  ;;  %v2218_v22 = vadd.f32 %v2217_v19, %v2216_v31  ;;  %v7209_v31 = vld [vmem:[#allocation23_spill] sm:$0xff]  ;;  %v7210_v19 = vld [vmem:[#allocation26_spill] sm:$0xff] }
 0x236   : > { %2049 = vadd.xlane.f32.xlu1 %v2048_v18  ;;  %v1582_v53 = vpop.xlane.xlu0 %1581  ;;  %v7203_v18 = vld [vmem:[#allocation100_spill] sm:$0xff] }
 0x237   : > { %1885 = vadd.xlane.f32.xlu2 %v7192_v11  ;;  %v1585_v21 = vsel %vm1583_vm1, %v1582_v53, 0.0  ;;  %vm1773_vm1 = vcmp.eq.s32.totalorder %v6053_v54, 63 }
 0x239   : > { %v1517_v51 = vpop.xlane.xlu1 %1516 }
 0x23a   : > { %v1562_v10 = vpop.xlane.xlu2 %1561 }
 0x23b   : > { %v1565_v13 = vsel %vm1563_vm0, %v1562_v10, 0.0  ;;  %2060 = vadd.xlane.f32.xlu0 %v2059_v36  ;;  %v7206_v36 = vld [vmem:[#allocation38_spill] sm:$0xff]  ;;  %vm1692_vm0 = vcmp.eq.s32.totalorder %v6053_v54, 87 }
 0x23c   : > { %v1576_v27 = vadd.f32 %v1574_v55, %v1565_v13  ;;  %v2090_v55 = vmul.f32 %v6304_v24, %v7206_v36  ;;  %v7207_v13 = vld [vmem:[#allocation39_spill] sm:$0xff] }
 0x23e   : > { %1979 = vadd.xlane.f32.xlu1 %v7193_v1  ;;  %v6357_v61 = vadd.f32 %v1585_v21, %v1576_v27  ;;  %v1506_v56 = vpop.xlane.xlu0 %1505  ;;  %v2091_v27 = vmul.f32 %v6307_v34, %v7207_v13 }
 0x23f   : > { %1990 = vadd.xlane.f32.xlu2 %v7194_v28  ;;  %v1509_v6 = vsel %vm1507_vm2, %v1506_v56, 0.0  ;;  %vm1605_vm2 = vcmp.eq.s32.totalorder %v6053_v54, 111 }
 0x240   : > { %v1511_v2 = vadd.f32 %v1509_v6, %v1500_v63  ;;  %v1521_v63 = vsel %vm1519_vm6, %v1517_v51, 0.0  ;;  %v7208_v6 = vld [vmem:[#allocation101_spill] sm:$0xff]  ;;  %vm1703_vm6 = vcmp.eq.s32.totalorder %v6053_v54, 112 }
 0x241   : > { %v1660_v29 = vpop.xlane.xlu1 %1659 }
 0x242   : > { %v1447_v43 = vpop.xlane.xlu2 %1446  ;;  %v6365_v62 = vadd.f32 %v1511_v2, %v1454_v37  ;;  %v1663_v28 = vsel %vm1661_vm12, %v1660_v29, 0.0  ;;  %v2092_v2 = vadd.f32 %v2091_v27, %v2090_v55  ;;  %v2225_v29 = vmul.f32 %v7201_v45, %v4788_v25 }
 0x243   : > { %v1451_v32 = vsel %vm1449_vm5, %v1447_v43, 0.0  ;;  %2141 = vadd.xlane.f32.xlu0 %v7197_v48  ;;  %v2226_v48 = vmul.f32 %v7202_v47, %v4790_v39  ;;  %v2236_v55 = vmul.f32 %v7201_v45, %v4794_v16  ;;  %v2237_v27 = vmul.f32 %v7202_v47, %v7188_v60 }
 0x244   : > { %v1453_v8 = vadd.f32 %v1451_v32, %v1442_v38  ;;  %v7204_v38 = vld [vmem:[#allocation32_spill] sm:$0xff]  ;;  %vm1784_vm5 = vcmp.eq.s32.totalorder %v6053_v54, 88  ;;  %vm1865_vm12 = vcmp.eq.s32.totalorder %v6053_v54, 64 }
 0x245   : > { %v2101_v52 = vmul.f32 %v6304_v24, %v7204_v38 }
 0x246   : > { %2082 = vadd.xlane.f32.xlu1 %v2081_v42  ;;  %v1455_v44 = vadd.f32 %v1453_v8, %v6319_v35  ;;  %v1615_v0 = vpop.xlane.xlu0 %1614 }
 0x247   : > { %2121 = vadd.xlane.f32.xlu2 %v7200_v20  ;;  %v1619_v51 = vsel %vm1617_vm10, %v1615_v0, 0.0  ;;  %v2103_v9 = vadd.f32 %v2102_v4, %v2101_v52  ;;  %v7213_v52 = vld [vmem:[#allocation104_spill] sm:$0xff]  ;;  %vm1854_vm10 = vcmp.eq.s32.totalorder %v6053_v54, 39 }
 0x249   : > { %v1539_v58 = vpop.xlane.xlu1 %1538 }
 0x24a   : > { %v1528_v35 = vpop.xlane.xlu2 %1527  ;;  %v1543_v59 = vsel %vm1541_vm7, %v1539_v58, 0.0  ;;  %v2227_v58 = vadd.f32 %v2226_v48, %v2225_v29  ;;  %vm1715_vm7 = vcmp.eq.s32.totalorder %v6113_v3, 137 }
 0x24b   : > { %v1532_v5 = vsel %vm1530_vm4, %v1528_v35, 0.0  ;;  %2071 = vadd.xlane.f32.xlu0 %v2070_v46  ;;  %vm1726_vm4 = vcmp.eq.s32.totalorder %v6113_v3, 162 }
 0x24c   : > { %v1534_v15 = vadd.f32 %v1532_v5, %v1521_v63 }
 0x24e   : > { %2219 = vadd.xlane.f32.xlu1 %v2218_v22  ;;  %v1545_v33 = vadd.f32 %v1543_v59, %v1534_v15  ;;  %v1752_v37 = vpop.xlane.xlu0 %1751  ;;  %v7211_v15 = vld [vmem:[#allocation59_spill] sm:$0xff] }
 0x24f   : > { %2012 = vadd.xlane.f32.xlu2 %v7203_v18  ;;  %v1755_v32 = vsel %vm1753_vm9, %v1752_v37, 0.0  ;;  %v2281_v18 = vmul.f32 %v7202_v47, %v7207_v13  ;;  %vm1807_vm9 = vcmp.eq.s32.totalorder %v6113_v3, 138 }
 0x250   : > { %v1547_v53 = vadd.f32 %v1545_v33, %v1455_v44  ;;  %v7212_v33 = vld [vmem:[#allocation103_spill] sm:$0xff] }
 0x251   : > { %v1626_v11 = vpop.xlane.xlu1 %1625 }
 0x252   : > { %v1630_v10 = vsel %vm1628_vm11, %v1626_v11, 0.0  ;;  %v1669_v1 = vpop.xlane.xlu2 %1668  ;;  %v2247_v11 = vmul.f32 %v7201_v45, %v7190_v40  ;;  %vm1845_vm11 = vcmp.eq.s32.totalorder %v6053_v54, 14 }
 0x253   : > { %v1632_v21 = vadd.f32 %v1630_v10, %v1619_v51  ;;  %v1672_v56 = vsel %vm1670_vm3, %v1669_v1, 0.0  ;;  %2174 = vadd.xlane.f32.xlu0 %v7208_v6  ;;  %v2238_v6 = vadd.f32 %v2237_v27, %v2236_v55  ;;  %vm1795_vm3 = vcmp.eq.s32.totalorder %v6053_v54, 113 }
 0x254   : > { %v1674_v30 = vadd.f32 %v1672_v56, %v1663_v28 }
 0x256   : > { %2104 = vadd.xlane.f32.xlu1 %v2103_v9  ;;  %v1637_v24 = vpop.xlane.xlu0 %1636 }
 0x257   : > { %2093 = vadd.xlane.f32.xlu2 %v2092_v2  ;;  %v1641_v43 = vsel %vm1639_vm8, %v1637_v24, 0.0  ;;  %v7214_v24 = vld [vmem:[#allocation116_spill] sm:$0xff]  ;;  %vm1737_vm8 = vcmp.eq.s32.totalorder %v6113_v3, 187 }
 0x258   : > { %v1643_v42 = vadd.f32 %v1641_v43, %v1632_v21  ;;  %v2429_v43 = vmul.f32 %v7214_v24, %v4788_v25 }
 0x259   : > { %v1761_v34 = vpop.xlane.xlu1 %1760 }
 0x25a   : > { %v1764_v8 = vsel %vm1762_vm13, %v1761_v34, 0.0  ;;  %v1593_v14 = vpop.xlane.xlu2 %1592  ;;  %v6403_v23 = vadd.f32 %v1643_v42, %v1547_v53  ;;  %v2248_v53 = vmul.f32 %v7202_v47, %v7191_v41  ;;  %v7215_v34 = vld [vmem:[#allocation18_spill] sm:$0xff]  ;;  %vm1818_vm13 = vcmp.eq.s32.totalorder %v6113_v3, 163 }
 0x25b   : > { %v1766_v44 = vadd.f32 %v1764_v8, %v1755_v32  ;;  %v1596_v20 = vsel %vm1594_vm14, %v1593_v14, 0.0  ;;  %2315 = vadd.xlane.f32.xlu0 %v7209_v31  ;;  %v2430_v29 = vmul.f32 %v7215_v34, %v4790_v39  ;;  %vm1829_vm14 = vcmp.eq.s32.totalorder %v6113_v3, 188 }
 0x25c   : > { %v1598_v0 = vadd.f32 %v1596_v20, %v6357_v61  ;;  %v2280_v61 = vmul.f32 %v7201_v45, %v7206_v36  ;;  %v2249_v9 = vadd.f32 %v2248_v53, %v2247_v11  ;;  %v7218_v53 = vld [vmem:[#allocation105_spill] sm:$0xff] }
 0x25d   : > { %v2431_v20 = vadd.f32 %v2430_v29, %v2429_v43  ;;  %v7219_v29 = vld [vmem:[#allocation110_spill] sm:$0xff] }
 0x25e   : > { %2185 = vadd.xlane.f32.xlu1 %v7210_v19  ;;  %v1724_v35 = vpop.xlane.xlu0 %1723  ;;  %v2282_v28 = vadd.f32 %v2281_v18, %v2280_v61 }
 0x25f   : > { %2228 = vadd.xlane.f32.xlu2 %v2227_v58 }
 0x261   : > { %v1691_v46 = vpop.xlane.xlu1 %1690 }
 0x262   : > { %v1680_v63 = vpop.xlane.xlu2 %1679  ;;  %v1694_v59 = vsel %vm1692_vm0, %v1691_v46, 0.0  ;;  %v7216_v46 = vld [vmem:[#allocation17_spill] sm:$0xff]  ;;  %vm1910_vm0 = vcmp.eq.s32.totalorder %v6113_v3, 164 }
 0x263   : > { %v1683_v5 = vsel %vm1681_vm15, %v1680_v63, 0.0  ;;  %2196 = vadd.xlane.f32.xlu0 %v7211_v15  ;;  %v7217_v63 = vld [vmem:[#allocation62_spill] sm:$0xff]  ;;  %v2259_v15 = vmul.f32 %v7202_v47, %v7199_v50  ;;  %vm1899_vm15 = vcmp.eq.s32.totalorder %v6113_v3, 139 }
 0x264   : > { %v1685_v22 = vadd.f32 %v1683_v5, %v1674_v30 }
 0x266   : > { %2324 = vadd.xlane.f32.xlu1 %v7212_v33  ;;  %v1696_v37 = vadd.f32 %v1694_v59, %v1685_v22  ;;  %v1853_v4 = vpop.xlane.xlu0 %1852  ;;  %v2258_v22 = vmul.f32 %v7201_v45, %v7198_v17  ;;  %v2270_v33 = vmul.f32 %v7202_v47, %v7196_v49  ;;  %v2441_v47 = vmul.f32 %v7215_v34, %v7188_v60 }
 0x267   : > { %2152 = vadd.xlane.f32.xlu2 %v7213_v52  ;;  %v1856_v18 = vsel %vm1854_vm10, %v1853_v4, 0.0  ;;  %vm1959_vm10 = vcmp.eq.s32.totalorder %v6053_v54, 65 }
 0x268   : > { %v2260_v52 = vadd.f32 %v2259_v15, %v2258_v22 }
 0x269   : > { %v1772_v51 = vpop.xlane.xlu1 %1771 }
 0x26a   : > { %v1775_v10 = vsel %vm1773_vm1, %v1772_v51, 0.0  ;;  %v1604_v1 = vpop.xlane.xlu2 %1603  ;;  %vm1939_vm1 = vcmp.eq.s32.totalorder %v6053_v54, 15 }
 0x26b   : > { %v1777_v21 = vadd.f32 %v1775_v10, %v1766_v44  ;;  %v1607_v56 = vsel %vm1605_vm2, %v1604_v1, 0.0  ;;  %2283 = vadd.xlane.f32.xlu0 %v2282_v28  ;;  %v2420_v28 = vmul.f32 %v7214_v24, %v4792_v12  ;;  %vm1948_vm2 = vcmp.eq.s32.totalorder %v6053_v54, 40 }
 0x26c   : > { %v1609_v30 = vadd.f32 %v1607_v56, %v1598_v0  ;;  %v1728_v0 = vsel %vm1726_vm4, %v1724_v35, 0.0  ;;  %v2269_v35 = vmul.f32 %v7201_v45, %v7195_v57  ;;  %v2440_v45 = vmul.f32 %v7214_v24, %v4794_v16 }
 0x26d   : > { %v2421_v56 = vmul.f32 %v7215_v34, %v4798_v26  ;;  %vm2040_vm4 = vcmp.eq.s32.totalorder %v6053_v54, 41 }
 0x26e   : > { %2250 = vadd.xlane.f32.xlu1 %v2249_v9  ;;  %v1644_v2 = vadd.f32 %v1609_v30, %v6365_v62  ;;  %v1783_v32 = vpop.xlane.xlu0 %1782  ;;  %v2271_v10 = vadd.f32 %v2270_v33, %v2269_v35  ;;  %v2442_v30 = vadd.f32 %v2441_v47, %v2440_v45  ;;  %v2484_v45 = vmul.f32 %v7214_v24, %v7206_v36 }
 0x26f   : > { %2239 = vadd.xlane.f32.xlu2 %v2238_v6  ;;  %v1786_v42 = vsel %vm1784_vm5, %v1783_v32, 0.0  ;;  %v2422_v32 = vadd.f32 %v2421_v56, %v2420_v28  ;;  %vm1921_vm5 = vcmp.eq.s32.totalorder %v6113_v3, 189  ;;  %v2485_v47 = vmul.f32 %v7215_v34, %v7207_v13 }
 0x270   : > { %v1788_v48 = vadd.f32 %v1786_v42, %v1777_v21 }
 0x271   : > { %v1702_v8 = vpop.xlane.xlu1 %1701 }
 0x272   : > { %v1705_v44 = vsel %vm1703_vm6, %v1702_v8, 0.0  ;;  %v1713_v62 = vpop.xlane.xlu2 %1712  ;;  %vm2031_vm6 = vcmp.eq.s32.totalorder %v6053_v54, 16 }
 0x273   : > { %v1707_v14 = vadd.f32 %v1705_v44, %v1696_v37  ;;  %v1717_v31 = vsel %vm1715_vm7, %v1713_v62, 0.0  ;;  %2432 = vadd.xlane.f32.xlu0 %v2431_v20  ;;  %vm1876_vm7 = vcmp.eq.s32.totalorder %v6053_v54, 89 }
 0x274   : > { %v1730_v58 = vadd.f32 %v1728_v0, %v1717_v31  ;;  %v7220_v0 = vld [vmem:[#allocation24_spill] sm:$0xff] }
 0x275   : > { %v1742_v19 = vadd.f32 %v1707_v14, %v1644_v2 }
 0x276   : > { %2335 = vadd.xlane.f32.xlu1 %v7216_v46  ;;  %v1864_v5 = vpop.xlane.xlu0 %1863  ;;  %v2474_v46 = vmul.f32 %v7215_v34, %v7196_v49 }
 0x277   : > { %2163 = vadd.xlane.f32.xlu2 %v7217_v63  ;;  %v1867_v51 = vsel %vm1865_vm12, %v1864_v5, 0.0  ;;  %v7222_v63 = vld [vmem:[#allocation111_spill] sm:$0xff]  ;;  %vm2051_vm12 = vcmp.eq.s32.totalorder %v6053_v54, 66 }
 0x279   : > { %v1805_v59 = vpop.xlane.xlu1 %1804 }
 0x27a   : > { %v1844_v61 = vpop.xlane.xlu2 %1843  ;;  %v1809_v14 = vsel %vm1807_vm9, %v1805_v59, 0.0  ;;  %vm1981_vm9 = vcmp.eq.s32.totalorder %v6053_v54, 115 }
 0x27b   : > { %v1847_v37 = vsel %vm1845_vm11, %v1844_v61, 0.0  ;;  %2346 = vadd.xlane.f32.xlu0 %v7218_v53  ;;  %v7223_v53 = vld [vmem:[#allocation112_spill] sm:$0xff]  ;;  %vm1970_vm11 = vcmp.eq.s32.totalorder %v6053_v54, 90 }
 0x27c   : > { %v1858_v11 = vadd.f32 %v1856_v18, %v1847_v37 }
 0x27e   : > { %2261 = vadd.xlane.f32.xlu1 %v2260_v52  ;;  %v6455_v55 = vadd.f32 %v1867_v51, %v1858_v11  ;;  %v1794_v4 = vpop.xlane.xlu0 %1793  ;;  %v7224_v51 = vld [vmem:[#allocation113_spill] sm:$0xff] }
 0x27f   : > { %2272 = vadd.xlane.f32.xlu2 %v2271_v10  ;;  %v1797_v27 = vsel %vm1795_vm3, %v1794_v4, 0.0  ;;  %vm1887_vm3 = vcmp.eq.s32.totalorder %v6053_v54, 114 }
 0x280   : > { %v1799_v1 = vadd.f32 %v1797_v27, %v1788_v48 }
 0x281   : > { %v1938_v21 = vpop.xlane.xlu1 %1937 }
 0x282   : > { %v1735_v9 = vpop.xlane.xlu2 %1734  ;;  %v6462_v6 = vadd.f32 %v1799_v1, %v1742_v19  ;;  %v7221_v19 = vld [vmem:[#allocation27_spill] sm:$0xff]  ;;  %v1941_v37 = vsel %vm1939_vm1, %v1938_v21, 0.0  ;;  %vm2143_vm1 = vcmp.eq.s32.totalorder %v6053_v54, 67 }
 0x283   : > { %v1739_v2 = vsel %vm1737_vm8, %v1735_v9, 0.0  ;;  %2443 = vadd.xlane.f32.xlu0 %v2442_v30  ;;  %vm2062_vm8 = vcmp.eq.s32.totalorder %v6053_v54, 91 }
 0x284   : > { %v1741_v43 = vadd.f32 %v1739_v2, %v1730_v58 }
 0x286   : > { %2368 = vadd.xlane.f32.xlu1 %v7219_v29  ;;  %v1743_v42 = vadd.f32 %v1741_v43, %v6403_v23  ;;  %v1897_v8 = vpop.xlane.xlu0 %1896  ;;  %v2473_v23 = vmul.f32 %v7214_v24, %v7195_v57  ;;  %v2486_v43 = vadd.f32 %v2485_v47, %v2484_v45 }
 0x287   : > { %2423 = vadd.xlane.f32.xlu2 %v2422_v32  ;;  %v1901_v59 = vsel %vm1899_vm15, %v1897_v8, 0.0  ;;  %v7225_v32 = vld [vmem:[#allocation114_spill] sm:$0xff]  ;;  %v2496_v8 = vmul.f32 %v7215_v34, %v7205_v7  ;;  %vm2132_vm15 = vcmp.eq.s32.totalorder %v6053_v54, 42 }
 0x288   : > { %v2475_v18 = vadd.f32 %v2474_v46, %v2473_v23 }
 0x289   : > { %v1827_v48 = vpop.xlane.xlu1 %1826 }
 0x28a   : > { %v1816_v44 = vpop.xlane.xlu2 %1815  ;;  %v1831_v31 = vsel %vm1829_vm14, %v1827_v48, 0.0  ;;  %v7226_v48 = vld [vmem:[#allocation40_spill] sm:$0xff]  ;;  %vm1993_vm14 = vcmp.eq.s32.totalorder %v6113_v3, 140 }
 0x28b   : > { %v1820_v62 = vsel %vm1818_vm13, %v1816_v44, 0.0  ;;  %2357 = vadd.xlane.f32.xlu0 %v7220_v0  ;;  %vm2004_vm13 = vcmp.eq.s32.totalorder %v6113_v3, 165 }
 0x28c   : > { %v1822_v20 = vadd.f32 %v1820_v62, %v1809_v14  ;;  %v2451_v62 = vmul.f32 %v7214_v24, %v7190_v40 }
 0x28e   : > { %2515 = vadd.xlane.f32.xlu1 %v7221_v19  ;;  %v1833_v58 = vadd.f32 %v1831_v31, %v1822_v20  ;;  %v2030_v5 = vpop.xlane.xlu0 %2029 }
 0x28f   : > { %2294 = vadd.xlane.f32.xlu2 %v7222_v63  ;;  %v2033_v21 = vsel %vm2031_vm6, %v2030_v5, 0.0  ;;  %vm2085_vm6 = vcmp.eq.s32.totalorder %v6113_v3, 141 }
 0x290   : > { %v1835_v15 = vadd.f32 %v1833_v58, %v1743_v42  ;;  %v2495_v42 = vmul.f32 %v7214_v24, %v7204_v38  ;;  %v7227_v58 = vld [vmem:[#allocation115_spill] sm:$0xff] }
 0x291   : > { %v1908_v22 = vpop.xlane.xlu1 %1907 }
 0x292   : > { %v1912_v35 = vsel %vm1910_vm0, %v1908_v22, 0.0  ;;  %v1947_v61 = vpop.xlane.xlu2 %1946  ;;  %v2497_v0 = vadd.f32 %v2496_v8, %v2495_v42  ;;  %vm2123_vm0 = vcmp.eq.s32.totalorder %v6053_v54, 17  ;;  %v7236_v8 = vld [vmem:[#allocation12_spill] sm:$0xff] }
 0x293   : > { %v1914_v33 = vadd.f32 %v1912_v35, %v1901_v59  ;;  %v1950_v52 = vsel %vm1948_vm2, %v1947_v61, 0.0  ;;  %2476 = vadd.xlane.f32.xlu0 %v2475_v18  ;;  %v7229_v61 = vld [vmem:[#allocation25_spill] sm:$0xff]  ;;  %vm2073_vm2 = vcmp.eq.s32.totalorder %v6053_v54, 116 }
 0x294   : > { %v1952_v11 = vadd.f32 %v1950_v52, %v1941_v37  ;;  %v7230_v37 = vld [vmem:[#allocation28_spill] sm:$0xff] }
 0x296   : > { %2390 = vadd.xlane.f32.xlu1 %v7223_v53  ;;  %v1919_v10 = vpop.xlane.xlu0 %1918 }
 0x297   : > { %2379 = vadd.xlane.f32.xlu2 %v7224_v51  ;;  %v1923_v4 = vsel %vm1921_vm5, %v1919_v10, 0.0  ;;  %vm2015_vm5 = vcmp.eq.s32.totalorder %v6113_v3, 190 }
 0x298   : > { %v1925_v1 = vadd.f32 %v1923_v4, %v1914_v33  ;;  %v7228_v33 = vld [vmem:[#allocation117_spill] sm:$0xff] }
 0x299   : > { %v2039_v27 = vpop.xlane.xlu1 %2038 }
 0x29a   : > { %v2042_v28 = vsel %vm2040_vm4, %v2039_v27, 0.0  ;;  %v1875_v9 = vpop.xlane.xlu2 %1874  ;;  %v6490_v30 = vadd.f32 %v1925_v1, %v1835_v15  ;;  %vm2096_vm4 = vcmp.eq.s32.totalorder %v6113_v3, 166 }
 0x29b   : > { %v2044_v56 = vadd.f32 %v2042_v28, %v2033_v21  ;;  %v1878_v2 = vsel %vm1876_vm7, %v1875_v9, 0.0  ;;  %2607 = vadd.xlane.f32.xlu0 %v7225_v32  ;;  %v7232_v28 = vld [vmem:[#allocation119_spill] sm:$0xff]  ;;  %vm2107_vm7 = vcmp.eq.s32.totalorder %v6113_v3, 191 }
 0x29c   : > { %v1880_v29 = vadd.f32 %v1878_v2, %v6455_v55  ;;  %v2452_v55 = vmul.f32 %v7215_v34, %v7191_v41  ;;  %v7234_v2 = vld [vmem:[#allocation16_spill] sm:$0xff] }
 0x29e   : > { %2487 = vadd.xlane.f32.xlu1 %v2486_v43  ;;  %v2002_v44 = vpop.xlane.xlu0 %2001  ;;  %v2453_v46 = vadd.f32 %v2452_v55, %v2451_v62  ;;  %v2787_v43 = vmul.f32 6.0, %v7234_v2 }
 0x29f   : > { %2524 = vadd.xlane.f32.xlu2 %v7226_v48  ;;  %v2006_v4 = vsel %vm2004_vm13, %v2002_v44, 0.0  ;;  %v7237_v44 = vld [vmem:[#allocation13_spill] sm:$0xff]  ;;  %vm2326_vm13 = vcmp.eq.s32.totalorder %v6053_v54, 44 }
 0x2a1   : > { %v1969_v14 = vpop.xlane.xlu1 %1968 }
 0x2a2   : > { %v1958_v20 = vpop.xlane.xlu2 %1957  ;;  %v1972_v23 = vsel %vm1970_vm11, %v1969_v14, 0.0  ;;  %v2789_v14 = vmul.f32 %v2787_v43, %v7237_v44  ;;  %vm2188_vm11 = vcmp.eq.s32.totalorder %v6113_v3, 167 }
 0x2a3   : > { %v1961_v31 = vsel %vm1959_vm10, %v1958_v20, 0.0  ;;  %2498 = vadd.xlane.f32.xlu0 %v2497_v0  ;;  %vm2177_vm10 = vcmp.eq.s32.totalorder %v6113_v3, 142 }
 0x2a4   : > { %v1963_v19 = vadd.f32 %v1961_v31, %v1952_v11  ;;  %v2785_v31 = vmul.f32 %v7234_v2, %v7234_v2 }
 0x2a6   : > { %2616 = vadd.xlane.f32.xlu1 %v7227_v58  ;;  %v1974_v63 = vadd.f32 %v1972_v23, %v1963_v19  ;;  %v2131_v5 = vpop.xlane.xlu0 %2130  ;;  %v7238_v23 = vld [vmem:[#allocation121_spill] sm:$0xff] }
 0x2a7   : > { %2454 = vadd.xlane.f32.xlu2 %v2453_v46  ;;  %v2134_v55 = vsel %vm2132_vm15, %v2131_v5, 0.0  ;;  %v7239_v46 = vld [vmem:[#allocation122_spill] sm:$0xff]  ;;  %v7240_v5 = vld [vmem:[#allocation123_spill] sm:$0xff]  ;;  %vm2241_vm15 = vcmp.eq.s32.totalorder %v6053_v54, 68 }
 0x2a9   : > { %v2050_v24 = vpop.xlane.xlu1 %2049 }
 0x2aa   : > { %v2053_v34 = vsel %vm2051_vm12, %v2050_v24, 0.0  ;;  %v1886_v15 = vpop.xlane.xlu2 %1885  ;;  %v2791_v24 = vsub.f32 %v2785_v31, %v2789_v14  ;;  %vm2221_vm12 = vcmp.eq.s32.totalorder %v6053_v54, 18 }
 0x2ab   : > { %v2055_v22 = vadd.f32 %v2053_v34, %v2044_v56  ;;  %v1889_v59 = vsel %vm1887_vm3, %v1886_v15, 0.0  ;;  %2579 = vadd.xlane.f32.xlu0 %v7228_v33  ;;  %v7233_v56 = vld [vmem:[#allocation14_spill] sm:$0xff]  ;;  %v2792_v15 = vmul.f32 %v7236_v8, %v7236_v8  ;;  %vm2230_vm3 = vcmp.eq.s32.totalorder %v6053_v54, 43 }
 0x2ac   : > { %v1891_v35 = vadd.f32 %v1889_v59, %v1880_v29  ;;  %v2786_v9 = vmul.f32 6.0, %v7233_v56  ;;  %v7235_v29 = vld [vmem:[#allocation120_spill] sm:$0xff]  ;;  %v2784_v0 = vmul.f32 %v7233_v56, %v7233_v56  ;;  %v2793_v59 = vmul.f32 %v7237_v44, %v7237_v44 }
 0x2ae   : > { %2546 = vadd.xlane.f32.xlu1 %v7229_v61  ;;  %v1926_v18 = vadd.f32 %v1891_v35, %v6462_v6  ;;  %v2061_v52 = vpop.xlane.xlu0 %2060  ;;  %v7231_v6 = vld [vmem:[#allocation118_spill] sm:$0xff]  ;;  %v2788_v48 = vmul.f32 %v2786_v9, %v7236_v8 }
 0x2af   : > { %2535 = vadd.xlane.f32.xlu2 %v7230_v37  ;;  %v2064_v11 = vsel %vm2062_vm8, %v2061_v52, 0.0  ;;  %v2795_v37 = vadd.f32 %v2793_v59, %v2791_v24  ;;  %vm2199_vm8 = vcmp.eq.s32.totalorder %v6113_v3, 192 }
 0x2b0   : > { %v2066_v51 = vadd.f32 %v2064_v11, %v2055_v22 }
 0x2b1   : > { %v1980_v53 = vpop.xlane.xlu1 %1979 }
 0x2b2   : > { %v1983_v10 = vsel %vm1981_vm9, %v1980_v53, 0.0  ;;  %v1991_v47 = vpop.xlane.xlu2 %1990  ;;  %vm2317_vm9 = vcmp.eq.s32.totalorder %v6053_v54, 19 }
 0x2b3   : > { %v1985_v45 = vadd.f32 %v1983_v10, %v1974_v63  ;;  %v1995_v27 = vsel %vm1993_vm14, %v1991_v47, 0.0  ;;  %2708 = vadd.xlane.f32.xlu0 %v7231_v6  ;;  %v2790_v63 = vsub.f32 %v2784_v0, %v2788_v48  ;;  %v7242_v47 = vld [vmem:[#allocation124_spill] sm:$0xff]  ;;  %vm2154_vm14 = vcmp.eq.s32.totalorder %v6053_v54, 92 }
 0x2b4   : > { %v2008_v1 = vadd.f32 %v2006_v4, %v1995_v27  ;;  %v6547_v27 = vmul.f32 7.864484, %v2795_v37 }
 0x2b5   : > { %v2020_v21 = vadd.f32 %v1985_v45, %v1926_v18  ;;  %v2794_v18 = vadd.f32 %v2792_v15, %v2790_v63  ;;  %v7241_v45 = vld [vmem:[#allocation19_spill] sm:$0xff] }
 0x2b6   : > { %2627 = vadd.xlane.f32.xlu1 %v7232_v28  ;;  %v2142_v32 = vpop.xlane.xlu0 %2141  ;;  %v7243_v28 = vld [vmem:[#allocation125_spill] sm:$0xff] }
 0x2b7   : > { %2465 = vadd.xlane.f32.xlu2 %v7235_v29  ;;  %v2145_v58 = vsel %vm2143_vm1, %v2142_v32, 0.0  ;;  %v6545_v4 = vmul.f32 7.864484, %v2794_v18  ;;  %v7244_v32 = vld [vmem:[#allocation126_spill] sm:$0xff]  ;;  %vm2337_vm1 = vcmp.eq.s32.totalorder %v6053_v54, 69 }
 0x2b9   : > { %v2083_v42 = vpop.xlane.xlu1 %2082  ;;  %v2798_v56 = vmul.f32 %v6545_v4, %v4792_v12 }
 0x2ba   : > { %v2122_v62 = vpop.xlane.xlu2 %2121  ;;  %v2087_v2 = vsel %vm2085_vm6, %v2083_v42, 0.0  ;;  %vm2263_vm6 = vcmp.eq.s32.totalorder %v6053_v54, 118 }
 0x2bb   : > { %v2125_v20 = vsel %vm2123_vm0, %v2122_v62, 0.0  ;;  %2638 = vadd.xlane.f32.xlu0 %v7238_v23  ;;  %v7246_v23 = vld [vmem:[#allocation128_spill] sm:$0xff]  ;;  %vm2252_vm0 = vcmp.eq.s32.totalorder %v6053_v54, 93 }
 0x2bc   : > { %v2136_v19 = vadd.f32 %v2134_v55, %v2125_v20 }
 0x2be   : > { %2557 = vadd.xlane.f32.xlu1 %v7239_v46  ;;  %v6533_v34 = vadd.f32 %v2145_v58, %v2136_v19  ;;  %v2072_v22 = vpop.xlane.xlu0 %2071  ;;  %v7247_v58 = vld [vmem:[#allocation129_spill] sm:$0xff]  ;;  %v7248_v46 = vld [vmem:[#allocation130_spill] sm:$0xff] }
 0x2bf   : > { %2568 = vadd.xlane.f32.xlu2 %v7240_v5  ;;  %v2075_v35 = vsel %vm2073_vm2, %v2072_v22, 0.0  ;;  %v2807_v22 = vmul.f32 %v6545_v4, %v4788_v25  ;;  %v2851_v25 = vmul.f32 %v6545_v4, %v7195_v57  ;;  %v2873_v57 = vmul.f32 %v6545_v4, %v7204_v38 }
 0x2c0   : > { %v2077_v61 = vadd.f32 %v2075_v35, %v2066_v51  ;;  %vm2165_vm2 = vcmp.eq.s32.totalorder %v6053_v54, 117  ;;  %v2818_v38 = vmul.f32 %v6545_v4, %v4794_v16 }
 0x2c1   : > { %v2220_v33 = vpop.xlane.xlu1 %2219 }
 0x2c2   : > { %v2013_v52 = vpop.xlane.xlu2 %2012  ;;  %v6541_v11 = vadd.f32 %v2077_v61, %v2020_v21  ;;  %v2799_v21 = vmul.f32 %v6547_v27, %v4798_v26  ;;  %v7245_v26 = vld [vmem:[#allocation127_spill] sm:$0xff]  ;;  %v2223_v0 = vsel %vm2221_vm12, %v2220_v33, 0.0  ;;  %v2808_v33 = vmul.f32 %v6547_v27, %v4790_v39 }
 0x2c3   : > { %v2017_v53 = vsel %vm2015_vm5, %v2013_v52, 0.0  ;;  %2719 = vadd.xlane.f32.xlu0 %v7241_v45  ;;  %v7250_v45 = vld [vmem:[#allocation132_spill] sm:$0xff]  ;;  %vm2348_vm5 = vcmp.eq.s32.totalorder %v6053_v54, 94  ;;  %vm2445_vm12 = vcmp.eq.s32.totalorder %v6053_v54, 70 }
 0x2c4   : > { %v2019_v10 = vadd.f32 %v2017_v53, %v2008_v1 }
 0x2c6   : > { %2660 = vadd.xlane.f32.xlu1 %v7242_v47  ;;  %v2021_v6 = vadd.f32 %v2019_v10, %v6490_v30  ;;  %v2175_v51 = vpop.xlane.xlu0 %2174  ;;  %v2800_v30 = vadd.f32 %v2799_v21, %v2798_v56  ;;  %v7249_v10 = vld [vmem:[#allocation131_spill] sm:$0xff]  ;;  %v2809_v47 = vadd.f32 %v2808_v33, %v2807_v22 }
 0x2c7   : > { %2699 = vadd.xlane.f32.xlu2 %v7243_v28  ;;  %v2179_v14 = vsel %vm2177_vm10, %v2175_v51, 0.0  ;;  %vm2434_vm10 = vcmp.eq.s32.totalorder %v6053_v54, 45 }
 0x2c9   : > { %v2105_v1 = vpop.xlane.xlu1 %2104 }
 0x2ca   : > { %v2094_v9 = vpop.xlane.xlu2 %2093  ;;  %v2109_v8 = vsel %vm2107_vm7, %v2105_v1, 0.0  ;;  %vm2275_vm7 = vcmp.eq.s32.totalorder %v6113_v3, 143 }
 0x2cb   : > { %v2098_v43 = vsel %vm2096_vm4, %v2094_v9, 0.0  ;;  %2649 = vadd.xlane.f32.xlu0 %v7244_v32  ;;  %v7251_v9 = vld [vmem:[#allocation41_spill] sm:$0xff]  ;;  %v2863_v32 = vmul.f32 %v6547_v27, %v7207_v13  ;;  %vm2286_vm4 = vcmp.eq.s32.totalorder %v6113_v3, 168 }
 0x2cc   : > { %v2100_v29 = vadd.f32 %v2098_v43, %v2087_v2  ;;  %v7252_v43 = vld [vmem:[#allocation42_spill] sm:$0xff] }
 0x2ce   : > { %2801 = vadd.xlane.f32.xlu1 %v2800_v30  ;;  %v2111_v12 = vadd.f32 %v2109_v8, %v2100_v29  ;;  %v2316_v48 = vpop.xlane.xlu0 %2315  ;;  %v2862_v29 = vmul.f32 %v6545_v4, %v7206_v36 }
 0x2cf   : > { %2590 = vadd.xlane.f32.xlu2 %v7245_v26  ;;  %v2319_v15 = vsel %vm2317_vm9, %v2316_v48, 0.0  ;;  %vm2371_vm9 = vcmp.eq.s32.totalorder %v6113_v3, 144 }
 0x2d0   : > { %v2113_v42 = vadd.f32 %v2111_v12, %v2021_v6  ;;  %v2852_v6 = vmul.f32 %v6547_v27, %v7196_v49  ;;  %v2874_v49 = vmul.f32 %v6547_v27, %v7205_v7  ;;  %v2819_v7 = vmul.f32 %v6547_v27, %v7188_v60 }
 0x2d1   : > { %v2186_v44 = vpop.xlane.xlu1 %2185 }
 0x2d2   : > { %v2190_v62 = vsel %vm2188_vm11, %v2186_v44, 0.0  ;;  %v2229_v20 = vpop.xlane.xlu2 %2228  ;;  %v2875_v44 = vadd.f32 %v2874_v49, %v2873_v57  ;;  %v2820_v36 = vadd.f32 %v2819_v7, %v2818_v38  ;;  %vm2425_vm11 = vcmp.eq.s32.totalorder %v6053_v54, 20  ;;  %v3083_v57 = vld [vmem:[#allocation3 + $0x5d0] sm:$0xff]  ;;  %v3077_v49 = vld [vmem:[#allocation3 + $0x5a0] sm:$0xff] }
 0x2d3   : > { %v2192_v55 = vadd.f32 %v2190_v62, %v2179_v14  ;;  %v2232_v31 = vsel %vm2230_vm3, %v2229_v20, 0.0  ;;  %2752 = vadd.xlane.f32.xlu0 %v7246_v23  ;;  %v2864_v14 = vadd.f32 %v2863_v32, %v2862_v29  ;;  %vm2359_vm3 = vcmp.eq.s32.totalorder %v6053_v54, 119  ;;  %3109 = vmatpush.msra.mxu1 %v3083_v57  ;;  %v3071_v32 = vld [vmem:[#allocation3 + $0x570] sm:$0xff] }
 0x2d4   : > { %v2234_v19 = vadd.f32 %v2232_v31, %v2223_v0  ;;  %v2829_v31 = vmul.f32 %v6545_v4, %v7190_v40  ;;  %v2840_v40 = vmul.f32 %v6545_v4, %v7198_v17 }
 0x2d5   : > { %3110 = vmatpush.msra.mxu1 %v3077_v49  ;;  %v3011_v49 = vld [vmem:[#allocation3 + $0x390] sm:$0xff] }
 0x2d6   : > { %2682 = vadd.xlane.f32.xlu1 %v7247_v58  ;;  %v2197_v63 = vpop.xlane.xlu0 %2196 }
 0x2d7   : > { %2671 = vadd.xlane.f32.xlu2 %v7248_v46  ;;  %v2201_v24 = vsel %vm2199_vm8, %v2197_v63, 0.0  ;;  %vm2297_vm8 = vcmp.eq.s32.totalorder %v6113_v3, 193  ;;  %3111 = vmatpush.msra.mxu1 %v3071_v32  ;;  %v3005_v32 = vld [vmem:[#allocation3 + $0x360] sm:$0xff] }
 0x2d8   : > { %v2203_v59 = vadd.f32 %v2201_v24, %v2192_v55 }
 0x2d9   : > { %v2325_v5 = vpop.xlane.xlu1 %2324 }
 0x2da   : > { %v2328_v35 = vsel %vm2326_vm13, %v2325_v5, 0.0  ;;  %v2153_v18 = vpop.xlane.xlu2 %2152  ;;  %v6575_v37 = vadd.f32 %v2203_v59, %v2113_v42  ;;  %vm2382_vm13 = vcmp.eq.s32.totalorder %v6113_v3, 169 }
 0x2db   : > { %v2330_v61 = vadd.f32 %v2328_v35, %v2319_v15  ;;  %v2156_v52 = vsel %vm2154_vm14, %v2153_v18, 0.0  ;;  %2741 = vadd.xlane.f32.xlu0 %v7249_v10  ;;  %vm2393_vm14 = vcmp.eq.s32.totalorder %v6113_v3, 194 }
 0x2dc   : > { %v2158_v53 = vadd.f32 %v2156_v52, %v6533_v34  ;;  %v2853_v34 = vadd.f32 %v2852_v6, %v2851_v25 }
 0x2de   : > { %2763 = vadd.xlane.f32.xlu1 %v7250_v45  ;;  %v2284_v39 = vpop.xlane.xlu0 %2283 }
 0x2df   : > { %2810 = vadd.xlane.f32.xlu2 %v2809_v47  ;;  %v2288_v58 = vsel %vm2286_vm4, %v2284_v39, 0.0  ;;  %vm2618_vm4 = vcmp.eq.s32.totalorder %v6053_v54, 47 }
 0x2e1   : > { %v2251_v28 = vpop.xlane.xlu1 %2250 }
 0x2e2   : > { %v2240_v51 = vpop.xlane.xlu2 %2239  ;;  %v2254_v1 = vsel %vm2252_vm0, %v2251_v28, 0.0  ;;  %vm2490_vm0 = vcmp.eq.s32.totalorder %v6113_v3, 170 }
 0x2e3   : > { %v2243_v56 = vsel %vm2241_vm15, %v2240_v51, 0.0  ;;  %2854 = vadd.xlane.f32.xlu0 %v2853_v34  ;;  %vm2479_vm15 = vcmp.eq.s32.totalorder %v6113_v3, 145 }
 0x2e4   : > { %v2245_v21 = vadd.f32 %v2243_v56, %v2234_v19  ;;  %v2830_v19 = vmul.f32 %v6547_v27, %v7191_v41  ;;  %v2841_v41 = vmul.f32 %v6547_v27, %v7199_v50 }
 0x2e6   : > { %2774 = vadd.xlane.f32.xlu1 %v7251_v9  ;;  %v2256_v2 = vadd.f32 %v2254_v1, %v2245_v21  ;;  %v2433_v30 = vpop.xlane.xlu0 %2432  ;;  %v2831_v5 = vadd.f32 %v2830_v19, %v2829_v31  ;;  %v2842_v52 = vadd.f32 %v2841_v41, %v2840_v40 }
 0x2e7   : > { %2730 = vadd.xlane.f32.xlu2 %v7252_v43  ;;  %v2436_v35 = vsel %vm2434_vm10, %v2433_v30, 0.0  ;;  %v3078_v43 = vld [vmem:[#allocation3 + $0x5a8] sm:$0xff]  ;;  %vm2537_vm10 = vcmp.eq.s32.totalorder %v6053_v54, 71 }
 0x2e9   : > { %v2336_v8 = vpop.xlane.xlu1 %2335 }
 0x2ea   : > { %v2339_v12 = vsel %vm2337_vm1, %v2336_v8, 0.0  ;;  %v2164_v48 = vpop.xlane.xlu2 %2163  ;;  %vm2517_vm1 = vcmp.eq.s32.totalorder %v6053_v54, 21  ;;  %v3072_v8 = vld [vmem:[#allocation3 + $0x578] sm:$0xff] }
 0x2eb   : > { %v2341_v26 = vadd.f32 %v2339_v12, %v2330_v61  ;;  %v2167_v42 = vsel %vm2165_vm2, %v2164_v48, 0.0  ;;  %2876 = vadd.xlane.f32.xlu0 %v2875_v44  ;;  %vm2526_vm2 = vcmp.eq.s32.totalorder %v6053_v54, 46  ;;  %v3065_v48 = vld [vmem:[#allocation3 + $0x540] sm:$0xff]  ;;  %v3066_v44 = vld [vmem:[#allocation3 + $0x548] sm:$0xff] }
 0x2ec   : > { %v2169_v62 = vadd.f32 %v2167_v42, %v2158_v53  ;;  %3112 = vmatpush.msra.mxu1 %v3065_v48  ;;  %v2999_v48 = vld [vmem:[#allocation3 + $0x330] sm:$0xff] }
 0x2ee   : > { %2865 = vadd.xlane.f32.xlu1 %v2864_v14  ;;  %v2204_v13 = vadd.f32 %v2169_v62, %v6541_v11  ;;  %v2347_v16 = vpop.xlane.xlu0 %2346 }
 0x2ef   : > { %2821 = vadd.xlane.f32.xlu2 %v2820_v36  ;;  %v2350_v60 = vsel %vm2348_vm5, %v2347_v16, 0.0  ;;  %v3059_v36 = vld [vmem:[#allocation3 + $0x510] sm:$0xff]  ;;  %vm2501_vm5 = vcmp.eq.s32.totalorder %v6113_v3, 195  ;;  %v3053_v16 = vld [vmem:[#allocation3 + $0x4e0] sm:$0xff] }
 0x2f0   : > { %v2352_v20 = vadd.f32 %v2350_v60, %v2341_v26  ;;  %v3054_v60 = vld [vmem:[#allocation3 + $0x4e8] sm:$0xff]  ;;  %3113 = vmatpush.msra.mxu1 %v3059_v36  ;;  %v2939_v36 = vld [vmem:[#allocation3 + $0x150] sm:$0xff] }
 0x2f1   : > { %v2262_v55 = vpop.xlane.xlu1 %2261 }
 0x2f2   : > { %v2265_v0 = vsel %vm2263_vm6, %v2262_v55, 0.0  ;;  %v2273_v11 = vpop.xlane.xlu2 %2272  ;;  %vm2609_vm6 = vcmp.eq.s32.totalorder %v6053_v54, 22  ;;  %v2987_v55 = vld [vmem:[#allocation3 + $0x2d0] sm:$0xff]  ;;  %3114 = vmatpush.msra.mxu1 %v3053_v16 }
 0x2f3   : > { %v2267_v23 = vadd.f32 %v2265_v0, %v2256_v2  ;;  %v2277_v46 = vsel %vm2275_vm7, %v2273_v11, 0.0  ;;  %vm2456_vm7 = vcmp.eq.s32.totalorder %v6053_v54, 95  ;;  %v3048_v11 = vld [vmem:[#allocation3 + $0x4b8] sm:$0xff]  ;;  %3089 = vmatpush.msra.mxu0 %v2987_v55  ;;  %v2994_v55 = vld [vmem:[#allocation3 + $0x308] sm:$0xff] }
 0x2f4   : > { %v2290_v24 = vadd.f32 %v2288_v58, %v2277_v46 }
 0x2f5   : > { %v2302_v63 = vadd.f32 %v2267_v23, %v2204_v13  ;;  %v3060_v13 = vld [vmem:[#allocation3 + $0x518] sm:$0xff]  ;;  %v3047_v23 = vld [vmem:[#allocation3 + $0x4b0] sm:$0xff] }
 0x2f6   : > { %v2444_v22 = vpop.xlane.xlu0 %2443  ;;  %3115 = vmatpush.msra.mxu1 %v3047_v23  ;;  %v2933_v23 = vld [vmem:[#allocation3 + $0x120] sm:$0xff] }
 0x2f7   : > { %2832 = vadd.xlane.f32.xlu2 %v2831_v5  ;;  %v2447_v18 = vsel %vm2445_vm12, %v2444_v22, 0.0  ;;  %v3041_v22 = vld [vmem:[#allocation3 + $0x480] sm:$0xff]  ;;  %vm2629_vm12 = vcmp.eq.s32.totalorder %v6053_v54, 72 }
 0x2f8   : > { %3116 = vmatpush.msra.mxu1 %v3041_v22  ;;  %v2928_v22 = vld [vmem:[#allocation3 + $0xf8] sm:$0xff] }
 0x2f9   : > { %v2369_v15 = vpop.xlane.xlu1 %2368 }
 0x2fa   : > { %v2424_v59 = vpop.xlane.xlu2 %2423  ;;  %v2373_v34 = vsel %vm2371_vm9, %v2369_v15, 0.0  ;;  %v3042_v15 = vld [vmem:[#allocation3 + $0x488] sm:$0xff]  ;;  %vm2640_vm9 = vcmp.eq.s32.totalorder %v6053_v54, 97 }
 0x2fb   : > { %v2427_v33 = vsel %vm2425_vm11, %v2424_v59, 0.0  ;;  %vm2548_vm11 = vcmp.eq.s32.totalorder %v6053_v54, 96 }
 0x2fc   : > { %v2438_v61 = vadd.f32 %v2436_v35, %v2427_v33  ;;  %v2981_v35 = vld [vmem:[#allocation3 + $0x2a0] sm:$0xff]  ;;  %v3035_v33 = vld [vmem:[#allocation3 + $0x450] sm:$0xff] }
 0x2fd   : > { %3090 = vmatpush.msra.mxu0 %v2981_v35  ;;  %3117 = vmatpush.msra.mxu1 %v3035_v33  ;;  %v2922_v35 = vld [vmem:[#allocation3 + $0xc8] sm:$0xff] }
 0x2fe   : > { %v6619_v53 = vadd.f32 %v2447_v18, %v2438_v61  ;;  %v2358_v10 = vpop.xlane.xlu0 %2357  ;;  %v2982_v61 = vld [vmem:[#allocation3 + $0x2a8] sm:$0xff]  ;;  %v3036_v18 = vld [vmem:[#allocation3 + $0x458] sm:$0xff] }
 0x2ff   : > { %2843 = vadd.xlane.f32.xlu2 %v2842_v52  ;;  %v2361_v45 = vsel %vm2359_vm3, %v2358_v10, 0.0  ;;  %v2975_v52 = vld [vmem:[#allocation3 + $0x270] sm:$0xff]  ;;  %v3029_v10 = vld [vmem:[#allocation3 + $0x420] sm:$0xff]  ;;  %vm2467_vm3 = vcmp.eq.s32.totalorder %v6053_v54, 120 }
 0x300   : > { %v2363_v17 = vadd.f32 %v2361_v45, %v2352_v20  ;;  %v2988_v20 = vld [vmem:[#allocation3 + $0x2d8] sm:$0xff]  ;;  %3091 = vmatpush.msra.mxu0 %v2975_v52  ;;  %3118 = vmatpush.msra.mxu1 %v3029_v10  ;;  %v2915_v10 = vld [vmem:[#allocation3 + $0x90] sm:$0xff] }
 0x301   : > { %v2516_v47 = vpop.xlane.xlu1 %2515  ;;  %3129 = vmatpush.msra.mxu2 %v2988_v20  ;;  %v2976_v45 = vld [vmem:[#allocation3 + $0x278] sm:$0xff] }
 0x302   : > { %v2295_v50 = vpop.xlane.xlu2 %2294  ;;  %v6622_v4 = vadd.f32 %v2363_v17, %v2302_v63  ;;  %v2519_v42 = vsel %vm2517_vm1, %v2516_v47, 0.0  ;;  %v3030_v47 = vld [vmem:[#allocation3 + $0x428] sm:$0xff]  ;;  %v3068_v52 = vld [vmem:[#allocation3 + $0x558] sm:$0xff]  ;;  %vm2571_vm1 = vcmp.eq.s32.totalorder %v6113_v3, 146 }
 0x303   : > { %v2299_v27 = vsel %vm2297_vm8, %v2295_v50, 0.0  ;;  %3130 = vmatpush.msra.mxu2 %v2982_v61  ;;  %v2969_v50 = vld [vmem:[#allocation3 + $0x240] sm:$0xff]  ;;  %vm2559_vm8 = vcmp.eq.s32.totalorder %v6053_v54, 121 }
 0x304   : > { %v2301_v25 = vadd.f32 %v2299_v27, %v2290_v24  ;;  %v2970_v27 = vld [vmem:[#allocation3 + $0x248] sm:$0xff]  ;;  %3092 = vmatpush.msra.mxu0 %v2969_v50  ;;  %v3061_v50 = vld [vmem:[#allocation3 + $0x520] sm:$0xff] }
 0x305   : > { %3131 = vmatpush.msra.mxu2 %v2976_v45  ;;  %v2916_v45 = vld [vmem:[#allocation3 + $0x98] sm:$0xff] }
 0x306   : > { %v2303_v6 = vadd.f32 %v2301_v25, %v6575_v37  ;;  %v2477_v39 = vpop.xlane.xlu0 %2476  ;;  %v3084_v37 = vld [vmem:[#allocation3 + $0x5d8] sm:$0xff]  ;;  %v3023_v25 = vld [vmem:[#allocation3 + $0x3f0] sm:$0xff] }
 0x307   : > { %3149 = vmatpush.msra.mxu3 %v3084_v37  ;;  %v2481_v12 = vsel %vm2479_vm15, %v2477_v39, 0.0  ;;  %v2963_v39 = vld [vmem:[#allocation3 + $0x210] sm:$0xff]  ;;  %3132 = vmatpush.msra.mxu2 %v2970_v27  ;;  %v2957_v37 = vld [vmem:[#allocation3 + $0x1e0] sm:$0xff]  ;;  %v3062_v27 = vld [vmem:[#allocation3 + $0x528] sm:$0xff]  ;;  %vm2710_vm15 = vcmp.eq.s32.totalorder %v6053_v54, 48 }
 0x308   : > { %3119 = vmatpush.msra.mxu1 %v3023_v25  ;;  %3093 = vmatpush.msra.mxu0 %v2963_v39  ;;  %v2910_v25 = vld [vmem:[#allocation3 + $0x68] sm:$0xff]  ;;  %v3056_v39 = vld [vmem:[#allocation3 + $0x4f8] sm:$0xff] }
 0x309   : > { %v2391_v28 = vpop.xlane.xlu1 %2390  ;;  %3150 = vmatpush.msra.mxu3 %v3078_v43 }
 0x30a   : > { %v2380_v51 = vpop.xlane.xlu2 %2379  ;;  %v2395_v1 = vsel %vm2393_vm14, %v2391_v28, 0.0  ;;  %v2964_v28 = vld [vmem:[#allocation3 + $0x218] sm:$0xff]  ;;  %3094 = vmatpush.msra.mxu0 %v2957_v37  ;;  %vm2701_vm14 = vcmp.eq.s32.totalorder %v6053_v54, 23 }
 0x30b   : > { %v2384_v56 = vsel %vm2382_vm13, %v2380_v51, 0.0  ;;  %3151 = vmatpush.msra.mxu3 %v3072_v8  ;;  %3133 = vmatpush.msra.mxu2 %v2964_v28  ;;  %vm2651_vm13 = vcmp.eq.s32.totalorder %v6053_v54, 122 }
 0x30c   : > { %v2386_v21 = vadd.f32 %v2384_v56, %v2373_v34  ;;  %v3017_v34 = vld [vmem:[#allocation3 + $0x3c0] sm:$0xff]  ;;  %v3018_v56 = vld [vmem:[#allocation3 + $0x3c8] sm:$0xff] }
 0x30d   : > { %3152 = vmatpush.msra.mxu3 %v3066_v44  ;;  %3120 = vmatpush.msra.mxu1 %v3017_v34  ;;  %v2946_v44 = vld [vmem:[#allocation3 + $0x188] sm:$0xff]  ;;  %v2904_v34 = vld [vmem:[#allocation3 + $0x38] sm:$0xff] }
 0x30e   : > { %v2397_v9 = vadd.f32 %v2395_v1, %v2386_v21  ;;  %v2608_v2 = vpop.xlane.xlu0 %2607 }
 0x30f   : > { %3153 = vmatpush.msra.mxu3 %v3060_v13  ;;  %v2611_v58 = vsel %vm2609_vm6, %v2608_v2, 0.0  ;;  %v2958_v2 = vld [vmem:[#allocation3 + $0x1e8] sm:$0xff]  ;;  %3121 = vmatpush.msra.mxu1 %v3011_v49  ;;  %v2993_v13 = vld [vmem:[#allocation3 + $0x300] sm:$0xff]  ;;  %vm2663_vm6 = vcmp.eq.s32.totalorder %v6113_v3, 147 }
 0x310   : > { %v2399_v29 = vadd.f32 %v2397_v9, %v2303_v6  ;;  %v3024_v6 = vld [vmem:[#allocation3 + $0x3f8] sm:$0xff]  ;;  %3134 = vmatpush.msra.mxu2 %v2958_v2  ;;  %v2989_v49 = vld [vmem:[#allocation3 + $0x2e0] sm:$0xff]  ;;  %v3043_v2 = vld [vmem:[#allocation3 + $0x490] sm:$0xff] }
 0x311   : > { %v2488_v30 = vpop.xlane.xlu1 %2487  ;;  %3154 = vmatpush.msra.mxu3 %v3054_v60  ;;  %3122 = vmatpush.msra.mxu1 %v3005_v32  ;;  %v2940_v60 = vld [vmem:[#allocation3 + $0x158] sm:$0xff] }
 0x312   : > { %v2492_v38 = vsel %vm2490_vm0, %v2488_v30, 0.0  ;;  %v2525_v26 = vpop.xlane.xlu2 %2524  ;;  %v3012_v30 = vld [vmem:[#allocation3 + $0x398] sm:$0xff]  ;;  %vm2582_vm0 = vcmp.eq.s32.totalorder %v6113_v3, 171 }
 0x313   : > { %v2494_v7 = vadd.f32 %v2492_v38, %v2481_v12  ;;  %v2528_v14 = vsel %vm2526_vm2, %v2525_v26, 0.0  ;;  %3155 = vmatpush.msra.mxu3 %v3048_v11  ;;  %v2952_v12 = vld [vmem:[#allocation3 + $0x1b8] sm:$0xff]  ;;  %v3006_v38 = vld [vmem:[#allocation3 + $0x368] sm:$0xff]  ;;  %3123 = vmatpush.msra.mxu1 %v2999_v48  ;;  %vm2674_vm2 = vcmp.eq.s32.totalorder %v6113_v3, 172 }
 0x314   : > { %v6634_v62 = vadd.f32 %v2528_v14, %v2519_v42  ;;  %v3000_v42 = vld [vmem:[#allocation3 + $0x338] sm:$0xff]  ;;  %3135 = vmatpush.msra.mxu2 %v2952_v12  ;;  %v3037_v12 = vld [vmem:[#allocation3 + $0x460] sm:$0xff]  ;;  %v3038_v48 = vld [vmem:[#allocation3 + $0x468] sm:$0xff] }
 0x315   : > { %3156 = vmatpush.msra.mxu3 %v3042_v15  ;;  %3124 = vmatpush.msra.mxu1 %v2993_v13  ;;  %v2978_v13 = vld [vmem:[#allocation3 + $0x288] sm:$0xff] }
 0x316   : > { %v2499_v0 = vpop.xlane.xlu0 %2498  ;;  %3136 = vmatpush.msra.mxu2 %v2946_v44  ;;  %v2977_v44 = vld [vmem:[#allocation3 + $0x280] sm:$0xff] }
 0x317   : > { %v2503_v31 = vsel %vm2501_vm5, %v2499_v0, 0.0  ;;  %3157 = vmatpush.msra.mxu3 %v3036_v18  ;;  %v3067_v18 = vld [vmem:[#allocation3 + $0x550] sm:$0xff]  ;;  %vm2721_vm5 = vcmp.eq.s32.totalorder %v6053_v54, 73 }
 0x318   : > { %v2505_v46 = vadd.f32 %v2503_v31, %v2494_v7  ;;  %v2945_v7 = vld [vmem:[#allocation3 + $0x180] sm:$0xff]  ;;  %3137 = vmatpush.msra.mxu2 %v2940_v60  ;;  %v2971_v60 = vld [vmem:[#allocation3 + $0x250] sm:$0xff] }
 0x319   : > { %v2617_v19 = vpop.xlane.xlu1 %2616  ;;  %3158 = vmatpush.msra.mxu3 %v3030_v47  ;;  %v3085_v31 = vld [vmem:[#allocation3 + $0x5e0] sm:$0xff] }
 0x31a   : > { %v2620_v63 = vsel %vm2618_vm4, %v2617_v19, 0.0  ;;  %v2455_v5 = vpop.xlane.xlu2 %2454  ;;  %v6644_v40 = vadd.f32 %v2505_v46, %v2399_v29  ;;  %v2951_v29 = vld [vmem:[#allocation3 + $0x1b0] sm:$0xff]  ;;  %v3086_v19 = vld [vmem:[#allocation3 + $0x5e8] sm:$0xff]  ;;  %3189 = vmatpush.msrb.mxu1 %v3085_v31  ;;  %vm2593_vm4 = vcmp.eq.s32.totalorder %v6113_v3, 196 }
 0x31b   : > { %v6642_v24 = vadd.f32 %v2620_v63, %v2611_v58  ;;  %v2458_v41 = vsel %vm2456_vm7, %v2455_v5, 0.0  ;;  %3159 = vmatpush.msra.mxu3 %v3024_v6  ;;  %3095 = vmatpush.msra.mxu0 %v2951_v29  ;;  %v2934_v58 = vld [vmem:[#allocation3 + $0x128] sm:$0xff]  ;;  %v3079_v46 = vld [vmem:[#allocation3 + $0x5b0] sm:$0xff]  ;;  %v3080_v63 = vld [vmem:[#allocation3 + $0x5b8] sm:$0xff]  ;;  %vm2755_vm7 = vcmp.eq.s32.totalorder %v6113_v3, 148 }
 0x31c   : > { %v6647_v59 = vadd.f32 %v2458_v41, %v6619_v53  ;;  %3138 = vmatpush.msra.mxu2 %v2934_v58  ;;  %v2927_v5 = vld [vmem:[#allocation3 + $0xf0] sm:$0xff]  ;;  %3190 = vmatpush.msrb.mxu1 %v3079_v46  ;;  %v3074_v41 = vld [vmem:[#allocation3 + $0x588] sm:$0xff]  ;;  %v3044_v29 = vld [vmem:[#allocation3 + $0x498] sm:$0xff] }
 0x31d   : > { %3160 = vmatpush.msra.mxu3 %v3018_v56  ;;  %3096 = vmatpush.msra.mxu0 %v2945_v7  ;;  %v3055_v6 = vld [vmem:[#allocation3 + $0x4f0] sm:$0xff]  ;;  %v2966_v58 = vld [vmem:[#allocation3 + $0x228] sm:$0xff]  ;;  %v3020_v46 = vld [vmem:[#allocation3 + $0x3d8] sm:$0xff] }
 0x31e   : > { %v6649_v17 = vpop.xlane.xlu0 %2579  ;;  %3139 = vmatpush.msra.mxu2 %v2928_v22 }
 0x31f   : > { %3161 = vmatpush.msra.mxu3 %v3012_v30  ;;  %3097 = vmatpush.msra.mxu0 %v2939_v36  ;;  %v2990_v30 = vld [vmem:[#allocation3 + $0x2e8] sm:$0xff] }
 0x320   : > { %3140 = vmatpush.msra.mxu2 %v2922_v35  ;;  %v2954_v35 = vld [vmem:[#allocation3 + $0x1c8] sm:$0xff] }
 0x321   : > { %v2547_v53 = vpop.xlane.xlu1 %2546  ;;  %3162 = vmatpush.msra.mxu3 %v3006_v38  ;;  %3098 = vmatpush.msra.mxu0 %v2933_v23  ;;  %v2984_v38 = vld [vmem:[#allocation3 + $0x2b8] sm:$0xff]  ;;  %v3019_v23 = vld [vmem:[#allocation3 + $0x3d0] sm:$0xff] }
 0x322   : > { %v2536_v51 = vpop.xlane.xlu2 %2535  ;;  %v2550_v9 = vsel %vm2548_vm11, %v2547_v53, 0.0  ;;  %v2909_v53 = vld [vmem:[#allocation3 + $0x60] sm:$0xff]  ;;  %3141 = vmatpush.msra.mxu2 %v2916_v45  ;;  %v3002_v45 = vld [vmem:[#allocation3 + $0x348] sm:$0xff]  ;;  %vm2766_vm11 = vcmp.eq.s32.totalorder %v6113_v3, 173 }
 0x323   : > { %v2539_v21 = vsel %vm2537_vm10, %v2536_v51, 0.0  ;;  %3163 = vmatpush.msra.mxu3 %v3000_v42  ;;  %3099 = vmatpush.msra.mxu0 %v2927_v5  ;;  %v2903_v51 = vld [vmem:[#allocation3 + $0x30] sm:$0xff]  ;;  %v2960_v5 = vld [vmem:[#allocation3 + $0x1f8] sm:$0xff]  ;;  %vm2685_vm10 = vcmp.eq.s32.totalorder %v6113_v3, 197 }
 0x324   : > { %v2541_v1 = vadd.f32 %v2539_v21, %v6634_v62  ;;  %3142 = vmatpush.msra.mxu2 %v2910_v25  ;;  %v3049_v21 = vld [vmem:[#allocation3 + $0x4c0] sm:$0xff]  ;;  %v3031_v42 = vld [vmem:[#allocation3 + $0x430] sm:$0xff]  ;;  %v2996_v25 = vld [vmem:[#allocation3 + $0x318] sm:$0xff] }
 0x325   : > { %3164 = vmatpush.msra.mxu3 %v2994_v55 }
 0x326   : > { %v6655_v57 = vadd.f32 %v2550_v9, %v2541_v1  ;;  %v6657_v43 = vpop.xlane.xlu0 %2708  ;;  %v3050_v1 = vld [vmem:[#allocation3 + $0x4c8] sm:$0xff]  ;;  %v2897_v9 = vld [vmem:[#allocation3] sm:$0xff]  ;;  %3143 = vmatpush.msra.mxu2 %v2904_v34 }
 0x327   : > { %3229 = vmatpush.msrb.mxu3 %v3086_v19  ;;  %v2965_v19 = vld [vmem:[#allocation3 + $0x220] sm:$0xff] }
 0x329   : > { %v2628_v8 = vpop.xlane.xlu1 %2627  ;;  %3230 = vmatpush.msrb.mxu3 %v3080_v63  ;;  %v2959_v63 = vld [vmem:[#allocation3 + $0x1f0] sm:$0xff] }
 0x32a   : > { %v2631_v26 = vsel %vm2629_vm12, %v2628_v8, 0.0  ;;  %v2466_v62 = vpop.xlane.xlu2 %2465  ;;  %v2983_v8 = vld [vmem:[#allocation3 + $0x2b0] sm:$0xff]  ;;  %vm2732_vm12 = vcmp.eq.s32.totalorder %v6053_v54, 98 }
 0x32b   : > { %v6663_v14 = vadd.f32 %v2631_v26, %v6642_v24  ;;  %v2469_v16 = vsel %vm2467_vm3, %v2466_v62, 0.0  ;;  %3231 = vmatpush.msrb.mxu3 %v3074_v41  ;;  %v3007_v41 = vld [vmem:[#allocation3 + $0x370] sm:$0xff]  ;;  %vm2743_vm3 = vcmp.eq.s32.totalorder %v6053_v54, 123 }
 0x32c   : > { %v2471_v20 = vadd.f32 %v2469_v16, %v6647_v59  ;;  %v2921_v59 = vld [vmem:[#allocation3 + $0xc0] sm:$0xff]  ;;  %v3032_v16 = vld [vmem:[#allocation3 + $0x438] sm:$0xff] }
 0x32d   : > { %3100 = vmatpush.msra.mxu0 %v2921_v59  ;;  %3232 = vmatpush.msrb.mxu3 %v3068_v52  ;;  %v3001_v52 = vld [vmem:[#allocation3 + $0x340] sm:$0xff] }
 0x32e   : > { %v2506_v0 = vadd.f32 %v2471_v20, %v6622_v4  ;;  %v6670_v11 = vpop.xlane.xlu0 %2638  ;;  %v3073_v4 = vld [vmem:[#allocation3 + $0x580] sm:$0xff] }
 0x32f   : > { %3191 = vmatpush.msrb.mxu1 %v3073_v4  ;;  %3101 = vmatpush.msra.mxu0 %v2915_v10  ;;  %v2642_v32 = vsel %vm2640_vm9, %v6670_v11, 0.0  ;;  %v3025_v20 = vld [vmem:[#allocation3 + $0x400] sm:$0xff]  ;;  %v3014_v4 = vld [vmem:[#allocation3 + $0x3a8] sm:$0xff]  ;;  %v2948_v10 = vld [vmem:[#allocation3 + $0x198] sm:$0xff]  ;;  %vm2857_vm9 = vcmp.eq.s32.totalorder %v6113_v3, 149 }
 0x330   : > { %3233 = vmatpush.msrb.mxu3 %v3062_v27  ;;  %v2644_v7 = vadd.f32 %v2642_v32, %v6663_v14  ;;  %v3026_v14 = vld [vmem:[#allocation3 + $0x408] sm:$0xff]  ;;  %v2995_v27 = vld [vmem:[#allocation3 + $0x310] sm:$0xff]  ;;  %v2712_v32 = vsel %vm2710_vm15, %v6657_v43, 0.0  ;;  %vm2812_vm15 = vcmp.eq.s32.totalorder %v6053_v54, 49 }
 0x331   : > { %v2558_v24 = vpop.xlane.xlu1 %2557  ;;  %3192 = vmatpush.msrb.mxu1 %v3067_v18  ;;  %3102 = vmatpush.msra.mxu0 %v2909_v53  ;;  %v2947_v18 = vld [vmem:[#allocation3 + $0x190] sm:$0xff]  ;;  %v2942_v53 = vld [vmem:[#allocation3 + $0x168] sm:$0xff] }
 0x332   : > { %v2561_v15 = vsel %vm2559_vm8, %v2558_v24, 0.0  ;;  %v6675_v61 = vpop.xlane.xlu2 %2568  ;;  %3234 = vmatpush.msrb.mxu3 %v3056_v39  ;;  %v3013_v24 = vld [vmem:[#allocation3 + $0x3a0] sm:$0xff]  ;;  %v2936_v39 = vld [vmem:[#allocation3 + $0x138] sm:$0xff]  ;;  %v2906_v43 = vld [vmem:[#allocation3 + $0x48] sm:$0xff]  ;;  %vm2777_vm8 = vcmp.eq.s32.totalorder %v6113_v3, 198 }
 0x333   : > { %v2563_v33 = vadd.f32 %v2561_v15, %v6655_v57  ;;  %3193 = vmatpush.msrb.mxu1 %v3061_v50  ;;  %v2898_v57 = vld [vmem:[#allocation3 + $0x8] sm:$0xff]  ;;  %3103 = vmatpush.msra.mxu0 %v2903_v51  ;;  %v2953_v15 = vld [vmem:[#allocation3 + $0x1c0] sm:$0xff] }
 0x334   : > { %3235 = vmatpush.msrb.mxu3 %v3050_v1  ;;  %3144 = vmatpush.msra.mxu2 %v2898_v57  ;;  %v2941_v50 = vld [vmem:[#allocation3 + $0x160] sm:$0xff]  ;;  %v2924_v57 = vld [vmem:[#allocation3 + $0xd8] sm:$0xff] }
 0x335   : > { %v6677_v47 = vadd.f32 %v2563_v33, %v2506_v0  ;;  %3194 = vmatpush.msrb.mxu1 %v3055_v6  ;;  %3104 = vmatpush.msra.mxu0 %v2897_v9  ;;  %v2972_v0 = vld [vmem:[#allocation3 + $0x258] sm:$0xff]  ;;  %v2935_v6 = vld [vmem:[#allocation3 + $0x130] sm:$0xff]  ;;  %v2929_v51 = vld [vmem:[#allocation3 + $0x100] sm:$0xff] }
 0x336   : > { %v6679_v28 = vpop.xlane.xlu0 %2719  ;;  %3209 = vmatpush.msrb.mxu2 %v2990_v30  ;;  %3236 = vmatpush.msrb.mxu3 %v3044_v29  ;;  %v3008_v33 = vld [vmem:[#allocation3 + $0x378] sm:$0xff]  ;;  %v2923_v9 = vld [vmem:[#allocation3 + $0xd0] sm:$0xff]  ;;  %v2918_v29 = vld [vmem:[#allocation3 + $0xa8] sm:$0xff] }
 0x337   : > { %3195 = vmatpush.msrb.mxu1 %v3049_v21  ;;  %3169 = vmatpush.msrb.mxu0 %v2989_v49  ;;  %v2930_v21 = vld [vmem:[#allocation3 + $0x108] sm:$0xff] }
 0x338   : > { %3210 = vmatpush.msrb.mxu2 %v2984_v38  ;;  %3237 = vmatpush.msrb.mxu3 %v3038_v48  ;;  %v2584_v38 = vsel %vm2582_vm0, %v6649_v17, 0.0  ;;  %v2723_v17 = vsel %vm2721_vm5, %v6679_v28, 0.0  ;;  %vm2803_vm0 = vcmp.eq.s32.totalorder %v6053_v54, 24  ;;  %vm2845_vm5 = vcmp.eq.s32.totalorder %v6053_v54, 124 }
 0x339   : > { %v6681_v56 = vpop.xlane.xlu1 %2660  ;;  %3196 = vmatpush.msrb.mxu1 %v3043_v2  ;;  %3170 = vmatpush.msrb.mxu0 %v2983_v8  ;;  %v2917_v2 = vld [vmem:[#allocation3 + $0xa0] sm:$0xff] }
 0x33a   : > { %v6684_v37 = vpop.xlane.xlu2 %2699  ;;  %3211 = vmatpush.msrb.mxu2 %v2978_v13  ;;  %3238 = vmatpush.msrb.mxu3 %v3032_v16  ;;  %v2900_v16 = vld [vmem:[#allocation3 + $0x18] sm:$0xff] }
 0x33b   : > { %3197 = vmatpush.msrb.mxu1 %v3037_v12  ;;  %3171 = vmatpush.msrb.mxu0 %v2977_v44  ;;  %v2703_v30 = vsel %vm2701_vm14, %v6684_v37, 0.0  ;;  %v2911_v37 = vld [vmem:[#allocation3 + $0x70] sm:$0xff]  ;;  %v2912_v12 = vld [vmem:[#allocation3 + $0x78] sm:$0xff]  ;;  %v2905_v44 = vld [vmem:[#allocation3 + $0x40] sm:$0xff]  ;;  %vm2879_vm14 = vcmp.eq.s32.totalorder %v6113_v3, 199 }
 0x33c   : > { %3212 = vmatpush.msrb.mxu2 %v2972_v0  ;;  %3239 = vmatpush.msrb.mxu3 %v3026_v14  ;;  %v2714_v8 = vadd.f32 %v2712_v32, %v2703_v30  ;;  %v3064_v30 = vld [vmem:[#allocation3 + $0x538] sm:$0xff] }
 0x33d   : > { %3198 = vmatpush.msrb.mxu1 %v3031_v42  ;;  %3172 = vmatpush.msrb.mxu0 %v2971_v60 }
 0x33e   : > { %v2650_v26 = vpop.xlane.xlu0 %2649  ;;  %3213 = vmatpush.msrb.mxu2 %v2966_v58  ;;  %3240 = vmatpush.msrb.mxu3 %v3020_v46 }
 0x33f   : > { %v2653_v62 = vsel %vm2651_vm13, %v2650_v26, 0.0  ;;  %3199 = vmatpush.msrb.mxu1 %v3025_v20  ;;  %3173 = vmatpush.msrb.mxu0 %v2965_v19  ;;  %v2725_v20 = vadd.f32 %v2723_v17, %v2714_v8  ;;  %vm2868_vm13 = vcmp.eq.s32.totalorder %v6113_v3, 174  ;;  %v3082_v3 = vld [vmem:[#allocation3 + $0x5c8] sm:$0xff]  ;;  %v3040_v17 = vld [vmem:[#allocation3 + $0x478] sm:$0xff] }
 0x340   : > { %v2655_v55 = vadd.f32 %v2653_v62, %v2644_v7  ;;  %3214 = vmatpush.msrb.mxu2 %v2960_v5  ;;  %3241 = vmatpush.msrb.mxu3 %v3014_v4  ;;  %v2573_v7 = vsel %vm2571_vm1, %v6675_v61, 0.0  ;;  %v2899_v62 = vld [vmem:[#allocation3 + $0x10] sm:$0xff]  ;;  %v2665_v61 = vsel %vm2663_vm6, %v6681_v56, 0.0  ;;  %vm2823_vm1 = vcmp.eq.s32.totalorder %v6053_v54, 74  ;;  %v3058_v8 = vld [vmem:[#allocation3 + $0x508] sm:$0xff] }
 0x341   : > { %v6689_v36 = vpop.xlane.xlu1 %2801  ;;  %3200 = vmatpush.msrb.mxu1 %v3019_v23  ;;  %3174 = vmatpush.msrb.mxu0 %v2959_v63  ;;  %v2586_v60 = vadd.f32 %v2584_v38, %v2573_v7  ;;  %v3052_v38 = vld [vmem:[#allocation3 + $0x4d8] sm:$0xff] }
 0x342   : > { %v6691_v31 = vpop.xlane.xlu2 %2590  ;;  %v6694_v11 = vadd.f32 %v2655_v55, %v6677_v47  ;;  %3215 = vmatpush.msrb.mxu2 %v2954_v35  ;;  %3242 = vmatpush.msrb.mxu3 %v3008_v33 }
 0x343   : > { %3201 = vmatpush.msrb.mxu1 %v3013_v24  ;;  %3175 = vmatpush.msrb.mxu0 %v2953_v15  ;;  %v2595_v13 = vsel %vm2593_vm4, %v6691_v31, 0.0 }
 0x344   : > { %3216 = vmatpush.msrb.mxu2 %v2948_v10  ;;  %3243 = vmatpush.msrb.mxu3 %v3002_v45  ;;  %v2597_v14 = vadd.f32 %v2595_v13, %v2586_v60  ;;  %v2986_v13 = vld [vmem:[#allocation3 + $0x2c8] sm:$0xff] }
 0x345   : > { %3202 = vmatpush.msrb.mxu1 %v3007_v41  ;;  %3176 = vmatpush.msrb.mxu0 %v2947_v18  ;;  %v3034_v60 = vld [vmem:[#allocation3 + $0x448] sm:$0xff] }
 0x346   : > { %v6696_v22 = vpop.xlane.xlu0 %2752  ;;  %3217 = vmatpush.msrb.mxu2 %v2942_v53  ;;  %3244 = vmatpush.msrb.mxu3 %v2996_v25  ;;  %v2599_v4 = vadd.f32 %v2597_v14, %v6644_v40  ;;  %v3087_v40 = vld [vmem:[#allocation3 + $0x5f0] sm:$0xff]  ;;  %v3088_v53 = vld [vmem:[#allocation3 + $0x5f8] sm:$0xff]  ;;  %v2974_v14 = vld [vmem:[#allocation3 + $0x268] sm:$0xff] }
 0x347   : > { %3203 = vmatpush.msrb.mxu1 %v3001_v52  ;;  %3177 = vmatpush.msrb.mxu0 %v2941_v50  ;;  %v2757_v19 = vsel %vm2755_vm7, %v6696_v22, 0.0 }
 0x348   : > { %3218 = vmatpush.msrb.mxu2 %v2936_v39  ;;  %v3076_v39 = vld [vmem:[#allocation3 + $0x598] sm:$0xff] }
 0x349   : > { %v6698_v59 = vpop.xlane.xlu1 %2682  ;;  %3204 = vmatpush.msrb.mxu1 %v2995_v27  ;;  %3178 = vmatpush.msrb.mxu0 %v2935_v6  ;;  %v3075_v6 = vld [vmem:[#allocation3 + $0x590] sm:$0xff] }
 0x34a   : > { %v2672_v47 = vpop.xlane.xlu2 %2671  ;;  %3219 = vmatpush.msrb.mxu2 %v2930_v21  ;;  %v2687_v23 = vsel %vm2685_vm10, %v6698_v59, 0.0  ;;  %v3070_v21 = vld [vmem:[#allocation3 + $0x568] sm:$0xff] }
 0x34b   : > { %3179 = vmatpush.msrb.mxu0 %v2929_v51  ;;  %v2676_v26 = vsel %vm2674_vm2, %v2672_v47, 0.0  ;;  %vm2834_vm2 = vcmp.eq.s32.totalorder %v6053_v54, 99  ;;  %v2992_v54 = vld [vmem:[#allocation3 + $0x2f8] sm:$0xff] }
 0x34c   : > { %3220 = vmatpush.msrb.mxu2 %v2924_v57  ;;  %v2678_v55 = vadd.f32 %v2676_v26, %v2665_v61  ;;  %v2985_v61 = vld [vmem:[#allocation3 + $0x2c0] sm:$0xff] }
 0x34d   : > { %3180 = vmatpush.msrb.mxu0 %v2923_v9 }
 0x34e   : > { %v6700_v34 = vpop.xlane.xlu0 %2741  ;;  %3221 = vmatpush.msrb.mxu2 %v2918_v29  ;;  %v2689_v63 = vadd.f32 %v2687_v23, %v2678_v55  ;;  %v2979_v55 = vld [vmem:[#allocation3 + $0x290] sm:$0xff]  ;;  %v2968_v23 = vld [vmem:[#allocation3 + $0x238] sm:$0xff] }
 0x34f   : > { %3181 = vmatpush.msrb.mxu0 %v2917_v2  ;;  %v2745_v58 = vsel %vm2743_vm3, %v6700_v34, 0.0  ;;  %v3069_v34 = vld [vmem:[#allocation3 + $0x560] sm:$0xff]  ;;  %v3063_v2 = vld [vmem:[#allocation3 + $0x530] sm:$0xff] }
 0x350   : > { %3222 = vmatpush.msrb.mxu2 %v2912_v12  ;;  %v2691_v18 = vadd.f32 %v2689_v63, %v2599_v4  ;;  %v3051_v12 = vld [vmem:[#allocation3 + $0x4d0] sm:$0xff] }
 0x351   : > { %v2764_v1 = vpop.xlane.xlu1 %2763  ;;  %3182 = vmatpush.msrb.mxu0 %v2911_v37  ;;  %v3015_v63 = vld [vmem:[#allocation3 + $0x3b0] sm:$0xff] }
 0x352   : > { %v6704_v49 = vpop.xlane.xlu2 %2810  ;;  %3223 = vmatpush.msrb.mxu2 %v2906_v43  ;;  %v2768_v28 = vsel %vm2766_vm11, %v2764_v1, 0.0  ;;  %v2805_v1 = vsel %vm2803_vm0, %v6689_v36, 0.0  ;;  %v2955_v4 = vld [vmem:[#allocation3 + $0x1d0] sm:$0xff] }
 0x353   : > { %3183 = vmatpush.msrb.mxu0 %v2905_v44  ;;  %v2770_v24 = vadd.f32 %v2768_v28, %v2757_v19  ;;  %v2814_v51 = vsel %vm2812_vm15, %v6704_v49, 0.0  ;;  %v3057_v49 = vld [vmem:[#allocation3 + $0x500] sm:$0xff]  ;;  %v3046_v44 = vld [vmem:[#allocation3 + $0x4a8] sm:$0xff]  ;;  %v3028_v28 = vld [vmem:[#allocation3 + $0x418] sm:$0xff] }
 0x354   : > { %3224 = vmatpush.msrb.mxu2 %v2900_v16  ;;  %v2816_v57 = vadd.f32 %v2814_v51, %v2805_v1  ;;  %v3033_v16 = vld [vmem:[#allocation3 + $0x440] sm:$0xff]  ;;  %v3503_v51 = vld [vmem:[#allocation5 + $0x570] sm:$0xff]  ;;  %v2926_v1 = vld [vmem:[#allocation3 + $0xe8] sm:$0xff] }
 0x355   : > { %3184 = vmatpush.msrb.mxu0 %v2899_v62  ;;  %v3039_v62 = vld [vmem:[#allocation3 + $0x470] sm:$0xff]  ;;  %v3021_v19 = vld [vmem:[#allocation3 + $0x3e0] sm:$0xff] }
 0x356   : > { %v2855_v48 = vpop.xlane.xlu0 %2854 }
 0x357   : > { %v2859_v59 = vsel %vm2857_vm9, %v2855_v48, 0.0  ;;  %v3045_v48 = vld [vmem:[#allocation3 + $0x4a0] sm:$0xff] }
 0x359   : > { %v2775_v42 = vpop.xlane.xlu1 %2774 }
 0x35a   : > { %v2731_v0 = vpop.xlane.xlu2 %2730  ;;  %v2779_v46 = vsel %vm2777_vm8, %v2775_v42, 0.0  ;;  %v2991_v42 = vld [vmem:[#allocation3 + $0x2f0] sm:$0xff] }
 0x35b   : > { %v2734_v56 = vsel %vm2732_vm12, %v2731_v0, 0.0  ;;  %v2781_v15 = vadd.f32 %v2779_v46, %v2770_v24  ;;  %v3027_v0 = vld [vmem:[#allocation3 + $0x410] sm:$0xff]  ;;  %v2961_v46 = vld [vmem:[#allocation3 + $0x200] sm:$0xff]  ;;  %v2962_v24 = vld [vmem:[#allocation3 + $0x208] sm:$0xff] }
 0x35c   : > { %v2736_v31 = vadd.f32 %v2734_v56, %v2725_v20  ;;  %v2980_v20 = vld [vmem:[#allocation3 + $0x298] sm:$0xff]  ;;  %v2973_v56 = vld [vmem:[#allocation3 + $0x260] sm:$0xff] }
 0x35d   : > { %v2783_v47 = vadd.f32 %v2781_v15, %v2691_v18  ;;  %v3009_v15 = vld [vmem:[#allocation3 + $0x380] sm:$0xff]  ;;  %v3004_v18 = vld [vmem:[#allocation3 + $0x358] sm:$0xff] }
 0x35e   : > { %v2747_v5 = vadd.f32 %v2745_v58, %v2736_v31  ;;  %v2877_v22 = vpop.xlane.xlu0 %2876  ;;  %v2967_v31 = vld [vmem:[#allocation3 + $0x230] sm:$0xff]  ;;  %v3022_v58 = vld [vmem:[#allocation3 + $0x3e8] sm:$0xff] }
 0x35f   : > { %v2881_v45 = vsel %vm2879_vm14, %v2877_v22, 0.0  ;;  %v2956_v22 = vld [vmem:[#allocation3 + $0x1d8] sm:$0xff] }
 0x360   : > { %v2782_v35 = vadd.f32 %v2747_v5, %v6694_v11  ;;  %v3081_v11 = vld [vmem:[#allocation3 + $0x5c0] sm:$0xff]  ;;  %v3016_v5 = vld [vmem:[#allocation3 + $0x3b8] sm:$0xff] }
 0x361   : > { %v2866_v41 = vpop.xlane.xlu1 %2865 }
 0x362   : > { %v2870_v33 = vsel %vm2868_vm13, %v2866_v41, 0.0  ;;  %v2822_v10 = vpop.xlane.xlu2 %2821  ;;  %v3010_v41 = vld [vmem:[#allocation3 + $0x388] sm:$0xff] }
 0x363   : > { %v2872_v52 = vadd.f32 %v2870_v33, %v2859_v59  ;;  %v2825_v9 = vsel %vm2823_vm1, %v2822_v10, 0.0  ;;  %v3003_v59 = vld [vmem:[#allocation3 + $0x350] sm:$0xff]  ;;  %v2950_v33 = vld [vmem:[#allocation3 + $0x1a8] sm:$0xff]  ;;  %v2997_v10 = vld [vmem:[#allocation3 + $0x320] sm:$0xff] }
 0x364   : > { %v2827_v32 = vadd.f32 %v2825_v9, %v2816_v57  ;;  %v3497_v9 = vld [vmem:[#allocation5 + $0x540] sm:$0xff]  ;;  %v3498_v57 = vld [vmem:[#allocation5 + $0x548] sm:$0xff] }
 0x365   : > { %v2883_v50 = vadd.f32 %v2881_v45, %v2872_v52  ;;  %v2943_v52 = vld [vmem:[#allocation3 + $0x170] sm:$0xff]  ;;  %v2944_v45 = vld [vmem:[#allocation3 + $0x178] sm:$0xff] }
 0x367   : > { %v6751_v27 = vadd.f32 %v2883_v50, %v2783_v47  ;;  %v2998_v47 = vld [vmem:[#allocation3 + $0x328] sm:$0xff]  ;;  %v3515_v50 = vld [vmem:[#allocation5 + $0x5d0] sm:$0xff] }
 0x369   : > { %3125 = vmatmul.f32.vlgmr.msra.gmra.mxu1 %v6751_v27  ;;  %3165 = vmatmul.f32.vlgmr.msra.gmra.mxu3 %v6751_v27 }
 0x36a   : > { %3269 = vmatpush.msra.mxu1 %v3087_v40  ;;  %3309 = vmatpush.msra.mxu3 %v3088_v53  ;;  %v2833_v25 = vpop.xlane.xlu2 %2832  ;;  %v3516_v40 = vld [vmem:[#allocation5 + $0x5d8] sm:$0xff]  ;;  %v2937_v53 = vld [vmem:[#allocation3 + $0x140] sm:$0xff] }
 0x36b   : > { %v2836_v29 = vsel %vm2834_vm2, %v2833_v25, 0.0  ;;  %v3510_v25 = vld [vmem:[#allocation5 + $0x5a8] sm:$0xff] }
 0x36c   : > { %3270 = vmatpush.msra.mxu1 %v3081_v11  ;;  %3310 = vmatpush.msra.mxu3 %v3082_v3  ;;  %v2838_v36 = vadd.f32 %v2836_v29, %v2827_v32  ;;  %v2938_v11 = vld [vmem:[#allocation3 + $0x148] sm:$0xff]  ;;  %v3509_v3 = vld [vmem:[#allocation5 + $0x5a0] sm:$0xff]  ;;  %v3491_v29 = vld [vmem:[#allocation5 + $0x510] sm:$0xff] }
 0x36d   : > { %v3492_v32 = vld [vmem:[#allocation5 + $0x518] sm:$0xff] }
 0x36e   : > { %3271 = vmatpush.msra.mxu1 %v3075_v6  ;;  %3311 = vmatpush.msra.mxu3 %v3076_v39  ;;  %v2931_v6 = vld [vmem:[#allocation3 + $0x110] sm:$0xff]  ;;  %v2932_v39 = vld [vmem:[#allocation3 + $0x118] sm:$0xff] }
 0x370   : > { %3272 = vmatpush.msra.mxu1 %v3069_v34  ;;  %3312 = vmatpush.msra.mxu3 %v3070_v21  ;;  %v3504_v34 = vld [vmem:[#allocation5 + $0x578] sm:$0xff]  ;;  %v2925_v21 = vld [vmem:[#allocation3 + $0xe0] sm:$0xff] }
 0x371   : > { %3205 = vmatmul.f32.vlgmr.msrb.gmra.mxu1 %v6751_v27  ;;  %3245 = vmatmul.f32.vlgmr.msrb.gmra.mxu3 %v6751_v27 }
 0x372   : > { %3273 = vmatpush.msra.mxu1 %v3063_v2  ;;  %3313 = vmatpush.msra.mxu3 %v3064_v30  ;;  %v2844_v37 = vpop.xlane.xlu2 %2843  ;;  %v2919_v2 = vld [vmem:[#allocation3 + $0xb0] sm:$0xff]  ;;  %v2920_v30 = vld [vmem:[#allocation3 + $0xb8] sm:$0xff] }
 0x373   : > { %v2847_v7 = vsel %vm2845_vm5, %v2844_v37, 0.0  ;;  %v3486_v37 = vld [vmem:[#allocation5 + $0x4e8] sm:$0xff] }
 0x374   : > { %3274 = vmatpush.msra.mxu1 %v3057_v49  ;;  %3314 = vmatpush.msra.mxu3 %v3058_v8  ;;  %v2849_v26 = vadd.f32 %v2847_v7, %v2838_v36  ;;  %v2913_v49 = vld [vmem:[#allocation3 + $0x80] sm:$0xff]  ;;  %v2914_v8 = vld [vmem:[#allocation3 + $0x88] sm:$0xff]  ;;  %v3479_v7 = vld [vmem:[#allocation5 + $0x4b0] sm:$0xff] }
 0x375   : > { %v3485_v36 = vld [vmem:[#allocation5 + $0x4e0] sm:$0xff] }
 0x376   : > { %3275 = vmatpush.msra.mxu1 %v3051_v12  ;;  %3315 = vmatpush.msra.mxu3 %v3052_v38  ;;  %v6764_v43 = vadd.f32 %v2849_v26, %v2782_v35  ;;  %v2949_v35 = vld [vmem:[#allocation3 + $0x1a0] sm:$0xff]  ;;  %v2907_v12 = vld [vmem:[#allocation3 + $0x50] sm:$0xff]  ;;  %v2908_v38 = vld [vmem:[#allocation3 + $0x58] sm:$0xff] }
 0x377   : > { %v3480_v26 = vld [vmem:[#allocation5 + $0x4b8] sm:$0xff] }
 0x378   : > { %3276 = vmatpush.msra.mxu1 %v3045_v48  ;;  %3316 = vmatpush.msra.mxu3 %v3046_v44  ;;  %v2901_v48 = vld [vmem:[#allocation3 + $0x20] sm:$0xff]  ;;  %v2902_v44 = vld [vmem:[#allocation3 + $0x28] sm:$0xff] }
 0x379   : > { %3105 = vmatmul.f32.vlgmr.msra.gmra.mxu0 %v6764_v43  ;;  %3145 = vmatmul.f32.vlgmr.msra.gmra.mxu2 %v6764_v43 }
 0x37a   : > { %3249 = vmatpush.msra.mxu0 %v2991_v42  ;;  %3289 = vmatpush.msra.mxu2 %v2992_v54  ;;  %v3419_v42 = vld [vmem:[#allocation5 + $0x2d0] sm:$0xff]  ;;  %v3473_v54 = vld [vmem:[#allocation5 + $0x480] sm:$0xff] }
 0x37b   : > { %3277 = vmatpush.msra.mxu1 %v3039_v62  ;;  %3317 = vmatpush.msra.mxu3 %v3040_v17  ;;  %v3420_v62 = vld [vmem:[#allocation5 + $0x2d8] sm:$0xff]  ;;  %v3474_v17 = vld [vmem:[#allocation5 + $0x488] sm:$0xff] }
 0x37c   : > { %3250 = vmatpush.msra.mxu0 %v2985_v61  ;;  %3290 = vmatpush.msra.mxu2 %v2986_v13  ;;  %v3413_v61 = vld [vmem:[#allocation5 + $0x2a0] sm:$0xff]  ;;  %v3467_v13 = vld [vmem:[#allocation5 + $0x450] sm:$0xff] }
 0x37d   : > { %3278 = vmatpush.msra.mxu1 %v3033_v16  ;;  %3318 = vmatpush.msra.mxu3 %v3034_v60  ;;  %v3414_v16 = vld [vmem:[#allocation5 + $0x2a8] sm:$0xff]  ;;  %v3468_v60 = vld [vmem:[#allocation5 + $0x458] sm:$0xff] }
 0x37e   : > { %3251 = vmatpush.msra.mxu0 %v2979_v55  ;;  %3291 = vmatpush.msra.mxu2 %v2980_v20  ;;  %v3407_v55 = vld [vmem:[#allocation5 + $0x270] sm:$0xff]  ;;  %v3461_v20 = vld [vmem:[#allocation5 + $0x420] sm:$0xff] }
 0x37f   : > { %3279 = vmatpush.msra.mxu1 %v3027_v0  ;;  %3319 = vmatpush.msra.mxu3 %v3028_v28  ;;  %v3408_v0 = vld [vmem:[#allocation5 + $0x278] sm:$0xff]  ;;  %v3462_v28 = vld [vmem:[#allocation5 + $0x428] sm:$0xff] }
 0x380   : > { %3252 = vmatpush.msra.mxu0 %v2973_v56  ;;  %3292 = vmatpush.msra.mxu2 %v2974_v14  ;;  %v3401_v56 = vld [vmem:[#allocation5 + $0x240] sm:$0xff]  ;;  %v3455_v14 = vld [vmem:[#allocation5 + $0x3f0] sm:$0xff] }
 0x381   : > { %3185 = vmatmul.f32.vlgmr.msrb.gmra.mxu0 %v6764_v43  ;;  %3225 = vmatmul.f32.vlgmr.msrb.gmra.mxu2 %v6764_v43 }
 0x382   : > { %3253 = vmatpush.msra.mxu0 %v2967_v31  ;;  %3280 = vmatpush.msra.mxu1 %v3021_v19  ;;  %v3402_v31 = vld [vmem:[#allocation5 + $0x248] sm:$0xff]  ;;  %v3456_v19 = vld [vmem:[#allocation5 + $0x3f8] sm:$0xff] }
 0x383   : > { %3293 = vmatpush.msra.mxu2 %v2968_v23  ;;  %3320 = vmatpush.msra.mxu3 %v3022_v58  ;;  %v3395_v23 = vld [vmem:[#allocation5 + $0x210] sm:$0xff]  ;;  %v3449_v58 = vld [vmem:[#allocation5 + $0x3c0] sm:$0xff] }
 0x384   : > { %3254 = vmatpush.msra.mxu0 %v2961_v46  ;;  %3281 = vmatpush.msra.mxu1 %v3015_v63  ;;  %v3396_v46 = vld [vmem:[#allocation5 + $0x218] sm:$0xff]  ;;  %v3450_v63 = vld [vmem:[#allocation5 + $0x3c8] sm:$0xff] }
 0x385   : > { %3294 = vmatpush.msra.mxu2 %v2962_v24  ;;  %3321 = vmatpush.msra.mxu3 %v3016_v5  ;;  %v3389_v24 = vld [vmem:[#allocation5 + $0x1e0] sm:$0xff]  ;;  %v3443_v5 = vld [vmem:[#allocation5 + $0x390] sm:$0xff] }
 0x386   : > { %3255 = vmatpush.msra.mxu0 %v2955_v4  ;;  %3282 = vmatpush.msra.mxu1 %v3009_v15  ;;  %v3390_v4 = vld [vmem:[#allocation5 + $0x1e8] sm:$0xff]  ;;  %v3444_v15 = vld [vmem:[#allocation5 + $0x398] sm:$0xff] }
 0x387   : > { %3295 = vmatpush.msra.mxu2 %v2956_v22  ;;  %3322 = vmatpush.msra.mxu3 %v3010_v41  ;;  %v3383_v22 = vld [vmem:[#allocation5 + $0x1b0] sm:$0xff]  ;;  %v3437_v41 = vld [vmem:[#allocation5 + $0x360] sm:$0xff] }
 0x388   : > { %3256 = vmatpush.msra.mxu0 %v2949_v35  ;;  %3283 = vmatpush.msra.mxu1 %v3003_v59  ;;  %v3384_v35 = vld [vmem:[#allocation5 + $0x1b8] sm:$0xff]  ;;  %v3438_v59 = vld [vmem:[#allocation5 + $0x368] sm:$0xff] }
 0x389   : > { %3296 = vmatpush.msra.mxu2 %v2950_v33  ;;  %3323 = vmatpush.msra.mxu3 %v3004_v18  ;;  %v3377_v33 = vld [vmem:[#allocation5 + $0x180] sm:$0xff]  ;;  %v3431_v18 = vld [vmem:[#allocation5 + $0x330] sm:$0xff] }
 0x38a   : > { %3257 = vmatpush.msra.mxu0 %v2943_v52  ;;  %3284 = vmatpush.msra.mxu1 %v2997_v10  ;;  %v3378_v52 = vld [vmem:[#allocation5 + $0x188] sm:$0xff]  ;;  %v3432_v10 = vld [vmem:[#allocation5 + $0x338] sm:$0xff] }
 0x38b   : > { %3297 = vmatpush.msra.mxu2 %v2944_v45  ;;  %3324 = vmatpush.msra.mxu3 %v2998_v47  ;;  %v3371_v45 = vld [vmem:[#allocation5 + $0x150] sm:$0xff]  ;;  %v3425_v47 = vld [vmem:[#allocation5 + $0x300] sm:$0xff] }
 0x38c   : > { %3285 = vmatmul.f32.vlgmr.msra.gmra.mxu1 %v6751_v27  ;;  %3325 = vmatmul.f32.vlgmr.msra.gmra.mxu3 %v6751_v27 }
 0x38d   : > { %3541 = vmatpush.msrb.mxu1 %v3515_v50  ;;  %3581 = vmatpush.msrb.mxu3 %v3516_v40  ;;  %v3372_v50 = vld [vmem:[#allocation5 + $0x158] sm:$0xff]  ;;  %v3426_v40 = vld [vmem:[#allocation5 + $0x308] sm:$0xff] }
 0x38e   : > { %3258 = vmatpush.msra.mxu0 %v2937_v53  ;;  %3298 = vmatpush.msra.mxu2 %v2938_v11  ;;  %v3517_v53 = vld [vmem:[#allocation5 + $0x5e0] sm:$0xff]  ;;  %v3518_v11 = vld [vmem:[#allocation5 + $0x5e8] sm:$0xff] }
 0x38f   : > { %3542 = vmatpush.msrb.mxu1 %v3509_v3  ;;  %3582 = vmatpush.msrb.mxu3 %v3510_v25  ;;  %v3365_v3 = vld [vmem:[#allocation5 + $0x120] sm:$0xff]  ;;  %v3366_v25 = vld [vmem:[#allocation5 + $0x128] sm:$0xff] }
 0x390   : > { %3259 = vmatpush.msra.mxu0 %v2931_v6  ;;  %3299 = vmatpush.msra.mxu2 %v2932_v39  ;;  %v3511_v6 = vld [vmem:[#allocation5 + $0x5b0] sm:$0xff]  ;;  %v3512_v39 = vld [vmem:[#allocation5 + $0x5b8] sm:$0xff] }
 0x391   : > { %3543 = vmatpush.msrb.mxu1 %v3503_v51  ;;  %3583 = vmatpush.msrb.mxu3 %v3504_v34  ;;  %v3359_v51 = vld [vmem:[#allocation5 + $0xf0] sm:$0xff]  ;;  %v3360_v34 = vld [vmem:[#allocation5 + $0xf8] sm:$0xff] }
 0x392   : > { %3260 = vmatpush.msra.mxu0 %v2925_v21  ;;  %3300 = vmatpush.msra.mxu2 %v2926_v1  ;;  %v3505_v21 = vld [vmem:[#allocation5 + $0x580] sm:$0xff]  ;;  %v3506_v1 = vld [vmem:[#allocation5 + $0x588] sm:$0xff] }
 0x393   : > { %3544 = vmatpush.msrb.mxu1 %v3497_v9  ;;  %3584 = vmatpush.msrb.mxu3 %v3498_v57  ;;  %v3353_v9 = vld [vmem:[#allocation5 + $0xc0] sm:$0xff]  ;;  %v3354_v57 = vld [vmem:[#allocation5 + $0xc8] sm:$0xff] }
 0x394   : > { %3261 = vmatpush.msra.mxu0 %v2919_v2  ;;  %3301 = vmatpush.msra.mxu2 %v2920_v30  ;;  %v3499_v2 = vld [vmem:[#allocation5 + $0x550] sm:$0xff]  ;;  %v3500_v30 = vld [vmem:[#allocation5 + $0x558] sm:$0xff] }
 0x395   : > { %3545 = vmatpush.msrb.mxu1 %v3491_v29  ;;  %3585 = vmatpush.msrb.mxu3 %v3492_v32  ;;  %v3347_v29 = vld [vmem:[#allocation5 + $0x90] sm:$0xff]  ;;  %v3348_v32 = vld [vmem:[#allocation5 + $0x98] sm:$0xff] }
 0x396   : > { %3262 = vmatpush.msra.mxu0 %v2913_v49  ;;  %3302 = vmatpush.msra.mxu2 %v2914_v8  ;;  %v3493_v49 = vld [vmem:[#allocation5 + $0x520] sm:$0xff]  ;;  %v3494_v8 = vld [vmem:[#allocation5 + $0x528] sm:$0xff] }
 0x397   : > { %3546 = vmatpush.msrb.mxu1 %v3485_v36  ;;  %3586 = vmatpush.msrb.mxu3 %v3486_v37  ;;  %v3341_v36 = vld [vmem:[#allocation5 + $0x60] sm:$0xff]  ;;  %v3342_v37 = vld [vmem:[#allocation5 + $0x68] sm:$0xff] }
 0x398   : > { %3263 = vmatpush.msra.mxu0 %v2907_v12  ;;  %3303 = vmatpush.msra.mxu2 %v2908_v38  ;;  %v3487_v12 = vld [vmem:[#allocation5 + $0x4f0] sm:$0xff]  ;;  %v3488_v38 = vld [vmem:[#allocation5 + $0x4f8] sm:$0xff] }
 0x399   : > { %3547 = vmatpush.msrb.mxu1 %v3479_v7  ;;  %3587 = vmatpush.msrb.mxu3 %v3480_v26  ;;  %v3335_v7 = vld [vmem:[#allocation5 + $0x30] sm:$0xff]  ;;  %v3336_v26 = vld [vmem:[#allocation5 + $0x38] sm:$0xff] }
 0x39a   : > { %3264 = vmatpush.msra.mxu0 %v2901_v48  ;;  %3304 = vmatpush.msra.mxu2 %v2902_v44  ;;  %v3481_v48 = vld [vmem:[#allocation5 + $0x4c0] sm:$0xff]  ;;  %v3482_v44 = vld [vmem:[#allocation5 + $0x4c8] sm:$0xff] }
 0x39b   : > { %3265 = vmatmul.f32.vlgmr.msra.gmra.mxu0 %v6764_v43  ;;  %3305 = vmatmul.f32.vlgmr.msra.gmra.mxu2 %v6764_v43 }
 0x39c   : > { %3521 = vmatpush.msrb.mxu0 %v3419_v42  ;;  %3548 = vmatpush.msrb.mxu1 %v3473_v54  ;;  %v3329_v42 = vld [vmem:[#allocation5] sm:$0xff]  ;;  %v3330_v54 = vld [vmem:[#allocation5 + $0x8] sm:$0xff] }
 0x39d   : > { %3561 = vmatpush.msrb.mxu2 %v3420_v62  ;;  %3588 = vmatpush.msrb.mxu3 %v3474_v17  ;;  %v3421_v62 = vld [vmem:[#allocation5 + $0x2e0] sm:$0xff]  ;;  %v3475_v17 = vld [vmem:[#allocation5 + $0x490] sm:$0xff] }
 0x39e   : > { %3522 = vmatpush.msrb.mxu0 %v3413_v61  ;;  %3549 = vmatpush.msrb.mxu1 %v3467_v13  ;;  %v3422_v61 = vld [vmem:[#allocation5 + $0x2e8] sm:$0xff]  ;;  %v3476_v13 = vld [vmem:[#allocation5 + $0x498] sm:$0xff] }
 0x39f   : > { %3562 = vmatpush.msrb.mxu2 %v3414_v16  ;;  %3589 = vmatpush.msrb.mxu3 %v3468_v60  ;;  %v3415_v16 = vld [vmem:[#allocation5 + $0x2b0] sm:$0xff]  ;;  %v3469_v60 = vld [vmem:[#allocation5 + $0x460] sm:$0xff] }
 0x3a0   : > { %3523 = vmatpush.msrb.mxu0 %v3407_v55  ;;  %3550 = vmatpush.msrb.mxu1 %v3461_v20  ;;  %v3416_v55 = vld [vmem:[#allocation5 + $0x2b8] sm:$0xff]  ;;  %v3470_v20 = vld [vmem:[#allocation5 + $0x468] sm:$0xff] }
 0x3a1   : > { %3563 = vmatpush.msrb.mxu2 %v3408_v0  ;;  %3590 = vmatpush.msrb.mxu3 %v3462_v28  ;;  %v3409_v0 = vld [vmem:[#allocation5 + $0x280] sm:$0xff]  ;;  %v3463_v28 = vld [vmem:[#allocation5 + $0x430] sm:$0xff] }
 0x3a2   : > { %3524 = vmatpush.msrb.mxu0 %v3401_v56  ;;  %3551 = vmatpush.msrb.mxu1 %v3455_v14  ;;  %v3410_v56 = vld [vmem:[#allocation5 + $0x288] sm:$0xff]  ;;  %v3464_v14 = vld [vmem:[#allocation5 + $0x438] sm:$0xff] }
 0x3a3   : > { %3564 = vmatpush.msrb.mxu2 %v3402_v31  ;;  %3591 = vmatpush.msrb.mxu3 %v3456_v19  ;;  %v3403_v31 = vld [vmem:[#allocation5 + $0x250] sm:$0xff]  ;;  %v3457_v19 = vld [vmem:[#allocation5 + $0x400] sm:$0xff] }
 0x3a4   : > { %3525 = vmatpush.msrb.mxu0 %v3395_v23  ;;  %3552 = vmatpush.msrb.mxu1 %v3449_v58  ;;  %v3404_v23 = vld [vmem:[#allocation5 + $0x258] sm:$0xff]  ;;  %v3458_v58 = vld [vmem:[#allocation5 + $0x408] sm:$0xff] }
 0x3a5   : > { %3565 = vmatpush.msrb.mxu2 %v3396_v46  ;;  %3592 = vmatpush.msrb.mxu3 %v3450_v63  ;;  %v3397_v46 = vld [vmem:[#allocation5 + $0x220] sm:$0xff]  ;;  %v3451_v63 = vld [vmem:[#allocation5 + $0x3d0] sm:$0xff] }
 0x3a6   : > { %3526 = vmatpush.msrb.mxu0 %v3389_v24  ;;  %3553 = vmatpush.msrb.mxu1 %v3443_v5  ;;  %v3398_v24 = vld [vmem:[#allocation5 + $0x228] sm:$0xff]  ;;  %v3452_v5 = vld [vmem:[#allocation5 + $0x3d8] sm:$0xff] }
 0x3a7   : > { %3566 = vmatpush.msrb.mxu2 %v3390_v4  ;;  %3593 = vmatpush.msrb.mxu3 %v3444_v15  ;;  %v3391_v4 = vld [vmem:[#allocation5 + $0x1f0] sm:$0xff]  ;;  %v3445_v15 = vld [vmem:[#allocation5 + $0x3a0] sm:$0xff] }
 0x3a8   : > { %3527 = vmatpush.msrb.mxu0 %v3383_v22  ;;  %3554 = vmatpush.msrb.mxu1 %v3437_v41  ;;  %v3392_v22 = vld [vmem:[#allocation5 + $0x1f8] sm:$0xff]  ;;  %v3446_v41 = vld [vmem:[#allocation5 + $0x3a8] sm:$0xff] }
 0x3a9   : > { %3567 = vmatpush.msrb.mxu2 %v3384_v35  ;;  %3594 = vmatpush.msrb.mxu3 %v3438_v59  ;;  %v3385_v35 = vld [vmem:[#allocation5 + $0x1c0] sm:$0xff]  ;;  %v3439_v59 = vld [vmem:[#allocation5 + $0x370] sm:$0xff] }
 0x3aa   : > { %3528 = vmatpush.msrb.mxu0 %v3377_v33  ;;  %3555 = vmatpush.msrb.mxu1 %v3431_v18  ;;  %v3386_v33 = vld [vmem:[#allocation5 + $0x1c8] sm:$0xff]  ;;  %v3440_v18 = vld [vmem:[#allocation5 + $0x378] sm:$0xff] }
 0x3ab   : > { %3568 = vmatpush.msrb.mxu2 %v3378_v52  ;;  %3595 = vmatpush.msrb.mxu3 %v3432_v10  ;;  %v3379_v52 = vld [vmem:[#allocation5 + $0x190] sm:$0xff]  ;;  %v3433_v10 = vld [vmem:[#allocation5 + $0x340] sm:$0xff] }
 0x3ac   : > { %3529 = vmatpush.msrb.mxu0 %v3371_v45  ;;  %3556 = vmatpush.msrb.mxu1 %v3425_v47  ;;  %v3380_v45 = vld [vmem:[#allocation5 + $0x198] sm:$0xff]  ;;  %v3434_v47 = vld [vmem:[#allocation5 + $0x348] sm:$0xff] }
 0x3ad   : > { %3569 = vmatpush.msrb.mxu2 %v3372_v50  ;;  %3596 = vmatpush.msrb.mxu3 %v3426_v40  ;;  %v3373_v50 = vld [vmem:[#allocation5 + $0x160] sm:$0xff]  ;;  %v3427_v40 = vld [vmem:[#allocation5 + $0x310] sm:$0xff] }
 0x3ae   : > { %3557 = vmatmul.f32.vlgmr.msrb.gmra.mxu1 %v6751_v27  ;;  %3597 = vmatmul.f32.vlgmr.msrb.gmra.mxu3 %v6751_v27 }
 0x3af   : > { %3621 = vmatpush.msra.mxu1 %v3517_v53  ;;  %3661 = vmatpush.msra.mxu3 %v3518_v11  ;;  %v3374_v53 = vld [vmem:[#allocation5 + $0x168] sm:$0xff]  ;;  %v3428_v11 = vld [vmem:[#allocation5 + $0x318] sm:$0xff] }
 0x3b0   : > { %3530 = vmatpush.msrb.mxu0 %v3365_v3  ;;  %3570 = vmatpush.msrb.mxu2 %v3366_v25  ;;  %v3519_v3 = vld [vmem:[#allocation5 + $0x5f0] sm:$0xff]  ;;  %v3520_v25 = vld [vmem:[#allocation5 + $0x5f8] sm:$0xff] }
 0x3b1   : > { %3622 = vmatpush.msra.mxu1 %v3511_v6  ;;  %3662 = vmatpush.msra.mxu3 %v3512_v39  ;;  %v3367_v6 = vld [vmem:[#allocation5 + $0x130] sm:$0xff]  ;;  %v3368_v39 = vld [vmem:[#allocation5 + $0x138] sm:$0xff] }
 0x3b2   : > { %3531 = vmatpush.msrb.mxu0 %v3359_v51  ;;  %3571 = vmatpush.msrb.mxu2 %v3360_v34  ;;  %v3513_v51 = vld [vmem:[#allocation5 + $0x5c0] sm:$0xff]  ;;  %v3514_v34 = vld [vmem:[#allocation5 + $0x5c8] sm:$0xff] }
 0x3b3   : > { %3623 = vmatpush.msra.mxu1 %v3505_v21  ;;  %3663 = vmatpush.msra.mxu3 %v3506_v1  ;;  %v3361_v21 = vld [vmem:[#allocation5 + $0x100] sm:$0xff]  ;;  %v3362_v1 = vld [vmem:[#allocation5 + $0x108] sm:$0xff] }
 0x3b4   : > { %3532 = vmatpush.msrb.mxu0 %v3353_v9  ;;  %3572 = vmatpush.msrb.mxu2 %v3354_v57  ;;  %v3507_v9 = vld [vmem:[#allocation5 + $0x590] sm:$0xff]  ;;  %v3508_v57 = vld [vmem:[#allocation5 + $0x598] sm:$0xff] }
 0x3b5   : > { %3624 = vmatpush.msra.mxu1 %v3499_v2  ;;  %3664 = vmatpush.msra.mxu3 %v3500_v30  ;;  %v3355_v2 = vld [vmem:[#allocation5 + $0xd0] sm:$0xff]  ;;  %v3356_v30 = vld [vmem:[#allocation5 + $0xd8] sm:$0xff] }
 0x3b6   : > { %3533 = vmatpush.msrb.mxu0 %v3347_v29  ;;  %3573 = vmatpush.msrb.mxu2 %v3348_v32  ;;  %v3501_v29 = vld [vmem:[#allocation5 + $0x560] sm:$0xff]  ;;  %v3502_v32 = vld [vmem:[#allocation5 + $0x568] sm:$0xff] }
 0x3b7   : > { %3625 = vmatpush.msra.mxu1 %v3493_v49  ;;  %3665 = vmatpush.msra.mxu3 %v3494_v8  ;;  %v3349_v49 = vld [vmem:[#allocation5 + $0xa0] sm:$0xff]  ;;  %v3350_v8 = vld [vmem:[#allocation5 + $0xa8] sm:$0xff] }
 0x3b8   : > { %3534 = vmatpush.msrb.mxu0 %v3341_v36  ;;  %3574 = vmatpush.msrb.mxu2 %v3342_v37  ;;  %v3495_v36 = vld [vmem:[#allocation5 + $0x530] sm:$0xff]  ;;  %v3496_v37 = vld [vmem:[#allocation5 + $0x538] sm:$0xff] }
 0x3b9   : > { %3626 = vmatpush.msra.mxu1 %v3487_v12  ;;  %3666 = vmatpush.msra.mxu3 %v3488_v38  ;;  %v3343_v12 = vld [vmem:[#allocation5 + $0x70] sm:$0xff]  ;;  %v3344_v38 = vld [vmem:[#allocation5 + $0x78] sm:$0xff] }
 0x3ba   : > { %3535 = vmatpush.msrb.mxu0 %v3335_v7  ;;  %3575 = vmatpush.msrb.mxu2 %v3336_v26  ;;  %v3489_v7 = vld [vmem:[#allocation5 + $0x500] sm:$0xff]  ;;  %v3490_v26 = vld [vmem:[#allocation5 + $0x508] sm:$0xff] }
 0x3bb   : > { %3627 = vmatpush.msra.mxu1 %v3481_v48  ;;  %3667 = vmatpush.msra.mxu3 %v3482_v44  ;;  %v3337_v48 = vld [vmem:[#allocation5 + $0x40] sm:$0xff]  ;;  %v3338_v44 = vld [vmem:[#allocation5 + $0x48] sm:$0xff] }
 0x3bc   : > { %3536 = vmatpush.msrb.mxu0 %v3329_v42  ;;  %3576 = vmatpush.msrb.mxu2 %v3330_v54  ;;  %v3483_v42 = vld [vmem:[#allocation5 + $0x4d0] sm:$0xff]  ;;  %v3484_v54 = vld [vmem:[#allocation5 + $0x4d8] sm:$0xff] }
 0x3bd   : > { %3537 = vmatmul.f32.vlgmr.msrb.gmra.mxu0 %v6764_v43  ;;  %3577 = vmatmul.f32.vlgmr.msrb.gmra.mxu2 %v6764_v43 }
 0x3be   : > { %3601 = vmatpush.msra.mxu0 %v3421_v62  ;;  %3628 = vmatpush.msra.mxu1 %v3475_v17  ;;  %v3331_v62 = vld [vmem:[#allocation5 + $0x10] sm:$0xff]  ;;  %v3332_v17 = vld [vmem:[#allocation5 + $0x18] sm:$0xff] }
 0x3bf   : > { %3641 = vmatpush.msra.mxu2 %v3422_v61  ;;  %3668 = vmatpush.msra.mxu3 %v3476_v13  ;;  %v3423_v61 = vld [vmem:[#allocation5 + $0x2f0] sm:$0xff]  ;;  %v3477_v13 = vld [vmem:[#allocation5 + $0x4a0] sm:$0xff] }
 0x3c0   : > { %3602 = vmatpush.msra.mxu0 %v3415_v16  ;;  %3629 = vmatpush.msra.mxu1 %v3469_v60  ;;  %v3424_v16 = vld [vmem:[#allocation5 + $0x2f8] sm:$0xff]  ;;  %v3478_v60 = vld [vmem:[#allocation5 + $0x4a8] sm:$0xff] }
 0x3c1   : > { %3642 = vmatpush.msra.mxu2 %v3416_v55  ;;  %3669 = vmatpush.msra.mxu3 %v3470_v20  ;;  %v3417_v55 = vld [vmem:[#allocation5 + $0x2c0] sm:$0xff]  ;;  %v3471_v20 = vld [vmem:[#allocation5 + $0x470] sm:$0xff] }
 0x3c2   : > { %3603 = vmatpush.msra.mxu0 %v3409_v0  ;;  %3630 = vmatpush.msra.mxu1 %v3463_v28  ;;  %v3418_v0 = vld [vmem:[#allocation5 + $0x2c8] sm:$0xff]  ;;  %v3472_v28 = vld [vmem:[#allocation5 + $0x478] sm:$0xff] }
 0x3c3   : > { %3643 = vmatpush.msra.mxu2 %v3410_v56  ;;  %3670 = vmatpush.msra.mxu3 %v3464_v14  ;;  %v3411_v56 = vld [vmem:[#allocation5 + $0x290] sm:$0xff]  ;;  %v3465_v14 = vld [vmem:[#allocation5 + $0x440] sm:$0xff] }
 0x3c4   : > { %3604 = vmatpush.msra.mxu0 %v3403_v31  ;;  %3631 = vmatpush.msra.mxu1 %v3457_v19  ;;  %v3412_v31 = vld [vmem:[#allocation5 + $0x298] sm:$0xff]  ;;  %v3466_v19 = vld [vmem:[#allocation5 + $0x448] sm:$0xff] }
 0x3c5   : > { %3644 = vmatpush.msra.mxu2 %v3404_v23  ;;  %3671 = vmatpush.msra.mxu3 %v3458_v58  ;;  %v3405_v23 = vld [vmem:[#allocation5 + $0x260] sm:$0xff]  ;;  %v3459_v58 = vld [vmem:[#allocation5 + $0x410] sm:$0xff] }
 0x3c6   : > { %3605 = vmatpush.msra.mxu0 %v3397_v46  ;;  %3632 = vmatpush.msra.mxu1 %v3451_v63  ;;  %v3406_v46 = vld [vmem:[#allocation5 + $0x268] sm:$0xff]  ;;  %v3460_v63 = vld [vmem:[#allocation5 + $0x418] sm:$0xff] }
 0x3c7   : > { %3645 = vmatpush.msra.mxu2 %v3398_v24  ;;  %3672 = vmatpush.msra.mxu3 %v3452_v5  ;;  %v3399_v24 = vld [vmem:[#allocation5 + $0x230] sm:$0xff]  ;;  %v3453_v5 = vld [vmem:[#allocation5 + $0x3e0] sm:$0xff] }
 0x3c8   : > { %3606 = vmatpush.msra.mxu0 %v3391_v4  ;;  %3633 = vmatpush.msra.mxu1 %v3445_v15  ;;  %v3400_v4 = vld [vmem:[#allocation5 + $0x238] sm:$0xff]  ;;  %v3454_v15 = vld [vmem:[#allocation5 + $0x3e8] sm:$0xff] }
 0x3c9   : > { %3646 = vmatpush.msra.mxu2 %v3392_v22  ;;  %3673 = vmatpush.msra.mxu3 %v3446_v41  ;;  %v3393_v22 = vld [vmem:[#allocation5 + $0x200] sm:$0xff]  ;;  %v3447_v41 = vld [vmem:[#allocation5 + $0x3b0] sm:$0xff] }
 0x3ca   : > { %3607 = vmatpush.msra.mxu0 %v3385_v35  ;;  %3634 = vmatpush.msra.mxu1 %v3439_v59  ;;  %v3394_v35 = vld [vmem:[#allocation5 + $0x208] sm:$0xff]  ;;  %v3448_v59 = vld [vmem:[#allocation5 + $0x3b8] sm:$0xff] }
 0x3cb   : > { %3647 = vmatpush.msra.mxu2 %v3386_v33  ;;  %3674 = vmatpush.msra.mxu3 %v3440_v18  ;;  %v3387_v33 = vld [vmem:[#allocation5 + $0x1d0] sm:$0xff]  ;;  %v3441_v18 = vld [vmem:[#allocation5 + $0x380] sm:$0xff] }
 0x3cc   : > { %3608 = vmatpush.msra.mxu0 %v3379_v52  ;;  %3635 = vmatpush.msra.mxu1 %v3433_v10  ;;  %v3388_v52 = vld [vmem:[#allocation5 + $0x1d8] sm:$0xff]  ;;  %v3442_v10 = vld [vmem:[#allocation5 + $0x388] sm:$0xff] }
 0x3cd   : > { %3648 = vmatpush.msra.mxu2 %v3380_v45  ;;  %3675 = vmatpush.msra.mxu3 %v3434_v47  ;;  %v3381_v45 = vld [vmem:[#allocation5 + $0x1a0] sm:$0xff]  ;;  %v3435_v47 = vld [vmem:[#allocation5 + $0x350] sm:$0xff] }
 0x3ce   : > { %3609 = vmatpush.msra.mxu0 %v3373_v50  ;;  %3636 = vmatpush.msra.mxu1 %v3427_v40  ;;  %v3382_v50 = vld [vmem:[#allocation5 + $0x1a8] sm:$0xff]  ;;  %v3436_v40 = vld [vmem:[#allocation5 + $0x358] sm:$0xff] }
 0x3cf   : > { %3649 = vmatpush.msra.mxu2 %v3374_v53  ;;  %3676 = vmatpush.msra.mxu3 %v3428_v11  ;;  %v3375_v53 = vld [vmem:[#allocation5 + $0x170] sm:$0xff]  ;;  %v3429_v11 = vld [vmem:[#allocation5 + $0x320] sm:$0xff] }
 0x3d0   : > { %3637 = vmatmul.f32.vlgmr.msra.gmra.mxu1 %v6751_v27  ;;  %3677 = vmatmul.f32.vlgmr.msra.gmra.mxu3 %v6751_v27 }
 0x3d1   : > { %3701 = vmatpush.msrb.mxu1 %v3519_v3  ;;  %3741 = vmatpush.msrb.mxu3 %v3520_v25  ;;  %v3376_v3 = vld [vmem:[#allocation5 + $0x178] sm:$0xff]  ;;  %v3430_v25 = vld [vmem:[#allocation5 + $0x328] sm:$0xff] }
 0x3d2   : > { %3610 = vmatpush.msra.mxu0 %v3367_v6  ;;  %3650 = vmatpush.msra.mxu2 %v3368_v39  ;;  %v3369_v6 = vld [vmem:[#allocation5 + $0x140] sm:$0xff]  ;;  %v3370_v39 = vld [vmem:[#allocation5 + $0x148] sm:$0xff] }
 0x3d3   : > { %3702 = vmatpush.msrb.mxu1 %v3513_v51  ;;  %3742 = vmatpush.msrb.mxu3 %v3514_v34  ;;  %v3363_v51 = vld [vmem:[#allocation5 + $0x110] sm:$0xff]  ;;  %v3364_v34 = vld [vmem:[#allocation5 + $0x118] sm:$0xff] }
 0x3d4   : > { %3611 = vmatpush.msra.mxu0 %v3361_v21  ;;  %3651 = vmatpush.msra.mxu2 %v3362_v1  ;;  %v3357_v21 = vld [vmem:[#allocation5 + $0xe0] sm:$0xff]  ;;  %v3358_v1 = vld [vmem:[#allocation5 + $0xe8] sm:$0xff] }
 0x3d5   : > { %3703 = vmatpush.msrb.mxu1 %v3507_v9  ;;  %3743 = vmatpush.msrb.mxu3 %v3508_v57  ;;  %v3351_v9 = vld [vmem:[#allocation5 + $0xb0] sm:$0xff]  ;;  %v3352_v57 = vld [vmem:[#allocation5 + $0xb8] sm:$0xff] }
 0x3d6   : > { %3612 = vmatpush.msra.mxu0 %v3355_v2  ;;  %3652 = vmatpush.msra.mxu2 %v3356_v30  ;;  %v3345_v2 = vld [vmem:[#allocation5 + $0x80] sm:$0xff]  ;;  %v3346_v30 = vld [vmem:[#allocation5 + $0x88] sm:$0xff] }
 0x3d7   : > { %3704 = vmatpush.msrb.mxu1 %v3501_v29  ;;  %3744 = vmatpush.msrb.mxu3 %v3502_v32  ;;  %v3339_v29 = vld [vmem:[#allocation5 + $0x50] sm:$0xff]  ;;  %v3340_v32 = vld [vmem:[#allocation5 + $0x58] sm:$0xff] }
 0x3d8   : > { %3613 = vmatpush.msra.mxu0 %v3349_v49  ;;  %3653 = vmatpush.msra.mxu2 %v3350_v8  ;;  %v3334_v49 = vld [vmem:[#allocation5 + $0x28] sm:$0xff]  ;;  %v3797_v8 = vld [vmem:[#allocation7 + $0xf0] sm:$0xff] }
 0x3d9   : > { %3705 = vmatpush.msrb.mxu1 %v3495_v36  ;;  %3745 = vmatpush.msrb.mxu3 %v3496_v37  ;;  %v3861_v36 = vld [vmem:[#allocation7 + $0x2f0] sm:$0xff]  ;;  %v3795_v37 = vld [vmem:[#allocation7 + $0xe0] sm:$0xff] }
 0x3da   : > { %3614 = vmatpush.msra.mxu0 %v3343_v12  ;;  %3654 = vmatpush.msra.mxu2 %v3344_v38  ;;  %v3859_v12 = vld [vmem:[#allocation7 + $0x2e0] sm:$0xff]  ;;  %v3829_v38 = vld [vmem:[#allocation7 + $0x1f0] sm:$0xff] }
 0x3db   : > { %3706 = vmatpush.msrb.mxu1 %v3489_v7  ;;  %3746 = vmatpush.msrb.mxu3 %v3490_v26  ;;  %v3793_v7 = vld [vmem:[#allocation7 + $0xd0] sm:$0xff] }
 0x3dc   : > { %3615 = vmatpush.msra.mxu0 %v3337_v48  ;;  %3655 = vmatpush.msra.mxu2 %v3338_v44  ;;  %v3893_v26 = vld [vmem:[#allocation7 + $0x3f0] sm:$0xff]  ;;  %v3827_v44 = vld [vmem:[#allocation7 + $0x1e0] sm:$0xff] }
 0x3dd   : > { %3707 = vmatpush.msrb.mxu1 %v3483_v42  ;;  %3747 = vmatpush.msrb.mxu3 %v3484_v54  ;;  %v3857_v48 = vld [vmem:[#allocation7 + $0x2d0] sm:$0xff]  ;;  %v3891_v42 = vld [vmem:[#allocation7 + $0x3e0] sm:$0xff] }
 0x3de   : > { %3616 = vmatpush.msra.mxu0 %v3331_v62  ;;  %3656 = vmatpush.msra.mxu2 %v3332_v17  ;;  %v3825_v54 = vld [vmem:[#allocation7 + $0x1d0] sm:$0xff]  ;;  %v3791_v62 = vld [vmem:[#allocation7 + $0xc0] sm:$0xff] }
 0x3df   : > { %3617 = vmatmul.f32.vlgmr.msra.gmra.mxu0 %v6764_v43  ;;  %3657 = vmatmul.f32.vlgmr.msra.gmra.mxu2 %v6764_v43  ;;  %v3855_v17 = vld [vmem:[#allocation7 + $0x2c0] sm:$0xff] }
 0x3e0   : > { %3681 = vmatpush.msrb.mxu0 %v3423_v61  ;;  %3708 = vmatpush.msrb.mxu1 %v3477_v13 }
 0x3e1   : > { %3721 = vmatpush.msrb.mxu2 %v3424_v16  ;;  %3748 = vmatpush.msrb.mxu3 %v3478_v60  ;;  %v3789_v16 = vld [vmem:[#allocation7 + $0xb0] sm:$0xff] }
 0x3e2   : > { %3682 = vmatpush.msrb.mxu0 %v3417_v55  ;;  %3709 = vmatpush.msrb.mxu1 %v3471_v20  ;;  %v3853_v60 = vld [vmem:[#allocation7 + $0x2b0] sm:$0xff]  ;;  %v3787_v55 = vld [vmem:[#allocation7 + $0xa0] sm:$0xff] }
 0x3e3   : > { %3722 = vmatpush.msrb.mxu2 %v3418_v0  ;;  %3749 = vmatpush.msrb.mxu3 %v3472_v28  ;;  %v3851_v20 = vld [vmem:[#allocation7 + $0x2a0] sm:$0xff]  ;;  %v3785_v0 = vld [vmem:[#allocation7 + $0x90] sm:$0xff] }
 0x3e4   : > { %3683 = vmatpush.msrb.mxu0 %v3411_v56  ;;  %3710 = vmatpush.msrb.mxu1 %v3465_v14  ;;  %v3823_v28 = vld [vmem:[#allocation7 + $0x1c0] sm:$0xff]  ;;  %v3849_v56 = vld [vmem:[#allocation7 + $0x290] sm:$0xff] }
 0x3e5   : > { %3723 = vmatpush.msrb.mxu2 %v3412_v31  ;;  %3750 = vmatpush.msrb.mxu3 %v3466_v19  ;;  %v3887_v19 = vld [vmem:[#allocation7 + $0x3c0] sm:$0xff] }
 0x3e6   : > { %3684 = vmatpush.msrb.mxu0 %v3405_v23  ;;  %3711 = vmatpush.msrb.mxu1 %v3459_v58  ;;  %v6786_v61 = vpop.f32.mrf.mxu1  ;;  %v3783_v23 = vld [vmem:[#allocation7 + $0x80] sm:$0xff]  ;;  %v3821_v58 = vld [vmem:[#allocation7 + $0x1b0] sm:$0xff] }
 0x3e7   : > { %3724 = vmatpush.msrb.mxu2 %v3406_v46  ;;  %3751 = vmatpush.msrb.mxu3 %v3460_v63  ;;  %v3847_v46 = vld [vmem:[#allocation7 + $0x280] sm:$0xff]  ;;  %v3885_v63 = vld [vmem:[#allocation7 + $0x3b0] sm:$0xff] }
 0x3e8   : > { %3685 = vmatpush.msrb.mxu0 %v3399_v24  ;;  %3712 = vmatpush.msrb.mxu1 %v3453_v5  ;;  %v3781_v24 = vld [vmem:[#allocation7 + $0x70] sm:$0xff]  ;;  %v3819_v5 = vld [vmem:[#allocation7 + $0x1a0] sm:$0xff] }
 0x3e9   : > { %3725 = vmatpush.msrb.mxu2 %v3400_v4  ;;  %3752 = vmatpush.msrb.mxu3 %v3454_v15  ;;  %v3845_v4 = vld [vmem:[#allocation7 + $0x270] sm:$0xff]  ;;  %v3883_v15 = vld [vmem:[#allocation7 + $0x3a0] sm:$0xff] }
 0x3ea   : > { %3686 = vmatpush.msrb.mxu0 %v3393_v22  ;;  %3713 = vmatpush.msrb.mxu1 %v3447_v41 }
 0x3eb   : > { %3726 = vmatpush.msrb.mxu2 %v3394_v35  ;;  %3753 = vmatpush.msrb.mxu3 %v3448_v59  ;;  %v3779_v35 = vld [vmem:[#allocation7 + $0x60] sm:$0xff]  ;;  %v3817_v59 = vld [vmem:[#allocation7 + $0x190] sm:$0xff] }
 0x3ec   : > { %3687 = vmatpush.msrb.mxu0 %v3387_v33  ;;  %3714 = vmatpush.msrb.mxu1 %v3441_v18  ;;  %v6790_v14 = vpop.f32.mrf.mxu3  ;;  %v3843_v33 = vld [vmem:[#allocation7 + $0x260] sm:$0xff]  ;;  %v3881_v18 = vld [vmem:[#allocation7 + $0x390] sm:$0xff] }
 0x3ed   : > { %3727 = vmatpush.msrb.mxu2 %v3388_v52  ;;  %3754 = vmatpush.msrb.mxu3 %v3442_v10  ;;  %v3777_v52 = vld [vmem:[#allocation7 + $0x50] sm:$0xff]  ;;  %v3815_v10 = vld [vmem:[#allocation7 + $0x180] sm:$0xff] }
 0x3ee   : > { %3688 = vmatpush.msrb.mxu0 %v3381_v45  ;;  %3715 = vmatpush.msrb.mxu1 %v3435_v47  ;;  %v6794_v22 = vpop.f32.mrf.mxu1  ;;  %v3841_v45 = vld [vmem:[#allocation7 + $0x250] sm:$0xff]  ;;  %v3879_v47 = vld [vmem:[#allocation7 + $0x380] sm:$0xff] }
 0x3ef   : > { %3728 = vmatpush.msrb.mxu2 %v3382_v50  ;;  %3755 = vmatpush.msrb.mxu3 %v3436_v40  ;;  %v3775_v50 = vld [vmem:[#allocation7 + $0x40] sm:$0xff]  ;;  %v3813_v40 = vld [vmem:[#allocation7 + $0x170] sm:$0xff] }
 0x3f0   : > { %3689 = vmatpush.msrb.mxu0 %v3375_v53  ;;  %3716 = vmatpush.msrb.mxu1 %v3429_v11  ;;  %v3839_v53 = vld [vmem:[#allocation7 + $0x240] sm:$0xff]  ;;  %v3877_v11 = vld [vmem:[#allocation7 + $0x370] sm:$0xff] }
 0x3f1   : > { %3729 = vmatpush.msrb.mxu2 %v3376_v3  ;;  %3756 = vmatpush.msrb.mxu3 %v3430_v25  ;;  %v3811_v3 = vld [vmem:[#allocation7 + $0x160] sm:$0xff] }
 0x3f2   : > { %3717 = vmatmul.f32.vlgmr.msrb.gmra.mxu1 %v6751_v27  ;;  %3757 = vmatmul.f32.vlgmr.msrb.gmra.mxu3 %v6751_v27  ;;  %v3333_v27 = vld [vmem:[#allocation5 + $0x20] sm:$0xff] }
 0x3f3   : > { %3690 = vmatpush.msrb.mxu0 %v3369_v6  ;;  %3730 = vmatpush.msrb.mxu2 %v3370_v39  ;;  %v3773_v39 = vld [vmem:[#allocation7 + $0x30] sm:$0xff] }
 0x3f4   : > { %3979 = vmatpush.msra.mxu1 %v3829_v38  ;;  %4019 = vmatpush.msra.mxu3 %v3893_v26  ;;  %v6798_v25 = vpop.f32.mrf.mxu3  ;;  %v3767_v38 = vld [vmem:[#allocation7] sm:$0xff] }
 0x3f5   : > { %3691 = vmatpush.msrb.mxu0 %v3363_v51  ;;  %3731 = vmatpush.msrb.mxu2 %v3364_v34  ;;  %v3837_v51 = vld [vmem:[#allocation7 + $0x230] sm:$0xff]  ;;  %v3875_v34 = vld [vmem:[#allocation7 + $0x360] sm:$0xff] }
 0x3f6   : > { %3980 = vmatpush.msra.mxu1 %v3827_v44  ;;  %4020 = vmatpush.msra.mxu3 %v3891_v42  ;;  %v6788_v13 = vpop.f32.mrf.mxu0  ;;  %v3831_v26 = vld [vmem:[#allocation7 + $0x200] sm:$0xff]  ;;  %v3798_v44 = vld [vmem:[#allocation7 + $0xf8] sm:$0xff] }
 0x3f7   : > { %3692 = vmatpush.msrb.mxu0 %v3357_v21  ;;  %3732 = vmatpush.msrb.mxu2 %v3358_v1  ;;  %v3803_v42 = vld [vmem:[#allocation7 + $0x120] sm:$0xff] }
 0x3f8   : > { %3981 = vmatpush.msra.mxu1 %v3825_v54  ;;  %v3867_v54 = vld [vmem:[#allocation7 + $0x320] sm:$0xff] }
 0x3f9   : > { %3693 = vmatpush.msrb.mxu0 %v3351_v9  ;;  %3733 = vmatpush.msrb.mxu2 %v3352_v57  ;;  %v3771_v57 = vld [vmem:[#allocation7 + $0x20] sm:$0xff] }
 0x3fa   : > { %3982 = vmatpush.msra.mxu1 %v3823_v28  ;;  %v3830_v28 = vld [vmem:[#allocation7 + $0x1f8] sm:$0xff] }
 0x3fb   : > { %3694 = vmatpush.msrb.mxu0 %v3345_v2  ;;  %3734 = vmatpush.msrb.mxu2 %v3346_v30  ;;  %v3809_v2 = vld [vmem:[#allocation7 + $0x150] sm:$0xff]  ;;  %v3835_v30 = vld [vmem:[#allocation7 + $0x220] sm:$0xff] }
 0x3fc   : > { %v6792_v31 = vpop.f32.mrf.mxu2  ;;  %3983 = vmatpush.msra.mxu1 %v3821_v58  ;;  %v3788_v58 = vld [vmem:[#allocation7 + $0xa8] sm:$0xff] }
 0x3fd   : > { %3695 = vmatpush.msrb.mxu0 %v3339_v29  ;;  %3735 = vmatpush.msrb.mxu2 %v3340_v32 }
 0x3fe   : > { %v6796_v41 = vpop.f32.mrf.mxu0  ;;  %3984 = vmatpush.msra.mxu1 %v3819_v5  ;;  %v3824_v5 = vld [vmem:[#allocation7 + $0x1c8] sm:$0xff] }
 0x3ff   : > { %3696 = vmatpush.msrb.mxu0 %v3333_v27  ;;  %3736 = vmatpush.msrb.mxu2 %v3334_v49  ;;  %v3873_v27 = vld [vmem:[#allocation7 + $0x350] sm:$0xff] }
 0x400   : > { %3697 = vmatmul.f32.vlgmr.msrb.gmra.mxu0 %v6764_v43  ;;  %3737 = vmatmul.f32.vlgmr.msrb.gmra.mxu2 %v6764_v43  ;;  %v3889_v43 = vld [vmem:[#allocation7 + $0x3d0] sm:$0xff] }
 0x401   : > { %3959 = vmatpush.msra.mxu0 %v3797_v8  ;;  %3999 = vmatpush.msra.mxu2 %v3861_v36  ;;  %v3769_v49 = vld [vmem:[#allocation7 + $0x10] sm:$0xff]  ;;  %v3807_v8 = vld [vmem:[#allocation7 + $0x140] sm:$0xff] }
 0x402   : > { %4021 = vmatpush.msra.mxu3 %v3889_v43  ;;  %3985 = vmatpush.msra.mxu1 %v3817_v59  ;;  %v3865_v43 = vld [vmem:[#allocation7 + $0x310] sm:$0xff]  ;;  %v3822_v59 = vld [vmem:[#allocation7 + $0x1b8] sm:$0xff] }
 0x403   : > { %3960 = vmatpush.msra.mxu0 %v3795_v37  ;;  %4000 = vmatpush.msra.mxu2 %v3859_v12  ;;  %v3833_v37 = vld [vmem:[#allocation7 + $0x210] sm:$0xff]  ;;  %v3871_v12 = vld [vmem:[#allocation7 + $0x340] sm:$0xff] }
 0x404   : > { %4022 = vmatpush.msra.mxu3 %v3887_v19  ;;  %3986 = vmatpush.msra.mxu1 %v3815_v10  ;;  %v6800_v6 = vpop.f32.mrf.mxu2  ;;  %v3790_v19 = vld [vmem:[#allocation7 + $0xb8] sm:$0xff]  ;;  %v3820_v10 = vld [vmem:[#allocation7 + $0x1a8] sm:$0xff] }
 0x405   : > { %3961 = vmatpush.msra.mxu0 %v3793_v7  ;;  %4001 = vmatpush.msra.mxu2 %v3857_v48  ;;  %v3805_v7 = vld [vmem:[#allocation7 + $0x130] sm:$0xff] }
 0x406   : > { %4023 = vmatpush.msra.mxu3 %v3885_v63  ;;  %3987 = vmatpush.msra.mxu1 %v3813_v40  ;;  %v3869_v48 = vld [vmem:[#allocation7 + $0x330] sm:$0xff]  ;;  %v3818_v40 = vld [vmem:[#allocation7 + $0x198] sm:$0xff] }
 0x407   : > { %3962 = vmatpush.msra.mxu0 %v3791_v62  ;;  %4002 = vmatpush.msra.mxu2 %v3855_v17  ;;  %v3796_v62 = vld [vmem:[#allocation7 + $0xe8] sm:$0xff]  ;;  %v3801_v17 = vld [vmem:[#allocation7 + $0x110] sm:$0xff] }
 0x408   : > { %4024 = vmatpush.msra.mxu3 %v3883_v15  ;;  %3988 = vmatpush.msra.mxu1 %v3811_v3  ;;  %v3921_v63 = vld [vmem:[#allocation7 + $0x4d0] sm:$0xff]  ;;  %v3778_v3 = vld [vmem:[#allocation7 + $0x58] sm:$0xff] }
 0x409   : > { %3963 = vmatpush.msra.mxu0 %v3789_v16  ;;  %4003 = vmatpush.msra.mxu2 %v3853_v60  ;;  %v3286_v21 = vpop.f32.mrf.mxu1  ;;  %v3794_v16 = vld [vmem:[#allocation7 + $0xd8] sm:$0xff]  ;;  %v3799_v60 = vld [vmem:[#allocation7 + $0x100] sm:$0xff]  ;;  %v3957_v15 = vld [vmem:[#allocation7 + $0x5f0] sm:$0xff] }
 0x40a   : > { %4025 = vmatpush.msra.mxu3 %v3881_v18  ;;  %3989 = vmatpush.msra.mxu1 %v3809_v2  ;;  %v3917_v18 = vld [vmem:[#allocation7 + $0x4b0] sm:$0xff]  ;;  %v3947_v2 = vld [vmem:[#allocation7 + $0x5a0] sm:$0xff] }
 0x40b   : > { %3964 = vmatpush.msra.mxu0 %v3787_v55  ;;  %4004 = vmatpush.msra.mxu2 %v3851_v20  ;;  %v3863_v55 = vld [vmem:[#allocation7 + $0x300] sm:$0xff]  ;;  %v3925_v20 = vld [vmem:[#allocation7 + $0x4f0] sm:$0xff] }
 0x40c   : > { %4026 = vmatpush.msra.mxu3 %v3879_v47  ;;  %3990 = vmatpush.msra.mxu1 %v3807_v8  ;;  %v3953_v47 = vld [vmem:[#allocation7 + $0x5d0] sm:$0xff] }
 0x40d   : > { %3965 = vmatpush.msra.mxu0 %v3785_v0  ;;  %4005 = vmatpush.msra.mxu2 %v3849_v56  ;;  %v3792_v0 = vld [vmem:[#allocation7 + $0xc8] sm:$0xff]  ;;  %v3923_v56 = vld [vmem:[#allocation7 + $0x4e0] sm:$0xff] }
 0x40e   : > { %4027 = vmatpush.msra.mxu3 %v3877_v11  ;;  %3991 = vmatpush.msra.mxu1 %v3805_v7  ;;  %v3951_v11 = vld [vmem:[#allocation7 + $0x5c0] sm:$0xff]  ;;  %v3772_v7 = vld [vmem:[#allocation7 + $0x28] sm:$0xff] }
 0x40f   : > { %3966 = vmatpush.msra.mxu0 %v3783_v23  ;;  %4006 = vmatpush.msra.mxu2 %v3847_v46  ;;  %v3326_v29 = vpop.f32.mrf.mxu3  ;;  %v3828_v23 = vld [vmem:[#allocation7 + $0x1e8] sm:$0xff]  ;;  %v3826_v46 = vld [vmem:[#allocation7 + $0x1d8] sm:$0xff] }
 0x410   : > { %4028 = vmatpush.msra.mxu3 %v3875_v34  ;;  %3992 = vmatpush.msra.mxu1 %v3803_v42  ;;  %v3949_v34 = vld [vmem:[#allocation7 + $0x5b0] sm:$0xff] }
 0x411   : > { %3967 = vmatpush.msra.mxu0 %v3781_v24  ;;  %4007 = vmatpush.msra.mxu2 %v3845_v4  ;;  %v3786_v24 = vld [vmem:[#allocation7 + $0x98] sm:$0xff]  ;;  %v3919_v4 = vld [vmem:[#allocation7 + $0x4c0] sm:$0xff]  ;;  %v3905_v42 = vld [vmem:[#allocation7 + $0x450] sm:$0xff] }
 0x412   : > { %4029 = vmatpush.msra.mxu3 %v3873_v27  ;;  %3993 = vmatpush.msra.mxu1 %v3801_v17  ;;  %v3808_v17 = vld [vmem:[#allocation7 + $0x148] sm:$0xff] }
 0x413   : > { %3968 = vmatpush.msra.mxu0 %v3779_v35  ;;  %4008 = vmatpush.msra.mxu2 %v3843_v33  ;;  %v3784_v35 = vld [vmem:[#allocation7 + $0x88] sm:$0xff]  ;;  %v3955_v33 = vld [vmem:[#allocation7 + $0x5e0] sm:$0xff] }
 0x414   : > { %4030 = vmatpush.msra.mxu3 %v3871_v12  ;;  %3994 = vmatpush.msra.mxu1 %v3799_v60  ;;  %v3907_v12 = vld [vmem:[#allocation7 + $0x460] sm:$0xff]  ;;  %v3768_v60 = vld [vmem:[#allocation7 + $0x8] sm:$0xff] }
 0x415   : > { %3969 = vmatpush.msra.mxu0 %v3777_v52  ;;  %4009 = vmatpush.msra.mxu2 %v3841_v45  ;;  %v3782_v52 = vld [vmem:[#allocation7 + $0x78] sm:$0xff]  ;;  %v3915_v45 = vld [vmem:[#allocation7 + $0x4a0] sm:$0xff] }
 0x416   : > { %4031 = vmatpush.msra.mxu3 %v3869_v48  ;;  %4059 = vmatpush.msrb.mxu1 %v3957_v15  ;;  %v3860_v15 = vld [vmem:[#allocation7 + $0x2e8] sm:$0xff] }
 0x417   : > { %3970 = vmatpush.msra.mxu0 %v3775_v50  ;;  %4010 = vmatpush.msra.mxu2 %v3839_v53  ;;  %v3780_v50 = vld [vmem:[#allocation7 + $0x68] sm:$0xff]  ;;  %v3913_v53 = vld [vmem:[#allocation7 + $0x490] sm:$0xff] }
 0x418   : > { %v3266_v1 = vpop.f32.mrf.mxu0  ;;  %4032 = vmatpush.msra.mxu3 %v3867_v54  ;;  %4060 = vmatpush.msrb.mxu1 %v3955_v33  ;;  %v3943_v54 = vld [vmem:[#allocation7 + $0x580] sm:$0xff] }
 0x419   : > { %v6802_v9 = vadd.f32 %v3286_v21, %v3266_v1  ;;  %3971 = vmatpush.msra.mxu0 %v3773_v39  ;;  %4011 = vmatpush.msra.mxu2 %v3837_v51  ;;  %v3816_v39 = vld [vmem:[#allocation7 + $0x188] sm:$0xff]  ;;  %v3911_v51 = vld [vmem:[#allocation7 + $0x480] sm:$0xff]  ;;  %v3814_v1 = vld [vmem:[#allocation7 + $0x178] sm:$0xff] }
 0x41a   : > { %4033 = vmatpush.msra.mxu3 %v3865_v43  ;;  %4061 = vmatpush.msrb.mxu1 %v3953_v47  ;;  %v3776_v21 = vld [vmem:[#allocation7 + $0x48] sm:$0xff]  ;;  %v3903_v43 = vld [vmem:[#allocation7 + $0x440] sm:$0xff] }
 0x41b   : > { %3972 = vmatpush.msra.mxu0 %v3771_v57  ;;  %4012 = vmatpush.msra.mxu2 %v3835_v30  ;;  %v3909_v57 = vld [vmem:[#allocation7 + $0x470] sm:$0xff]  ;;  %v3774_v30 = vld [vmem:[#allocation7 + $0x38] sm:$0xff]  ;;  %v3927_v33 = vld [vmem:[#allocation7 + $0x500] sm:$0xff] }
 0x41c   : > { %4034 = vmatpush.msra.mxu3 %v3863_v55  ;;  %4062 = vmatpush.msrb.mxu1 %v3951_v11  ;;  %v3852_v47 = vld [vmem:[#allocation7 + $0x2a8] sm:$0xff] }
 0x41d   : > { %3973 = vmatpush.msra.mxu0 %v3769_v49  ;;  %4013 = vmatpush.msra.mxu2 %v3833_v37  ;;  %v3127_v49 = vadd.f32 %v6786_v61, %v6788_v13  ;;  %v3167_v61 = vadd.f32 %v6790_v14, %v6792_v31  ;;  %v3901_v14 = vld [vmem:[#allocation7 + $0x430] sm:$0xff]  ;;  %v3939_v31 = vld [vmem:[#allocation7 + $0x560] sm:$0xff]  ;;  %v3848_v11 = vld [vmem:[#allocation7 + $0x288] sm:$0xff] }
 0x41e   : > { %v3306_v32 = vpop.f32.mrf.mxu2  ;;  %4099 = vmatpush.msrb.mxu3 %v3830_v28  ;;  %4063 = vmatpush.msrb.mxu1 %v3949_v34  ;;  %v3899_v28 = vld [vmem:[#allocation7 + $0x420] sm:$0xff] }
 0x41f   : > { %v6804_v36 = vadd.f32 %v3326_v29, %v3306_v32  ;;  %3974 = vmatpush.msra.mxu0 %v3767_v38  ;;  %4014 = vmatpush.msra.mxu2 %v3831_v26  ;;  %v3812_v29 = vld [vmem:[#allocation7 + $0x168] sm:$0xff]  ;;  %v3945_v38 = vld [vmem:[#allocation7 + $0x590] sm:$0xff] }
 0x420   : > { %4100 = vmatpush.msrb.mxu3 %v3828_v23  ;;  %4064 = vmatpush.msrb.mxu1 %v3947_v2  ;;  %v3897_v23 = vld [vmem:[#allocation7 + $0x410] sm:$0xff] }
 0x421   : > { %4079 = vmatpush.msrb.mxu2 %v3798_v44  ;;  %4039 = vmatpush.msrb.mxu0 %v3925_v20  ;;  %v3810_v44 = vld [vmem:[#allocation7 + $0x158] sm:$0xff] }
 0x422   : > { %4101 = vmatpush.msrb.mxu3 %v3826_v46  ;;  %4065 = vmatpush.msrb.mxu1 %v3945_v38  ;;  %v3806_v20 = vld [vmem:[#allocation7 + $0x138] sm:$0xff]  ;;  %v3800_v46 = vld [vmem:[#allocation7 + $0x108] sm:$0xff] }
 0x423   : > { %4080 = vmatpush.msrb.mxu2 %v3796_v62  ;;  %4040 = vmatpush.msrb.mxu0 %v3923_v56  ;;  %v3770_v62 = vld [vmem:[#allocation7 + $0x18] sm:$0xff]  ;;  %v3937_v56 = vld [vmem:[#allocation7 + $0x550] sm:$0xff] }
 0x424   : > { %4102 = vmatpush.msrb.mxu3 %v3824_v5  ;;  %4066 = vmatpush.msrb.mxu1 %v3943_v54  ;;  %v3862_v5 = vld [vmem:[#allocation7 + $0x2f8] sm:$0xff] }
 0x425   : > { %4081 = vmatpush.msrb.mxu2 %v3794_v16  ;;  %4041 = vmatpush.msrb.mxu0 %v3921_v63  ;;  %v3941_v16 = vld [vmem:[#allocation7 + $0x570] sm:$0xff]  ;;  %v3895_v63 = vld [vmem:[#allocation7 + $0x400] sm:$0xff]  ;;  %v3958_v54 = vld [vmem:[#allocation7 + $0x5f8] sm:$0xff] }
 0x426   : > { %4103 = vmatpush.msrb.mxu3 %v3822_v59  ;;  %4067 = vmatpush.msrb.mxu1 %v3941_v16  ;;  %v3858_v59 = vld [vmem:[#allocation7 + $0x2d8] sm:$0xff] }
 0x427   : > { %4082 = vmatpush.msrb.mxu2 %v3792_v0  ;;  %4042 = vmatpush.msrb.mxu0 %v3919_v4  ;;  %v3804_v0 = vld [vmem:[#allocation7 + $0x128] sm:$0xff]  ;;  %v3931_v4 = vld [vmem:[#allocation7 + $0x520] sm:$0xff]  ;;  %v3954_v16 = vld [vmem:[#allocation7 + $0x5d8] sm:$0xff] }
 0x428   : > { %4104 = vmatpush.msrb.mxu3 %v3820_v10  ;;  %4068 = vmatpush.msrb.mxu1 %v3939_v31  ;;  %v3854_v10 = vld [vmem:[#allocation7 + $0x2b8] sm:$0xff]  ;;  %v3952_v31 = vld [vmem:[#allocation7 + $0x5c8] sm:$0xff] }
 0x429   : > { %4083 = vmatpush.msrb.mxu2 %v3790_v19  ;;  %4043 = vmatpush.msrb.mxu0 %v3917_v18  ;;  %v3802_v19 = vld [vmem:[#allocation7 + $0x118] sm:$0xff]  ;;  %v3856_v18 = vld [vmem:[#allocation7 + $0x2c8] sm:$0xff] }
 0x42a   : > { %4105 = vmatpush.msrb.mxu3 %v3818_v40  ;;  %4069 = vmatpush.msrb.mxu1 %v3937_v56  ;;  %v3850_v40 = vld [vmem:[#allocation7 + $0x298] sm:$0xff] }
 0x42b   : > { %4084 = vmatpush.msrb.mxu2 %v3788_v58  ;;  %4044 = vmatpush.msrb.mxu0 %v3915_v45  ;;  %v3558_v32 = vpop.f32.mrf.mxu1  ;;  %v3935_v58 = vld [vmem:[#allocation7 + $0x540] sm:$0xff]  ;;  %v3892_v45 = vld [vmem:[#allocation7 + $0x3e8] sm:$0xff]  ;;  %v3950_v56 = vld [vmem:[#allocation7 + $0x5b8] sm:$0xff] }
 0x42c   : > { %4106 = vmatpush.msrb.mxu3 %v3816_v39  ;;  %4070 = vmatpush.msrb.mxu1 %v3935_v58  ;;  %v3846_v39 = vld [vmem:[#allocation7 + $0x278] sm:$0xff]  ;;  %v3868_v58 = vld [vmem:[#allocation7 + $0x328] sm:$0xff] }
 0x42d   : > { %4085 = vmatpush.msrb.mxu2 %v3786_v24  ;;  %4045 = vmatpush.msrb.mxu0 %v3913_v53  ;;  %v3933_v24 = vld [vmem:[#allocation7 + $0x530] sm:$0xff]  ;;  %v3888_v53 = vld [vmem:[#allocation7 + $0x3c8] sm:$0xff] }
 0x42e   : > { %4107 = vmatpush.msrb.mxu3 %v3814_v1  ;;  %4071 = vmatpush.msrb.mxu1 %v3933_v24  ;;  %v3207_v1 = vadd.f32 %v6794_v22, %v6796_v41  ;;  %v3247_v22 = vadd.f32 %v6798_v25, %v6800_v6  ;;  %v3836_v25 = vld [vmem:[#allocation7 + $0x228] sm:$0xff]  ;;  %v3874_v6 = vld [vmem:[#allocation7 + $0x358] sm:$0xff] }
 0x42f   : > { %4086 = vmatpush.msrb.mxu2 %v3784_v35  ;;  %4046 = vmatpush.msrb.mxu0 %v3911_v51  ;;  %v3929_v35 = vld [vmem:[#allocation7 + $0x510] sm:$0xff]  ;;  %v3884_v51 = vld [vmem:[#allocation7 + $0x3a8] sm:$0xff]  ;;  %v3866_v24 = vld [vmem:[#allocation7 + $0x318] sm:$0xff] }
 0x430   : > { %4108 = vmatpush.msrb.mxu3 %v3812_v29  ;;  %4072 = vmatpush.msrb.mxu1 %v3931_v4  ;;  %v3844_v29 = vld [vmem:[#allocation7 + $0x268] sm:$0xff] }
 0x431   : > { %4087 = vmatpush.msrb.mxu2 %v3782_v52  ;;  %4047 = vmatpush.msrb.mxu0 %v3909_v57  ;;  %v3598_v26 = vpop.f32.mrf.mxu3  ;;  %v3894_v52 = vld [vmem:[#allocation7 + $0x3f8] sm:$0xff]  ;;  %v3944_v4 = vld [vmem:[#allocation7 + $0x588] sm:$0xff] }
 0x432   : > { %4109 = vmatpush.msrb.mxu3 %v3810_v44  ;;  %4073 = vmatpush.msrb.mxu1 %v3929_v35  ;;  %v3904_v35 = vld [vmem:[#allocation7 + $0x448] sm:$0xff] }
 0x433   : > { %4088 = vmatpush.msrb.mxu2 %v3780_v50  ;;  %4048 = vmatpush.msrb.mxu0 %v3907_v12  ;;  %v3890_v50 = vld [vmem:[#allocation7 + $0x3d8] sm:$0xff] }
 0x434   : > { %4110 = vmatpush.msrb.mxu3 %v3808_v17  ;;  %4074 = vmatpush.msrb.mxu1 %v3927_v33  ;;  %v3956_v17 = vld [vmem:[#allocation7 + $0x5e8] sm:$0xff] }
 0x435   : > { %4089 = vmatpush.msrb.mxu2 %v3778_v3  ;;  %4049 = vmatpush.msrb.mxu0 %v3905_v42  ;;  %v3886_v3 = vld [vmem:[#allocation7 + $0x3b8] sm:$0xff]  ;;  %v3920_v42 = vld [vmem:[#allocation7 + $0x4c8] sm:$0xff] }
 0x436   : > { %4111 = vmatpush.msrb.mxu3 %v3806_v20  ;;  %v3872_v20 = vld [vmem:[#allocation7 + $0x348] sm:$0xff] }
 0x437   : > { %4090 = vmatpush.msrb.mxu2 %v3776_v21  ;;  %4050 = vmatpush.msrb.mxu0 %v3903_v43  ;;  %v3916_v43 = vld [vmem:[#allocation7 + $0x4a8] sm:$0xff] }
 0x438   : > { %4112 = vmatpush.msrb.mxu3 %v3804_v0  ;;  %v3832_v0 = vld [vmem:[#allocation7 + $0x208] sm:$0xff] }
 0x439   : > { %4091 = vmatpush.msrb.mxu2 %v3774_v30  ;;  %4051 = vmatpush.msrb.mxu0 %v3901_v14  ;;  %v3926_v30 = vld [vmem:[#allocation7 + $0x4f8] sm:$0xff]  ;;  %v3940_v33 = vld [vmem:[#allocation7 + $0x568] sm:$0xff] }
 0x43a   : > { %v3538_v27 = vpop.f32.mrf.mxu0  ;;  %4113 = vmatpush.msrb.mxu3 %v3802_v19  ;;  %v3914_v14 = vld [vmem:[#allocation7 + $0x498] sm:$0xff] }
 0x43b   : > { %v3559_v8 = vadd.f32 %v3558_v32, %v3538_v27  ;;  %4092 = vmatpush.msrb.mxu2 %v3772_v7  ;;  %4052 = vmatpush.msrb.mxu0 %v3899_v28  ;;  %v3882_v32 = vld [vmem:[#allocation7 + $0x398] sm:$0xff]  ;;  %v3924_v27 = vld [vmem:[#allocation7 + $0x4e8] sm:$0xff] }
 0x43c   : > { %4114 = vmatpush.msrb.mxu3 %v3800_v46  ;;  %v3840_v7 = vld [vmem:[#allocation7 + $0x248] sm:$0xff]  ;;  %v3910_v19 = vld [vmem:[#allocation7 + $0x478] sm:$0xff] }
 0x43d   : > { %v6808_v37 = vmul.f32 %v3559_v8, %v3127_v49  ;;  %4093 = vmatpush.msrb.mxu2 %v3770_v62  ;;  %4053 = vmatpush.msrb.mxu0 %v3897_v23  ;;  %v3842_v49 = vld [vmem:[#allocation7 + $0x258] sm:$0xff]  ;;  %v3880_v8 = vld [vmem:[#allocation7 + $0x388] sm:$0xff] }
 0x43e   : > { %v3918_v62 = vld [vmem:[#allocation7 + $0x4b8] sm:$0xff]  ;;  %v3912_v28 = vld [vmem:[#allocation7 + $0x488] sm:$0xff] }
 0x43f   : > { %3975 = vmatmul.f32.vlgmr.msra.gmra.mxu0 %v6808_v37  ;;  %4094 = vmatpush.msrb.mxu2 %v3768_v60  ;;  %v3834_v60 = vld [vmem:[#allocation7 + $0x218] sm:$0xff]  ;;  %v3948_v23 = vld [vmem:[#allocation7 + $0x5a8] sm:$0xff] }
 0x440   : > { %v3578_v48 = vpop.f32.mrf.mxu2  ;;  %4054 = vmatpush.msrb.mxu0 %v3895_v63  ;;  %v3908_v46 = vld [vmem:[#allocation7 + $0x468] sm:$0xff]  ;;  %v3946_v63 = vld [vmem:[#allocation7 + $0x598] sm:$0xff] }
 0x441   : > { %v3599_v13 = vadd.f32 %v3598_v26, %v3578_v48  ;;  %v3922_v26 = vld [vmem:[#allocation7 + $0x4d8] sm:$0xff] }
 0x442   : > { %4119 = vmatpush.msra.mxu0 %v3862_v5  ;;  %v3878_v48 = vld [vmem:[#allocation7 + $0x378] sm:$0xff] }
 0x443   : > { %v6813_v55 = vmul.f32 %v3599_v13, %v3167_v61  ;;  %v3838_v61 = vld [vmem:[#allocation7 + $0x238] sm:$0xff]  ;;  %v3876_v13 = vld [vmem:[#allocation7 + $0x368] sm:$0xff] }
 0x444   : > { %4120 = vmatpush.msra.mxu0 %v3860_v15  ;;  %v3906_v5 = vld [vmem:[#allocation7 + $0x458] sm:$0xff]  ;;  %v3864_v15 = vld [vmem:[#allocation7 + $0x308] sm:$0xff] }
 0x445   : > { %3995 = vmatmul.f32.vlgmr.msra.gmra.mxu1 %v6813_v55 }
 0x446   : > { %4121 = vmatpush.msra.mxu0 %v3858_v59  ;;  %4139 = vmatpush.msra.mxu1 %v3894_v52  ;;  %v3902_v59 = vld [vmem:[#allocation7 + $0x438] sm:$0xff] }
 0x447   : > { %v3938_v52 = vld [vmem:[#allocation7 + $0x558] sm:$0xff] }
 0x448   : > { %4122 = vmatpush.msra.mxu0 %v3856_v18  ;;  %4140 = vmatpush.msra.mxu1 %v3892_v45  ;;  %v3900_v18 = vld [vmem:[#allocation7 + $0x428] sm:$0xff] }
 0x449   : > { %v3936_v45 = vld [vmem:[#allocation7 + $0x548] sm:$0xff] }
 0x44a   : > { %4123 = vmatpush.msra.mxu0 %v3854_v10  ;;  %4141 = vmatpush.msra.mxu1 %v3890_v50  ;;  %v3898_v10 = vld [vmem:[#allocation7 + $0x418] sm:$0xff] }
 0x44c   : > { %4124 = vmatpush.msra.mxu0 %v3852_v47  ;;  %4142 = vmatpush.msra.mxu1 %v3888_v53  ;;  %v3934_v53 = vld [vmem:[#allocation7 + $0x538] sm:$0xff] }
 0x44d   : > { %v3638_v34 = vpop.f32.mrf.mxu1 }
 0x44e   : > { %4125 = vmatpush.msra.mxu0 %v3850_v40  ;;  %4143 = vmatpush.msra.mxu1 %v3886_v3  ;;  %v3896_v40 = vld [vmem:[#allocation7 + $0x408] sm:$0xff] }
 0x450   : > { %4126 = vmatpush.msra.mxu0 %v3848_v11  ;;  %4144 = vmatpush.msra.mxu1 %v3884_v51  ;;  %v3930_v51 = vld [vmem:[#allocation7 + $0x518] sm:$0xff] }
 0x452   : > { %4127 = vmatpush.msra.mxu0 %v3846_v39  ;;  %4145 = vmatpush.msra.mxu1 %v3882_v32  ;;  %v3932_v39 = vld [vmem:[#allocation7 + $0x528] sm:$0xff] }
 0x453   : > { %v3678_v12 = vpop.f32.mrf.mxu3 }
 0x454   : > { %4128 = vmatpush.msra.mxu0 %v3844_v29  ;;  %4146 = vmatpush.msra.mxu1 %v3880_v8 }
 0x456   : > { %4129 = vmatpush.msra.mxu0 %v3842_v49  ;;  %4147 = vmatpush.msra.mxu1 %v3878_v48 }
 0x458   : > { %4130 = vmatpush.msra.mxu0 %v3840_v7  ;;  %4148 = vmatpush.msra.mxu1 %v3876_v13 }
 0x45a   : > { %4131 = vmatpush.msra.mxu0 %v3838_v61  ;;  %4149 = vmatpush.msra.mxu1 %v3874_v6 }
 0x45c   : > { %v3618_v21 = vpop.f32.mrf.mxu0  ;;  %4132 = vmatpush.msra.mxu0 %v3836_v25  ;;  %4150 = vmatpush.msra.mxu1 %v3872_v20 }
 0x45d   : > { %v3639_v57 = vadd.f32 %v3638_v34, %v3618_v21 }
 0x45e   : > { %4133 = vmatpush.msra.mxu0 %v3834_v60 }
 0x45f   : > { %v6818_v2 = vmul.f32 %v3639_v57, %v3207_v1  ;;  %v3928_v57 = vld [vmem:[#allocation7 + $0x508] sm:$0xff] }
 0x460   : > { %4134 = vmatpush.msra.mxu0 %v3832_v0 }
 0x461   : > { %4015 = vmatmul.f32.vlgmr.msra.gmra.mxu2 %v6818_v2 }
 0x462   : > { %4159 = vmatpush.msra.mxu2 %v3926_v30  ;;  %v3658_v38 = vpop.f32.mrf.mxu2 }
 0x463   : > { %v3679_v41 = vadd.f32 %v3678_v12, %v3658_v38 }
 0x464   : > { %4160 = vmatpush.msra.mxu2 %v3924_v27 }
 0x465   : > { %v6823_v44 = vmul.f32 %v3679_v41, %v3247_v22 }
 0x466   : > { %4161 = vmatpush.msra.mxu2 %v3922_v26 }
 0x467   : > { %4035 = vmatmul.f32.vlgmr.msra.gmra.mxu3 %v6823_v44 }
 0x468   : > { %4162 = vmatpush.msra.mxu2 %v3920_v42  ;;  %4179 = vmatpush.msra.mxu3 %v3958_v54 }
 0x469   : > { %4095 = vmatmul.f32.vlgmr.msrb.gmra.mxu2 %v6808_v37  ;;  %v3870_v37 = vld [vmem:[#allocation7 + $0x338] sm:$0xff] }
 0x46a   : > { %4163 = vmatpush.msra.mxu2 %v3918_v62  ;;  %4180 = vmatpush.msra.mxu3 %v3956_v17 }
 0x46b   : > { %4151 = vmatpush.msra.mxu1 %v3870_v37 }
 0x46c   : > { %4164 = vmatpush.msra.mxu2 %v3916_v43  ;;  %4181 = vmatpush.msra.mxu3 %v3954_v16 }
 0x46d   : > { %4152 = vmatpush.msra.mxu1 %v3868_v58 }
 0x46e   : > { %4165 = vmatpush.msra.mxu2 %v3914_v14  ;;  %4182 = vmatpush.msra.mxu3 %v3952_v31 }
 0x46f   : > { %4115 = vmatmul.f32.vlgmr.msrb.gmra.mxu3 %v6813_v55  ;;  %v3942_v55 = vld [vmem:[#allocation7 + $0x578] sm:$0xff]  ;;  %4153 = vmatpush.msra.mxu1 %v3866_v24  ;;  %v3718_v47 = vpop.f32.mrf.mxu1 }
 0x470   : > { %4166 = vmatpush.msra.mxu2 %v3912_v28  ;;  %4183 = vmatpush.msra.mxu3 %v3950_v56 }
 0x471   : > { %4154 = vmatpush.msra.mxu1 %v3864_v15 }
 0x472   : > { %4167 = vmatpush.msra.mxu2 %v3910_v19  ;;  %4184 = vmatpush.msra.mxu3 %v3948_v23 }
 0x474   : > { %4168 = vmatpush.msra.mxu2 %v3908_v46  ;;  %4185 = vmatpush.msra.mxu3 %v3946_v63 }
 0x475   : > { %v3758_v34 = vpop.f32.mrf.mxu3 }
 0x476   : > { %4169 = vmatpush.msra.mxu2 %v3906_v5  ;;  %4186 = vmatpush.msra.mxu3 %v3944_v4 }
 0x478   : > { %4170 = vmatpush.msra.mxu2 %v3904_v35  ;;  %4187 = vmatpush.msra.mxu3 %v3942_v55 }
 0x47a   : > { %4171 = vmatpush.msra.mxu2 %v3902_v59  ;;  %4188 = vmatpush.msra.mxu3 %v3940_v33 }
 0x47c   : > { %4172 = vmatpush.msra.mxu2 %v3900_v18  ;;  %4189 = vmatpush.msra.mxu3 %v3938_v52 }
 0x47d   : > { %v3698_v50 = vpop.f32.mrf.mxu0 }
 0x47e   : > { %v3719_v11 = vadd.f32 %v3718_v47, %v3698_v50  ;;  %4173 = vmatpush.msra.mxu2 %v3898_v10  ;;  %4190 = vmatpush.msra.mxu3 %v3936_v45 }
 0x480   : > { %v3765_v3 = vmul.f32 %v3719_v11, %v6802_v9  ;;  %4174 = vmatpush.msra.mxu2 %v3896_v40  ;;  %4191 = vmatpush.msra.mxu3 %v3934_v53 }
 0x482   : > { %4055 = vmatmul.f32.vlgmr.msrb.gmra.mxu0 %v3765_v3  ;;  %4175 = vmatmul.f32.vlgmr.msra.gmra.mxu2 %v3765_v3 }
 0x483   : > { %v3738_v21 = vpop.f32.mrf.mxu2  ;;  %4192 = vmatpush.msra.mxu3 %v3932_v39 }
 0x484   : > { %v3759_v1 = vadd.f32 %v3758_v34, %v3738_v21 }
 0x485   : > { %4193 = vmatpush.msra.mxu3 %v3930_v51 }
 0x486   : > { %v3766_v30 = vmul.f32 %v3759_v1, %v6804_v36 }
 0x487   : > { %4194 = vmatpush.msra.mxu3 %v3928_v57 }
 0x488   : > { %4075 = vmatmul.f32.vlgmr.msrb.gmra.mxu1 %v3766_v30  ;;  %4195 = vmatmul.f32.vlgmr.msra.gmra.mxu3 %v3766_v30 }
 0x48a   : > { %4135 = vmatmul.f32.vlgmr.msra.gmra.mxu0 %v6818_v2 }
 0x490   : > { %4155 = vmatmul.f32.vlgmr.msra.gmra.mxu1 %v6823_v44 }
 0x4bc   : > { %v3976_v9 = vpop.f32.mrf.mxu0 }
 0x4c2   : > { %v3996_v29 = vpop.f32.mrf.mxu1 }
 0x4c3   : > { %v3997_v49 = vadd.f32 %v3996_v29, %v3976_v9 }
 0x4e4   : > { %v4016_v32 = vpop.f32.mrf.mxu2 }
 0x4e5   : > { %v4017_v12 = vadd.f32 %v4016_v32, %v3997_v49 }
 0x4ea   : > { %v4036_v27 = vpop.f32.mrf.mxu3 }
 0x4eb   : > { %v4037_v38 = vadd.f32 %v4036_v27, %v4017_v12 }
 0x4ec   : > { %v4096_v41 = vpop.f32.mrf.mxu2 }
 0x4f2   : > { %v4116_v2 = vpop.f32.mrf.mxu3 }
 0x4f3   : > { %v4117_v48 = vadd.f32 %v4116_v2, %v4096_v41 }
 0x4ff   : > { %v4056_v8 = vpop.f32.mrf.mxu0 }
 0x500   : > { %v4057_v7 = vadd.f32 %v4056_v8, %v4037_v38 }
 0x505   : > { %v4076_v36 = vpop.f32.mrf.mxu1  ;;  %v4176_v61 = vpop.f32.mrf.mxu2 }
 0x506   : > { %v4077_v22 = vadd.f32 %v4076_v36, %v4057_v7 }
 0x507   : > { %v4136_v26 = vpop.f32.mrf.mxu0 }
 0x508   : > { %4199 = vst [vmem:[%s305_s21] sm:$0xff] %v4077_v22  ;;  %v4137_v44 = vadd.f32 %v4136_v26, %v4117_v48 }
 0x50b   : > { %v4196_v62 = vpop.f32.mrf.mxu3 }
 0x50d   : > { %v4156_v42 = vpop.f32.mrf.mxu1 }
 0x50e   : > { %v4157_v54 = vadd.f32 %v4156_v42, %v4137_v44 }
 0x510   : > { %v4177_v13 = vadd.f32 %v4176_v61, %v4157_v54 }
 0x512   : > { %v4197_v17 = vadd.f32 %v4196_v62, %v4177_v13 }
 0x514   : > { %4200 = vst [vmem:[%s305_s21 + $0x8] sm:$0xff] %v4197_v17 }
 0x515 PF: > { %s17_s20 = sadd.s32 1, %s4529_s20   ;;  %s7253_s18 = smov %s4525_s19 }
 0x516   : > { %p14_p8 = scmp.ge.s32.totalorder %s17_s20, 4   ;;  %s7254_s19 = smov %s7256_s30 }
 0x518   :  { %16 = sbr.rel (!%p14_p8) target bundleno = 3 (0x3), region = 99 }
 0x51d   :  { %4222 = vsyncpa [#allocation4], 1 }
 0x51e   :  { %4224 = vsyncpa [#allocation4 + $0x1], 1 }
 0x51f   :  { %4225 = vsyncpa [#allocation6], 1 }

</bundles_post_ra>
